<compile_context>
chip_gen: v7x
topology: tpu7x:2x2x1
jax: 0.10.0
libtpu: 0.0.40
codegen_flags: <defaults>
</compile_context>

<pallas_src>
import math

import jax
import jax.numpy as jnp
import numpy as np
from jax.experimental import pallas as pl
from jax.experimental.pallas import tpu as pltpu

# ---- model config (matches the PyTorch script) ----
D_MODEL = 200
NUM_GROUPS = 2
NUM_HEADS = 20
HEAD_DIM = D_MODEL // NUM_HEADS        # 10
DIM_FF = 400
NUM_LAYERS = 3
VOCAB_SIZE = 177
MAX_LEN = 99                            # forward does `x += pos_encoding` -> seq_len must be 99
KV_DIM = 2 * NUM_GROUPS * HEAD_DIM      # 40
LN_EPS = 1e-5
SCALE = HEAD_DIM ** (-0.5)

# lane-aligned packing widths
QKV_W = 384          # [wq*scale | pad | wkv | pad] : q at 0:200, kv at 256:296
KV_PAD = 128         # kv output padded 40 -> 128 lanes
REP_W = 4 * 256      # [k_g0 | v_g0 | k_g1 | v_g1], each block 256-lane aligned
LOGIT_PAD = 256      # logits padded 177 -> 256 lanes


# ----------------------------------------------------------------------------
# Hoisted constants (built once at import time)
# ----------------------------------------------------------------------------
def _pos_encoding_np():
    pos = np.arange(MAX_LEN, dtype=np.float32)[:, None]
    div = np.exp(np.arange(0, D_MODEL, 2, dtype=np.float32) * (-math.log(10000.0) / D_MODEL))
    pe = np.zeros((MAX_LEN, D_MODEL), np.float32)
    pe[:, 0::2] = np.sin(pos * div)
    pe[:, 1::2] = np.cos(pos * div)
    return pe


_POS_ENC = jnp.asarray(_pos_encoding_np())                       # (S, D) f32

# segmented head reduce/expand matrices (exact 0/1 -> bf16 is lossless)
_col_head = np.arange(D_MODEL) // HEAD_DIM
_M_NP = (_col_head[:, None] == np.arange(NUM_HEADS)[None, :]).astype(np.float32)
_SEG_REDUCE = jnp.asarray(_M_NP, dtype=jnp.bfloat16)             # (D, H)
_SEG_EXPAND = jnp.asarray(_M_NP.T, dtype=jnp.bfloat16)           # (H, D)

# fused kv -> replicated (k_g0 | v_g0 | k_g1 | v_g1) selection matrix, 256-aligned blocks.
# kv column layout (PyTorch chunk): k[:, g, d] = kv[:, g*HD + d], v[:, g, d] = kv[:, 2*HD + g*HD + d]
_rep_np = np.zeros((KV_PAD, REP_W), np.float32)
for _blk, _base in enumerate((0, NUM_GROUPS * HEAD_DIM,                    # k_g0, v_g0
                              HEAD_DIM, NUM_GROUPS * HEAD_DIM + HEAD_DIM)):  # k_g1, v_g1
    for _c in range(D_MODEL):
        _rep_np[_base + (_c % HEAD_DIM), _blk * 256 + _c] = 1.0
_REP_FUSED = jnp.asarray(_rep_np, dtype=jnp.bfloat16)            # (128, 1024)


# ----------------------------------------------------------------------------
# In-kernel building blocks (operate on one batch element: (S, ·) 2-D slabs)
# ----------------------------------------------------------------------------
def _layernorm(x, gamma, beta):
    mean = jnp.mean(x, axis=-1, keepdims=True)
    xc = x - mean
    var = jnp.mean(xc * xc, axis=-1, keepdims=True)
    return xc * jax.lax.rsqrt(var + LN_EPS) * gamma + beta


def _attend(x, wqkv_ref, rep_ref, segr_ref, sege_ref):
    """Grouped-query attention exactly as the reference computes it.

    Because q is never made head-major in the PyTorch code, `q @ k.transpose(-2,-1)`
    is a per-position (S as batch dim) score of shape (S, H, G); softmax is over the
    G=2 groups; output y[s, h*HD+d] = sum_g p[s,h,g] * v[s,g,d].
    Returns (y, kv_pad) with kv_pad = raw kv projection padded to 128 lanes.
    """
    xb = x.astype(jnp.bfloat16)
    proj = jnp.dot(xb, wqkv_ref[...], preferred_element_type=jnp.float32)    # (S, 384) f32
    q = proj[:, 0:D_MODEL]                       # already scaled by 1/sqrt(HD) (folded into wq)
    kv_pad = proj[:, 256:256 + KV_PAD]           # (S, 128), cols >= 40 are exactly zero

    # one fused bf16 selection matmul -> replicated k/v for both groups
    reps = jnp.dot(kv_pad.astype(jnp.bfloat16), rep_ref[...],
                   preferred_element_type=jnp.float32)                       # (S, 1024)
    k0 = reps[:, 0:D_MODEL]
    v0 = reps[:, 256:256 + D_MODEL]
    k1 = reps[:, 512:512 + D_MODEL]
    v1 = reps[:, 768:768 + D_MODEL]

    segr = segr_ref[...]                                                     # (D, H) bf16
    s0 = jnp.dot((q * k0).astype(jnp.bfloat16), segr, preferred_element_type=jnp.float32)
    s1 = jnp.dot((q * k1).astype(jnp.bfloat16), segr, preferred_element_type=jnp.float32)

    m = jnp.maximum(s0, s1)
    e0 = jnp.exp(s0 - m)
    e1 = jnp.exp(s1 - m)
    inv = pl.reciprocal(e0 + e1, approx=True)            # EUP, ~free

    sege = sege_ref[...]                                                     # (H, D) bf16
    w0 = jnp.dot((e0 * inv).astype(jnp.bfloat16), sege, preferred_element_type=jnp.float32)
    w1 = jnp.dot((e1 * inv).astype(jnp.bfloat16), sege, preferred_element_type=jnp.float32)
    y = w0 * v0 + w1 * v1
    return y, kv_pad


def _layer_tail(ctx_b, xres, wo_ref, w1_ref, w2_ref, small_ref):
    """out_proj + residual + LN1 + FFN(relu) + residual + LN2."""
    # TODO(synk): nn.Dropout(0.1) (train mode) has no deterministic equivalent;
    # implemented as identity (eval semantics).
    ln1g = small_ref[0:1, 0:D_MODEL]
    ln1b = small_ref[1:2, 0:D_MODEL]
    ln2g = small_ref[2:3, 0:D_MODEL]
    ln2b = small_ref[3:4, 0:D_MODEL]
    b1 = small_ref[4:5, :]
    b2 = small_ref[5:6, 0:D_MODEL]

    attn_out = jnp.dot(ctx_b, wo_ref[...], preferred_element_type=jnp.float32)
    h = _layernorm(attn_out + xres, ln1g, ln1b)
    ff = jnp.dot(h.astype(jnp.bfloat16), w1_ref[...],
                 preferred_element_type=jnp.float32) + b1
    ff = jnp.maximum(ff, 0.0)
    ff = jnp.dot(ff.astype(jnp.bfloat16), w2_ref[...],
                 preferred_element_type=jnp.float32) + b2
    return _layernorm(ff + h, ln2g, ln2b)


# ----------------------------------------------------------------------------
# Kernels (each invocation handles one batch element; grid=(B,), "parallel")
# ----------------------------------------------------------------------------
def _embed_attn_kernel(tok_ref, emb_ref, pos_ref, wqkv_ref, rep_ref, segr_ref, sege_ref,
                       x_out_ref, y_out_ref, kv_out_ref):
    """embedding (one-hot @ table) + positional add + layer-0 attention."""
    tok = tok_ref[0]                                                     # (S, 1) i32
    s_len = tok.shape[0]
    iota = jax.lax.broadcasted_iota(jnp.int32, (s_len, VOCAB_SIZE), 1)
    onehot = jnp.where(iota == tok, 1.0, 0.0).astype(jnp.bfloat16)       # (S, V)
    x = jnp.dot(onehot, emb_ref[...], preferred_element_type=jnp.float32) + pos_ref[...]
    x_out_ref[0] = x
    y, kv_pad = _attend(x, wqkv_ref, rep_ref, segr_ref, sege_ref)
    y_out_ref[0] = y.astype(jnp.bfloat16)
    kv_out_ref[0] = kv_pad


def _tail_attn_kernel(ctx_ref, xres_ref, wo_ref, w1_ref, w2_ref, small_ref,
                      wqkv_ref, rep_ref, segr_ref, sege_ref,
                      x_out_ref, y_out_ref, kv_out_ref):
    """tail of layer i + attention of layer i+1 fused in one call."""
    x_new = _layer_tail(ctx_ref[0], xres_ref[0], wo_ref, w1_ref, w2_ref, small_ref)
    x_out_ref[0] = x_new
    y, kv_pad = _attend(x_new, wqkv_ref, rep_ref, segr_ref, sege_ref)
    y_out_ref[0] = y.astype(jnp.bfloat16)
    kv_out_ref[0] = kv_pad


def _tail_head_kernel(ctx_ref, xres_ref, wo_ref, w1_ref, w2_ref, small_ref, wlm_ref,
                      logits_ref):
    """tail of the last layer + final LayerNorm + lm_head (lane-dense 256-wide logits)."""
    x_new = _layer_tail(ctx_ref[0], xres_ref[0], wo_ref, w1_ref, w2_ref, small_ref)
    lnfg = small_ref[6:7, 0:D_MODEL]
    lnfb = small_ref[7:8, 0:D_MODEL]
    h = _layernorm(x_new, lnfg, lnfb)
    logits_ref[0] = jnp.dot(h.astype(jnp.bfloat16), wlm_ref[...],
                            preferred_element_type=jnp.float32)


# ----------------------------------------------------------------------------
# pallas_call plumbing
# ----------------------------------------------------------------------------
def _bspec(arr, batched):
    shape = tuple(arr.shape)
    nd = len(shape)
    if batched:
        block = (1,) + shape[1:]
        imap = lambda b, _n=nd: (b,) + (0,) * (_n - 1)
    else:
        block = shape
        imap = lambda b, _n=nd: (0,) * _n
    return pl.BlockSpec(block, imap)


def _run(kernel, inputs, batched, out_shapes, batch):
    multi = isinstance(out_shapes, (list, tuple))
    out_list = tuple(out_shapes) if multi else (out_shapes,)
    in_specs = [_bspec(a, f) for a, f in zip(inputs, batched)]
    out_specs = tuple(_bspec(s, True) for s in out_list)
    return pl.pallas_call(
        kernel,
        grid=(batch,),
        in_specs=in_specs,
        out_specs=out_specs if multi else out_specs[0],
        out_shape=out_list if multi else out_list[0],
        compiler_params=pltpu.CompilerParams(dimension_semantics=("parallel",)),
    )(*inputs)


# ----------------------------------------------------------------------------
# Parameter setup (deterministic, synthetic) + one-time packing
# ----------------------------------------------------------------------------
def init_params(key):
    params = {}
    k_emb, key = jax.random.split(key)
    params["embedding"] = 0.02 * jax.random.normal(k_emb, (VOCAB_SIZE, D_MODEL), jnp.float32)
    layers = []
    for _ in range(NUM_LAYERS):
        keys = jax.random.split(key, 8)
        key = keys[0]
        layers.append({
            "wq": 0.02 * jax.random.normal(keys[1], (D_MODEL, D_MODEL), jnp.float32),
            "wkv": 0.02 * jax.random.normal(keys[2], (D_MODEL, KV_DIM), jnp.float32),
            "wo": 0.02 * jax.random.normal(keys[3], (D_MODEL, D_MODEL), jnp.float32),
            "ln1_g": jnp.ones((1, D_MODEL), jnp.float32),
            "ln1_b": jnp.zeros((1, D_MODEL), jnp.float32),
            "w1": 0.02 * jax.random.normal(keys[4], (D_MODEL, DIM_FF), jnp.float32),
            "b1": 0.02 * jax.random.normal(keys[5], (1, DIM_FF), jnp.float32),
            "w2": 0.02 * jax.random.normal(keys[6], (DIM_FF, D_MODEL), jnp.float32),
            "b2": 0.02 * jax.random.normal(keys[7], (1, D_MODEL), jnp.float32),
            "ln2_g": jnp.ones((1, D_MODEL), jnp.float32),
            "ln2_b": jnp.zeros((1, D_MODEL), jnp.float32),
        })
    params["layers"] = layers
    k_lm, _ = jax.random.split(key)
    params["ln_f_g"] = jnp.ones((1, D_MODEL), jnp.float32)
    params["ln_f_b"] = jnp.zeros((1, D_MODEL), jnp.float32)
    params["lm_head"] = 0.02 * jax.random.normal(k_lm, (D_MODEL, VOCAB_SIZE), jnp.float32)
    return params


def pack_params(params):
    """One-time packing: fused bf16 matmul weights, packed small params, padded lm_head."""
    lm_pad = jnp.zeros((D_MODEL, LOGIT_PAD), jnp.float32)
    lm_pad = lm_pad.at[:, :VOCAB_SIZE].set(params["lm_head"])

    packed = {
        "emb": params["embedding"].astype(jnp.bfloat16),
        "pos": _POS_ENC,
        "rep": _REP_FUSED,
        "segr": _SEG_REDUCE,
        "sege": _SEG_EXPAND,
        "lm_head": lm_pad.astype(jnp.bfloat16),
        "layers": [],
    }
    for li, layer in enumerate(params["layers"]):
        # fused [wq*scale | pad | wkv | pad] projection (q at lanes 0:200, kv at 256:296)
        wqkv = jnp.zeros((D_MODEL, QKV_W), jnp.float32)
        wqkv = wqkv.at[:, 0:D_MODEL].set(layer["wq"] * SCALE)
        wqkv = wqkv.at[:, 256:256 + KV_DIM].set(layer["wkv"])

        # packed small params: rows [ln1_g, ln1_b, ln2_g, ln2_b, b1, b2, ln_f_g, ln_f_b]
        small = jnp.zeros((8, DIM_FF), jnp.float32)
        small = small.at[0, :D_MODEL].set(layer["ln1_g"].reshape(-1))
        small = small.at[1, :D_MODEL].set(layer["ln1_b"].reshape(-1))
        small = small.at[2, :D_MODEL].set(layer["ln2_g"].reshape(-1))
        small = small.at[3, :D_MODEL].set(layer["ln2_b"].reshape(-1))
        small = small.at[4, :].set(layer["b1"].reshape(-1))
        small = small.at[5, :D_MODEL].set(layer["b2"].reshape(-1))
        if li == NUM_LAYERS - 1:
            small = small.at[6, :D_MODEL].set(params["ln_f_g"].reshape(-1))
            small = small.at[7, :D_MODEL].set(params["ln_f_b"].reshape(-1))

        packed["layers"].append({
            "wqkv": wqkv.astype(jnp.bfloat16),
            "wo": layer["wo"].astype(jnp.bfloat16),
            "w1": layer["w1"].astype(jnp.bfloat16),
            "w2": layer["w2"].astype(jnp.bfloat16),
            "small": small,
        })
    return packed


# ----------------------------------------------------------------------------
# Forward pass (AutoregressiveModel.forward, past_kvs=None)
# ----------------------------------------------------------------------------
def forward(packed, tokens):
    B, S = tokens.shape
    assert S == MAX_LEN, "reference forward broadcasts the full positional table"
    layers = packed["layers"]
    tok3 = tokens.astype(jnp.int32).reshape(B, S, 1)

    def scramble(y):
        # Reproduce PyTorch's (attn @ v).transpose(1,2).contiguous().view(B,S,d_model):
        # the attention output is (B,S,H,HD) (q was never made head-major), so this
        # genuinely mixes seq/head elements.  Kept as XLA glue on bf16 (~80 KB/layer).
        # TODO(synk): an in-kernel relayout would collapse the 4 calls into 1, but the
        # (99,20,10)->(99,200) head-major repack is not robustly lowerable in Mosaic.
        return jnp.transpose(y.reshape(B, S, NUM_HEADS, HEAD_DIM),
                             (0, 2, 1, 3)).reshape(B, S, D_MODEL)

    def attn_consts(i):
        return [layers[i]["wqkv"], packed["rep"], packed["segr"], packed["sege"]]

    x_shape = jax.ShapeDtypeStruct((B, S, D_MODEL), jnp.float32)
    y_shape = jax.ShapeDtypeStruct((B, S, D_MODEL), jnp.bfloat16)
    kv_shape = jax.ShapeDtypeStruct((B, S, KV_PAD), jnp.float32)

    # call 1: embedding + positional add + layer-0 attention
    x_cur, y_cur, kv0 = _run(
        _embed_attn_kernel,
        [tok3, packed["emb"], packed["pos"]] + attn_consts(0),
        [True] + [False] * 6,
        (x_shape, y_shape, kv_shape),
        B)
    kvs = [kv0]

    # middle calls: tail of layer i + attention of layer i+1
    for i in range(NUM_LAYERS - 1):
        li = layers[i]
        ctx = scramble(y_cur)
        x_cur, y_cur, kv = _run(
            _tail_attn_kernel,
            [ctx, x_cur, li["wo"], li["w1"], li["w2"], li["small"]] + attn_consts(i + 1),
            [True, True] + [False] * 8,
            (x_shape, y_shape, kv_shape),
            B)
        kvs.append(kv)

    # last call: tail of final layer + final LayerNorm + lm_head
    lL = layers[-1]
    ctx = scramble(y_cur)
    logits_pad = _run(
        _tail_head_kernel,
        [ctx, x_cur, lL["wo"], lL["w1"], lL["w2"], lL["small"], packed["lm_head"]],
        [True, True] + [False] * 5,
        jax.ShapeDtypeStruct((B, S, LOGIT_PAD), jnp.float32),
        B)
    logits = logits_pad[..., :VOCAB_SIZE]

    new_kvs = []
    for kv in kvs:
        k = kv[..., : NUM_GROUPS * HEAD_DIM].reshape(B, S, NUM_GROUPS, HEAD_DIM)
        v = kv[..., NUM_GROUPS * HEAD_DIM: 2 * NUM_GROUPS * HEAD_DIM].reshape(
            B, S, NUM_GROUPS, HEAD_DIM)
        new_kvs.append((k, v))
    return logits, new_kvs


if __name__ == "__main__":
    key = jax.random.PRNGKey(0)
    pkey, tkey = jax.random.split(key)
    params = init_params(pkey)
    packed = pack_params(params)

    B, S = 2, MAX_LEN
    tokens = jax.random.randint(tkey, (B, S), 0, VOCAB_SIZE, dtype=jnp.int32)

    fwd = jax.jit(forward)
    logits, new_kvs = fwd(packed, tokens)
    jax.block_until_ready(logits)
    for k, v in new_kvs:
        jax.block_until_ready(k)
        jax.block_until_ready(v)

    assert logits.shape == (B, S, VOCAB_SIZE)
    assert len(new_kvs) == NUM_LAYERS
    assert new_kvs[0][0].shape == (B, S, NUM_GROUPS, HEAD_DIM)
    assert new_kvs[0][1].shape == (B, S, NUM_GROUPS, HEAD_DIM)
    assert bool(jnp.all(jnp.isfinite(logits)))
    print("KERNEL_OK")
</pallas_src>

<mosaic_0001>
module attributes {stable_mosaic.version = 11 : i64} {
  func.func @_embed_attn_kernel(%arg0: i32, %arg1: memref<1x99x1xi32, #tpu.memory_space<vmem>>, %arg2: memref<177x200xbf16, #tpu.memory_space<vmem>>, %arg3: memref<99x200xf32, #tpu.memory_space<vmem>>, %arg4: memref<200x384xbf16, #tpu.memory_space<vmem>>, %arg5: memref<128x1024xbf16, #tpu.memory_space<vmem>>, %arg6: memref<200x20xbf16, #tpu.memory_space<vmem>>, %arg7: memref<20x200xbf16, #tpu.memory_space<vmem>>, %arg8: memref<1x99x200xf32, #tpu.memory_space<vmem>>, %arg9: memref<1x99x200xbf16, #tpu.memory_space<vmem>>, %arg10: memref<1x99x128xf32, #tpu.memory_space<vmem>>) attributes {dimension_semantics = [#tpu.dimension_semantics<parallel>], iteration_bounds = array<i64: 2>, scalar_prefetch = 0 : i64, scratch_operands = 0 : i64, tpu.core_type = #tpu.core_type<tc>, window_params = [{transform_indices = @transform_0, window_bounds = array<i64: 1, 99, 1>}, {pipeline_mode = #tpu.pipeline_mode<synchronous>, transform_indices = @transform_1, window_bounds = array<i64: 177, 200>}, {pipeline_mode = #tpu.pipeline_mode<synchronous>, transform_indices = @transform_2, window_bounds = array<i64: 99, 200>}, {pipeline_mode = #tpu.pipeline_mode<synchronous>, transform_indices = @transform_3, window_bounds = array<i64: 200, 384>}, {pipeline_mode = #tpu.pipeline_mode<synchronous>, transform_indices = @transform_4, window_bounds = array<i64: 128, 1024>}, {pipeline_mode = #tpu.pipeline_mode<synchronous>, transform_indices = @transform_5, window_bounds = array<i64: 200, 20>}, {pipeline_mode = #tpu.pipeline_mode<synchronous>, transform_indices = @transform_6, window_bounds = array<i64: 20, 200>}, {transform_indices = @transform_7, window_bounds = array<i64: 1, 99, 200>}, {transform_indices = @transform_8, window_bounds = array<i64: 1, 99, 200>}, {transform_indices = @transform_9, window_bounds = array<i64: 1, 99, 128>}]} {
    %c0 = arith.constant 0 : index
    %c0_0 = arith.constant 0 : index
    %c0_1 = arith.constant 0 : index
    %0 = vector.load %arg1[%c0, %c0_0, %c0_1] : memref<1x99x1xi32, #tpu.memory_space<vmem>>, vector<1x99x1xi32>
    %1 = vector.shape_cast %0 : vector<1x99x1xi32> to vector<99x1xi32>
    %2 = tpu.iota {dimensions = array<i32: 1>} : vector<99x177xi32>
    %3 = vector.broadcast %1 : vector<99x1xi32> to vector<99x177xi32>
    %4 = arith.cmpi eq, %2, %3 : vector<99x177xi32>
    %cst = arith.constant 1.000000e+00 : f32
    %cst_2 = arith.constant 0.000000e+00 : f32
    %5 = vector.broadcast %cst : f32 to vector<99x177xf32>
    %6 = vector.broadcast %cst_2 : f32 to vector<99x177xf32>
    %7 = arith.select %4, %5, %6 : vector<99x177xi1>, vector<99x177xf32>
    %8 = arith.truncf %7 : vector<99x177xf32> to vector<99x177xbf16>
    %c0_3 = arith.constant 0 : index
    %c0_4 = arith.constant 0 : index
    %9 = vector.load %arg2[%c0_3, %c0_4] : memref<177x200xbf16, #tpu.memory_space<vmem>>, vector<177x200xbf16>
    %cst_5 = arith.constant dense<0.000000e+00> : vector<99x200xf32>
    %10 = tpu.matmul %8, %9, %cst_5 {dimension_numbers = #tpu.dot_dimension_numbers<[1], [0], [0], [1], [0, 0, 1, 1], [], []>} : vector<99x177xbf16>, vector<177x200xbf16>, vector<99x200xf32> -> vector<99x200xf32>
    %c0_6 = arith.constant 0 : index
    %c0_7 = arith.constant 0 : index
    %11 = vector.load %arg3[%c0_6, %c0_7] : memref<99x200xf32, #tpu.memory_space<vmem>>, vector<99x200xf32>
    %12 = arith.addf %10, %11 : vector<99x200xf32>
    %c0_8 = arith.constant 0 : index
    %c0_9 = arith.constant 0 : index
    %c0_10 = arith.constant 0 : index
    %13 = vector.load %arg8[%c0_8, %c0_9, %c0_10] : memref<1x99x200xf32, #tpu.memory_space<vmem>>, vector<1x99x200xf32>
    %14 = vector.shape_cast %13 : vector<1x99x200xf32> to vector<99x200xf32>
    %15 = vector.shape_cast %12 : vector<99x200xf32> to vector<1x99x200xf32>
    tpu.vector_store %arg8[%c0_8, %c0_9, %c0_10], %15 {strides = array<i32>} : memref<1x99x200xf32, #tpu.memory_space<vmem>>, vector<1x99x200xf32>,
    %16 = arith.truncf %12 : vector<99x200xf32> to vector<99x200xbf16>
    %c0_11 = arith.constant 0 : index
    %c0_12 = arith.constant 0 : index
    %17 = vector.load %arg4[%c0_11, %c0_12] : memref<200x384xbf16, #tpu.memory_space<vmem>>, vector<200x384xbf16>
    %cst_13 = arith.constant dense<0.000000e+00> : vector<99x384xf32>
    %18 = tpu.matmul %16, %17, %cst_13 {dimension_numbers = #tpu.dot_dimension_numbers<[1], [0], [0], [1], [0, 0, 1, 1], [], []>} : vector<99x200xbf16>, vector<200x384xbf16>, vector<99x384xf32> -> vector<99x384xf32>
    %19 = vector.extract_strided_slice %18 {offsets = [0, 0], sizes = [99, 200], strides = [1, 1]} : vector<99x384xf32> to vector<99x200xf32>
    %20 = vector.extract_strided_slice %18 {offsets = [0, 256], sizes = [99, 128], strides = [1, 1]} : vector<99x384xf32> to vector<99x128xf32>
    %21 = arith.truncf %20 : vector<99x128xf32> to vector<99x128xbf16>
    %c0_14 = arith.constant 0 : index
    %c0_15 = arith.constant 0 : index
    %22 = vector.load %arg5[%c0_14, %c0_15] : memref<128x1024xbf16, #tpu.memory_space<vmem>>, vector<128x1024xbf16>
    %cst_16 = arith.constant dense<0.000000e+00> : vector<99x1024xf32>
    %23 = tpu.matmul %21, %22, %cst_16 {dimension_numbers = #tpu.dot_dimension_numbers<[1], [0], [0], [1], [0, 0, 1, 1], [], []>} : vector<99x128xbf16>, vector<128x1024xbf16>, vector<99x1024xf32> -> vector<99x1024xf32>
    %24 = vector.extract_strided_slice %23 {offsets = [0, 0], sizes = [99, 200], strides = [1, 1]} : vector<99x1024xf32> to vector<99x200xf32>
    %25 = vector.extract_strided_slice %23 {offsets = [0, 256], sizes = [99, 200], strides = [1, 1]} : vector<99x1024xf32> to vector<99x200xf32>
    %26 = vector.extract_strided_slice %23 {offsets = [0, 512], sizes = [99, 200], strides = [1, 1]} : vector<99x1024xf32> to vector<99x200xf32>
    %27 = vector.extract_strided_slice %23 {offsets = [0, 768], sizes = [99, 200], strides = [1, 1]} : vector<99x1024xf32> to vector<99x200xf32>
    %c0_17 = arith.constant 0 : index
    %c0_18 = arith.constant 0 : index
    %28 = vector.load %arg6[%c0_17, %c0_18] : memref<200x20xbf16, #tpu.memory_space<vmem>>, vector<200x20xbf16>
    %29 = arith.mulf %19, %24 : vector<99x200xf32>
    %30 = arith.truncf %29 : vector<99x200xf32> to vector<99x200xbf16>
    %cst_19 = arith.constant dense<0.000000e+00> : vector<99x20xf32>
    %31 = tpu.matmul %30, %28, %cst_19 {dimension_numbers = #tpu.dot_dimension_numbers<[1], [0], [0], [1], [0, 0, 1, 1], [], []>} : vector<99x200xbf16>, vector<200x20xbf16>, vector<99x20xf32> -> vector<99x20xf32>
    %32 = arith.mulf %19, %26 : vector<99x200xf32>
    %33 = arith.truncf %32 : vector<99x200xf32> to vector<99x200xbf16>
    %cst_20 = arith.constant dense<0.000000e+00> : vector<99x20xf32>
    %34 = tpu.matmul %33, %28, %cst_20 {dimension_numbers = #tpu.dot_dimension_numbers<[1], [0], [0], [1], [0, 0, 1, 1], [], []>} : vector<99x200xbf16>, vector<200x20xbf16>, vector<99x20xf32> -> vector<99x20xf32>
    %35 = arith.maximumf %31, %34 : vector<99x20xf32>
    %36 = arith.subf %31, %35 : vector<99x20xf32>
    %37 = math.exp %36 : vector<99x20xf32>
    %38 = arith.subf %34, %35 : vector<99x20xf32>
    %39 = math.exp %38 : vector<99x20xf32>
    %40 = arith.addf %37, %39 : vector<99x20xf32>
    %41 = tpu.reciprocal %40 {approx = true} : vector<99x20xf32> -> vector<99x20xf32>
    %c0_21 = arith.constant 0 : index
    %c0_22 = arith.constant 0 : index
    %42 = vector.load %arg7[%c0_21, %c0_22] : memref<20x200xbf16, #tpu.memory_space<vmem>>, vector<20x200xbf16>
    %43 = arith.mulf %37, %41 : vector<99x20xf32>
    %44 = arith.truncf %43 : vector<99x20xf32> to vector<99x20xbf16>
    %cst_23 = arith.constant dense<0.000000e+00> : vector<99x200xf32>
    %45 = tpu.matmul %44, %42, %cst_23 {dimension_numbers = #tpu.dot_dimension_numbers<[1], [0], [0], [1], [0, 0, 1, 1], [], []>} : vector<99x20xbf16>, vector<20x200xbf16>, vector<99x200xf32> -> vector<99x200xf32>
    %46 = arith.mulf %39, %41 : vector<99x20xf32>
    %47 = arith.truncf %46 : vector<99x20xf32> to vector<99x20xbf16>
    %cst_24 = arith.constant dense<0.000000e+00> : vector<99x200xf32>
    %48 = tpu.matmul %47, %42, %cst_24 {dimension_numbers = #tpu.dot_dimension_numbers<[1], [0], [0], [1], [0, 0, 1, 1], [], []>} : vector<99x20xbf16>, vector<20x200xbf16>, vector<99x200xf32> -> vector<99x200xf32>
    %49 = arith.mulf %45, %25 : vector<99x200xf32>
    %50 = arith.mulf %48, %27 : vector<99x200xf32>
    %51 = arith.addf %49, %50 : vector<99x200xf32>
    %52 = arith.truncf %51 : vector<99x200xf32> to vector<99x200xbf16>
    %c0_25 = arith.constant 0 : index
    %c0_26 = arith.constant 0 : index
    %c0_27 = arith.constant 0 : index
    %53 = vector.load %arg9[%c0_25, %c0_26, %c0_27] : memref<1x99x200xbf16, #tpu.memory_space<vmem>>, vector<1x99x200xbf16>
    %54 = vector.shape_cast %53 : vector<1x99x200xbf16> to vector<99x200xbf16>
    %55 = vector.shape_cast %52 : vector<99x200xbf16> to vector<1x99x200xbf16>
    tpu.vector_store %arg9[%c0_25, %c0_26, %c0_27], %55 {strides = array<i32>} : memref<1x99x200xbf16, #tpu.memory_space<vmem>>, vector<1x99x200xbf16>,
    %c0_28 = arith.constant 0 : index
    %c0_29 = arith.constant 0 : index
    %c0_30 = arith.constant 0 : index
    %56 = vector.load %arg10[%c0_28, %c0_29, %c0_30] : memref<1x99x128xf32, #tpu.memory_space<vmem>>, vector<1x99x128xf32>
    %57 = vector.shape_cast %56 : vector<1x99x128xf32> to vector<99x128xf32>
    %58 = vector.shape_cast %20 : vector<99x128xf32> to vector<1x99x128xf32>
    tpu.vector_store %arg10[%c0_28, %c0_29, %c0_30], %58 {strides = array<i32>} : memref<1x99x128xf32, #tpu.memory_space<vmem>>, vector<1x99x128xf32>,
    return
  }
  func.func @transform_0(%arg0: i32) -> (i32, i32, i32) {
    %c0_i32 = arith.constant 0 : i32
    %c0_i32_0 = arith.constant 0 : i32
    %c0_i32_1 = arith.constant 0 : i32
    return %arg0, %c0_i32, %c0_i32_0 : i32, i32, i32
  }
  func.func @transform_1(%arg0: i32) -> (i32, i32) {
    %c0_i32 = arith.constant 0 : i32
    %c0_i32_0 = arith.constant 0 : i32
    %c0_i32_1 = arith.constant 0 : i32
    return %c0_i32, %c0_i32_0 : i32, i32
  }
  func.func @transform_2(%arg0: i32) -> (i32, i32) {
    %c0_i32 = arith.constant 0 : i32
    %c0_i32_0 = arith.constant 0 : i32
    %c0_i32_1 = arith.constant 0 : i32
    return %c0_i32, %c0_i32_0 : i32, i32
  }
  func.func @transform_3(%arg0: i32) -> (i32, i32) {
    %c0_i32 = arith.constant 0 : i32
    %c0_i32_0 = arith.constant 0 : i32
    %c0_i32_1 = arith.constant 0 : i32
    return %c0_i32, %c0_i32_0 : i32, i32
  }
  func.func @transform_4(%arg0: i32) -> (i32, i32) {
    %c0_i32 = arith.constant 0 : i32
    %c0_i32_0 = arith.constant 0 : i32
    %c0_i32_1 = arith.constant 0 : i32
    return %c0_i32, %c0_i32_0 : i32, i32
  }
  func.func @transform_5(%arg0: i32) -> (i32, i32) {
    %c0_i32 = arith.constant 0 : i32
    %c0_i32_0 = arith.constant 0 : i32
    %c0_i32_1 = arith.constant 0 : i32
    return %c0_i32, %c0_i32_0 : i32, i32
  }
  func.func @transform_6(%arg0: i32) -> (i32, i32) {
    %c0_i32 = arith.constant 0 : i32
    %c0_i32_0 = arith.constant 0 : i32
    %c0_i32_1 = arith.constant 0 : i32
    return %c0_i32, %c0_i32_0 : i32, i32
  }
  func.func @transform_7(%arg0: i32) -> (i32, i32, i32) {
    %c0_i32 = arith.constant 0 : i32
    %c0_i32_0 = arith.constant 0 : i32
    %c0_i32_1 = arith.constant 0 : i32
    return %arg0, %c0_i32, %c0_i32_0 : i32, i32, i32
  }
  func.func @transform_8(%arg0: i32) -> (i32, i32, i32) {
    %c0_i32 = arith.constant 0 : i32
    %c0_i32_0 = arith.constant 0 : i32
    %c0_i32_1 = arith.constant 0 : i32
    return %arg0, %c0_i32, %c0_i32_0 : i32, i32, i32
  }
  func.func @transform_9(%arg0: i32) -> (i32, i32, i32) {
    %c0_i32 = arith.constant 0 : i32
    %c0_i32_0 = arith.constant 0 : i32
    %c0_i32_1 = arith.constant 0 : i32
    return %arg0, %c0_i32, %c0_i32_0 : i32, i32, i32
  }
}

module attributes {stable_mosaic.version = 11 : i64} {
  func.func @_tail_attn_kernel(%arg0: i32, %arg1: memref<1x99x200xbf16, #tpu.memory_space<vmem>>, %arg2: memref<1x99x200xf32, #tpu.memory_space<vmem>>, %arg3: memref<200x200xbf16, #tpu.memory_space<vmem>>, %arg4: memref<200x400xbf16, #tpu.memory_space<vmem>>, %arg5: memref<400x200xbf16, #tpu.memory_space<vmem>>, %arg6: memref<8x400xf32, #tpu.memory_space<vmem>>, %arg7: memref<200x384xbf16, #tpu.memory_space<vmem>>, %arg8: memref<128x1024xbf16, #tpu.memory_space<vmem>>, %arg9: memref<200x20xbf16, #tpu.memory_space<vmem>>, %arg10: memref<20x200xbf16, #tpu.memory_space<vmem>>, %arg11: memref<1x99x200xf32, #tpu.memory_space<vmem>>, %arg12: memref<1x99x200xbf16, #tpu.memory_space<vmem>>, %arg13: memref<1x99x128xf32, #tpu.memory_space<vmem>>) attributes {dimension_semantics = [#tpu.dimension_semantics<parallel>], iteration_bounds = array<i64: 2>, scalar_prefetch = 0 : i64, scratch_operands = 0 : i64, tpu.core_type = #tpu.core_type<tc>, window_params = [{transform_indices = @transform_0, window_bounds = array<i64: 1, 99, 200>}, {transform_indices = @transform_1, window_bounds = array<i64: 1, 99, 200>}, {pipeline_mode = #tpu.pipeline_mode<synchronous>, transform_indices = @transform_2, window_bounds = array<i64: 200, 200>}, {pipeline_mode = #tpu.pipeline_mode<synchronous>, transform_indices = @transform_3, window_bounds = array<i64: 200, 400>}, {pipeline_mode = #tpu.pipeline_mode<synchronous>, transform_indices = @transform_4, window_bounds = array<i64: 400, 200>}, {pipeline_mode = #tpu.pipeline_mode<synchronous>, transform_indices = @transform_5, window_bounds = array<i64: 8, 400>}, {pipeline_mode = #tpu.pipeline_mode<synchronous>, transform_indices = @transform_6, window_bounds = array<i64: 200, 384>}, {pipeline_mode = #tpu.pipeline_mode<synchronous>, transform_indices = @transform_7, window_bounds = array<i64: 128, 1024>}, {pipeline_mode = #tpu.pipeline_mode<synchronous>, transform_indices = @transform_8, window_bounds = array<i64: 200, 20>}, {pipeline_mode = #tpu.pipeline_mode<synchronous>, transform_indices = @transform_9, window_bounds = array<i64: 20, 200>}, {transform_indices = @transform_10, window_bounds = array<i64: 1, 99, 200>}, {transform_indices = @transform_11, window_bounds = array<i64: 1, 99, 200>}, {transform_indices = @transform_12, window_bounds = array<i64: 1, 99, 128>}]} {
    %c0 = arith.constant 0 : index
    %c0_0 = arith.constant 0 : index
    %c0_1 = arith.constant 0 : index
    %0 = vector.load %arg1[%c0, %c0_0, %c0_1] : memref<1x99x200xbf16, #tpu.memory_space<vmem>>, vector<1x99x200xbf16>
    %1 = vector.shape_cast %0 : vector<1x99x200xbf16> to vector<99x200xbf16>
    %c0_2 = arith.constant 0 : index
    %c0_3 = arith.constant 0 : index
    %c0_4 = arith.constant 0 : index
    %2 = vector.load %arg2[%c0_2, %c0_3, %c0_4] : memref<1x99x200xf32, #tpu.memory_space<vmem>>, vector<1x99x200xf32>
    %3 = vector.shape_cast %2 : vector<1x99x200xf32> to vector<99x200xf32>
    %c0_5 = arith.constant 0 : index
    %c0_6 = arith.constant 0 : index
    %4 = vector.load %arg6[%c0_5, %c0_6] : memref<8x400xf32, #tpu.memory_space<vmem>>, vector<1x200xf32>
    %c1 = arith.constant 1 : index
    %c0_7 = arith.constant 0 : index
    %5 = vector.load %arg6[%c1, %c0_7] : memref<8x400xf32, #tpu.memory_space<vmem>>, vector<1x200xf32>
    %c2 = arith.constant 2 : index
    %c0_8 = arith.constant 0 : index
    %6 = vector.load %arg6[%c2, %c0_8] : memref<8x400xf32, #tpu.memory_space<vmem>>, vector<1x200xf32>
    %c3 = arith.constant 3 : index
    %c0_9 = arith.constant 0 : index
    %7 = vector.load %arg6[%c3, %c0_9] : memref<8x400xf32, #tpu.memory_space<vmem>>, vector<1x200xf32>
    %c4 = arith.constant 4 : index
    %c0_10 = arith.constant 0 : index
    %8 = vector.load %arg6[%c4, %c0_10] : memref<8x400xf32, #tpu.memory_space<vmem>>, vector<1x400xf32>
    %c5 = arith.constant 5 : index
    %c0_11 = arith.constant 0 : index
    %9 = vector.load %arg6[%c5, %c0_11] : memref<8x400xf32, #tpu.memory_space<vmem>>, vector<1x200xf32>
    %c0_12 = arith.constant 0 : index
    %c0_13 = arith.constant 0 : index
    %10 = vector.load %arg3[%c0_12, %c0_13] : memref<200x200xbf16, #tpu.memory_space<vmem>>, vector<200x200xbf16>
    %cst = arith.constant dense<0.000000e+00> : vector<99x200xf32>
    %11 = tpu.matmul %1, %10, %cst {dimension_numbers = #tpu.dot_dimension_numbers<[1], [0], [0], [1], [0, 0, 1, 1], [], []>} : vector<99x200xbf16>, vector<200x200xbf16>, vector<99x200xf32> -> vector<99x200xf32>
    %12 = arith.addf %11, %3 : vector<99x200xf32>
    %cst_14 = arith.constant dense<0.000000e+00> : vector<99xf32>
    %13 = vector.multi_reduction <add>, %12, %cst_14 [1] : vector<99x200xf32> to vector<99xf32>
    %14 = vector.shape_cast %13 : vector<99xf32> to vector<99x1xf32>
    %cst_15 = arith.constant 2.000000e+02 : f32
    %15 = vector.broadcast %cst_15 : f32 to vector<99x1xf32>
    %16 = arith.divf %14, %15 : vector<99x1xf32>
    %17 = vector.broadcast %16 : vector<99x1xf32> to vector<99x200xf32>
    %18 = arith.subf %12, %17 : vector<99x200xf32>
    %19 = arith.mulf %18, %18 : vector<99x200xf32>
    %cst_16 = arith.constant dense<0.000000e+00> : vector<99xf32>
    %20 = vector.multi_reduction <add>, %19, %cst_16 [1] : vector<99x200xf32> to vector<99xf32>
    %21 = vector.shape_cast %20 : vector<99xf32> to vector<99x1xf32>
    %cst_17 = arith.constant 2.000000e+02 : f32
    %22 = vector.broadcast %cst_17 : f32 to vector<99x1xf32>
    %23 = arith.divf %21, %22 : vector<99x1xf32>
    %cst_18 = arith.constant 9.99999974E-6 : f32
    %24 = vector.broadcast %cst_18 : f32 to vector<99x1xf32>
    %25 = arith.addf %23, %24 : vector<99x1xf32>
    %26 = math.rsqrt %25 : vector<99x1xf32>
    %27 = vector.broadcast %26 : vector<99x1xf32> to vector<99x200xf32>
    %28 = arith.mulf %18, %27 : vector<99x200xf32>
    %29 = vector.broadcast %4 : vector<1x200xf32> to vector<99x200xf32>
    %30 = arith.mulf %28, %29 : vector<99x200xf32>
    %31 = vector.broadcast %5 : vector<1x200xf32> to vector<99x200xf32>
    %32 = arith.addf %30, %31 : vector<99x200xf32>
    %33 = arith.truncf %32 : vector<99x200xf32> to vector<99x200xbf16>
    %c0_19 = arith.constant 0 : index
    %c0_20 = arith.constant 0 : index
    %34 = vector.load %arg4[%c0_19, %c0_20] : memref<200x400xbf16, #tpu.memory_space<vmem>>, vector<200x400xbf16>
    %cst_21 = arith.constant dense<0.000000e+00> : vector<99x400xf32>
    %35 = tpu.matmul %33, %34, %cst_21 {dimension_numbers = #tpu.dot_dimension_numbers<[1], [0], [0], [1], [0, 0, 1, 1], [], []>} : vector<99x200xbf16>, vector<200x400xbf16>, vector<99x400xf32> -> vector<99x400xf32>
    %36 = vector.broadcast %8 : vector<1x400xf32> to vector<99x400xf32>
    %37 = arith.addf %35, %36 : vector<99x400xf32>
    %cst_22 = arith.constant 0.000000e+00 : f32
    %38 = vector.broadcast %cst_22 : f32 to vector<99x400xf32>
    %39 = arith.maximumf %37, %38 : vector<99x400xf32>
    %40 = arith.truncf %39 : vector<99x400xf32> to vector<99x400xbf16>
    %c0_23 = arith.constant 0 : index
    %c0_24 = arith.constant 0 : index
    %41 = vector.load %arg5[%c0_23, %c0_24] : memref<400x200xbf16, #tpu.memory_space<vmem>>, vector<400x200xbf16>
    %cst_25 = arith.constant dense<0.000000e+00> : vector<99x200xf32>
    %42 = tpu.matmul %40, %41, %cst_25 {dimension_numbers = #tpu.dot_dimension_numbers<[1], [0], [0], [1], [0, 0, 1, 1], [], []>} : vector<99x400xbf16>, vector<400x200xbf16>, vector<99x200xf32> -> vector<99x200xf32>
    %43 = vector.broadcast %9 : vector<1x200xf32> to vector<99x200xf32>
    %44 = arith.addf %42, %43 : vector<99x200xf32>
    %45 = arith.addf %44, %32 : vector<99x200xf32>
    %cst_26 = arith.constant dense<0.000000e+00> : vector<99xf32>
    %46 = vector.multi_reduction <add>, %45, %cst_26 [1] : vector<99x200xf32> to vector<99xf32>
    %47 = vector.shape_cast %46 : vector<99xf32> to vector<99x1xf32>
    %cst_27 = arith.constant 2.000000e+02 : f32
    %48 = vector.broadcast %cst_27 : f32 to vector<99x1xf32>
    %49 = arith.divf %47, %48 : vector<99x1xf32>
    %50 = vector.broadcast %49 : vector<99x1xf32> to vector<99x200xf32>
    %51 = arith.subf %45, %50 : vector<99x200xf32>
    %52 = arith.mulf %51, %51 : vector<99x200xf32>
    %cst_28 = arith.constant dense<0.000000e+00> : vector<99xf32>
    %53 = vector.multi_reduction <add>, %52, %cst_28 [1] : vector<99x200xf32> to vector<99xf32>
    %54 = vector.shape_cast %53 : vector<99xf32> to vector<99x1xf32>
    %cst_29 = arith.constant 2.000000e+02 : f32
    %55 = vector.broadcast %cst_29 : f32 to vector<99x1xf32>
    %56 = arith.divf %54, %55 : vector<99x1xf32>
    %cst_30 = arith.constant 9.99999974E-6 : f32
    %57 = vector.broadcast %cst_30 : f32 to vector<99x1xf32>
    %58 = arith.addf %56, %57 : vector<99x1xf32>
    %59 = math.rsqrt %58 : vector<99x1xf32>
    %60 = vector.broadcast %59 : vector<99x1xf32> to vector<99x200xf32>
    %61 = arith.mulf %51, %60 : vector<99x200xf32>
    %62 = vector.broadcast %6 : vector<1x200xf32> to vector<99x200xf32>
    %63 = arith.mulf %61, %62 : vector<99x200xf32>
    %64 = vector.broadcast %7 : vector<1x200xf32> to vector<99x200xf32>
    %65 = arith.addf %63, %64 : vector<99x200xf32>
    %c0_31 = arith.constant 0 : index
    %c0_32 = arith.constant 0 : index
    %c0_33 = arith.constant 0 : index
    %66 = vector.load %arg11[%c0_31, %c0_32, %c0_33] : memref<1x99x200xf32, #tpu.memory_space<vmem>>, vector<1x99x200xf32>
    %67 = vector.shape_cast %66 : vector<1x99x200xf32> to vector<99x200xf32>
    %68 = vector.shape_cast %65 : vector<99x200xf32> to vector<1x99x200xf32>
    tpu.vector_store %arg11[%c0_31, %c0_32, %c0_33], %68 {strides = array<i32>} : memref<1x99x200xf32, #tpu.memory_space<vmem>>, vector<1x99x200xf32>,
    %69 = arith.truncf %65 : vector<99x200xf32> to vector<99x200xbf16>
    %c0_34 = arith.constant 0 : index
    %c0_35 = arith.constant 0 : index
    %70 = vector.load %arg7[%c0_34, %c0_35] : memref<200x384xbf16, #tpu.memory_space<vmem>>, vector<200x384xbf16>
    %cst_36 = arith.constant dense<0.000000e+00> : vector<99x384xf32>
    %71 = tpu.matmul %69, %70, %cst_36 {dimension_numbers = #tpu.dot_dimension_numbers<[1], [0], [0], [1], [0, 0, 1, 1], [], []>} : vector<99x200xbf16>, vector<200x384xbf16>, vector<99x384xf32> -> vector<99x384xf32>
    %72 = vector.extract_strided_slice %71 {offsets = [0, 0], sizes = [99, 200], strides = [1, 1]} : vector<99x384xf32> to vector<99x200xf32>
    %73 = vector.extract_strided_slice %71 {offsets = [0, 256], sizes = [99, 128], strides = [1, 1]} : vector<99x384xf32> to vector<99x128xf32>
    %74 = arith.truncf %73 : vector<99x128xf32> to vector<99x128xbf16>
    %c0_37 = arith.constant 0 : index
    %c0_38 = arith.constant 0 : index
    %75 = vector.load %arg8[%c0_37, %c0_38] : memref<128x1024xbf16, #tpu.memory_space<vmem>>, vector<128x1024xbf16>
    %cst_39 = arith.constant dense<0.000000e+00> : vector<99x1024xf32>
    %76 = tpu.matmul %74, %75, %cst_39 {dimension_numbers = #tpu.dot_dimension_numbers<[1], [0], [0], [1], [0, 0, 1, 1], [], []>} : vector<99x128xbf16>, vector<128x1024xbf16>, vector<99x1024xf32> -> vector<99x1024xf32>
    %77 = vector.extract_strided_slice %76 {offsets = [0, 0], sizes = [99, 200], strides = [1, 1]} : vector<99x1024xf32> to vector<99x200xf32>
    %78 = vector.extract_strided_slice %76 {offsets = [0, 256], sizes = [99, 200], strides = [1, 1]} : vector<99x1024xf32> to vector<99x200xf32>
    %79 = vector.extract_strided_slice %76 {offsets = [0, 512], sizes = [99, 200], strides = [1, 1]} : vector<99x1024xf32> to vector<99x200xf32>
    %80 = vector.extract_strided_slice %76 {offsets = [0, 768], sizes = [99, 200], strides = [1, 1]} : vector<99x1024xf32> to vector<99x200xf32>
    %c0_40 = arith.constant 0 : index
    %c0_41 = arith.constant 0 : index
    %81 = vector.load %arg9[%c0_40, %c0_41] : memref<200x20xbf16, #tpu.memory_space<vmem>>, vector<200x20xbf16>
    %82 = arith.mulf %72, %77 : vector<99x200xf32>
    %83 = arith.truncf %82 : vector<99x200xf32> to vector<99x200xbf16>
    %cst_42 = arith.constant dense<0.000000e+00> : vector<99x20xf32>
    %84 = tpu.matmul %83, %81, %cst_42 {dimension_numbers = #tpu.dot_dimension_numbers<[1], [0], [0], [1], [0, 0, 1, 1], [], []>} : vector<99x200xbf16>, vector<200x20xbf16>, vector<99x20xf32> -> vector<99x20xf32>
    %85 = arith.mulf %72, %79 : vector<99x200xf32>
    %86 = arith.truncf %85 : vector<99x200xf32> to vector<99x200xbf16>
    %cst_43 = arith.constant dense<0.000000e+00> : vector<99x20xf32>
    %87 = tpu.matmul %86, %81, %cst_43 {dimension_numbers = #tpu.dot_dimension_numbers<[1], [0], [0], [1], [0, 0, 1, 1], [], []>} : vector<99x200xbf16>, vector<200x20xbf16>, vector<99x20xf32> -> vector<99x20xf32>
    %88 = arith.maximumf %84, %87 : vector<99x20xf32>
    %89 = arith.subf %84, %88 : vector<99x20xf32>
    %90 = math.exp %89 : vector<99x20xf32>
    %91 = arith.subf %87, %88 : vector<99x20xf32>
    %92 = math.exp %91 : vector<99x20xf32>
    %93 = arith.addf %90, %92 : vector<99x20xf32>
    %94 = tpu.reciprocal %93 {approx = true} : vector<99x20xf32> -> vector<99x20xf32>
    %c0_44 = arith.constant 0 : index
    %c0_45 = arith.constant 0 : index
    %95 = vector.load %arg10[%c0_44, %c0_45] : memref<20x200xbf16, #tpu.memory_space<vmem>>, vector<20x200xbf16>
    %96 = arith.mulf %90, %94 : vector<99x20xf32>
    %97 = arith.truncf %96 : vector<99x20xf32> to vector<99x20xbf16>
    %cst_46 = arith.constant dense<0.000000e+00> : vector<99x200xf32>
    %98 = tpu.matmul %97, %95, %cst_46 {dimension_numbers = #tpu.dot_dimension_numbers<[1], [0], [0], [1], [0, 0, 1, 1], [], []>} : vector<99x20xbf16>, vector<20x200xbf16>, vector<99x200xf32> -> vector<99x200xf32>
    %99 = arith.mulf %92, %94 : vector<99x20xf32>
    %100 = arith.truncf %99 : vector<99x20xf32> to vector<99x20xbf16>
    %cst_47 = arith.constant dense<0.000000e+00> : vector<99x200xf32>
    %101 = tpu.matmul %100, %95, %cst_47 {dimension_numbers = #tpu.dot_dimension_numbers<[1], [0], [0], [1], [0, 0, 1, 1], [], []>} : vector<99x20xbf16>, vector<20x200xbf16>, vector<99x200xf32> -> vector<99x200xf32>
    %102 = arith.mulf %98, %78 : vector<99x200xf32>
    %103 = arith.mulf %101, %80 : vector<99x200xf32>
    %104 = arith.addf %102, %103 : vector<99x200xf32>
    %105 = arith.truncf %104 : vector<99x200xf32> to vector<99x200xbf16>
    %c0_48 = arith.constant 0 : index
    %c0_49 = arith.constant 0 : index
    %c0_50 = arith.constant 0 : index
    %106 = vector.load %arg12[%c0_48, %c0_49, %c0_50] : memref<1x99x200xbf16, #tpu.memory_space<vmem>>, vector<1x99x200xbf16>
    %107 = vector.shape_cast %106 : vector<1x99x200xbf16> to vector<99x200xbf16>
    %108 = vector.shape_cast %105 : vector<99x200xbf16> to vector<1x99x200xbf16>
    tpu.vector_store %arg12[%c0_48, %c0_49, %c0_50], %108 {strides = array<i32>} : memref<1x99x200xbf16, #tpu.memory_space<vmem>>, vector<1x99x200xbf16>,
    %c0_51 = arith.constant 0 : index
    %c0_52 = arith.constant 0 : index
    %c0_53 = arith.constant 0 : index
    %109 = vector.load %arg13[%c0_51, %c0_52, %c0_53] : memref<1x99x128xf32, #tpu.memory_space<vmem>>, vector<1x99x128xf32>
    %110 = vector.shape_cast %109 : vector<1x99x128xf32> to vector<99x128xf32>
    %111 = vector.shape_cast %73 : vector<99x128xf32> to vector<1x99x128xf32>
    tpu.vector_store %arg13[%c0_51, %c0_52, %c0_53], %111 {strides = array<i32>} : memref<1x99x128xf32, #tpu.memory_space<vmem>>, vector<1x99x128xf32>,
    return
  }
  func.func @transform_0(%arg0: i32) -> (i32, i32, i32) {
    %c0_i32 = arith.constant 0 : i32
    %c0_i32_0 = arith.constant 0 : i32
    %c0_i32_1 = arith.constant 0 : i32
    return %arg0, %c0_i32, %c0_i32_0 : i32, i32, i32
  }
  func.func @transform_1(%arg0: i32) -> (i32, i32, i32) {
    %c0_i32 = arith.constant 0 : i32
    %c0_i32_0 = arith.constant 0 : i32
    %c0_i32_1 = arith.constant 0 : i32
    return %arg0, %c0_i32, %c0_i32_0 : i32, i32, i32
  }
  func.func @transform_2(%arg0: i32) -> (i32, i32) {
    %c0_i32 = arith.constant 0 : i32
    %c0_i32_0 = arith.constant 0 : i32
    %c0_i32_1 = arith.constant 0 : i32
    return %c0_i32, %c0_i32_0 : i32, i32
  }
  func.func @transform_3(%arg0: i32) -> (i32, i32) {
    %c0_i32 = arith.constant 0 : i32
    %c0_i32_0 = arith.constant 0 : i32
    %c0_i32_1 = arith.constant 0 : i32
    return %c0_i32, %c0_i32_0 : i32, i32
  }
  func.func @transform_4(%arg0: i32) -> (i32, i32) {
    %c0_i32 = arith.constant 0 : i32
    %c0_i32_0 = arith.constant 0 : i32
    %c0_i32_1 = arith.constant 0 : i32
    return %c0_i32, %c0_i32_0 : i32, i32
  }
  func.func @transform_5(%arg0: i32) -> (i32, i32) {
    %c0_i32 = arith.constant 0 : i32
    %c0_i32_0 = arith.constant 0 : i32
    %c0_i32_1 = arith.constant 0 : i32
    return %c0_i32, %c0_i32_0 : i32, i32
  }
  func.func @transform_6(%arg0: i32) -> (i32, i32) {
    %c0_i32 = arith.constant 0 : i32
    %c0_i32_0 = arith.constant 0 : i32
    %c0_i32_1 = arith.constant 0 : i32
    return %c0_i32, %c0_i32_0 : i32, i32
  }
  func.func @transform_7(%arg0: i32) -> (i32, i32) {
    %c0_i32 = arith.constant 0 : i32
    %c0_i32_0 = arith.constant 0 : i32
    %c0_i32_1 = arith.constant 0 : i32
    return %c0_i32, %c0_i32_0 : i32, i32
  }
  func.func @transform_8(%arg0: i32) -> (i32, i32) {
    %c0_i32 = arith.constant 0 : i32
    %c0_i32_0 = arith.constant 0 : i32
    %c0_i32_1 = arith.constant 0 : i32
    return %c0_i32, %c0_i32_0 : i32, i32
  }
  func.func @transform_9(%arg0: i32) -> (i32, i32) {
    %c0_i32 = arith.constant 0 : i32
    %c0_i32_0 = arith.constant 0 : i32
    %c0_i32_1 = arith.constant 0 : i32
    return %c0_i32, %c0_i32_0 : i32, i32
  }
  func.func @transform_10(%arg0: i32) -> (i32, i32, i32) {
    %c0_i32 = arith.constant 0 : i32
    %c0_i32_0 = arith.constant 0 : i32
    %c0_i32_1 = arith.constant 0 : i32
    return %arg0, %c0_i32, %c0_i32_0 : i32, i32, i32
  }
  func.func @transform_11(%arg0: i32) -> (i32, i32, i32) {
    %c0_i32 = arith.constant 0 : i32
    %c0_i32_0 = arith.constant 0 : i32
    %c0_i32_1 = arith.constant 0 : i32
    return %arg0, %c0_i32, %c0_i32_0 : i32, i32, i32
  }
  func.func @transform_12(%arg0: i32) -> (i32, i32, i32) {
    %c0_i32 = arith.constant 0 : i32
    %c0_i32_0 = arith.constant 0 : i32
    %c0_i32_1 = arith.constant 0 : i32
    return %arg0, %c0_i32, %c0_i32_0 : i32, i32, i32
  }
}

module attributes {stable_mosaic.version = 11 : i64} {
  func.func @_tail_head_kernel(%arg0: i32, %arg1: memref<1x99x200xbf16, #tpu.memory_space<vmem>>, %arg2: memref<1x99x200xf32, #tpu.memory_space<vmem>>, %arg3: memref<200x200xbf16, #tpu.memory_space<vmem>>, %arg4: memref<200x400xbf16, #tpu.memory_space<vmem>>, %arg5: memref<400x200xbf16, #tpu.memory_space<vmem>>, %arg6: memref<8x400xf32, #tpu.memory_space<vmem>>, %arg7: memref<200x256xbf16, #tpu.memory_space<vmem>>, %arg8: memref<1x99x256xf32, #tpu.memory_space<vmem>>) attributes {dimension_semantics = [#tpu.dimension_semantics<parallel>], iteration_bounds = array<i64: 2>, scalar_prefetch = 0 : i64, scratch_operands = 0 : i64, tpu.core_type = #tpu.core_type<tc>, window_params = [{transform_indices = @transform_0, window_bounds = array<i64: 1, 99, 200>}, {transform_indices = @transform_1, window_bounds = array<i64: 1, 99, 200>}, {pipeline_mode = #tpu.pipeline_mode<synchronous>, transform_indices = @transform_2, window_bounds = array<i64: 200, 200>}, {pipeline_mode = #tpu.pipeline_mode<synchronous>, transform_indices = @transform_3, window_bounds = array<i64: 200, 400>}, {pipeline_mode = #tpu.pipeline_mode<synchronous>, transform_indices = @transform_4, window_bounds = array<i64: 400, 200>}, {pipeline_mode = #tpu.pipeline_mode<synchronous>, transform_indices = @transform_5, window_bounds = array<i64: 8, 400>}, {pipeline_mode = #tpu.pipeline_mode<synchronous>, transform_indices = @transform_6, window_bounds = array<i64: 200, 256>}, {transform_indices = @transform_7, window_bounds = array<i64: 1, 99, 256>}]} {
    %c0 = arith.constant 0 : index
    %c0_0 = arith.constant 0 : index
    %c0_1 = arith.constant 0 : index
    %0 = vector.load %arg1[%c0, %c0_0, %c0_1] : memref<1x99x200xbf16, #tpu.memory_space<vmem>>, vector<1x99x200xbf16>
    %1 = vector.shape_cast %0 : vector<1x99x200xbf16> to vector<99x200xbf16>
    %c0_2 = arith.constant 0 : index
    %c0_3 = arith.constant 0 : index
    %c0_4 = arith.constant 0 : index
    %2 = vector.load %arg2[%c0_2, %c0_3, %c0_4] : memref<1x99x200xf32, #tpu.memory_space<vmem>>, vector<1x99x200xf32>
    %3 = vector.shape_cast %2 : vector<1x99x200xf32> to vector<99x200xf32>
    %c0_5 = arith.constant 0 : index
    %c0_6 = arith.constant 0 : index
    %4 = vector.load %arg6[%c0_5, %c0_6] : memref<8x400xf32, #tpu.memory_space<vmem>>, vector<1x200xf32>
    %c1 = arith.constant 1 : index
    %c0_7 = arith.constant 0 : index
    %5 = vector.load %arg6[%c1, %c0_7] : memref<8x400xf32, #tpu.memory_space<vmem>>, vector<1x200xf32>
    %c2 = arith.constant 2 : index
    %c0_8 = arith.constant 0 : index
    %6 = vector.load %arg6[%c2, %c0_8] : memref<8x400xf32, #tpu.memory_space<vmem>>, vector<1x200xf32>
    %c3 = arith.constant 3 : index
    %c0_9 = arith.constant 0 : index
    %7 = vector.load %arg6[%c3, %c0_9] : memref<8x400xf32, #tpu.memory_space<vmem>>, vector<1x200xf32>
    %c4 = arith.constant 4 : index
    %c0_10 = arith.constant 0 : index
    %8 = vector.load %arg6[%c4, %c0_10] : memref<8x400xf32, #tpu.memory_space<vmem>>, vector<1x400xf32>
    %c5 = arith.constant 5 : index
    %c0_11 = arith.constant 0 : index
    %9 = vector.load %arg6[%c5, %c0_11] : memref<8x400xf32, #tpu.memory_space<vmem>>, vector<1x200xf32>
    %c0_12 = arith.constant 0 : index
    %c0_13 = arith.constant 0 : index
    %10 = vector.load %arg3[%c0_12, %c0_13] : memref<200x200xbf16, #tpu.memory_space<vmem>>, vector<200x200xbf16>
    %cst = arith.constant dense<0.000000e+00> : vector<99x200xf32>
    %11 = tpu.matmul %1, %10, %cst {dimension_numbers = #tpu.dot_dimension_numbers<[1], [0], [0], [1], [0, 0, 1, 1], [], []>} : vector<99x200xbf16>, vector<200x200xbf16>, vector<99x200xf32> -> vector<99x200xf32>
    %12 = arith.addf %11, %3 : vector<99x200xf32>
    %cst_14 = arith.constant dense<0.000000e+00> : vector<99xf32>
    %13 = vector.multi_reduction <add>, %12, %cst_14 [1] : vector<99x200xf32> to vector<99xf32>
    %14 = vector.shape_cast %13 : vector<99xf32> to vector<99x1xf32>
    %cst_15 = arith.constant 2.000000e+02 : f32
    %15 = vector.broadcast %cst_15 : f32 to vector<99x1xf32>
    %16 = arith.divf %14, %15 : vector<99x1xf32>
    %17 = vector.broadcast %16 : vector<99x1xf32> to vector<99x200xf32>
    %18 = arith.subf %12, %17 : vector<99x200xf32>
    %19 = arith.mulf %18, %18 : vector<99x200xf32>
    %cst_16 = arith.constant dense<0.000000e+00> : vector<99xf32>
    %20 = vector.multi_reduction <add>, %19, %cst_16 [1] : vector<99x200xf32> to vector<99xf32>
    %21 = vector.shape_cast %20 : vector<99xf32> to vector<99x1xf32>
    %cst_17 = arith.constant 2.000000e+02 : f32
    %22 = vector.broadcast %cst_17 : f32 to vector<99x1xf32>
    %23 = arith.divf %21, %22 : vector<99x1xf32>
    %cst_18 = arith.constant 9.99999974E-6 : f32
    %24 = vector.broadcast %cst_18 : f32 to vector<99x1xf32>
    %25 = arith.addf %23, %24 : vector<99x1xf32>
    %26 = math.rsqrt %25 : vector<99x1xf32>
    %27 = vector.broadcast %26 : vector<99x1xf32> to vector<99x200xf32>
    %28 = arith.mulf %18, %27 : vector<99x200xf32>
    %29 = vector.broadcast %4 : vector<1x200xf32> to vector<99x200xf32>
    %30 = arith.mulf %28, %29 : vector<99x200xf32>
    %31 = vector.broadcast %5 : vector<1x200xf32> to vector<99x200xf32>
    %32 = arith.addf %30, %31 : vector<99x200xf32>
    %33 = arith.truncf %32 : vector<99x200xf32> to vector<99x200xbf16>
    %c0_19 = arith.constant 0 : index
    %c0_20 = arith.constant 0 : index
    %34 = vector.load %arg4[%c0_19, %c0_20] : memref<200x400xbf16, #tpu.memory_space<vmem>>, vector<200x400xbf16>
    %cst_21 = arith.constant dense<0.000000e+00> : vector<99x400xf32>
    %35 = tpu.matmul %33, %34, %cst_21 {dimension_numbers = #tpu.dot_dimension_numbers<[1], [0], [0], [1], [0, 0, 1, 1], [], []>} : vector<99x200xbf16>, vector<200x400xbf16>, vector<99x400xf32> -> vector<99x400xf32>
    %36 = vector.broadcast %8 : vector<1x400xf32> to vector<99x400xf32>
    %37 = arith.addf %35, %36 : vector<99x400xf32>
    %cst_22 = arith.constant 0.000000e+00 : f32
    %38 = vector.broadcast %cst_22 : f32 to vector<99x400xf32>
    %39 = arith.maximumf %37, %38 : vector<99x400xf32>
    %40 = arith.truncf %39 : vector<99x400xf32> to vector<99x400xbf16>
    %c0_23 = arith.constant 0 : index
    %c0_24 = arith.constant 0 : index
    %41 = vector.load %arg5[%c0_23, %c0_24] : memref<400x200xbf16, #tpu.memory_space<vmem>>, vector<400x200xbf16>
    %cst_25 = arith.constant dense<0.000000e+00> : vector<99x200xf32>
    %42 = tpu.matmul %40, %41, %cst_25 {dimension_numbers = #tpu.dot_dimension_numbers<[1], [0], [0], [1], [0, 0, 1, 1], [], []>} : vector<99x400xbf16>, vector<400x200xbf16>, vector<99x200xf32> -> vector<99x200xf32>
    %43 = vector.broadcast %9 : vector<1x200xf32> to vector<99x200xf32>
    %44 = arith.addf %42, %43 : vector<99x200xf32>
    %45 = arith.addf %44, %32 : vector<99x200xf32>
    %cst_26 = arith.constant dense<0.000000e+00> : vector<99xf32>
    %46 = vector.multi_reduction <add>, %45, %cst_26 [1] : vector<99x200xf32> to vector<99xf32>
    %47 = vector.shape_cast %46 : vector<99xf32> to vector<99x1xf32>
    %cst_27 = arith.constant 2.000000e+02 : f32
    %48 = vector.broadcast %cst_27 : f32 to vector<99x1xf32>
    %49 = arith.divf %47, %48 : vector<99x1xf32>
    %50 = vector.broadcast %49 : vector<99x1xf32> to vector<99x200xf32>
    %51 = arith.subf %45, %50 : vector<99x200xf32>
    %52 = arith.mulf %51, %51 : vector<99x200xf32>
    %cst_28 = arith.constant dense<0.000000e+00> : vector<99xf32>
    %53 = vector.multi_reduction <add>, %52, %cst_28 [1] : vector<99x200xf32> to vector<99xf32>
    %54 = vector.shape_cast %53 : vector<99xf32> to vector<99x1xf32>
    %cst_29 = arith.constant 2.000000e+02 : f32
    %55 = vector.broadcast %cst_29 : f32 to vector<99x1xf32>
    %56 = arith.divf %54, %55 : vector<99x1xf32>
    %cst_30 = arith.constant 9.99999974E-6 : f32
    %57 = vector.broadcast %cst_30 : f32 to vector<99x1xf32>
    %58 = arith.addf %56, %57 : vector<99x1xf32>
    %59 = math.rsqrt %58 : vector<99x1xf32>
    %60 = vector.broadcast %59 : vector<99x1xf32> to vector<99x200xf32>
    %61 = arith.mulf %51, %60 : vector<99x200xf32>
    %62 = vector.broadcast %6 : vector<1x200xf32> to vector<99x200xf32>
    %63 = arith.mulf %61, %62 : vector<99x200xf32>
    %64 = vector.broadcast %7 : vector<1x200xf32> to vector<99x200xf32>
    %65 = arith.addf %63, %64 : vector<99x200xf32>
    %c6 = arith.constant 6 : index
    %c0_31 = arith.constant 0 : index
    %66 = vector.load %arg6[%c6, %c0_31] : memref<8x400xf32, #tpu.memory_space<vmem>>, vector<1x200xf32>
    %c7 = arith.constant 7 : index
    %c0_32 = arith.constant 0 : index
    %67 = vector.load %arg6[%c7, %c0_32] : memref<8x400xf32, #tpu.memory_space<vmem>>, vector<1x200xf32>
    %cst_33 = arith.constant dense<0.000000e+00> : vector<99xf32>
    %68 = vector.multi_reduction <add>, %65, %cst_33 [1] : vector<99x200xf32> to vector<99xf32>
    %69 = vector.shape_cast %68 : vector<99xf32> to vector<99x1xf32>
    %cst_34 = arith.constant 2.000000e+02 : f32
    %70 = vector.broadcast %cst_34 : f32 to vector<99x1xf32>
    %71 = arith.divf %69, %70 : vector<99x1xf32>
    %72 = vector.broadcast %71 : vector<99x1xf32> to vector<99x200xf32>
    %73 = arith.subf %65, %72 : vector<99x200xf32>
    %74 = arith.mulf %73, %73 : vector<99x200xf32>
    %cst_35 = arith.constant dense<0.000000e+00> : vector<99xf32>
    %75 = vector.multi_reduction <add>, %74, %cst_35 [1] : vector<99x200xf32> to vector<99xf32>
    %76 = vector.shape_cast %75 : vector<99xf32> to vector<99x1xf32>
    %cst_36 = arith.constant 2.000000e+02 : f32
    %77 = vector.broadcast %cst_36 : f32 to vector<99x1xf32>
    %78 = arith.divf %76, %77 : vector<99x1xf32>
    %cst_37 = arith.constant 9.99999974E-6 : f32
    %79 = vector.broadcast %cst_37 : f32 to vector<99x1xf32>
    %80 = arith.addf %78, %79 : vector<99x1xf32>
    %81 = math.rsqrt %80 : vector<99x1xf32>
    %82 = vector.broadcast %81 : vector<99x1xf32> to vector<99x200xf32>
    %83 = arith.mulf %73, %82 : vector<99x200xf32>
    %84 = vector.broadcast %66 : vector<1x200xf32> to vector<99x200xf32>
    %85 = arith.mulf %83, %84 : vector<99x200xf32>
    %86 = vector.broadcast %67 : vector<1x200xf32> to vector<99x200xf32>
    %87 = arith.addf %85, %86 : vector<99x200xf32>
    %88 = arith.truncf %87 : vector<99x200xf32> to vector<99x200xbf16>
    %c0_38 = arith.constant 0 : index
    %c0_39 = arith.constant 0 : index
    %89 = vector.load %arg7[%c0_38, %c0_39] : memref<200x256xbf16, #tpu.memory_space<vmem>>, vector<200x256xbf16>
    %cst_40 = arith.constant dense<0.000000e+00> : vector<99x256xf32>
    %90 = tpu.matmul %88, %89, %cst_40 {dimension_numbers = #tpu.dot_dimension_numbers<[1], [0], [0], [1], [0, 0, 1, 1], [], []>} : vector<99x200xbf16>, vector<200x256xbf16>, vector<99x256xf32> -> vector<99x256xf32>
    %c0_41 = arith.constant 0 : index
    %c0_42 = arith.constant 0 : index
    %c0_43 = arith.constant 0 : index
    %91 = vector.load %arg8[%c0_41, %c0_42, %c0_43] : memref<1x99x256xf32, #tpu.memory_space<vmem>>, vector<1x99x256xf32>
    %92 = vector.shape_cast %91 : vector<1x99x256xf32> to vector<99x256xf32>
    %93 = vector.shape_cast %90 : vector<99x256xf32> to vector<1x99x256xf32>
    tpu.vector_store %arg8[%c0_41, %c0_42, %c0_43], %93 {strides = array<i32>} : memref<1x99x256xf32, #tpu.memory_space<vmem>>, vector<1x99x256xf32>,
    return
  }
  func.func @transform_0(%arg0: i32) -> (i32, i32, i32) {
    %c0_i32 = arith.constant 0 : i32
    %c0_i32_0 = arith.constant 0 : i32
    %c0_i32_1 = arith.constant 0 : i32
    return %arg0, %c0_i32, %c0_i32_0 : i32, i32, i32
  }
  func.func @transform_1(%arg0: i32) -> (i32, i32, i32) {
    %c0_i32 = arith.constant 0 : i32
    %c0_i32_0 = arith.constant 0 : i32
    %c0_i32_1 = arith.constant 0 : i32
    return %arg0, %c0_i32, %c0_i32_0 : i32, i32, i32
  }
  func.func @transform_2(%arg0: i32) -> (i32, i32) {
    %c0_i32 = arith.constant 0 : i32
    %c0_i32_0 = arith.constant 0 : i32
    %c0_i32_1 = arith.constant 0 : i32
    return %c0_i32, %c0_i32_0 : i32, i32
  }
  func.func @transform_3(%arg0: i32) -> (i32, i32) {
    %c0_i32 = arith.constant 0 : i32
    %c0_i32_0 = arith.constant 0 : i32
    %c0_i32_1 = arith.constant 0 : i32
    return %c0_i32, %c0_i32_0 : i32, i32
  }
  func.func @transform_4(%arg0: i32) -> (i32, i32) {
    %c0_i32 = arith.constant 0 : i32
    %c0_i32_0 = arith.constant 0 : i32
    %c0_i32_1 = arith.constant 0 : i32
    return %c0_i32, %c0_i32_0 : i32, i32
  }
  func.func @transform_5(%arg0: i32) -> (i32, i32) {
    %c0_i32 = arith.constant 0 : i32
    %c0_i32_0 = arith.constant 0 : i32
    %c0_i32_1 = arith.constant 0 : i32
    return %c0_i32, %c0_i32_0 : i32, i32
  }
  func.func @transform_6(%arg0: i32) -> (i32, i32) {
    %c0_i32 = arith.constant 0 : i32
    %c0_i32_0 = arith.constant 0 : i32
    %c0_i32_1 = arith.constant 0 : i32
    return %c0_i32, %c0_i32_0 : i32, i32
  }
  func.func @transform_7(%arg0: i32) -> (i32, i32, i32) {
    %c0_i32 = arith.constant 0 : i32
    %c0_i32_0 = arith.constant 0 : i32
    %c0_i32_1 = arith.constant 0 : i32
    return %arg0, %c0_i32, %c0_i32_0 : i32, i32, i32
  }
}

</mosaic_0001>

<bundles_post_ra>
// kernel: forward.4
= control target key start
LH: loop header
LB: loop body
LE: loop exit
PB: predicated region body
PF: predicated region fallthrough
CT: control target
= control target key end

     0   :  { %15 = vsyncpa [#allocation3], 0  ;;  %s5093_s0 = inlined_call_operand.vmem [shape: s32[2,99,1], index: 0, kind: input, shape index: {}]   ;;  %s5094_s1 = inlined_call_operand.hbm [shape: bf16[177,200], index: 1, kind: input, shape index: {}]   ;;  %s5095_s2 = inlined_call_operand.vmem [shape: f32[99,200], index: 2, kind: input, shape index: {}]   ;;  %s5096_s3 = inlined_call_operand.hbm [shape: bf16[200,384], index: 3, kind: input, shape index: {}]   ;;  %s5097_s4 = inlined_call_operand.hbm [shape: bf16[128,1024], index: 4, kind: input, shape index: {}]   ;;  %s5098_s5 = inlined_call_operand.vmem [shape: bf16[200,20], index: 5, kind: input, shape index: {}]   ;;  %s5099_s6 = inlined_call_operand.hbm [shape: bf16[20,200], index: 6, kind: input, shape index: {}]   ;;  %s5100_s7 = inlined_call_operand.vmem [shape: f32[2,99,200], index: 7, kind: output, shape index: {0}]   ;;  %s5101_s8 = inlined_call_operand.vmem [shape: bf16[2,99,200], index: 8, kind: output, shape index: {1}]   ;;  %s5102_s9 = inlined_call_operand.vmem [shape: f32[2,99,128], index: 9, kind: output, shape index: {2}]  }
   0x1   :  { %16 = vsyncpa [#allocation5], 0 }
   0x2   :  { %17 = vsyncpa [#allocation8], 0  ;;  %s4047_s30 = smov 0  }
   0x3 LB: > { %s3984_s10 = smov [#allocation4]   ;;  %s4053_s12 = sadd.s32 4294967295, %s3982_s30   ;;  %s3982_s30 = sphi %s4047_s30, %s23_s30  }
   0x4   : > { %s286_s11 = sshll.u32 %s3984_s10, 4  ;;  %p3329_p0 = scmp.ge.s32.totalorder %s3982_s30, 1  ;;  %s4058_s11 = int_to_ptr.vmem [resolvable:$true] %s286_s11 }
   0x5   : > { %p258_p1 = scmp.lt.s32.totalorder %s3982_s30, 3  ;;  %p5103_p2 = scmp.eq.s32.totalorder %s4053_s12, 0 }
   0x6   : > { %s3985_s14 = smov [#allocation2]   ;;  %s3986_s17 = smov [#allocation6]  }
   0x7   : > { %p4060_p3 = pnand %p3329_p0, %p258_p1  ;;  %s270_s15 = sshll.u32 %s3985_s14, 4  ;;  %s4066_s15 = int_to_ptr.vmem [resolvable:$true] %s270_s15 }
   0x8   : > { %s4074_s18 = sshll.u32 %s3986_s17, 4  ;;  %s3852_s21 = scalar_lea.hbm %s5096_s3, 4800  ;;  %s300_s18 = int_to_ptr.vmem [resolvable:$true] %s4074_s18 }
   0x9   : > { %s5107_s13 = scalar_select %p4060_p3, 1, 0 }
   0xa   : > { %p3626_p4 = pneg %p4060_p3  ;;  %p3853_p6 = scmp.ne.s32.totalorder %s5096_s3, %s3852_s21 }
   0xb   : > { %p3859_p10 = scmp.lt.u32.totalorder %s3852_s21, %s5096_s3 }
   0xc   : > { %p4070_p5 = pnand %p5103_p2, %p3626_p4 }
   0xe   : > { %p4084_p7 = pneg %p4070_p5 }
  0x10   : > { %p3855_p8 = pnand %p4084_p7, %p3853_p6 }
  0x12   : > { %p3856_p9 = pneg %p3855_p8 }
  0x14   : > { %p3861_p11 = pnand %p3859_p10, %p3856_p9 }
  0x16   : > { %3864 = shalt.err (!%p3861_p11)
}
  0x17   : > { %s3865_s27 = scalar_lea.vmem %s4058_s11, 4800  ;;  %p3873_p1 = scmp.lt.s32.totalorder %s4058_s11, %s4058_s11 }
  0x18   : > { %p3866_p12 = scmp.ne.s32.totalorder %s4058_s11, %s3865_s27  ;;  %p3874_p4 = scmp.lt.s32.totalorder %s3865_s27, %s3865_s27 }
  0x1a   : > { %p3868_p13 = pnand %p3866_p12, %p4084_p7  ;;  %p3875_p6 = por %p3874_p4, %p3873_p1 }
  0x1c   : > { %p3869_p0 = pneg %p3868_p13 }
  0x1e   : > { %p3876_p8 = pnand %p3875_p6, %p3869_p0 }
  0x20   : > { %3879 = shalt.err (!%p3876_p8)
}
  0x21   : > { %s3987_s28 = smov 192   ;;  %s3988_s29 = smov 12  }
  0x22   : > { %3632 = dma.hbm_to_vmem [thread:$0]  (!%p4070_p5), %s5096_s3, 4800, %s4058_s11, [#allocation5], %s3987_s28, %s3987_s28, %s3988_s29  }
  0x23   : > { %s3880_s20 = scalar_lea.hbm %s5094_s1, 2944 }
  0x24   : > { %p3881_p9 = scmp.ne.s32.totalorder %s5094_s1, %s3880_s20  ;;  %p3887_p12 = scmp.lt.u32.totalorder %s3880_s20, %s5094_s1 }
  0x26   : > { %p3883_p10 = pnand %p3881_p9, %p4084_p7 }
  0x28   : > { %p3884_p11 = pneg %p3883_p10 }
  0x2a   : > { %p3889_p13 = pnand %p3887_p12, %p3884_p11 }
  0x2c   : > { %3892 = shalt.err (!%p3889_p13)
}
  0x2d   : > { %s3893_s11 = scalar_lea.vmem %s4066_s15, 2944  ;;  %p3901_p6 = scmp.lt.s32.totalorder %s4066_s15, %s4066_s15 }
  0x2e   : > { %p3894_p0 = scmp.ne.s32.totalorder %s4066_s15, %s3893_s11  ;;  %p3902_p8 = scmp.lt.s32.totalorder %s3893_s11, %s3893_s11 }
  0x30   : > { %p3896_p1 = pnand %p3894_p0, %p4084_p7  ;;  %p3903_p9 = por %p3902_p8, %p3901_p6 }
  0x32   : > { %p3897_p4 = pneg %p3896_p1 }
  0x34   : > { %p3904_p10 = pnand %p3903_p9, %p3897_p4 }
  0x36   : > { %3907 = shalt.err (!%p3904_p10)
}
  0x37   : > { %s3989_s26 = smov 128   ;;  %s3990_s27 = smov 8  }
  0x38   : > { %3629 = dma.hbm_to_vmem [thread:$0]  (!%p4070_p5), %s5094_s1, 2944, %s4066_s15, [#allocation3], %s3989_s26, %s3989_s26, %s3990_s27  }
  0x39   : > { %s3908_s17 = scalar_lea.hbm %s5097_s4, 8192 }
  0x3a   : > { %p3909_p11 = scmp.ne.s32.totalorder %s5097_s4, %s3908_s17  ;;  %p3915_p0 = scmp.lt.u32.totalorder %s3908_s17, %s5097_s4 }
  0x3c   : > { %p3911_p12 = pnand %p3909_p11, %p4084_p7 }
  0x3e   : > { %p3912_p13 = pneg %p3911_p12 }
  0x40   : > { %p3917_p1 = pnand %p3915_p0, %p3912_p13 }
  0x42   : > { %3920 = shalt.err (!%p3917_p1)
}
  0x43   : > { %s3921_s23 = scalar_lea.vmem %s300_s18, 8192  ;;  %p3929_p9 = scmp.lt.s32.totalorder %s300_s18, %s300_s18 }
  0x44   : > { %p3922_p4 = scmp.ne.s32.totalorder %s300_s18, %s3921_s23  ;;  %p3930_p10 = scmp.lt.s32.totalorder %s3921_s23, %s3921_s23 }
  0x46   : > { %p3924_p6 = pnand %p3922_p4, %p4084_p7  ;;  %p3931_p2 = por %p3930_p10, %p3929_p9 }
  0x48   : > { %p3925_p8 = pneg %p3924_p6 }
  0x4a   : > { %p3932_p3 = pnand %p3931_p2, %p3925_p8 }
  0x4c   : > { %3935 = shalt.err (!%p3932_p3)
}
  0x4d   : > { %s3991_s15 = smov 512   ;;  %s3992_s25 = smov 32  }
  0x4e   : > { %3635 = dma.hbm_to_vmem [thread:$0]  (!%p4070_p5), %s5097_s4, 8192, %s300_s18, [#allocation5], %s3991_s15, %s3991_s15, %s3992_s25  }
  0x4f   : > { %s3993_s29 = smov [#allocation7]   ;;  %s3936_s19 = scalar_lea.hbm %s5099_s6, 384 }
  0x50   : > { %s315_s10 = sshll.u32 %s3993_s29, 4  ;;  %p3937_p2 = scmp.ne.s32.totalorder %s5099_s6, %s3936_s19  ;;  %s316_s10 = int_to_ptr.vmem [resolvable:$true] %s315_s10 }
  0x51   : > { %p3943_p12 = scmp.lt.u32.totalorder %s3936_s19, %s5099_s6 }
  0x52   : > { %p3939_p3 = pnand %p3937_p2, %p4084_p7 }
  0x54   : > { %p3940_p11 = pneg %p3939_p3 }
  0x56   : > { %p3945_p13 = pnand %p3943_p12, %p3940_p11 }
  0x58   : > { %3948 = shalt.err (!%p3945_p13)
}
  0x59   : > { %s3949_s18 = scalar_lea.vmem %s316_s10, 384  ;;  %p3957_p6 = scmp.lt.s32.totalorder %s316_s10, %s316_s10 }
  0x5a   : > { %p3950_p0 = scmp.ne.s32.totalorder %s316_s10, %s3949_s18  ;;  %p3958_p8 = scmp.lt.s32.totalorder %s3949_s18, %s3949_s18 }
  0x5c   : > { %p3952_p1 = pnand %p3950_p0, %p4084_p7  ;;  %p3959_p9 = por %p3958_p8, %p3957_p6 }
  0x5e   : > { %p3953_p4 = pneg %p3952_p1 }
  0x60   : > { %p3960_p10 = pnand %p3959_p9, %p3953_p4 }
  0x62   : > { %3963 = shalt.err (!%p3960_p10)
}
  0x63   : > { %3638 = dma.hbm_to_vmem [thread:$0]  (!%p4070_p5), %s5099_s6, 384, %s316_s10, [#allocation8], %s3989_s26, %s3989_s26, %s3990_s27  }
  0x64   : > { %p5110_p2 = scmp.ne.s32.totalorder %s5107_s13, 0 }
  0x66   : > { %339 = sbr.rel (%p5110_p2) target bundleno = 1495 (0x5d7), region = 48 }
  0x6d   : > { %p5111_p7 = scmp.eq.s32.totalorder %s4053_s12, 0 }
  0x6f   : > { %3969 = dma.done.wait (%p5111_p7), [#allocation3], 2944   ;;  %p5112_p3 = pmov %p5111_p7 }
  0x71   : > { %3971 = vsyncadd (%p5112_p3), [#allocation3], 4294964352  ;;  %p5113_p11 = pmov %p5112_p3 }
  0x72   : > { %p5114_p12 = pmov %p5112_p3 }
  0x73   : > { %3973 = dma.done.wait (%p5113_p11), [#allocation5], 12992  }
  0x74   : > { %3975 = vsyncadd (%p5114_p12), [#allocation5], 4294954304  ;;  %p5115_p13 = pmov %p5112_p3 }
  0x75   : > { %p5116_p5 = pmov %p5112_p3 }
  0x76   : > { %3977 = dma.done.wait (%p5115_p13), [#allocation8], 384  }
  0x77   : > { %3979 = vsyncadd (%p5116_p5), [#allocation8], 4294966912  ;;  %p397_p0 = scmp.lt.s32.totalorder %s4053_s12, 1  ;;  %v5105_v0 = vmov 0   ;;  %v3670_v6 = vld [vmem:[#allocation2 + $0x4] ss:$8 sps:$4 sm:$0xff]  }
  0x78   : > { %3669 = vset.pattern.permute.xlu1 %v5105_v0  ;;  %3668 = vset.pattern.permute.xlu0 %v5105_v0  ;;  %v3672_v7 = vld [vmem:[#allocation2] ss:$8 sps:$4 sm:$0xff]   ;;  %v3673_v9 = vld [vmem:[#allocation2 + $0x14] ss:$8 sps:$4 sm:$0xff]   ;;  %v3675_v10 = vld [vmem:[#allocation2 + $0x10] ss:$8 sps:$4 sm:$0xff]  }
  0x79   : > { %s5167_s12 = smov (!%p397_p0, %s4053_s12), 1  ;;  %734 = vmatprep.subr.bf16.mxu0 %v3670_v6  ;;  %v3676_v13 = vld [vmem:[#allocation2 + $0x24] ss:$8 sps:$4 sm:$0xff]   ;;  %v3678_v14 = vld [vmem:[#allocation2 + $0x20] ss:$8 sps:$4 sm:$0xff]   ;;  %vm725_vm0 = vcmask 1040384  }
  0x7a   : > { %s4192_s13 = smul.u32 104, %s5167_s12  ;;  %735 = vmatpush1.bf16.msra.mxu0 %v3672_v7  ;;  %v3679_v17 = vld [vmem:[#allocation2 + $0x34] ss:$8 sps:$4 sm:$0xff]   ;;  %v3681_v18 = vld [vmem:[#allocation2 + $0x30] ss:$8 sps:$4 sm:$0xff]   ;;  %v727_v32 = vsel %vm725_vm0, 65535, %v5105_v0 }
  0x7b   : > { %736 = vmatprep.subr.bf16.mxu0 %v3673_v9  ;;  %v3682_v21 = vld [vmem:[#allocation2 + $0x44] ss:$8 sps:$4 sm:$0xff]   ;;  %v3684_v22 = vld [vmem:[#allocation2 + $0x40] ss:$8 sps:$4 sm:$0xff]   ;;  %v3685_v23 = vld [vmem:[#allocation2 + $0x54] ss:$8 sps:$4 sm:$0xff]  }
  0x7c   : > { %s4198_s26 = scalar_lea.vmem %s5093_s0, %s4192_s13  ;;  %v3687_v25 = vld [vmem:[#allocation2 + $0x50] ss:$8 sps:$4 sm:$0xff]   ;;  %v3688_v26 = vld [vmem:[#allocation2 + $0x64] ss:$8 sps:$4 sm:$0xff]   ;;  %v3690_v27 = vld [vmem:[#allocation2 + $0x60] ss:$8 sps:$4 sm:$0xff]   ;;  %s4430_s28 = scalar_lea.vmem %s5102_s9, %s4192_s13 }
  0x7d   : > { %v420_v1 = vld [vmem:[%s4198_s26 + $0x10] sm:$0xff]  ;;  %v418_v2 = vld [vmem:[%s4198_s26] sm:$0xff]  ;;  %v421_v3 = vld [vmem:[%s4198_s26 + $0x18] sm:$0xff]  ;;  %v3995_v6 = vmov 0.0   ;;  %vm703_vm5 = vcmask 400384   ;;  %s3609_s27 = smul.u32 208, %s5167_s12  ;;  %s4994_s18 = scalar_lea.vmem %s5101_s8, %s4192_s13 }
  0x7e   : > { %441 = vperm.xlu1 %3669, %v420_v1   ;;  %435 = vperm.xlu0 %3668, %v418_v2   ;;  %v419_v4 = vld [vmem:[%s4198_s26 + $0x8] sm:$0xff]  ;;  %v422_v8 = vld [vmem:[%s4198_s26 + $0x20] sm:$0xff]  ;;  %v425_v11 = vld [vmem:[%s4198_s26 + $0x38] sm:$0xff]  ;;  %v431_v1 = vlaneseq }
  0x7f   : > { %v423_v5 = vld [vmem:[%s4198_s26 + $0x28] sm:$0xff]  ;;  %v424_v12 = vld [vmem:[%s4198_s26 + $0x30] sm:$0xff]  ;;  %737 = vmatpush1.bf16.msra.mxu0 %v3675_v10  ;;  %v426_v16 = vld [vmem:[%s4198_s26 + $0x40] sm:$0xff]  ;;  %s4298_s19 = scalar_lea.vmem %s5100_s7, %s3609_s27 }
  0x80   : > { %v427_v15 = vld [vmem:[%s4198_s26 + $0x48] sm:$0xff]  ;;  %738 = vmatprep.subr.bf16.mxu0 %v3676_v13  ;;  %v429_v19 = vld [vmem:[%s4198_s26 + $0x58] sm:$0xff]  ;;  %v428_v20 = vld [vmem:[%s4198_s26 + $0x50] sm:$0xff]  ;;  %v4215_v2 = vand.u32 127, %v431_v1 }
  0x81   : > { %v430_v24 = vld [vmem:[%s4198_s26 + $0x60] sm:$0x7]  ;;  %v3691_v28 = vld [vmem:[#allocation2 + $0x74] ss:$8 sps:$4 sm:$0xff]   ;;  %v3693_v29 = vld [vmem:[#allocation2 + $0x70] ss:$8 sps:$4 sm:$0xff]  }
  0x82   : > { %444 = vperm.xlu1 %3669, %v421_v3   ;;  %438 = vperm.xlu0 %3668, %v419_v4   ;;  %v3694_v30 = vld [vmem:[#allocation2 + $0x84] ss:$8 sps:$4 sm:$0xff]   ;;  %v3696_v31 = vld [vmem:[#allocation2 + $0x80] ss:$8 sps:$4 sm:$0xff]   ;;  %v3697_v33 = vld [vmem:[#allocation2 + $0x94] ss:$8 sps:$4 sm:$0xff]  }
  0x83   : > { %739 = vmatpush1.bf16.msra.mxu0 %v3678_v14  ;;  %v561_v34 = vld [vmem:[#allocation2 + $0xb0] sm:$0x11]  ;;  %v3700_v36 = vld [vmem:[#allocation2 + $0xa4] ss:$8 sps:$4 sm:$0xff]   ;;  %v3702_v38 = vld [vmem:[#allocation2 + $0xa0] ss:$8 sps:$4 sm:$0xff]  }
  0x84   : > { %740 = vmatprep.subr.bf16.mxu0 %v3679_v17  ;;  %v3699_v35 = vld [vmem:[#allocation2 + $0x90] ss:$8 sps:$4 sm:$0xff]   ;;  %v3367_v37 = vcombine.high %v561_v34, %v561_v34  ;;  %v3366_v39 = vcombine.low %v561_v34, %v561_v34  ;;  %v3706_v42 = vld [vmem:[#allocation4 + $0x4] ss:$12 sps:$4 sm:$0xff]   ;;  %v3710_v44 = vld [vmem:[#allocation4 + $0x1c] ss:$12 sps:$4 sm:$0xff]  }
  0x85   : > { %v3708_v43 = vld [vmem:[#allocation4] ss:$12 sps:$4 sm:$0xff]   ;;  %1158 = vmatprep.subr.bf16.mxu1 %v3706_v42  ;;  %v3712_v45 = vld [vmem:[#allocation4 + $0x18] ss:$12 sps:$4 sm:$0xff]   ;;  %v3716_v47 = vld [vmem:[#allocation4 + $0x30] ss:$12 sps:$4 sm:$0xff]  }
  0x86   : > { %450 = vperm.xlu1 %3669, %v423_v5   ;;  %447 = vperm.xlu0 %3668, %v422_v8   ;;  %v732_v40 = vand.u32 %v3367_v37, %v727_v32  ;;  %v729_v41 = vand.u32 %v3366_v39, %v727_v32  ;;  %v3714_v46 = vld [vmem:[#allocation4 + $0x34] ss:$12 sps:$4 sm:$0xff]   ;;  %v3718_v48 = vld [vmem:[#allocation4 + $0x4c] ss:$12 sps:$4 sm:$0xff]   ;;  %v3722_v50 = vld [vmem:[#allocation4 + $0x64] ss:$12 sps:$4 sm:$0xff]  }
  0x87   : > { %741 = vmatpush1.bf16.msra.mxu0 %v3681_v18  ;;  %1159 = vmatpush1.bf16.msra.mxu1 %v3708_v43  ;;  %v3720_v49 = vld [vmem:[#allocation4 + $0x48] ss:$12 sps:$4 sm:$0xff]   ;;  %v3724_v51 = vld [vmem:[#allocation4 + $0x60] ss:$12 sps:$4 sm:$0xff]   ;;  %v3728_v53 = vld [vmem:[#allocation4 + $0x78] ss:$12 sps:$4 sm:$0xff]  }
  0x88   : > { %742 = vmatprep.subr.bf16.mxu0 %v3682_v21  ;;  %1160 = vmatprep.subr.bf16.mxu1 %v3710_v44  ;;  %v3726_v52 = vld [vmem:[#allocation4 + $0x7c] ss:$12 sps:$4 sm:$0xff]   ;;  %v3730_v54 = vld [vmem:[#allocation4 + $0x94] ss:$12 sps:$4 sm:$0xff]   ;;  %v3734_v56 = vld [vmem:[#allocation4 + $0xac] ss:$12 sps:$4 sm:$0xff]  }
  0x89   : > { %v3732_v55 = vld [vmem:[#allocation4 + $0x90] ss:$12 sps:$4 sm:$0xff]   ;;  %v3736_v57 = vld [vmem:[#allocation4 + $0xa8] ss:$12 sps:$4 sm:$0xff]   ;;  %v3740_v59 = vld [vmem:[#allocation4 + $0xc0] ss:$12 sps:$4 sm:$0xff]  }
  0x8a   : > { %456 = vperm.xlu1 %3669, %v425_v11   ;;  %453 = vperm.xlu0 %3668, %v424_v12   ;;  %v3738_v58 = vld [vmem:[#allocation4 + $0xc4] ss:$12 sps:$4 sm:$0xff]   ;;  %v3742_v60 = vld [vmem:[#allocation4 + $0xdc] ss:$12 sps:$4 sm:$0xff]   ;;  %v3745_v62 = vld [vmem:[#allocation4 + $0xf4] ss:$12 sps:$4 sm:$0xff]  }
  0x8b   : > { %743 = vmatpush1.bf16.msra.mxu0 %v3684_v22  ;;  %1161 = vmatpush1.bf16.msra.mxu1 %v3712_v45  ;;  %v3744_v61 = vld [vmem:[#allocation4 + $0xd8] ss:$12 sps:$4 sm:$0xff]   ;;  %v3748_v63 = vld [vmem:[#allocation4 + $0xf0] ss:$12 sps:$4 sm:$0xff]   ;;  %v4218_v3 = vadd.s32 128, %v4215_v2 }
  0x8c   : > { %744 = vmatprep.subr.bf16.mxu0 %v3685_v23  ;;  %1162 = vmatprep.subr.bf16.mxu1 %v3714_v46  ;;  %v3996_v18 = vmov 1.0|1.0   ;;  %v3713_v22 = vld [vmem:[#allocation4 + $0x38] ss:$12 sps:$4 sm:$0xff]   ;;  %v3737_v43 = vld [vmem:[#allocation4 + $0xc8] ss:$12 sps:$4 sm:$0xff]  }
  0x8d   : > { %v3741_v46 = vld [vmem:[#allocation4 + $0xe0] ss:$12 sps:$4 sm:$0xff]   ;;  %v1359_v1 = vld [vmem:[#allocation6 + $0x28] sm:$0xff] }
  0x8e   : > { %462 = vperm.xlu1 %3669, %v427_v15   ;;  %459 = vperm.xlu0 %3668, %v426_v16   ;;  %v3705_v15 = vld [vmem:[#allocation4 + $0x8] ss:$12 sps:$4 sm:$0xff]  }
  0x8f   : > { %745 = vmatpush1.bf16.msra.mxu0 %v3687_v25  ;;  %1163 = vmatpush1.bf16.msra.mxu1 %v3716_v47 }
  0x90   : > { %746 = vmatprep.subr.bf16.mxu0 %v3688_v26  ;;  %1164 = vmatprep.subr.bf16.mxu1 %v3718_v48  ;;  %v3717_v26 = vld [vmem:[#allocation4 + $0x50] ss:$12 sps:$4 sm:$0xff]   ;;  %v3747_v48 = vld [vmem:[#allocation4 + $0xf8] ss:$12 sps:$4 sm:$0xff]  }
  0x92   : > { %468 = vperm.xlu1 %3669, %v429_v19   ;;  %465 = vperm.xlu0 %3668, %v428_v20   ;;  %v3709_v19 = vld [vmem:[#allocation4 + $0x20] ss:$12 sps:$4 sm:$0xff]  }
  0x93   : > { %747 = vmatpush1.bf16.msra.mxu0 %v3690_v27  ;;  %1165 = vmatpush1.bf16.msra.mxu1 %v3720_v49 }
  0x94   : > { %748 = vmatprep.subr.bf16.mxu0 %v3691_v28  ;;  %1166 = vmatprep.subr.bf16.mxu1 %v3722_v50  ;;  %v3749_v50 = vld [vmem:[#allocation4 + $0x10c] ss:$12 sps:$4 sm:$0xff]  }
  0x96   : > { %471 = vperm.xlu0 %3668, %v430_v24  }
  0x97   : > { %749 = vmatpush1.bf16.msra.mxu0 %v3693_v29  ;;  %1167 = vmatpush1.bf16.msra.mxu1 %v3724_v51  ;;  %v3721_v29 = vld [vmem:[#allocation4 + $0x68] ss:$12 sps:$4 sm:$0xff]   ;;  %v3751_v51 = vld [vmem:[#allocation4 + $0x110] ss:$12 sps:$4 sm:$0xff]  }
  0x98   : > { %750 = vmatprep.subr.bf16.mxu0 %v3694_v30  ;;  %1168 = vmatprep.subr.bf16.mxu1 %v3726_v52  ;;  %v3752_v52 = vld [vmem:[#allocation4 + $0x108] ss:$12 sps:$4 sm:$0xff]  }
  0x9b   : > { %751 = vmatpush1.bf16.msra.mxu0 %v3696_v31  ;;  %1169 = vmatpush1.bf16.msra.mxu1 %v3728_v53  ;;  %v925_v53 = vld [vmem:[#allocation4 + $0x120] sm:$0xff] }
  0x9c   : > { %752 = vmatprep.subr.bf16.mxu0 %v3697_v33  ;;  %1170 = vmatprep.subr.bf16.mxu1 %v3730_v54  ;;  %v3725_v33 = vld [vmem:[#allocation4 + $0x80] ss:$12 sps:$4 sm:$0xff]   ;;  %v3426_v54 = vcombine.high %v925_v53, %v925_v53 }
  0x9f   : > { %753 = vmatpush1.bf16.msra.mxu0 %v3699_v35  ;;  %1171 = vmatpush1.bf16.msra.mxu1 %v3732_v55  ;;  %v3754_v55 = vld [vmem:[#allocation4 + $0x128] ss:$0 sps:$4 sm:$0xff]  }
  0xa0   : > { %754 = vmatprep.subr.bf16.mxu0 %v3700_v36  ;;  %1172 = vmatprep.subr.bf16.mxu1 %v3734_v56  ;;  %v3729_v36 = vld [vmem:[#allocation4 + $0x98] ss:$12 sps:$4 sm:$0xff]   ;;  %v3425_v56 = vcombine.low %v925_v53, %v925_v53  ;;  %v571_v53 = vld [vmem:[%s5095_s2 + $0x48] sm:$0xff] }
  0xa3   : > { %755 = vmatpush1.bf16.msra.mxu0 %v3702_v38  ;;  %1173 = vmatpush1.bf16.msra.mxu1 %v3736_v57 }
  0xa4   : > { %756 = vmatprep.subr.bf16.mxu0 %v732_v40  ;;  %1174 = vmatprep.subr.bf16.mxu1 %v3738_v58  ;;  %v3733_v40 = vld [vmem:[#allocation4 + $0xb0] ss:$12 sps:$4 sm:$0xff]  }
  0xa7   : > { %757 = vmatpush1.bf16.msra.mxu0 %v729_v41  ;;  %1175 = vmatpush1.bf16.msra.mxu1 %v3740_v59  ;;  %v1354_v59 = vld [vmem:[#allocation6] sm:$0xff] }
  0xa8   : > { %1259 = vmatprep.subr.bf16.mxu0 %v5105_v0  ;;  %1176 = vmatprep.subr.bf16.mxu1 %v3742_v60  ;;  %v1358_v60 = vld [vmem:[#allocation6 + $0x20] sm:$0xff] }
  0xab   : > { %1177 = vmatpush1.bf16.msra.mxu1 %v3744_v61  ;;  %v3443_v61 = vcombine.low %v1354_v59, %v1358_v60 }
  0xac   : > { %1178 = vmatprep.subr.bf16.mxu1 %v3745_v62  ;;  %v3444_v62 = vcombine.high %v1354_v59, %v1358_v60  ;;  %v1390_v59 = vld [vmem:[#allocation6 + $0x120] sm:$0xff]  ;;  %v1387_v60 = vld [vmem:[#allocation6 + $0x108] sm:$0xff] }
  0xaf   : > { %1179 = vmatpush1.bf16.msra.mxu1 %v3748_v63  ;;  %v1355_v63 = vld [vmem:[#allocation6 + $0x8] sm:$0xff] }
  0xb0   : > { %1180 = vmatprep.subr.bf16.mxu1 %v3749_v50  ;;  %v570_v50 = vld [vmem:[%s5095_s2 + $0x40] sm:$0xff] }
  0xb3   : > { %1181 = vmatpush1.bf16.msra.mxu1 %v3752_v52 }
  0xfd   : > { %v442_v4 = vpop.permute.xlu1 %441  ;;  %v436_v5 = vpop.permute.xlu0 %435 }
  0xfe   : > { %vm478_vm1 = vcmp.eq.s32.totalorder %v4218_v3, %v442_v4  ;;  %vm474_vm2 = vcmp.eq.s32.totalorder %v4218_v3, %v436_v5  ;;  %vm473_vm7 = vcmp.eq.s32.totalorder %v4215_v2, %v436_v5  ;;  %vm477_vm11 = vcmp.eq.s32.totalorder %v4215_v2, %v442_v4  ;;  %v562_v4 = vld [vmem:[%s5095_s2] sm:$0xff]  ;;  %v563_v5 = vld [vmem:[%s5095_s2 + $0x8] sm:$0xff] }
  0xff   : > { %v504_v7 = vsel %vm478_vm1, 1.0, %v3995_v6  ;;  %v500_v11 = vsel %vm474_vm2, 1.0, %v3995_v6 }
 0x101   : > { %v445_v8 = vpop.permute.xlu1 %444  ;;  %v439_v9 = vpop.permute.xlu0 %438 }
 0x102   : > { %vm480_vm3 = vcmp.eq.s32.totalorder %v4218_v3, %v445_v8  ;;  %vm476_vm4 = vcmp.eq.s32.totalorder %v4218_v3, %v439_v9  ;;  %vm475_vm6 = vcmp.eq.s32.totalorder %v4215_v2, %v439_v9  ;;  %vm479_vm12 = vcmp.eq.s32.totalorder %v4215_v2, %v445_v8 }
 0x103   : > { %v506_v10 = vsel %vm480_vm3, 1.0, %v3995_v6  ;;  %v502_v12 = vsel %vm476_vm4, 1.0, %v3995_v6  ;;  %vm3369_vm8 = vmpackc.low %vm475_vm6, %vm473_vm7 }
 0x104   : > { %v528_v13 = vpack.c.bf16 %v506_v10, %v504_v7  ;;  %v526_v14 = vpack.c.bf16 %v502_v12, %v500_v11  ;;  %vm3372_vm13 = vmpackc.low %vm479_vm12, %vm477_vm11  ;;  %v564_v7 = vld [vmem:[%s5095_s2 + $0x10] sm:$0xff]  ;;  %v565_v10 = vld [vmem:[%s5095_s2 + $0x18] sm:$0xff] }
 0x105   : > { %v451_v16 = vpop.permute.xlu1 %450  ;;  %v448_v17 = vpop.permute.xlu0 %447 }
 0x106   : > { %3368 = vmatprep.mubr.msk.bf16.mxu0 %vm703_vm5, %v526_v14  ;;  %vm484_vm9 = vcmp.eq.s32.totalorder %v4218_v3, %v451_v16  ;;  %vm482_vm10 = vcmp.eq.s32.totalorder %v4218_v3, %v448_v17  ;;  %vm483_vm0 = vcmp.eq.s32.totalorder %v4215_v2, %v451_v16  ;;  %vm481_vm1 = vcmp.eq.s32.totalorder %v4215_v2, %v448_v17  ;;  %v1366_v17 = vld [vmem:[#allocation6 + $0x60] sm:$0xff] }
 0x107   : > { %3370 = vmatmul.mubr.msk.bf16.vlgmr.msra.gmra.mrb[0].mxu0 %vm3369_vm8, %v3996_v18  ;;  %v510_v20 = vsel %vm484_vm9, 1.0, %v3995_v6  ;;  %v508_v21 = vsel %vm482_vm10, 1.0, %v3995_v6  ;;  %vm3375_vm2 = vmpackc.low %vm483_vm0, %vm481_vm1 }
 0x108   : > { %3371 = vmatprep.mubr.msk.bf16.mxu0 %vm703_vm5, %v528_v13  ;;  %1260 = vmatpush1.bf16.msra.mxu0 %v3705_v15  ;;  %v530_v25 = vpack.c.bf16 %v510_v20, %v508_v21  ;;  %v1362_v15 = vld [vmem:[#allocation6 + $0x40] sm:$0xff] }
 0x109   : > { %1261 = vmatprep.subr.bf16.mxu0 %v5105_v0  ;;  %v457_v23 = vpop.permute.xlu1 %456  ;;  %v454_v24 = vpop.permute.xlu0 %453  ;;  %v566_v21 = vld [vmem:[%s5095_s2 + $0x20] sm:$0xff] }
 0x10a   : > { %vm488_vm14 = vcmp.eq.s32.totalorder %v4218_v3, %v457_v23  ;;  %vm486_vm15 = vcmp.eq.s32.totalorder %v4218_v3, %v454_v24  ;;  %vm487_vm6 = vcmp.eq.s32.totalorder %v4215_v2, %v457_v23  ;;  %vm485_vm7 = vcmp.eq.s32.totalorder %v4215_v2, %v454_v24  ;;  %v567_v23 = vld [vmem:[%s5095_s2 + $0x28] sm:$0xff]  ;;  %v568_v24 = vld [vmem:[%s5095_s2 + $0x30] sm:$0xff] }
 0x10b   : > { %v514_v27 = vsel %vm488_vm14, 1.0, %v3995_v6  ;;  %v512_v28 = vsel %vm486_vm15, 1.0, %v3995_v6  ;;  %vm3378_vm8 = vmpackc.low %vm487_vm6, %vm485_vm7  ;;  %vm861_vm6 = vcmask 583680   ;;  %vm2720_vm7 = vcmask 1041408  }
 0x10c   : > { %1262 = vmatpush1.bf16.msra.mxu0 %v3709_v19  ;;  %v532_v32 = vpack.c.bf16 %v514_v27, %v512_v28  ;;  %v1367_v19 = vld [vmem:[#allocation6 + $0x68] sm:$0xff] }
 0x10d   : > { %1263 = vmatprep.subr.bf16.mxu0 %v5105_v0  ;;  %v463_v30 = vpop.permute.xlu1 %462  ;;  %v460_v31 = vpop.permute.xlu0 %459 }
 0x10e   : > { %vm492_vm3 = vcmp.eq.s32.totalorder %v4218_v3, %v463_v30  ;;  %vm490_vm4 = vcmp.eq.s32.totalorder %v4218_v3, %v460_v31  ;;  %vm491_vm11 = vcmp.eq.s32.totalorder %v4215_v2, %v463_v30  ;;  %vm489_vm12 = vcmp.eq.s32.totalorder %v4215_v2, %v460_v31  ;;  %v1371_v30 = vld [vmem:[#allocation6 + $0x88] sm:$0xff] }
 0x10f   : > { %3373 = vmatmul.mubr.msk.bf16.gmra.mrb[4].mxu0 %vm3372_vm13, %v3996_v18  ;;  %v518_v34 = vsel %vm492_vm3, 1.0, %v3995_v6  ;;  %v516_v35 = vsel %vm490_vm4, 1.0, %v3995_v6  ;;  %vm3381_vm13 = vmpackc.low %vm491_vm11, %vm489_vm12  ;;  %vm836_vm4 = vcmask 588800   ;;  %v1375_v31 = vld [vmem:[#allocation6 + $0xa8] sm:$0xff]  ;;  %vm3143_vm11 = vsmask.f32 1280 }
 0x110   : > { %3374 = vmatprep.mubr.msk.bf16.mxu0 %vm703_vm5, %v530_v25  ;;  %1264 = vmatpush1.bf16.msra.mxu0 %v3713_v22  ;;  %v534_v39 = vpack.c.bf16 %v518_v34, %v516_v35  ;;  %v3452_v25 = vcombine.high %v1362_v15, %v1366_v17  ;;  %v569_v34 = vld [vmem:[%s5095_s2 + $0x38] sm:$0xff]  ;;  %v3461_v52 = vcombine.low %v1371_v30, %v1375_v31  ;;  %vm3145_vm12 = vcmask 586756  }
 0x111   : > { %1265 = vmatprep.subr.bf16.mxu0 %v5105_v0  ;;  %v469_v37 = vpop.permute.xlu1 %468  ;;  %v466_v38 = vpop.permute.xlu0 %465 }
 0x112   : > { %vm496_vm9 = vcmp.eq.s32.totalorder %v4218_v3, %v469_v37  ;;  %vm494_vm10 = vcmp.eq.s32.totalorder %v4218_v3, %v466_v38  ;;  %vm495_vm15 = vcmp.eq.s32.totalorder %v4215_v2, %v469_v37  ;;  %vm493_vm0 = vcmp.eq.s32.totalorder %v4215_v2, %v466_v38 }
 0x113   : > { %v522_v41 = vsel %vm496_vm9, 1.0, %v3995_v6  ;;  %v520_v42 = vsel %vm494_vm10, 1.0, %v3995_v6  ;;  %vm3384_vm1 = vmpackc.low %vm495_vm15, %vm493_vm0  ;;  %v3451_v37 = vcombine.low %v1362_v15, %v1366_v17  ;;  %v574_v17 = vld [vmem:[%s5095_s2 + $0x60] sm:$0xff]  ;;  %vm3128_vm9 = vcmask 588804  }
 0x114   : > { %1266 = vmatpush1.bf16.msra.mxu0 %v3717_v26  ;;  %v536_v45 = vpack.c.bf16 %v522_v41, %v520_v42  ;;  %v1370_v26 = vld [vmem:[#allocation6 + $0x80] sm:$0xff] }
 0x115   : > { %1267 = vmatprep.subr.bf16.mxu0 %v5105_v0  ;;  %v472_v44 = vpop.permute.xlu0 %471  ;;  %v1378_v42 = vld [vmem:[#allocation6 + $0xc0] sm:$0xff] }
 0x116   : > { %vm498_vm14 = vcmp.eq.s32.totalorder %v4218_v3, %v472_v44  ;;  %v3446_v3 = vcombine.high %v1355_v63, %v1359_v1 }
 0x117   : > { %3376 = vmatmul.mubr.msk.bf16.gmra.mrb[8].mxu0 %vm3375_vm2, %v3996_v18  ;;  %v524_v47 = vsel %vm498_vm14, 1.0, %v3995_v6  ;;  %vm497_vm2 = vcmp.eq.s32.totalorder %v4215_v2, %v472_v44  ;;  %v3445_v2 = vcombine.low %v1355_v63, %v1359_v1  ;;  %v573_v1 = vld [vmem:[%s5095_s2 + $0x58] sm:$0xff]  ;;  %vm5076_vm14 = vmand %vm2720_vm7, %vm3143_vm11 }
 0x118   : > { %3377 = vmatprep.mubr.msk.bf16.mxu0 %vm703_vm5, %v532_v32  ;;  %1268 = vmatpush1.bf16.msra.mxu0 %v3721_v29  ;;  %v538_v49 = vpack.c.bf16 %v524_v47, %v524_v47  ;;  %vm3387_vm3 = vmpackc.low %vm497_vm2, %vm497_vm2  ;;  %v1374_v29 = vld [vmem:[#allocation6 + $0xa0] sm:$0xff]  ;;  %v1383_v47 = vld [vmem:[#allocation6 + $0xe8] sm:$0xff] }
 0x119   : > { %1269 = vmatprep.subr.bf16.mxu0 %v5105_v0  ;;  %v3460_v41 = vcombine.high %v1370_v26, %v1374_v29 }
 0x11c   : > { %1270 = vmatpush1.bf16.msra.mxu0 %v3725_v33 }
 0x11d   : > { %1271 = vmatprep.subr.bf16.mxu0 %v5105_v0 }
 0x11f   : > { %3379 = vmatmul.mubr.msk.bf16.gmra.mrb[12].mxu0 %vm3378_vm8, %v3996_v18  ;;  %vm2698_vm8 = vcmask 162816  }
 0x120   : > { %3380 = vmatprep.mubr.msk.bf16.mxu0 %vm703_vm5, %v534_v39  ;;  %1272 = vmatpush1.bf16.msra.mxu0 %v3729_v36 }
 0x121   : > { %1273 = vmatprep.subr.bf16.mxu0 %v5105_v0 }
 0x124   : > { %1274 = vmatpush1.bf16.msra.mxu0 %v3733_v40 }
 0x125   : > { %1275 = vmatprep.subr.bf16.mxu0 %v5105_v0 }
 0x127   : > { %3382 = vmatmul.mubr.msk.bf16.gmra.mrb[16].mxu0 %vm3381_vm13, %v3996_v18  ;;  %vm3146_vm13 = vsmask.f32 5376 }
 0x128   : > { %3383 = vmatprep.mubr.msk.bf16.mxu0 %vm703_vm5, %v536_v45  ;;  %1276 = vmatpush1.bf16.msra.mxu0 %v3737_v43  ;;  %v3462_v43 = vcombine.high %v1371_v30, %v1375_v31  ;;  %v1382_v45 = vld [vmem:[#allocation6 + $0xe0] sm:$0xff]  ;;  %v577_v31 = vld [vmem:[%s5095_s2 + $0x78] sm:$0xff]  ;;  %vm3147_vm15 = vmand %vm3145_vm12, %vm3146_vm13 }
 0x129   : > { %1277 = vmatprep.subr.bf16.mxu0 %v5105_v0  ;;  %vm3148_vm0 = vmor %vm3147_vm15, %vm5076_vm14 }
 0x12c   : > { %1278 = vmatpush1.bf16.msra.mxu0 %v3741_v46  ;;  %v1379_v46 = vld [vmem:[#allocation6 + $0xc8] sm:$0xff] }
 0x12d   : > { %1279 = vmatprep.subr.bf16.mxu0 %v5105_v0 }
 0x12f   : > { %3385 = vmatmul.mubr.msk.bf16.gmra.mrb[20].mxu0 %vm3384_vm1, %v3996_v18 }
 0x130   : > { %3386 = vmatprep.mubr.msk.bf16.mxu0 %vm703_vm5, %v538_v49  ;;  %1280 = vmatpush1.bf16.msra.mxu0 %v3747_v48  ;;  %vm1148_vm5 = vcmask 1043456  }
 0x131   : > { %1281 = vmatprep.subr.bf16.mxu0 %v5105_v0  ;;  %3428 = vmatprep.subr.msk.bf16.mxu1 %vm1148_vm5, %v3426_v54  ;;  %v1156_v57 = vsel %vm1148_vm5, %v3754_v55, 0  ;;  %v1150_v58 = vsel %vm1148_vm5, %v3425_v56, 0  ;;  %v572_v54 = vld [vmem:[%s5095_s2 + $0x50] sm:$0xff]  ;;  %v3468_v55 = vcombine.high %v1378_v42, %v1382_v45  ;;  %v1386_v56 = vld [vmem:[#allocation6 + $0x100] sm:$0xff]  ;;  %vm4997_vm10 = vmor %vm3128_vm9, %vm1148_vm5 }
 0x132   : > { %1183 = vmatpush1.bf16.msra.mxu1 %v1150_v58 }
 0x133   : > { %1738 = vmatprep.subr.bf16.mxu1 %v3444_v62 }
 0x134   : > { %1282 = vmatpush1.bf16.msra.mxu0 %v3751_v51  ;;  %v3459_v51 = vcombine.low %v1370_v26, %v1374_v29  ;;  %v1406_v26 = vld [vmem:[#allocation6 + $0x1a0] sm:$0xff] }
 0x135   : > { %1283 = vmatprep.subr.bf16.mxu0 %v5105_v0 }
 0x137   : > { %3388 = vmatmul.mubr.msk.bf16.gmra.mrb[24].mxu0 %vm3387_vm3, %v3996_v18  ;;  %v1363_v18 = vld [vmem:[#allocation6 + $0x48] sm:$0xff] }
 0x138   : > { %1284 = vmatpush1.bf16.msra.mxu0 %v1156_v57  ;;  %v3454_v27 = vcombine.high %v1363_v18, %v1367_v19  ;;  %v3453_v38 = vcombine.low %v1363_v18, %v1367_v19  ;;  %v3470_v57 = vcombine.high %v1379_v46, %v1383_v47  ;;  %v3475_v18 = vcombine.low %v1386_v56, %v1390_v59 }
 0x139   : > { %1839 = vmatprep.subr.bf16.mxu0 %v3446_v3 }
 0x1da   : > { %v768_v6 = vpop.f32.mrb[0].mxu0 }
 0x1db   : > { %v769_v8 = vadd.f32 %v768_v6, %v562_v4  ;;  %v770_v9 = vpop.f32.mrb[1].mxu0  ;;  %v3467_v4 = vcombine.low %v1378_v42, %v1382_v45  ;;  %v1414_v42 = vld [vmem:[#allocation6 + $0x1e0] sm:$0xff] }
 0x1dc   : > { %v771_v11 = vadd.f32 %v770_v9, %v563_v5  ;;  %v772_v12 = vpop.f32.mrb[2].mxu0  ;;  %v3469_v5 = vcombine.low %v1379_v46, %v1383_v47  ;;  %v1394_v9 = vld [vmem:[#allocation6 + $0x140] sm:$0xff] }
 0x1dd   : > { %835 = vst [vmem:[%s4298_s19] sm:$0xff] %v769_v8  ;;  %v773_v13 = vadd.f32 %v772_v12, %v564_v7  ;;  %v774_v14 = vpop.f32.mrb[3].mxu0  ;;  %v1398_v12 = vld [vmem:[#allocation6 + $0x160] sm:$0xff] }
 0x1de   : > { %837 = vst.msk [vmem:[%s4298_s19 + $0x8] sm:$0xff] %vm836_vm4, %v771_v11  ;;  %v775_v16 = vadd.f32 %v774_v14, %v565_v10  ;;  %v1399_v14 = vld [vmem:[#allocation6 + $0x168] sm:$0xff]  ;;  %v578_v45 = vld [vmem:[%s5095_s2 + $0x80] sm:$0xff] }
 0x1df   : > { %838 = vst [vmem:[%s4298_s19 + $0x10] sm:$0xff] %v773_v13  ;;  %v863_v20 = vpack.c.bf16 %v773_v13, %v769_v8  ;;  %v3476_v8 = vcombine.high %v1386_v56, %v1390_v59  ;;  %v1395_v13 = vld [vmem:[#allocation6 + $0x148] sm:$0xff] }
 0x1e0   : > { %839 = vst.msk [vmem:[%s4298_s19 + $0x18] sm:$0xff] %vm836_vm4, %v775_v16  ;;  %v864_v22 = vpack.c.bf16 %v775_v16, %v771_v11 }
 0x1e2   : > { %v778_v28 = vpop.f32.mrb[4].mxu0  ;;  %3429 = vmatprep.mubr.msk.bf16.mxu1 %vm836_vm4, %v864_v22  ;;  %3436 = vmatprep.mubr.msk.bf16.mxu0 %vm836_vm4, %v864_v22  ;;  %v3484_v22 = vcombine.high %v1394_v9, %v1398_v12 }
 0x1e3   : > { %v779_v32 = vadd.f32 %v778_v28, %v566_v21  ;;  %v780_v33 = vpop.f32.mrb[5].mxu0  ;;  %1191 = vmatmul.mubr.bf16.vlgmr.msra.gmra.mrb[0].mxu1 %v863_v20  ;;  %1292 = vmatmul.mubr.bf16.vlgmr.msra.gmra.mrb[28].mxu0 %v863_v20  ;;  %v575_v20 = vld [vmem:[%s5095_s2 + $0x68] sm:$0xff]  ;;  %v576_v21 = vld [vmem:[%s5095_s2 + $0x70] sm:$0xff] }
 0x1e4   : > { %v781_v35 = vadd.f32 %v780_v33, %v567_v23  ;;  %v782_v36 = vpop.f32.mrb[6].mxu0  ;;  %1739 = vmatpush1.bf16.msra.mxu1 %v3443_v61  ;;  %1840 = vmatpush1.bf16.msra.mxu0 %v3445_v2  ;;  %v1391_v61 = vld [vmem:[#allocation6 + $0x128] sm:$0xff]  ;;  %v1402_v23 = vld [vmem:[#allocation6 + $0x180] sm:$0xff] }
 0x1e5   : > { %840 = vst [vmem:[%s4298_s19 + $0x20] sm:$0xff] %v779_v32  ;;  %v783_v39 = vadd.f32 %v782_v36, %v568_v24  ;;  %v784_v40 = vpop.f32.mrb[7].mxu0  ;;  %1740 = vmatprep.subr.bf16.mxu1 %v3452_v25  ;;  %1841 = vmatprep.subr.bf16.mxu0 %v3454_v27  ;;  %v3478_v10 = vcombine.high %v1387_v60, %v1391_v61  ;;  %v1403_v27 = vld [vmem:[#allocation6 + $0x188] sm:$0xff] }
 0x1e6   : > { %841 = vst.msk [vmem:[%s4298_s19 + $0x28] sm:$0xff] %vm836_vm4, %v781_v35  ;;  %v785_v44 = vadd.f32 %v784_v40, %v569_v34  ;;  %v3477_v19 = vcombine.low %v1387_v60, %v1391_v61  ;;  %v3486_v24 = vcombine.high %v1395_v13, %v1399_v14  ;;  %v1407_v28 = vld [vmem:[#allocation6 + $0x1a8] sm:$0xff]  ;;  %v3483_v34 = vcombine.low %v1394_v9, %v1398_v12 }
 0x1e7   : > { %842 = vst [vmem:[%s4298_s19 + $0x30] sm:$0xff] %v783_v39  ;;  %v865_v48 = vpack.c.bf16 %v783_v39, %v779_v32  ;;  %v3494_v39 = vcombine.high %v1403_v27, %v1407_v28  ;;  %v3491_v46 = vcombine.low %v1402_v23, %v1406_v26  ;;  %v3493_v47 = vcombine.low %v1403_v27, %v1407_v28  ;;  %v1356_v28 = vld [vmem:[#allocation6 + $0x10] sm:$0xff] }
 0x1e8   : > { %843 = vst.msk [vmem:[%s4298_s19 + $0x38] sm:$0xff] %vm836_vm4, %v785_v44  ;;  %v866_v49 = vpack.c.bf16 %v785_v44, %v781_v35  ;;  %1741 = vmatpush1.bf16.msra.mxu1 %v3451_v37  ;;  %1842 = vmatpush1.bf16.msra.mxu0 %v3453_v38  ;;  %v3485_v35 = vcombine.low %v1395_v13, %v1399_v14  ;;  %v586_v14 = vld [vmem:[%s5095_s2 + $0xc0] sm:$0x7] }
 0x1e9   : > { %1742 = vmatprep.subr.bf16.mxu1 %v3460_v41  ;;  %1843 = vmatprep.subr.bf16.mxu0 %v3462_v43  ;;  %v3492_v38 = vcombine.high %v1402_v23, %v1406_v26  ;;  %v1410_v41 = vld [vmem:[#allocation6 + $0x1c0] sm:$0xff] }
 0x1ea   : > { %v788_v58 = vpop.f32.mrb[8].mxu0  ;;  %3430 = vmatprep.mubr.msk.bf16.mxu1 %vm836_vm4, %v866_v49  ;;  %3437 = vmatprep.mubr.msk.bf16.mxu0 %vm836_vm4, %v866_v49  ;;  %v3500_v49 = vcombine.high %v1410_v41, %v1414_v42 }
 0x1eb   : > { %v789_v62 = vadd.f32 %v788_v58, %v570_v50  ;;  %v790_v63 = vpop.f32.mrb[9].mxu0  ;;  %1201 = vmatmul.mubr.bf16.gmra.mrb[4].mxu1 %v865_v48  ;;  %1300 = vmatmul.mubr.bf16.gmra.mrb[32].mxu0 %v865_v48  ;;  %v579_v48 = vld [vmem:[%s5095_s2 + $0x88] sm:$0xff] }
 0x1ec   : > { %v791_v2 = vadd.f32 %v790_v63, %v571_v53  ;;  %v792_v3 = vpop.f32.mrb[10].mxu0  ;;  %1743 = vmatpush1.bf16.msra.mxu1 %v3459_v51  ;;  %1844 = vmatpush1.bf16.msra.mxu0 %v3461_v52  ;;  %v580_v51 = vld [vmem:[%s5095_s2 + $0x90] sm:$0xff]  ;;  %v582_v63 = vld [vmem:[%s5095_s2 + $0xa0] sm:$0xff] }
 0x1ed   : > { %844 = vst [vmem:[%s4298_s19 + $0x40] sm:$0xff] %v789_v62  ;;  %v793_v6 = vadd.f32 %v792_v3, %v572_v54  ;;  %v794_v7 = vpop.f32.mrb[11].mxu0  ;;  %1744 = vmatprep.subr.bf16.mxu1 %v3468_v55  ;;  %1845 = vmatprep.subr.bf16.mxu0 %v3470_v57  ;;  %v581_v54 = vld [vmem:[%s5095_s2 + $0x98] sm:$0xff]  ;;  %v3499_v57 = vcombine.low %v1410_v41, %v1414_v42  ;;  %v584_v3 = vld [vmem:[%s5095_s2 + $0xb0] sm:$0xff] }
 0x1ee   : > { %845 = vst.msk [vmem:[%s4298_s19 + $0x48] sm:$0xff] %vm836_vm4, %v791_v2  ;;  %v795_v11 = vadd.f32 %v794_v7, %v573_v1  ;;  %v583_v1 = vld [vmem:[%s5095_s2 + $0xa8] sm:$0xff] }
 0x1ef   : > { %846 = vst [vmem:[%s4298_s19 + $0x50] sm:$0xff] %v793_v6  ;;  %v867_v15 = vpack.c.bf16 %v793_v6, %v789_v62  ;;  %v585_v6 = vld [vmem:[%s5095_s2 + $0xb8] sm:$0xff] }
 0x1f0   : > { %847 = vst.msk [vmem:[%s4298_s19 + $0x58] sm:$0xff] %vm836_vm4, %v795_v11  ;;  %v868_v16 = vpack.c.bf16 %v795_v11, %v791_v2  ;;  %1745 = vmatpush1.bf16.msra.mxu1 %v3467_v4  ;;  %1846 = vmatpush1.bf16.msra.mxu0 %v3469_v5 }
 0x1f1   : > { %1746 = vmatprep.subr.bf16.mxu1 %v3476_v8  ;;  %1847 = vmatprep.subr.bf16.mxu0 %v3478_v10 }
 0x1f2   : > { %v798_v25 = vpop.f32.mrb[12].mxu0  ;;  %3431 = vmatprep.mubr.msk.bf16.mxu1 %vm836_vm4, %v868_v16  ;;  %3438 = vmatprep.mubr.msk.bf16.mxu0 %vm836_vm4, %v868_v16 }
 0x1f3   : > { %v799_v29 = vadd.f32 %v798_v25, %v574_v17  ;;  %v800_v30 = vpop.f32.mrb[13].mxu0  ;;  %1211 = vmatmul.mubr.bf16.gmra.mrb[8].mxu1 %v867_v15  ;;  %1308 = vmatmul.mubr.bf16.gmra.mrb[36].mxu0 %v867_v15  ;;  %v587_v15 = vld [vmem:[%s5095_s2 + $0xc8] sm:$0x7]  ;;  %v1415_v25 = vld [vmem:[#allocation6 + $0x1e8] sm:$0xff] }
 0x1f4   : > { %v801_v32 = vadd.f32 %v800_v30, %v575_v20  ;;  %v802_v33 = vpop.f32.mrb[14].mxu0  ;;  %1747 = vmatpush1.bf16.msra.mxu1 %v3475_v18  ;;  %1848 = vmatpush1.bf16.msra.mxu0 %v3477_v19 }
 0x1f5   : > { %848 = vst [vmem:[%s4298_s19 + $0x60] sm:$0xff] %v799_v29  ;;  %v803_v36 = vadd.f32 %v802_v33, %v576_v21  ;;  %v804_v37 = vpop.f32.mrb[15].mxu0  ;;  %1748 = vmatprep.subr.bf16.mxu1 %v3484_v22  ;;  %1849 = vmatprep.subr.bf16.mxu0 %v3486_v24  ;;  %v1411_v24 = vld [vmem:[#allocation6 + $0x1c8] sm:$0xff]  ;;  %v1361_v33 = vld [vmem:[#allocation6 + $0x38] sm:$0xff] }
 0x1f6   : > { %849 = vst.msk [vmem:[%s4298_s19 + $0x68] sm:$0xff] %vm836_vm4, %v801_v32  ;;  %v805_v40 = vadd.f32 %v804_v37, %v577_v31  ;;  %v3502_v26 = vcombine.high %v1411_v24, %v1415_v25  ;;  %v3501_v27 = vcombine.low %v1411_v24, %v1415_v25  ;;  %v1393_v24 = vld [vmem:[#allocation6 + $0x138] sm:$0xff] }
 0x1f7   : > { %850 = vst [vmem:[%s4298_s19 + $0x70] sm:$0xff] %v803_v36  ;;  %v869_v43 = vpack.c.bf16 %v803_v36, %v799_v29  ;;  %v1360_v29 = vld [vmem:[#allocation6 + $0x30] sm:$0xff] }
 0x1f8   : > { %851 = vst.msk [vmem:[%s4298_s19 + $0x78] sm:$0xff] %vm836_vm4, %v805_v40  ;;  %v870_v44 = vpack.c.bf16 %v805_v40, %v801_v32  ;;  %1749 = vmatpush1.bf16.msra.mxu1 %v3483_v34  ;;  %1850 = vmatpush1.bf16.msra.mxu0 %v3485_v35  ;;  %v3447_v30 = vcombine.low %v1356_v28, %v1360_v29  ;;  %v1357_v32 = vld [vmem:[#allocation6 + $0x18] sm:$0xff] }
 0x1f9   : > { %1750 = vmatprep.subr.bf16.mxu1 %v3492_v38  ;;  %1851 = vmatprep.subr.bf16.mxu0 %v3494_v39  ;;  %v3448_v31 = vcombine.high %v1356_v28, %v1360_v29  ;;  %v3450_v34 = vcombine.high %v1357_v32, %v1361_v33  ;;  %v3449_v35 = vcombine.low %v1357_v32, %v1361_v33  ;;  %v1364_v38 = vld [vmem:[#allocation6 + $0x50] sm:$0xff] }
 0x1fa   : > { %v808_v50 = vpop.f32.mrb[16].mxu0  ;;  %3432 = vmatprep.mubr.msk.bf16.mxu1 %vm836_vm4, %v870_v44  ;;  %3439 = vmatprep.mubr.msk.bf16.mxu0 %vm836_vm4, %v870_v44  ;;  %v1368_v39 = vld [vmem:[#allocation6 + $0x70] sm:$0xff]  ;;  %v1365_v44 = vld [vmem:[#allocation6 + $0x58] sm:$0xff] }
 0x1fb   : > { %v809_v52 = vadd.f32 %v808_v50, %v578_v45  ;;  %v810_v53 = vpop.f32.mrb[17].mxu0  ;;  %1221 = vmatmul.mubr.bf16.gmra.mrb[12].mxu1 %v869_v43  ;;  %1316 = vmatmul.mubr.bf16.gmra.mrb[40].mxu0 %v869_v43  ;;  %v1369_v45 = vld [vmem:[#allocation6 + $0x78] sm:$0xff]  ;;  %v1372_v50 = vld [vmem:[#allocation6 + $0x90] sm:$0xff] }
 0x1fc   : > { %v811_v55 = vadd.f32 %v810_v53, %v579_v48  ;;  %v812_v56 = vpop.f32.mrb[18].mxu0  ;;  %1751 = vmatpush1.bf16.msra.mxu1 %v3491_v46  ;;  %1852 = vmatpush1.bf16.msra.mxu0 %v3493_v47  ;;  %v3455_v53 = vcombine.low %v1364_v38, %v1368_v39 }
 0x1fd   : > { %852 = vst [vmem:[%s4298_s19 + $0x80] sm:$0xff] %v809_v52  ;;  %v813_v58 = vadd.f32 %v812_v56, %v580_v51  ;;  %v814_v59 = vpop.f32.mrb[19].mxu0  ;;  %1752 = vmatprep.subr.bf16.mxu1 %v3500_v49  ;;  %1853 = vmatprep.subr.bf16.mxu0 %v3502_v26  ;;  %v3456_v49 = vcombine.high %v1364_v38, %v1368_v39  ;;  %v1376_v51 = vld [vmem:[#allocation6 + $0xb0] sm:$0xff]  ;;  %v1401_v38 = vld [vmem:[#allocation6 + $0x178] sm:$0xff] }
 0x1fe   : > { %853 = vst.msk [vmem:[%s4298_s19 + $0x88] sm:$0xff] %vm836_vm4, %v811_v55  ;;  %v815_v60 = vadd.f32 %v814_v59, %v581_v54  ;;  %v3464_v54 = vcombine.high %v1372_v50, %v1376_v51  ;;  %v3457_v59 = vcombine.low %v1365_v44, %v1369_v45 }
 0x1ff   : > { %854 = vst [vmem:[%s4298_s19 + $0x90] sm:$0xff] %v813_v58  ;;  %v871_v61 = vpack.c.bf16 %v813_v58, %v809_v52  ;;  %v3458_v52 = vcombine.high %v1365_v44, %v1369_v45  ;;  %v1384_v58 = vld [vmem:[#allocation6 + $0xf0] sm:$0xff] }
 0x200   : > { %855 = vst.msk [vmem:[%s4298_s19 + $0x98] sm:$0xff] %vm836_vm4, %v815_v60  ;;  %v872_v62 = vpack.c.bf16 %v815_v60, %v811_v55  ;;  %1753 = vmatpush1.bf16.msra.mxu1 %v3499_v57  ;;  %1854 = vmatpush1.bf16.msra.mxu0 %v3501_v27  ;;  %v1380_v57 = vld [vmem:[#allocation6 + $0xd0] sm:$0xff] }
 0x201   : > { %1940 = vmatprep.subr.bf16.mxu1 %v3448_v31  ;;  %2041 = vmatprep.subr.bf16.mxu0 %v3450_v34  ;;  %v1404_v34 = vld [vmem:[#allocation6 + $0x190] sm:$0xff] }
 0x202   : > { %v818_v2 = vpop.f32.mrb[20].mxu0  ;;  %3433 = vmatprep.mubr.msk.bf16.mxu1 %vm836_vm4, %v872_v62  ;;  %3440 = vmatprep.mubr.msk.bf16.mxu0 %vm836_vm4, %v872_v62  ;;  %v1373_v62 = vld [vmem:[#allocation6 + $0x98] sm:$0xff] }
 0x203   : > { %v819_v4 = vadd.f32 %v818_v2, %v582_v63  ;;  %v820_v5 = vpop.f32.mrb[21].mxu0  ;;  %1231 = vmatmul.mubr.bf16.gmra.mrb[16].mxu1 %v871_v61  ;;  %1324 = vmatmul.mubr.bf16.gmra.mrb[44].mxu0 %v871_v61  ;;  %v1377_v63 = vld [vmem:[#allocation6 + $0xb8] sm:$0xff] }
 0x204   : > { %v821_v7 = vadd.f32 %v820_v5, %v583_v1  ;;  %v822_v8 = vpop.f32.mrb[22].mxu0 }
 0x205   : > { %856 = vst [vmem:[%s4298_s19 + $0xa0] sm:$0xff] %v819_v4  ;;  %v823_v9 = vadd.f32 %v822_v8, %v584_v3  ;;  %v824_v10 = vpop.f32.mrb[23].mxu0  ;;  %v3463_v3 = vcombine.low %v1372_v50, %v1376_v51  ;;  %v1381_v8 = vld [vmem:[#allocation6 + $0xd8] sm:$0xff] }
 0x206   : > { %857 = vst.msk [vmem:[%s4298_s19 + $0xa8] sm:$0xff] %vm836_vm4, %v821_v7  ;;  %v825_v11 = vadd.f32 %v824_v10, %v585_v6  ;;  %v1388_v10 = vld [vmem:[#allocation6 + $0x110] sm:$0xff] }
 0x207   : > { %858 = vst [vmem:[%s4298_s19 + $0xb0] sm:$0xff] %v823_v9  ;;  %v873_v12 = vpack.c.bf16 %v823_v9, %v819_v4  ;;  %v1385_v9 = vld [vmem:[#allocation6 + $0xf8] sm:$0xff] }
 0x208   : > { %859 = vst.msk [vmem:[%s4298_s19 + $0xb8] sm:$0xff] %vm836_vm4, %v825_v11  ;;  %v874_v13 = vpack.c.bf16 %v825_v11, %v821_v7  ;;  %v3472_v7 = vcombine.high %v1380_v57, %v1384_v58  ;;  %v1392_v11 = vld [vmem:[#allocation6 + $0x130] sm:$0xff]  ;;  %v3473_v31 = vcombine.low %v1381_v8, %v1385_v9 }
 0x20a   : > { %v828_v16 = vpop.f32.mrb[24].mxu0  ;;  %3434 = vmatprep.mubr.msk.bf16.mxu1 %vm836_vm4, %v874_v13  ;;  %3441 = vmatprep.mubr.msk.bf16.mxu0 %vm836_vm4, %v874_v13  ;;  %v3465_v13 = vcombine.low %v1373_v62, %v1377_v63 }
 0x20b   : > { %v829_v17 = vadd.f32 %v828_v16, %v586_v14  ;;  %v830_v18 = vpop.f32.mrb[25].mxu0  ;;  %1241 = vmatmul.mubr.bf16.gmra.mrb[20].mxu1 %v873_v12  ;;  %1332 = vmatmul.mubr.bf16.gmra.mrb[48].mxu0 %v873_v12  ;;  %v3466_v12 = vcombine.high %v1373_v62, %v1377_v63  ;;  %v3471_v14 = vcombine.low %v1380_v57, %v1384_v58 }
 0x20c   : > { %v831_v19 = vadd.f32 %v830_v18, %v587_v15  ;;  %v832_v20 = vpop.f32.mrb[26].mxu0  ;;  %v3474_v15 = vcombine.high %v1381_v8, %v1385_v9  ;;  %v3480_v16 = vcombine.high %v1388_v10, %v1392_v11 }
 0x20d   : > { %860 = vst [vmem:[%s4298_s19 + $0xc0] sm:$0x7] %v829_v17  ;;  %v833_v21 = vpop.f32.mrb[27].mxu0  ;;  %v875_v23 = vpack.c.bf16 %v829_v17, %v829_v17 }
 0x20e   : > { %862 = vst.msk [vmem:[%s4298_s19 + $0xc8] sm:$0x7] %vm861_vm6, %v831_v19  ;;  %v876_v22 = vpack.c.bf16 %v831_v19, %v831_v19  ;;  %v1396_v19 = vld [vmem:[#allocation6 + $0x150] sm:$0xff] }
 0x210   : > { %3435 = vmatprep.mubr.msk.bf16.mxu1 %vm836_vm4, %v876_v22  ;;  %3442 = vmatprep.mubr.msk.bf16.mxu0 %vm836_vm4, %v876_v22  ;;  %v1400_v22 = vld [vmem:[#allocation6 + $0x170] sm:$0xff] }
 0x211   : > { %v3488_v32 = vcombine.high %v1396_v19, %v1400_v22  ;;  %v3487_v39 = vcombine.low %v1396_v19, %v1400_v22 }
 0x213   : > { %1251 = vmatmul.mubr.bf16.gmra.mrb[24].mxu1 %v875_v23  ;;  %1340 = vmatmul.mubr.bf16.gmra.mrb[52].mxu0 %v875_v23  ;;  %v1389_v23 = vld [vmem:[#allocation6 + $0x118] sm:$0xff] }
 0x214   : > { %1770 = vmatprep.mubr.bf16.mxu1 %v5105_v0  ;;  %1871 = vmatprep.mubr.bf16.mxu0 %v5105_v0  ;;  %v3482_v33 = vcombine.high %v1389_v23, %v1393_v24 }
 0x2b6   : > { %v4432_v36 = vpop.f32.mrb[0].mxu1  ;;  %v1293_v37 = vpop.f32.mrb[28].mxu0 }
 0x2b7   : > { %3152 = vst [vmem:[%s4430_s28] sm:$0xff] %v1293_v37  ;;  %v4435_v40 = vpop.f32.mrb[1].mxu1  ;;  %v1295_v41 = vpop.f32.mrb[29].mxu0 }
 0x2b8   : > { %v4437_v42 = vpop.f32.mrb[2].mxu1  ;;  %v1296_v43 = vpop.f32.mrb[30].mxu0  ;;  %v3481_v41 = vcombine.low %v1389_v23, %v1393_v24 }
 0x2b9   : > { %v4439_v46 = vpack.c.bf16 %v1296_v43, %v1293_v37  ;;  %3153 = vst [vmem:[%s4430_s28 + $0x8] sm:$0xff] %v1296_v43  ;;  %v4442_v47 = vpop.f32.mrb[3].mxu1  ;;  %v1298_v48 = vpop.f32.mrb[31].mxu0  ;;  %v1397_v37 = vld [vmem:[#allocation6 + $0x158] sm:$0xff] }
 0x2ba   : > { %v3490_v48 = vcombine.high %v1397_v37, %v1401_v38  ;;  %v3489_v63 = vcombine.low %v1397_v37, %v1401_v38 }
 0x2bb   : > { %1771 = vmatmul.mubr.bf16.vlgmr.msra.gmra.mrb[28].mxu1 %v4439_v46  ;;  %1872 = vmatmul.mubr.bf16.vlgmr.msra.gmra.mrb[56].mxu0 %v4439_v46 }
 0x2bc   : > { %1941 = vmatpush1.bf16.msra.mxu1 %v3447_v30  ;;  %1780 = vmatprep.mubr.bf16.mxu1 %v5105_v0  ;;  %v3479_v30 = vcombine.low %v1388_v10, %v1392_v11 }
 0x2bd   : > { %1942 = vmatprep.subr.bf16.mxu1 %v3456_v49  ;;  %1881 = vmatprep.mubr.bf16.mxu0 %v5105_v0  ;;  %v1405_v49 = vld [vmem:[#allocation6 + $0x198] sm:$0xff] }
 0x2be   : > { %v4448_v55 = vpop.f32.mrb[4].mxu1  ;;  %v1301_v56 = vpop.f32.mrb[32].mxu0  ;;  %2042 = vmatpush1.bf16.msra.mxu0 %v3449_v35  ;;  %v1408_v35 = vld [vmem:[#allocation6 + $0x1b0] sm:$0xff] }
 0x2bf   : > { %3154 = vst [vmem:[%s4430_s28 + $0x10] sm:$0xff] %v1301_v56  ;;  %v4451_v60 = vpop.f32.mrb[5].mxu1  ;;  %v1303_v61 = vpop.f32.mrb[33].mxu0  ;;  %2043 = vmatprep.subr.bf16.mxu0 %v3458_v52  ;;  %v3496_v45 = vcombine.high %v1404_v34, %v1408_v35  ;;  %v1412_v52 = vld [vmem:[#allocation6 + $0x1d0] sm:$0xff]  ;;  %v3495_v62 = vcombine.low %v1404_v34, %v1408_v35 }
 0x2c0   : > { %v4453_v1 = vpop.f32.mrb[6].mxu1  ;;  %v1304_v2 = vpop.f32.mrb[34].mxu0  ;;  %1943 = vmatpush1.bf16.msra.mxu1 %v3455_v53  ;;  %v1416_v53 = vld [vmem:[#allocation6 + $0x1f0] sm:$0xff] }
 0x2c1   : > { %v4455_v4 = vpack.c.bf16 %v1304_v2, %v1301_v56  ;;  %3155 = vst [vmem:[%s4430_s28 + $0x18] sm:$0xff] %v1304_v2  ;;  %v4458_v5 = vpop.f32.mrb[7].mxu1  ;;  %v1306_v6 = vpop.f32.mrb[35].mxu0  ;;  %1944 = vmatprep.subr.bf16.mxu1 %v3464_v54  ;;  %v1409_v54 = vld [vmem:[#allocation6 + $0x1b8] sm:$0xff]  ;;  %v3504_v2 = vcombine.high %v1412_v52, %v1416_v53  ;;  %v3503_v8 = vcombine.low %v1412_v52, %v1416_v53  ;;  %v4554_v52 = vld [vmem:[%s5098_s5 + $0x8] sm:$0xff]  }
 0x2c2   : > { %2044 = vmatpush1.bf16.msra.mxu0 %v3457_v59  ;;  %v1413_v6 = vld [vmem:[#allocation6 + $0x1d8] sm:$0xff]  ;;  %v3497_v9 = vcombine.low %v1405_v49, %v1409_v54 }
 0x2c3   : > { %1781 = vmatmul.mubr.bf16.gmra.mrb[32].mxu1 %v4455_v4  ;;  %1882 = vmatmul.mubr.bf16.gmra.mrb[60].mxu0 %v4455_v4  ;;  %v4576_v53 = vld [vmem:[%s5098_s5 + $0x18] sm:$0xff]  }
 0x2c4   : > { %1945 = vmatpush1.bf16.msra.mxu1 %v3463_v3  ;;  %1790 = vmatprep.mubr.bf16.mxu1 %v5105_v0  ;;  %v3498_v3 = vcombine.high %v1405_v49, %v1409_v54  ;;  %v4598_v54 = vld [vmem:[%s5098_s5 + $0x28] sm:$0xff]  }
 0x2c5   : > { %1891 = vmatprep.mubr.bf16.mxu0 %v5105_v0  ;;  %1946 = vmatprep.subr.bf16.mxu1 %v3472_v7  ;;  %v1417_v7 = vld [vmem:[#allocation6 + $0x1f8] sm:$0xff] }
 0x2c6   : > { %v4464_v17 = vpop.f32.mrb[8].mxu1  ;;  %v1309_v18 = vpop.f32.mrb[36].mxu0  ;;  %2045 = vmatprep.subr.bf16.mxu0 %v3466_v12  ;;  %v3506_v12 = vcombine.high %v1413_v6, %v1417_v7  ;;  %v3505_v22 = vcombine.low %v1413_v6, %v1417_v7 }
 0x2c7   : > { %3156 = vst [vmem:[%s4430_s28 + $0x20] sm:$0xff] %v1309_v18  ;;  %v4467_v20 = vpop.f32.mrb[9].mxu1  ;;  %v1311_v21 = vpop.f32.mrb[37].mxu0  ;;  %2046 = vmatpush1.bf16.msra.mxu0 %v3465_v13 }
 0x2c8   : > { %v4469_v25 = vpop.f32.mrb[10].mxu1  ;;  %v1312_v26 = vpop.f32.mrb[38].mxu0  ;;  %1947 = vmatpush1.bf16.msra.mxu1 %v3471_v14  ;;  %2047 = vmatprep.subr.bf16.mxu0 %v3474_v15 }
 0x2c9   : > { %v4471_v27 = vpack.c.bf16 %v1312_v26, %v1309_v18  ;;  %3157 = vst [vmem:[%s4430_s28 + $0x28] sm:$0xff] %v1312_v26  ;;  %v4474_v28 = vpop.f32.mrb[11].mxu1  ;;  %v1314_v29 = vpop.f32.mrb[39].mxu0  ;;  %1948 = vmatprep.subr.bf16.mxu1 %v3480_v16 }
 0x2cb   : > { %1791 = vmatmul.mubr.bf16.gmra.mrb[36].mxu1 %v4471_v27  ;;  %1892 = vmatmul.mubr.bf16.gmra.mrb[64].mxu0 %v4471_v27 }
 0x2cc   : > { %1800 = vmatprep.mubr.bf16.mxu1 %v5105_v0  ;;  %1901 = vmatprep.mubr.bf16.mxu0 %v5105_v0 }
 0x2cd   : > { %1949 = vmatpush1.bf16.msra.mxu1 %v3479_v30  ;;  %2048 = vmatpush1.bf16.msra.mxu0 %v3473_v31 }
 0x2ce   : > { %v4480_v43 = vpop.f32.mrb[12].mxu1  ;;  %v1317_v44 = vpop.f32.mrb[40].mxu0  ;;  %1950 = vmatprep.subr.bf16.mxu1 %v3488_v32  ;;  %2049 = vmatprep.subr.bf16.mxu0 %v3482_v33 }
 0x2cf   : > { %3158 = vst [vmem:[%s4430_s28 + $0x30] sm:$0xff] %v1317_v44  ;;  %v4483_v50 = vpop.f32.mrb[13].mxu1  ;;  %v1319_v51 = vpop.f32.mrb[41].mxu0 }
 0x2d0   : > { %v4485_v56 = vpop.f32.mrb[14].mxu1  ;;  %v1320_v57 = vpop.f32.mrb[42].mxu0  ;;  %v4544_v51 = vld [vmem:[%s5098_s5] sm:$0xff]  }
 0x2d1   : > { %v4487_v58 = vpack.c.bf16 %v1320_v57, %v1317_v44  ;;  %3159 = vst [vmem:[%s4430_s28 + $0x38] sm:$0xff] %v1320_v57  ;;  %v4490_v59 = vpop.f32.mrb[15].mxu1  ;;  %v1322_v61 = vpop.f32.mrb[43].mxu0  ;;  %1951 = vmatpush1.bf16.msra.mxu1 %v3487_v39  ;;  %2050 = vmatpush1.bf16.msra.mxu0 %v3481_v41  ;;  %v4620_v57 = vld [vmem:[%s5098_s5 + $0x38] sm:$0xff]  }
 0x2d2   : > { %1952 = vmatprep.subr.bf16.mxu1 %v3496_v45  ;;  %2051 = vmatprep.subr.bf16.mxu0 %v3490_v48  ;;  %v4642_v61 = vld [vmem:[%s5098_s5 + $0x48] sm:$0xff]  }
 0x2d3   : > { %1801 = vmatmul.mubr.bf16.gmra.mrb[40].mxu1 %v4487_v58  ;;  %1902 = vmatmul.mubr.bf16.gmra.mrb[68].mxu0 %v4487_v58 }
 0x2d4   : > { %1810 = vmatprep.mubr.bf16.mxu1 %v5105_v0  ;;  %1911 = vmatprep.mubr.bf16.mxu0 %v5105_v0 }
 0x2d5   : > { %1953 = vmatpush1.bf16.msra.mxu1 %v3495_v62  ;;  %2052 = vmatpush1.bf16.msra.mxu0 %v3489_v63  ;;  %v4651_v62 = vld [vmem:[%s5098_s5 + $0x50] sm:$0xff]   ;;  %v4664_v63 = vld [vmem:[%s5098_s5 + $0x58] sm:$0xff]  }
 0x2d6   : > { %v4496_v10 = vpop.f32.mrb[16].mxu1  ;;  %v1325_v11 = vpop.f32.mrb[44].mxu0  ;;  %1954 = vmatprep.subr.bf16.mxu1 %v3504_v2  ;;  %2053 = vmatprep.subr.bf16.mxu0 %v3498_v3  ;;  %v3768_v2 = vld [vmem:[%s5098_s5 + $0x60] ss:$0 sps:$4 sm:$0xff]  }
 0x2d7   : > { %3160 = vst [vmem:[%s4430_s28 + $0x40] sm:$0xff] %v1325_v11  ;;  %v4499_v13 = vpop.f32.mrb[17].mxu1  ;;  %v1327_v14 = vpop.f32.mrb[45].mxu0  ;;  %v4676_v3 = vsel %vm1148_vm5, %v3768_v2, 0 }
 0x2d8   : > { %v4501_v15 = vpop.f32.mrb[18].mxu1  ;;  %v1328_v16 = vpop.f32.mrb[46].mxu0 }
 0x2d9   : > { %v4503_v18 = vpack.c.bf16 %v1328_v16, %v1325_v11  ;;  %3161 = vst [vmem:[%s4430_s28 + $0x48] sm:$0xff] %v1328_v16  ;;  %v4506_v19 = vpop.f32.mrb[19].mxu1  ;;  %v1330_v21 = vpop.f32.mrb[47].mxu0  ;;  %1955 = vmatpush1.bf16.msra.mxu1 %v3503_v8  ;;  %2054 = vmatpush1.bf16.msra.mxu0 %v3497_v9 }
 0x2da   : > { %2055 = vmatprep.subr.bf16.mxu0 %v3506_v12  ;;  %2306 = vmatprep.subr.bf16.mxu1 %v5105_v0 }
 0x2db   : > { %1811 = vmatmul.mubr.bf16.gmra.mrb[44].mxu1 %v4503_v18  ;;  %1912 = vmatmul.mubr.bf16.gmra.mrb[72].mxu0 %v4503_v18 }
 0x2dc   : > { %1820 = vmatprep.mubr.bf16.mxu1 %v5105_v0  ;;  %1921 = vmatprep.mubr.bf16.mxu0 %v5105_v0 }
 0x2dd   : > { %2056 = vmatpush1.bf16.msra.mxu0 %v3505_v22 }
 0x2de   : > { %v4513_v23 = vpop.f32.mrb[20].mxu1  ;;  %v1333_v24 = vpop.f32.mrb[48].mxu0  ;;  %2455 = vmatprep.subr.bf16.mxu0 %v5105_v0 }
 0x2df   : > { %3162 = vst [vmem:[%s4430_s28 + $0x50] sm:$0xff] %v1333_v24  ;;  %v4517_v26 = vpop.f32.mrb[21].mxu1  ;;  %v1335_v29 = vpop.f32.mrb[49].mxu0 }
 0x2e0   : > { %v4519_v30 = vpop.f32.mrb[22].mxu1  ;;  %v1336_v31 = vpop.f32.mrb[50].mxu0 }
 0x2e1   : > { %v4521_v32 = vpack.c.bf16 %v1336_v31, %v1333_v24  ;;  %3163 = vst [vmem:[%s4430_s28 + $0x58] sm:$0xff] %v1336_v31  ;;  %v4524_v33 = vpop.f32.mrb[23].mxu1  ;;  %v1338_v34 = vpop.f32.mrb[51].mxu0 }
 0x2e3   : > { %1821 = vmatmul.mubr.bf16.gmra.mrb[48].mxu1 %v4521_v32  ;;  %1922 = vmatmul.mubr.bf16.gmra.mrb[76].mxu0 %v4521_v32 }
 0x2e4   : > { %1830 = vmatprep.mubr.bf16.mxu1 %v5105_v0  ;;  %1931 = vmatprep.mubr.bf16.mxu0 %v5105_v0 }
 0x2e6   : > { %v4530_v35 = vpop.f32.mrb[24].mxu1  ;;  %v1341_v37 = vpop.f32.mrb[52].mxu0 }
 0x2e7   : > { %3164 = vst [vmem:[%s4430_s28 + $0x60] sm:$0x7] %v1341_v37  ;;  %v4533_v38 = vpop.f32.mrb[25].mxu1  ;;  %v1343_v39 = vpop.f32.mrb[53].mxu0  ;;  %v4535_v45 = vpack.c.bf16 %v1341_v37, %v1341_v37 }
 0x2e8   : > { %v1256_v41 = vpop.f32.mrb[26].mxu1  ;;  %v1344_v44 = vpop.f32.mrb[54].mxu0 }
 0x2e9   : > { %v1257_v48 = vpop.f32.mrb[27].mxu1  ;;  %v1345_v49 = vpop.f32.mrb[55].mxu0 }
 0x2eb   : > { %1831 = vmatmul.mubr.bf16.gmra.mrb[52].mxu1 %v4535_v45  ;;  %1932 = vmatmul.mubr.bf16.gmra.mrb[80].mxu0 %v4535_v45 }
 0x2ec   : > { %1972 = vmatprep.mubr.bf16.mxu1 %v5105_v0  ;;  %2073 = vmatprep.mubr.bf16.mxu0 %v5105_v0 }
 0x2f3   : > { %1973 = vmatmul.mubr.bf16.vlgmr.msra.gmra.mrb[56].mxu1 %v4439_v46  ;;  %2074 = vmatmul.mubr.bf16.vlgmr.msra.gmra.mrb[84].mxu0 %v4439_v46  ;;  %v4563_v46 = vld [vmem:[%s5098_s5 + $0x10] sm:$0xff]  }
 0x2f4   : > { %1982 = vmatprep.mubr.bf16.mxu1 %v5105_v0  ;;  %2083 = vmatprep.mubr.bf16.mxu0 %v5105_v0 }
 0x2f5   : > { %2307 = vmatpush1.bf16.msra.mxu1 %v4544_v51  ;;  %2456 = vmatpush1.bf16.msra.mxu0 %v4544_v51 }
 0x2f6   : > { %2308 = vmatprep.subr.bf16.mxu1 %v5105_v0  ;;  %2457 = vmatprep.subr.bf16.mxu0 %v5105_v0 }
 0x2f9   : > { %2309 = vmatpush1.bf16.msra.mxu1 %v4554_v52  ;;  %2458 = vmatpush1.bf16.msra.mxu0 %v4554_v52 }
 0x2fa   : > { %2310 = vmatprep.subr.bf16.mxu1 %v5105_v0  ;;  %2459 = vmatprep.subr.bf16.mxu0 %v5105_v0 }
 0x2fb   : > { %1983 = vmatmul.mubr.bf16.gmra.mrb[60].mxu1 %v4455_v4  ;;  %2084 = vmatmul.mubr.bf16.gmra.mrb[88].mxu0 %v4455_v4  ;;  %v4585_v4 = vld [vmem:[%s5098_s5 + $0x20] sm:$0xff]  }
 0x2fc   : > { %1992 = vmatprep.mubr.bf16.mxu1 %v5105_v0  ;;  %2093 = vmatprep.mubr.bf16.mxu0 %v5105_v0 }
 0x2fd   : > { %2311 = vmatpush1.bf16.msra.mxu1 %v4563_v46  ;;  %2460 = vmatpush1.bf16.msra.mxu0 %v4563_v46 }
 0x2fe   : > { %2312 = vmatprep.subr.bf16.mxu1 %v5105_v0  ;;  %2461 = vmatprep.subr.bf16.mxu0 %v5105_v0 }
 0x301   : > { %2313 = vmatpush1.bf16.msra.mxu1 %v4576_v53  ;;  %2462 = vmatpush1.bf16.msra.mxu0 %v4576_v53 }
 0x302   : > { %2314 = vmatprep.subr.bf16.mxu1 %v5105_v0  ;;  %2463 = vmatprep.subr.bf16.mxu0 %v5105_v0 }
 0x303   : > { %1993 = vmatmul.mubr.bf16.gmra.mrb[64].mxu1 %v4471_v27  ;;  %2094 = vmatmul.mubr.bf16.gmra.mrb[92].mxu0 %v4471_v27  ;;  %v4607_v27 = vld [vmem:[%s5098_s5 + $0x30] sm:$0xff]  }
 0x304   : > { %2002 = vmatprep.mubr.bf16.mxu1 %v5105_v0  ;;  %2103 = vmatprep.mubr.bf16.mxu0 %v5105_v0 }
 0x305   : > { %2315 = vmatpush1.bf16.msra.mxu1 %v4585_v4  ;;  %2464 = vmatpush1.bf16.msra.mxu0 %v4585_v4 }
 0x306   : > { %2316 = vmatprep.subr.bf16.mxu1 %v5105_v0  ;;  %2465 = vmatprep.subr.bf16.mxu0 %v5105_v0 }
 0x309   : > { %2317 = vmatpush1.bf16.msra.mxu1 %v4598_v54  ;;  %2466 = vmatpush1.bf16.msra.mxu0 %v4598_v54 }
 0x30a   : > { %2318 = vmatprep.subr.bf16.mxu1 %v5105_v0  ;;  %2467 = vmatprep.subr.bf16.mxu0 %v5105_v0 }
 0x30b   : > { %2003 = vmatmul.mubr.bf16.gmra.mrb[68].mxu1 %v4487_v58  ;;  %2104 = vmatmul.mubr.bf16.gmra.mrb[96].mxu0 %v4487_v58  ;;  %v4629_v58 = vld [vmem:[%s5098_s5 + $0x40] sm:$0xff]  }
 0x30c   : > { %2012 = vmatprep.mubr.bf16.mxu1 %v5105_v0  ;;  %2113 = vmatprep.mubr.bf16.mxu0 %v5105_v0 }
 0x30d   : > { %2319 = vmatpush1.bf16.msra.mxu1 %v4607_v27  ;;  %2468 = vmatpush1.bf16.msra.mxu0 %v4607_v27 }
 0x30e   : > { %2320 = vmatprep.subr.bf16.mxu1 %v5105_v0  ;;  %2469 = vmatprep.subr.bf16.mxu0 %v5105_v0 }
 0x311   : > { %2321 = vmatpush1.bf16.msra.mxu1 %v4620_v57  ;;  %2470 = vmatpush1.bf16.msra.mxu0 %v4620_v57 }
 0x312   : > { %2322 = vmatprep.subr.bf16.mxu1 %v5105_v0  ;;  %2471 = vmatprep.subr.bf16.mxu0 %v5105_v0 }
 0x313   : > { %2013 = vmatmul.mubr.bf16.gmra.mrb[72].mxu1 %v4503_v18  ;;  %2114 = vmatmul.mubr.bf16.gmra.mrb[100].mxu0 %v4503_v18 }
 0x314   : > { %2022 = vmatprep.mubr.bf16.mxu1 %v5105_v0  ;;  %2123 = vmatprep.mubr.bf16.mxu0 %v5105_v0 }
 0x315   : > { %2323 = vmatpush1.bf16.msra.mxu1 %v4629_v58  ;;  %2472 = vmatpush1.bf16.msra.mxu0 %v4629_v58 }
 0x316   : > { %2324 = vmatprep.subr.bf16.mxu1 %v5105_v0  ;;  %2473 = vmatprep.subr.bf16.mxu0 %v5105_v0 }
 0x319   : > { %2325 = vmatpush1.bf16.msra.mxu1 %v4642_v61  ;;  %2474 = vmatpush1.bf16.msra.mxu0 %v4642_v61 }
 0x31a   : > { %2326 = vmatprep.subr.bf16.mxu1 %v5105_v0  ;;  %2475 = vmatprep.subr.bf16.mxu0 %v5105_v0 }
 0x31b   : > { %2023 = vmatmul.mubr.bf16.gmra.mrb[76].mxu1 %v4521_v32  ;;  %2124 = vmatmul.mubr.bf16.gmra.mrb[104].mxu0 %v4521_v32 }
 0x31c   : > { %2032 = vmatprep.mubr.bf16.mxu1 %v5105_v0  ;;  %2133 = vmatprep.mubr.bf16.mxu0 %v5105_v0 }
 0x31d   : > { %2327 = vmatpush1.bf16.msra.mxu1 %v4651_v62  ;;  %2476 = vmatpush1.bf16.msra.mxu0 %v4651_v62 }
 0x31e   : > { %2328 = vmatprep.subr.bf16.mxu1 %v5105_v0  ;;  %2477 = vmatprep.subr.bf16.mxu0 %v5105_v0 }
 0x321   : > { %2329 = vmatpush1.bf16.msra.mxu1 %v4664_v63  ;;  %2478 = vmatpush1.bf16.msra.mxu0 %v4664_v63 }
 0x322   : > { %2330 = vmatprep.subr.bf16.mxu1 %v5105_v0  ;;  %2479 = vmatprep.subr.bf16.mxu0 %v5105_v0 }
 0x323   : > { %2033 = vmatmul.mubr.bf16.gmra.mrb[80].mxu1 %v4535_v45  ;;  %2134 = vmatmul.mubr.bf16.gmra.mrb[108].mxu0 %v4535_v45 }
 0x325   : > { %2331 = vmatpush1.bf16.msra.mxu1 %v4676_v3  ;;  %2480 = vmatpush1.bf16.msra.mxu0 %v4676_v3 }
 0x326   : > { %3582 = vmatprep.subr.bf16.mxu1 %v5105_v0 }
 0x38e   : > { %v1772_v6 = vpop.f32.mrb[28].mxu1  ;;  %v4684_v7 = vpop.f32.mrb[56].mxu0 }
 0x38f   : > { %v2167_v8 = vmul.f32 %v1772_v6, %v4432_v36  ;;  %v1774_v9 = vpop.f32.mrb[29].mxu1  ;;  %v4687_v11 = vpop.f32.mrb[57].mxu0 }
 0x390   : > { %v2168_v12 = vmul.f32 %v1774_v9, %v4435_v40  ;;  %v1776_v14 = vpop.f32.mrb[30].mxu1  ;;  %v4690_v16 = vpop.f32.mrb[58].mxu0 }
 0x391   : > { %v2169_v18 = vmul.f32 %v1776_v14, %v4437_v42  ;;  %v1778_v21 = vpop.f32.mrb[31].mxu1  ;;  %v4693_v22 = vpop.f32.mrb[59].mxu0 }
 0x392   : > { %v2170_v24 = vmul.f32 %v1778_v21, %v4442_v47 }
 0x393   : > { %v2193_v29 = vpack.c.bf16 %v2169_v18, %v2167_v8 }
 0x394   : > { %v2194_v31 = vpack.c.bf16 %v2170_v24, %v2168_v12 }
 0x396   : > { %v1782_v32 = vpop.f32.mrb[32].mxu1  ;;  %v4696_v34 = vpop.f32.mrb[60].mxu0  ;;  %3520 = vmatprep.mubr.msk.bf16.mxu1 %vm836_vm4, %v2194_v31 }
 0x397   : > { %v2171_v37 = vmul.f32 %v1782_v32, %v4448_v55  ;;  %v1784_v39 = vpop.f32.mrb[33].mxu1  ;;  %v4700_v41 = vpop.f32.mrb[61].mxu0  ;;  %2339 = vmatmul.mubr.bf16.vlgmr.msra.gmra.mrb[84].mxu1 %v2193_v29 }
 0x398   : > { %v2172_v44 = vmul.f32 %v1784_v39, %v4451_v60  ;;  %v1786_v45 = vpop.f32.mrb[34].mxu1  ;;  %v4703_v48 = vpop.f32.mrb[62].mxu0  ;;  %3595 = vmatpush1.bf16.msra.mxu1 %v4544_v51 }
 0x399   : > { %v2173_v49 = vmul.f32 %v1786_v45, %v4453_v1  ;;  %v1788_v2 = vpop.f32.mrb[35].mxu1  ;;  %v4707_v6 = vpop.f32.mrb[63].mxu0  ;;  %3583 = vmatprep.subr.bf16.mxu1 %v5105_v0 }
 0x39a   : > { %v2174_v8 = vmul.f32 %v1788_v2, %v4458_v5 }
 0x39b   : > { %v2195_v9 = vpack.c.bf16 %v2173_v49, %v2171_v37 }
 0x39c   : > { %v2196_v12 = vpack.c.bf16 %v2174_v8, %v2172_v44  ;;  %3596 = vmatpush1.bf16.msra.mxu1 %v4554_v52 }
 0x39d   : > { %3584 = vmatprep.subr.bf16.mxu1 %v5105_v0 }
 0x39e   : > { %v1792_v14 = vpop.f32.mrb[36].mxu1  ;;  %v4713_v18 = vpop.f32.mrb[64].mxu0  ;;  %3521 = vmatprep.mubr.msk.bf16.mxu1 %vm836_vm4, %v2196_v12 }
 0x39f   : > { %v2175_v51 = vmul.f32 %v1792_v14, %v4464_v17  ;;  %v1794_v21 = vpop.f32.mrb[37].mxu1  ;;  %v4717_v24 = vpop.f32.mrb[65].mxu0  ;;  %2347 = vmatmul.mubr.bf16.gmra.mrb[88].mxu1 %v2195_v9 }
 0x3a0   : > { %v2176_v29 = vmul.f32 %v1794_v21, %v4467_v20  ;;  %v1796_v31 = vpop.f32.mrb[38].mxu1  ;;  %v4720_v32 = vpop.f32.mrb[66].mxu0  ;;  %3597 = vmatpush1.bf16.msra.mxu1 %v4563_v46 }
 0x3a1   : > { %v2177_v52 = vmul.f32 %v1796_v31, %v4469_v25  ;;  %v1798_v37 = vpop.f32.mrb[39].mxu1  ;;  %v4724_v39 = vpop.f32.mrb[67].mxu0  ;;  %3585 = vmatprep.subr.bf16.mxu1 %v5105_v0 }
 0x3a2   : > { %v2178_v44 = vmul.f32 %v1798_v37, %v4474_v28 }
 0x3a3   : > { %v2197_v45 = vpack.c.bf16 %v2177_v52, %v2175_v51 }
 0x3a4   : > { %v2198_v49 = vpack.c.bf16 %v2178_v44, %v2176_v29  ;;  %3598 = vmatpush1.bf16.msra.mxu1 %v4576_v53 }
 0x3a5   : > { %3586 = vmatprep.subr.bf16.mxu1 %v5105_v0 }
 0x3a6   : > { %v1802_v2 = vpop.f32.mrb[40].mxu1  ;;  %v4730_v8 = vpop.f32.mrb[68].mxu0  ;;  %3522 = vmatprep.mubr.msk.bf16.mxu1 %vm836_vm4, %v2198_v49 }
 0x3a7   : > { %v2179_v46 = vmul.f32 %v1802_v2, %v4480_v43  ;;  %v1804_v9 = vpop.f32.mrb[41].mxu1  ;;  %v4734_v12 = vpop.f32.mrb[69].mxu0  ;;  %2355 = vmatmul.mubr.bf16.gmra.mrb[92].mxu1 %v2197_v45 }
 0x3a8   : > { %v2180_v14 = vmul.f32 %v1804_v9, %v4483_v50  ;;  %v1806_v21 = vpop.f32.mrb[42].mxu1  ;;  %v4737_v51 = vpop.f32.mrb[70].mxu0  ;;  %3599 = vmatpush1.bf16.msra.mxu1 %v4585_v4 }
 0x3a9   : > { %v2181_v53 = vmul.f32 %v1806_v21, %v4485_v56  ;;  %v1808_v29 = vpop.f32.mrb[43].mxu1  ;;  %v4741_v31 = vpop.f32.mrb[71].mxu0  ;;  %3587 = vmatprep.subr.bf16.mxu1 %v5105_v0 }
 0x3aa   : > { %5117 = vst [vmem:[#allocation12_spill] sm:$0xff] %v4741_v31  ;;  %v2182_v52 = vmul.f32 %v1808_v29, %v4490_v59 }
 0x3ab   : > { %v2199_v37 = vpack.c.bf16 %v2181_v53, %v2179_v46 }
 0x3ac   : > { %v2200_v44 = vpack.c.bf16 %v2182_v52, %v2180_v14  ;;  %3600 = vmatpush1.bf16.msra.mxu1 %v4598_v54 }
 0x3ad   : > { %3588 = vmatprep.subr.bf16.mxu1 %v5105_v0 }
 0x3ae   : > { %v1812_v45 = vpop.f32.mrb[44].mxu1  ;;  %v4747_v49 = vpop.f32.mrb[72].mxu0  ;;  %3523 = vmatprep.mubr.msk.bf16.mxu1 %vm836_vm4, %v2200_v44 }
 0x3af   : > { %5118 = vst [vmem:[#allocation13_spill] sm:$0xff] %v4747_v49  ;;  %v2183_v4 = vmul.f32 %v1812_v45, %v4496_v10  ;;  %v1814_v2 = vpop.f32.mrb[45].mxu1  ;;  %v4751_v9 = vpop.f32.mrb[73].mxu0  ;;  %2363 = vmatmul.mubr.bf16.gmra.mrb[96].mxu1 %v2199_v37 }
 0x3b0   : > { %5119 = vst [vmem:[#allocation14_spill] sm:$0xff] %v4751_v9  ;;  %v2184_v21 = vmul.f32 %v1814_v2, %v4499_v13  ;;  %v1816_v29 = vpop.f32.mrb[46].mxu1  ;;  %v4754_v46 = vpop.f32.mrb[74].mxu0  ;;  %3601 = vmatpush1.bf16.msra.mxu1 %v4607_v27 }
 0x3b1   : > { %5120 = vst [vmem:[#allocation15_spill] sm:$0xff] %v4754_v46  ;;  %v2185_v54 = vmul.f32 %v1816_v29, %v4501_v15  ;;  %v1818_v14 = vpop.f32.mrb[47].mxu1  ;;  %v4758_v53 = vpop.f32.mrb[75].mxu0  ;;  %3589 = vmatprep.subr.bf16.mxu1 %v5105_v0 }
 0x3b2   : > { %5121 = vst [vmem:[#allocation16_spill] sm:$0xff] %v4758_v53  ;;  %v2186_v52 = vmul.f32 %v1818_v14, %v4506_v19 }
 0x3b3   : > { %v2201_v44 = vpack.c.bf16 %v2185_v54, %v2183_v4 }
 0x3b4   : > { %v2202_v45 = vpack.c.bf16 %v2186_v52, %v2184_v21  ;;  %3602 = vmatpush1.bf16.msra.mxu1 %v4620_v57 }
 0x3b5   : > { %3590 = vmatprep.subr.bf16.mxu1 %v5105_v0 }
 0x3b6   : > { %v1822_v37 = vpop.f32.mrb[48].mxu1  ;;  %v4764_v2 = vpop.f32.mrb[76].mxu0  ;;  %3524 = vmatprep.mubr.msk.bf16.mxu1 %vm836_vm4, %v2202_v45 }
 0x3b7   : > { %5122 = vst [vmem:[#allocation17_spill] sm:$0xff] %v4764_v2  ;;  %v2187_v27 = vmul.f32 %v1822_v37, %v4513_v23  ;;  %v1824_v29 = vpop.f32.mrb[49].mxu1  ;;  %v4768_v46 = vpop.f32.mrb[77].mxu0  ;;  %2371 = vmatmul.mubr.bf16.gmra.mrb[100].mxu1 %v2201_v44 }
 0x3b8   : > { %5123 = vst [vmem:[#allocation18_spill] sm:$0xff] %v4768_v46  ;;  %v2188_v53 = vmul.f32 %v1824_v29, %v4517_v26  ;;  %v1826_v14 = vpop.f32.mrb[50].mxu1  ;;  %v4771_v4 = vpop.f32.mrb[78].mxu0  ;;  %3603 = vmatpush1.bf16.msra.mxu1 %v4629_v58 }
 0x3b9   : > { %5124 = vst [vmem:[#allocation19_spill] sm:$0xff] %v4771_v4  ;;  %v2189_v57 = vmul.f32 %v1826_v14, %v4519_v30  ;;  %v1828_v21 = vpop.f32.mrb[51].mxu1  ;;  %v4775_v54 = vpop.f32.mrb[79].mxu0  ;;  %3591 = vmatprep.subr.bf16.mxu1 %v5105_v0 }
 0x3ba   : > { %5125 = vst [vmem:[#allocation20_spill] sm:$0xff] %v4775_v54  ;;  %v2190_v52 = vmul.f32 %v1828_v21, %v4524_v33 }
 0x3bb   : > { %v2203_v45 = vpack.c.bf16 %v2189_v57, %v2187_v27 }
 0x3bc   : > { %v2204_v37 = vpack.c.bf16 %v2190_v52, %v2188_v53  ;;  %3604 = vmatpush1.bf16.msra.mxu1 %v4642_v61 }
 0x3bd   : > { %3592 = vmatprep.subr.bf16.mxu1 %v5105_v0 }
 0x3be   : > { %v1832_v44 = vpop.f32.mrb[52].mxu1  ;;  %v4781_v29 = vpop.f32.mrb[80].mxu0  ;;  %3525 = vmatprep.mubr.msk.bf16.mxu1 %vm836_vm4, %v2204_v37 }
 0x3bf   : > { %5126 = vst [vmem:[#allocation21_spill] sm:$0xff] %v4781_v29  ;;  %v2191_v58 = vmul.f32 %v1832_v44, %v4530_v35  ;;  %v1834_v14 = vpop.f32.mrb[53].mxu1  ;;  %v4785_v4 = vpop.f32.mrb[81].mxu0  ;;  %2379 = vmatmul.mubr.bf16.gmra.mrb[104].mxu1 %v2203_v45 }
 0x3c0   : > { %5127 = vst [vmem:[#allocation22_spill] sm:$0xff] %v4785_v4  ;;  %v2192_v54 = vmul.f32 %v1834_v14, %v4533_v38  ;;  %v1836_v21 = vpop.f32.mrb[54].mxu1  ;;  %v1937_v27 = vpop.f32.mrb[82].mxu0  ;;  %3605 = vmatpush1.bf16.msra.mxu1 %v4651_v62  ;;  %v5132_v4 = vmov 0  }
 0x3c1   : > { %v1837_v61 = vpop.f32.mrb[55].mxu1  ;;  %v1938_v53 = vpop.f32.mrb[83].mxu0  ;;  %3593 = vmatprep.subr.bf16.mxu1 %v5105_v0  ;;  %v2205_v52 = vpack.c.bf16 %v2191_v58, %v2191_v58 }
 0x3c2   : > { %v2206_v57 = vpack.c.bf16 %v2192_v54, %v2192_v54 }
 0x3c4   : > { %3526 = vmatprep.mubr.msk.bf16.mxu1 %vm836_vm4, %v2206_v57  ;;  %3606 = vmatpush1.bf16.msra.mxu1 %v4664_v63 }
 0x3c5   : > { %3594 = vmatprep.subr.bf16.mxu1 %v5105_v0 }
 0x3c6   : > { %v1974_v37 = vpop.f32.mrb[56].mxu1  ;;  %v4793_v45 = vpop.f32.mrb[84].mxu0 }
 0x3c7   : > { %v2394_v44 = vmul.f32 %v1974_v37, %v4432_v36  ;;  %v1976_v14 = vpop.f32.mrb[57].mxu1  ;;  %v4796_v21 = vpop.f32.mrb[85].mxu0  ;;  %2387 = vmatmul.mubr.bf16.gmra.mrb[108].mxu1 %v2205_v52 }
 0x3c8   : > { %v2395_v62 = vmul.f32 %v1976_v14, %v4435_v40  ;;  %v1978_v27 = vpop.f32.mrb[58].mxu1  ;;  %v4799_v54 = vpop.f32.mrb[86].mxu0  ;;  %3607 = vmatpush1.bf16.msra.mxu1 %v4676_v3 }
 0x3c9   : > { %v2396_v63 = vmul.f32 %v1978_v27, %v4437_v42  ;;  %v1980_v58 = vpop.f32.mrb[59].mxu1  ;;  %v4803_v61 = vpop.f32.mrb[87].mxu0 }
 0x3ca   : > { %v2397_v53 = vmul.f32 %v1980_v58, %v4442_v47 }
 0x3cb   : > { %v2420_v57 = vpack.c.bf16 %v2396_v63, %v2394_v44 }
 0x3cc   : > { %v2421_v36 = vpack.c.bf16 %v2397_v53, %v2395_v62 }
 0x3ce   : > { %v1984_v37 = vpop.f32.mrb[60].mxu1  ;;  %v4806_v0 = vpop.f32.mrb[88].mxu0  ;;  %3527 = vmatprep.mubr.msk.bf16.mxu0 %vm836_vm4, %v2421_v36 }
 0x3cf   : > { %v2398_v40 = vmul.f32 %v1984_v37, %v4448_v55  ;;  %v1986_v52 = vpop.f32.mrb[61].mxu1  ;;  %v4810_v14 = vpop.f32.mrb[89].mxu0  ;;  %2488 = vmatmul.mubr.bf16.vlgmr.msra.gmra.mrb[112].mxu0 %v2420_v57 }
 0x3d0   : > { %v2399_v42 = vmul.f32 %v1986_v52, %v4451_v60  ;;  %v1988_v3 = vpop.f32.mrb[62].mxu1  ;;  %v4813_v27 = vpop.f32.mrb[90].mxu0 }
 0x3d1   : > { %v2400_v47 = vmul.f32 %v1988_v3, %v4453_v1  ;;  %v1990_v44 = vpop.f32.mrb[63].mxu1  ;;  %v4816_v62 = vpop.f32.mrb[91].mxu0 }
 0x3d2   : > { %v2401_v63 = vmul.f32 %v1990_v44, %v4458_v5 }
 0x3d3   : > { %v2422_v58 = vpack.c.bf16 %v2400_v47, %v2398_v40 }
 0x3d4   : > { %v2423_v53 = vpack.c.bf16 %v2401_v63, %v2399_v42 }
 0x3d6   : > { %v1994_v36 = vpop.f32.mrb[64].mxu1  ;;  %v4819_v55 = vpop.f32.mrb[92].mxu0  ;;  %3528 = vmatprep.mubr.msk.bf16.mxu0 %vm836_vm4, %v2423_v53 }
 0x3d7   : > { %v2402_v57 = vmul.f32 %v1994_v36, %v4464_v17  ;;  %v1996_v60 = vpop.f32.mrb[65].mxu1  ;;  %v4823_v37 = vpop.f32.mrb[93].mxu0  ;;  %2496 = vmatmul.mubr.bf16.gmra.mrb[116].mxu0 %v2422_v58 }
 0x3d8   : > { %v2403_v1 = vmul.f32 %v1996_v60, %v4467_v20  ;;  %v1998_v52 = vpop.f32.mrb[66].mxu1  ;;  %v4826_v3 = vpop.f32.mrb[94].mxu0 }
 0x3d9   : > { %v2404_v5 = vmul.f32 %v1998_v52, %v4469_v25  ;;  %v2000_v40 = vpop.f32.mrb[67].mxu1  ;;  %v4829_v42 = vpop.f32.mrb[95].mxu0 }
 0x3da   : > { %v2405_v47 = vmul.f32 %v2000_v40, %v4474_v28 }
 0x3db   : > { %v2424_v44 = vpack.c.bf16 %v2404_v5, %v2402_v57 }
 0x3dc   : > { %v2425_v63 = vpack.c.bf16 %v2405_v47, %v2403_v1 }
 0x3de   : > { %v2004_v53 = vpop.f32.mrb[68].mxu1  ;;  %v4832_v17 = vpop.f32.mrb[96].mxu0  ;;  %3529 = vmatprep.mubr.msk.bf16.mxu0 %vm836_vm4, %v2425_v63 }
 0x3df   : > { %v2406_v58 = vmul.f32 %v2004_v53, %v4480_v43  ;;  %v2006_v20 = vpop.f32.mrb[69].mxu1  ;;  %v4836_v36 = vpop.f32.mrb[97].mxu0  ;;  %2504 = vmatmul.mubr.bf16.gmra.mrb[120].mxu0 %v2424_v44 }
 0x3e0   : > { %v2407_v25 = vmul.f32 %v2006_v20, %v4483_v50  ;;  %v2008_v60 = vpop.f32.mrb[70].mxu1  ;;  %v4839_v52 = vpop.f32.mrb[98].mxu0 }
 0x3e1   : > { %v2408_v28 = vmul.f32 %v2008_v60, %v4485_v56  ;;  %v2010_v57 = vpop.f32.mrb[71].mxu1  ;;  %v4842_v1 = vpop.f32.mrb[99].mxu0 }
 0x3e2   : > { %5128 = vst [vmem:[#allocation23_spill] sm:$0xff] %v4842_v1  ;;  %v2409_v5 = vmul.f32 %v2010_v57, %v4490_v59 }
 0x3e3   : > { %v2426_v40 = vpack.c.bf16 %v2408_v28, %v2406_v58 }
 0x3e4   : > { %v2427_v47 = vpack.c.bf16 %v2409_v5, %v2407_v25 }
 0x3e6   : > { %v2014_v63 = vpop.f32.mrb[72].mxu1  ;;  %v4845_v43 = vpop.f32.mrb[100].mxu0  ;;  %3530 = vmatprep.mubr.msk.bf16.mxu0 %vm836_vm4, %v2427_v47 }
 0x3e7   : > { %5129 = vst [vmem:[#allocation24_spill] sm:$0xff] %v4845_v43  ;;  %v2410_v44 = vmul.f32 %v2014_v63, %v4496_v10  ;;  %v2016_v50 = vpop.f32.mrb[73].mxu1  ;;  %v4849_v53 = vpop.f32.mrb[101].mxu0  ;;  %2512 = vmatmul.mubr.bf16.gmra.mrb[124].mxu0 %v2426_v40 }
 0x3e8   : > { %5130 = vst [vmem:[#allocation25_spill] sm:$0xff] %v4849_v53  ;;  %v2411_v56 = vmul.f32 %v2016_v50, %v4499_v13  ;;  %v2018_v20 = vpop.f32.mrb[74].mxu1  ;;  %v4852_v60 = vpop.f32.mrb[102].mxu0  ;;  %2901 = vmatprep.mubr.bf16.mxu0 %v5132_v4 }
 0x3e9   : > { %5131 = vst [vmem:[#allocation26_spill] sm:$0xff] %v4852_v60  ;;  %v2412_v59 = vmul.f32 %v2018_v20, %v4501_v15  ;;  %v2020_v58 = vpop.f32.mrb[75].mxu1  ;;  %v4856_v25 = vpop.f32.mrb[103].mxu0 }
 0x3ea   : > { %5133 = vst [vmem:[#allocation27_spill] sm:$0xff] %v4856_v25  ;;  %v2413_v28 = vmul.f32 %v2020_v58, %v4506_v19 }
 0x3eb   : > { %v2428_v57 = vpack.c.bf16 %v2412_v59, %v2410_v44 }
 0x3ec   : > { %v2429_v10 = vpack.c.bf16 %v2413_v28, %v2411_v56 }
 0x3ee   : > { %v2024_v5 = vpop.f32.mrb[76].mxu1  ;;  %v4859_v47 = vpop.f32.mrb[104].mxu0  ;;  %3531 = vmatprep.mubr.msk.bf16.mxu1 %vm836_vm4, %v2429_v10 }
 0x3ef   : > { %5134 = vst [vmem:[#allocation28_spill] sm:$0xff] %v4859_v47  ;;  %v2414_v13 = vmul.f32 %v2024_v5, %v4513_v23  ;;  %v2026_v40 = vpop.f32.mrb[77].mxu1  ;;  %v4863_v63 = vpop.f32.mrb[105].mxu0  ;;  %2520 = vmatmul.mubr.bf16.vlgmr.msra.gmra.mrb[112].mxu1 %v2428_v57 }
 0x3f0   : > { %5135 = vst [vmem:[#allocation29_spill] sm:$0xff] %v4863_v63  ;;  %v2415_v15 = vmul.f32 %v2026_v40, %v4517_v26  ;;  %v2028_v50 = vpop.f32.mrb[78].mxu1  ;;  %v4866_v20 = vpop.f32.mrb[106].mxu0 }
 0x3f1   : > { %5136 = vst [vmem:[#allocation30_spill] sm:$0xff] %v4866_v20  ;;  %v2416_v19 = vmul.f32 %v2028_v50, %v4519_v30  ;;  %v2030_v44 = vpop.f32.mrb[79].mxu1  ;;  %v4869_v56 = vpop.f32.mrb[107].mxu0 }
 0x3f2   : > { %5137 = vst [vmem:[#allocation31_spill] sm:$0xff] %v4869_v56  ;;  %v2417_v59 = vmul.f32 %v2030_v44, %v4524_v33 }
 0x3f3   : > { %v2430_v58 = vpack.c.bf16 %v2416_v19, %v2414_v13  ;;  %v3769_v19 = vld [vmem:[#allocation7] ss:$8 sps:$4 sm:$0xff]  }
 0x3f4   : > { %v2431_v28 = vpack.c.bf16 %v2417_v59, %v2415_v15  ;;  %v3771_v15 = vld [vmem:[#allocation7 + $0x4] ss:$8 sps:$4 sm:$0xff]  }
 0x3f5   : > { %2869 = vmatprep.subr.bf16.mxu0 %v3771_v15  ;;  %2727 = vmatprep.subr.bf16.mxu1 %v3771_v15 }
 0x3f6   : > { %v2034_v10 = vpop.f32.mrb[80].mxu1  ;;  %v4872_v23 = vpop.f32.mrb[108].mxu0  ;;  %3532 = vmatprep.mubr.msk.bf16.mxu1 %vm836_vm4, %v2431_v28  ;;  %2870 = vmatpush1.bf16.msra.mxu0 %v3769_v19 }
 0x3f7   : > { %5138 = vst [vmem:[#allocation32_spill] sm:$0xff] %v4872_v23  ;;  %v2418_v57 = vmul.f32 %v2034_v10, %v4530_v35  ;;  %v2036_v26 = vpop.f32.mrb[81].mxu1  ;;  %v4876_v5 = vpop.f32.mrb[109].mxu0  ;;  %2528 = vmatmul.mubr.bf16.gmra.mrb[116].mxu1 %v2430_v58  ;;  %v2662_v35 = vld [vmem:[#allocation7 + $0x10] sm:$0x33] }
 0x3f8   : > { %5139 = vst [vmem:[#allocation33_spill] sm:$0xff] %v4876_v5  ;;  %v2419_v30 = vmul.f32 %v2036_v26, %v4533_v38  ;;  %v2038_v40 = vpop.f32.mrb[82].mxu1  ;;  %v2139_v50 = vpop.f32.mrb[110].mxu0  ;;  %2728 = vmatpush1.bf16.msra.mxu1 %v3769_v19  ;;  %v3537_v44 = vcombine.high %v2662_v35, %v2662_v35  ;;  %v3536_v38 = vcombine.low %v2662_v35, %v2662_v35 }
 0x3f9   : > { %v2039_v29 = vpop.f32.mrb[83].mxu1  ;;  %v2140_v56 = vpop.f32.mrb[111].mxu0  ;;  %v2432_v13 = vpack.c.bf16 %v2418_v57, %v2418_v57 }
 0x3fa   : > { %v2433_v33 = vpack.c.bf16 %v2419_v30, %v2419_v30  ;;  %3546 = vmatprep.subr.msk.bf16.mxu0 %vm2720_vm7, %v3537_v44  ;;  %v2722_v29 = vsel %vm2720_vm7, %v3536_v38, 0  ;;  %3538 = vmatprep.subr.msk.bf16.mxu1 %vm2720_vm7, %v3537_v44 }
 0x3fb   : > { %2872 = vmatpush1.bf16.msra.mxu0 %v2722_v29 }
 0x3fc   : > { %3533 = vmatprep.mubr.msk.bf16.mxu1 %vm836_vm4, %v2433_v33  ;;  %2730 = vmatpush1.bf16.msra.mxu1 %v2722_v29 }
 0x3ff   : > { %2536 = vmatmul.mubr.bf16.gmra.mrb[120].mxu1 %v2432_v13 }
 0x400   : > { %2759 = vmatprep.mubr.bf16.mxu1 %v5132_v4 }
 0x46a   : > { %v2340_v56 = vpop.f32.mrb[84].mxu1 }
 0x46b   : > { %v2342_v59 = vpop.f32.mrb[85].mxu1 }
 0x46c   : > { %v2343_v58 = vpop.f32.mrb[86].mxu1 }
 0x46d   : > { %v2345_v28 = vpop.f32.mrb[87].mxu1 }
 0x472   : > { %v2348_v10 = vpop.f32.mrb[88].mxu1 }
 0x473   : > { %v2350_v57 = vpop.f32.mrb[89].mxu1 }
 0x474   : > { %v2351_v26 = vpop.f32.mrb[90].mxu1 }
 0x475   : > { %v2353_v30 = vpop.f32.mrb[91].mxu1 }
 0x47a   : > { %v4884_v40 = vpop.f32.mrb[92].mxu1 }
 0x47b   : > { %v2358_v50 = vpop.f32.mrb[93].mxu1 }
 0x47c   : > { %v4886_v33 = vpop.f32.mrb[94].mxu1 }
 0x47d   : > { %v2361_v13 = vpop.f32.mrb[95].mxu1 }
 0x482   : > { %v4888_v15 = vpop.f32.mrb[96].mxu1 }
 0x483   : > { %v2366_v19 = vpop.f32.mrb[97].mxu1 }
 0x484   : > { %v4890_v35 = vpop.f32.mrb[98].mxu1 }
 0x485   : > { %v2369_v44 = vpop.f32.mrb[99].mxu1 }
 0x48a   : > { %v4892_v38 = vpop.f32.mrb[100].mxu1 }
 0x48b   : > { %v2374_v29 = vpop.f32.mrb[101].mxu1 }
 0x48c   : > { %v4894_v59 = vpop.f32.mrb[102].mxu1 }
 0x48d   : > { %v2377_v28 = vpop.f32.mrb[103].mxu1 }
 0x492   : > { %v4896_v57 = vpop.f32.mrb[104].mxu1 }
 0x493   : > { %v2382_v30 = vpop.f32.mrb[105].mxu1 }
 0x494   : > { %v4898_v5 = vpop.f32.mrb[106].mxu1 }
 0x495   : > { %v2385_v50 = vpop.f32.mrb[107].mxu1 }
 0x49a   : > { %v4900_v23 = vpop.f32.mrb[108].mxu1 }
 0x49b   : > { %v2390_v13 = vpop.f32.mrb[109].mxu1 }
 0x49c   : > { %v2391_v20 = vpop.f32.mrb[110].mxu1 }
 0x49d   : > { %v2392_v19 = vpop.f32.mrb[111].mxu1 }
 0x4a2   : > { %v2489_v63 = vpop.f32.mrb[112].mxu0 }
 0x4a3   : > { %v2543_v46 = vmax.f32 %v2340_v56, %v2489_v63  ;;  %v2491_v44 = vpop.f32.mrb[113].mxu0 }
 0x4a4   : > { %v2492_v47 = vpop.f32.mrb[114].mxu0 }
 0x4a5   : > { %v2556_v2 = vsub.f32 %v2340_v56, %v2543_v46  ;;  %v2595_v29 = vsub.f32 %v2489_v63, %v2543_v46  ;;  %v2544_v25 = vmax.f32 %v2343_v58, %v2492_v47  ;;  %v2494_v60 = vpop.f32.mrb[115].mxu0 }
 0x4a7   : > { %v2569_v28 = vmul.f32 1.442695, %v2556_v2  ;;  %v2608_v53 = vmul.f32 1.442695, %v2595_v29  ;;  %v2557_v9 = vsub.f32 %v2343_v58, %v2544_v25  ;;  %v2596_v30 = vsub.f32 %v2492_v47, %v2544_v25 }
 0x4a9   : > { %3774 = vpow2.f32 %v2569_v28  ;;  %v2571_v43 = vmul.f32 1.442695, %v2557_v9  ;;  %v2610_v50 = vmul.f32 1.442695, %v2596_v30 }
 0x4aa   : > { %3776 = vpow2.f32 %v2608_v53  ;;  %v2497_v49 = vpop.f32.mrb[116].mxu0 }
 0x4ab   : > { %3778 = vpow2.f32 %v2571_v43  ;;  %v2545_v20 = vmax.f32 %v2348_v10, %v2497_v49  ;;  %v2499_v13 = vpop.f32.mrb[117].mxu0 }
 0x4ac   : > { %3780 = vpow2.f32 %v2610_v50  ;;  %v2500_v19 = vpop.f32.mrb[118].mxu0 }
 0x4ad   : > { %v2558_v44 = vsub.f32 %v2348_v10, %v2545_v20  ;;  %v2597_v1 = vsub.f32 %v2497_v49, %v2545_v20  ;;  %v2546_v56 = vmax.f32 %v2351_v26, %v2500_v19  ;;  %v2502_v46 = vpop.f32.mrb[119].mxu0 }
 0x4af   : > { %v2573_v63 = vmul.f32 1.442695, %v2558_v44  ;;  %v2612_v60 = vmul.f32 1.442695, %v2597_v1  ;;  %v2559_v2 = vsub.f32 %v2351_v26, %v2546_v56  ;;  %v2598_v29 = vsub.f32 %v2500_v19, %v2546_v56 }
 0x4b1   : > { %3782 = vpow2.f32 %v2573_v63  ;;  %v2575_v25 = vmul.f32 1.442695, %v2559_v2  ;;  %v2614_v47 = vmul.f32 1.442695, %v2598_v29 }
 0x4b2   : > { %3784 = vpow2.f32 %v2612_v60  ;;  %v2505_v9 = vpop.f32.mrb[120].mxu0 }
 0x4b3   : > { %v3775_v53 = vpop.eup %3774  ;;  %3786 = vpow2.f32 %v2575_v25  ;;  %v2547_v43 = vmax.f32 %v4884_v40, %v2505_v9  ;;  %v2507_v58 = vpop.f32.mrb[121].mxu0 }
 0x4b4   : > { %v3777_v28 = vpop.eup %3776  ;;  %3788 = vpow2.f32 %v2614_v47  ;;  %v2508_v10 = vpop.f32.mrb[122].mxu0 }
 0x4b5   : > { %v3779_v49 = vpop.eup %3778  ;;  %v2634_v30 = vadd.f32 %v3777_v28, %v3775_v53  ;;  %v2560_v50 = vsub.f32 %v4884_v40, %v2547_v43  ;;  %v2599_v1 = vsub.f32 %v2505_v9, %v2547_v43  ;;  %v2548_v26 = vmax.f32 %v4886_v33, %v2508_v10  ;;  %v2510_v20 = vpop.f32.mrb[123].mxu0 }
 0x4b6   : > { %v3781_v13 = vpop.eup %3780 }
 0x4b7   : > { %3790 = vrcp.f32 %v2634_v30  ;;  %v2635_v19 = vadd.f32 %v3781_v13, %v3779_v49  ;;  %v2577_v44 = vmul.f32 1.442695, %v2560_v50  ;;  %v2616_v56 = vmul.f32 1.442695, %v2599_v1 }
 0x4b8   : > { %v2561_v46 = vsub.f32 %v4886_v33, %v2548_v26  ;;  %v2600_v63 = vsub.f32 %v2508_v10, %v2548_v26 }
 0x4b9   : > { %3792 = vrcp.f32 %v2635_v19 }
 0x4ba   : > { %3794 = vpow2.f32 %v2577_v44  ;;  %v2579_v60 = vmul.f32 1.442695, %v2561_v46  ;;  %v2618_v2 = vmul.f32 1.442695, %v2600_v63  ;;  %v2513_v29 = vpop.f32.mrb[124].mxu0 }
 0x4bb   : > { %v4906_v25 = vpop.eup %3782  ;;  %3796 = vpow2.f32 %v2616_v56  ;;  %v2549_v40 = vmax.f32 %v4888_v15, %v2513_v29  ;;  %v2515_v47 = vpop.f32.mrb[125].mxu0 }
 0x4bc   : > { %v4909_v9 = vpop.eup %3784  ;;  %3798 = vpow2.f32 %v2579_v60  ;;  %v2516_v43 = vpop.f32.mrb[126].mxu0 }
 0x4bd   : > { %v4911_v58 = vpop.eup %3786  ;;  %v2636_v33 = vadd.f32 %v4909_v9, %v4906_v25  ;;  %3800 = vpow2.f32 %v2618_v2  ;;  %v2562_v10 = vsub.f32 %v4888_v15, %v2549_v40  ;;  %v2601_v30 = vsub.f32 %v2513_v29, %v2549_v40  ;;  %v2518_v50 = vpop.f32.mrb[127].mxu0 }
 0x4be   : > { %v4916_v1 = vpop.eup %3788  ;;  %v2550_v26 = vmax.f32 %v4890_v35, %v2516_v43 }
 0x4bf   : > { %3802 = vrcp.f32 %v2636_v33  ;;  %v2637_v20 = vadd.f32 %v4916_v1, %v4911_v58  ;;  %v2581_v19 = vmul.f32 1.442695, %v2562_v10  ;;  %v2620_v44 = vmul.f32 1.442695, %v2601_v30 }
 0x4c0   : > { %v2563_v56 = vsub.f32 %v4890_v35, %v2550_v26  ;;  %v2602_v46 = vsub.f32 %v2516_v43, %v2550_v26 }
 0x4c1   : > { %v3791_v63 = vpop.eup %3790  ;;  %3804 = vrcp.f32 %v2637_v20 }
 0x4c2   : > { %v2663_v60 = vmul.f32 %v3791_v63, %v3775_v53  ;;  %v2828_v2 = vmul.f32 %v3791_v63, %v3777_v28  ;;  %3806 = vpow2.f32 %v2581_v19  ;;  %v2583_v15 = vmul.f32 1.442695, %v2563_v56  ;;  %v2521_v29 = vpop.f32.mrb[112].mxu1 }
 0x4c3   : > { %v3793_v40 = vpop.eup %3792  ;;  %3808 = vpow2.f32 %v2620_v44  ;;  %v2622_v47 = vmul.f32 1.442695, %v2602_v46  ;;  %v2551_v33 = vmax.f32 %v4892_v38, %v2521_v29  ;;  %v2523_v50 = vpop.f32.mrb[113].mxu1 }
 0x4c4   : > { %v4923_v31 = vpop.eup %3794  ;;  %v2664_v10 = vmul.f32 %v3793_v40, %v3779_v49  ;;  %v2829_v30 = vmul.f32 %v3793_v40, %v3781_v13  ;;  %3810 = vpow2.f32 %v2583_v15  ;;  %v2524_v35 = vpop.f32.mrb[114].mxu1 }
 0x4c5   : > { %v4925_v43 = vpop.eup %3796  ;;  %3812 = vpow2.f32 %v2622_v47  ;;  %v2564_v53 = vsub.f32 %v4892_v38, %v2551_v33  ;;  %v2603_v28 = vsub.f32 %v2521_v29, %v2551_v33  ;;  %v2552_v26 = vmax.f32 %v4894_v59, %v2524_v35  ;;  %v2526_v20 = vpop.f32.mrb[115].mxu1 }
 0x4c6   : > { %v4929_v19 = vpop.eup %3798  ;;  %v2841_v44 = vpack.c.bf16 %v2829_v30, %v2828_v2  ;;  %v2638_v56 = vadd.f32 %v4925_v43, %v4923_v31  ;;  %v2676_v49 = vpack.c.bf16 %v2664_v10, %v2663_v60 }
 0x4c7   : > { %v4933_v13 = vpop.eup %3800  ;;  %v2585_v46 = vmul.f32 1.442695, %v2564_v53  ;;  %v2624_v63 = vmul.f32 1.442695, %v2603_v28  ;;  %v2565_v15 = vsub.f32 %v4894_v59, %v2552_v26  ;;  %v2604_v40 = vsub.f32 %v2524_v35, %v2552_v26 }
 0x4c8   : > { %3814 = vrcp.f32 %v2638_v56  ;;  %v2639_v38 = vadd.f32 %v4933_v13, %v4929_v19  ;;  %3539 = vmatmul.mubr.msk.bf16.vlgmr.msra.gmra.mrb[124].mxu1 %vm2698_vm8, %v2676_v49  ;;  %3547 = vmatmul.mubr.msk.bf16.vlgmr.msra.gmra.mrb[128].mxu0 %vm2698_vm8, %v2841_v44 }
 0x4c9   : > { %v3803_v2 = vpop.eup %3802  ;;  %3816 = vpow2.f32 %v2585_v46  ;;  %v2587_v29 = vmul.f32 1.442695, %v2565_v15  ;;  %v2626_v47 = vmul.f32 1.442695, %v2604_v40  ;;  %2769 = vmatprep.mubr.bf16.mxu1 %v5132_v4  ;;  %2911 = vmatprep.mubr.bf16.mxu0 %v5132_v4 }
 0x4ca   : > { %3818 = vrcp.f32 %v2639_v38  ;;  %v2529_v60 = vpop.f32.mrb[116].mxu1  ;;  %v2665_v59 = vmul.f32 %v3803_v2, %v4906_v25  ;;  %v2830_v33 = vmul.f32 %v3803_v2, %v4909_v9 }
 0x4cb   : > { %v3805_v50 = vpop.eup %3804  ;;  %3820 = vpow2.f32 %v2624_v63  ;;  %v2553_v10 = vmax.f32 %v4896_v57, %v2529_v60  ;;  %v2531_v30 = vpop.f32.mrb[117].mxu1 }
 0x4cc   : > { %v4945_v35 = vpop.eup %3806  ;;  %3822 = vpow2.f32 %v2587_v29  ;;  %v2532_v53 = vpop.f32.mrb[118].mxu1  ;;  %v2666_v28 = vmul.f32 %v3805_v50, %v4911_v58  ;;  %v2831_v26 = vmul.f32 %v3805_v50, %v4916_v1 }
 0x4cd   : > { %v3809_v20 = vpop.eup %3808  ;;  %3824 = vpow2.f32 %v2626_v47  ;;  %v2566_v44 = vsub.f32 %v4896_v57, %v2553_v10  ;;  %v2605_v25 = vsub.f32 %v2529_v60, %v2553_v10  ;;  %v2554_v9 = vmax.f32 %v4898_v5, %v2532_v53  ;;  %v2534_v56 = vpop.f32.mrb[119].mxu1 }
 0x4ce   : > { %v3811_v49 = vpop.eup %3810  ;;  %v2640_v46 = vadd.f32 %v3809_v20, %v4945_v35  ;;  %v2677_v63 = vpack.c.bf16 %v2666_v28, %v2665_v59  ;;  %v2842_v15 = vpack.c.bf16 %v2831_v26, %v2830_v33 }
 0x4cf   : > { %v3813_v40 = vpop.eup %3812  ;;  %v2589_v38 = vmul.f32 1.442695, %v2566_v44  ;;  %v2628_v2 = vmul.f32 1.442695, %v2605_v25  ;;  %v2567_v58 = vsub.f32 %v4898_v5, %v2554_v9  ;;  %v2606_v29 = vsub.f32 %v2532_v53, %v2554_v9 }
 0x4d0   : > { %3826 = vrcp.f32 %v2640_v46  ;;  %v2641_v1 = vadd.f32 %v3813_v40, %v3811_v49  ;;  %3540 = vmatmul.mubr.msk.bf16.gmra.mrb[128].mxu1 %vm2698_vm8, %v2677_v63  ;;  %3548 = vmatmul.mubr.msk.bf16.gmra.mrb[132].mxu0 %vm2698_vm8, %v2842_v15 }
 0x4d1   : > { %3828 = vpow2.f32 %v2589_v38  ;;  %v2591_v57 = vmul.f32 1.442695, %v2567_v58  ;;  %v2630_v47 = vmul.f32 1.442695, %v2606_v29  ;;  %2779 = vmatprep.mubr.bf16.mxu1 %v5132_v4  ;;  %2921 = vmatprep.mubr.bf16.mxu0 %v5132_v4 }
 0x4d2   : > { %v3815_v60 = vpop.eup %3814  ;;  %3830 = vrcp.f32 %v2641_v1  ;;  %v2537_v59 = vpop.f32.mrb[120].mxu1 }
 0x4d3   : > { %v3817_v33 = vpop.eup %3816  ;;  %3832 = vpow2.f32 %v2628_v2  ;;  %v2555_v5 = vmax.f32 %v4900_v23, %v2537_v59  ;;  %v2539_v50 = vpop.f32.mrb[121].mxu1  ;;  %v2667_v10 = vmul.f32 %v3815_v60, %v4923_v31  ;;  %v2832_v30 = vmul.f32 %v3815_v60, %v4925_v43 }
 0x4d4   : > { %v3819_v53 = vpop.eup %3818  ;;  %3834 = vpow2.f32 %v2591_v57  ;;  %v2540_v28 = vpop.f32.mrb[122].mxu1 }
 0x4d5   : > { %v3821_v26 = vpop.eup %3820  ;;  %3836 = vpow2.f32 %v2630_v47  ;;  %v2568_v44 = vsub.f32 %v4900_v23, %v2555_v5  ;;  %v2607_v25 = vsub.f32 %v2537_v59, %v2555_v5  ;;  %v2541_v9 = vpop.f32.mrb[123].mxu1  ;;  %v2668_v56 = vmul.f32 %v3819_v53, %v4929_v19 }
 0x4d6   : > { %v3823_v46 = vpop.eup %3822  ;;  %v2642_v63 = vadd.f32 %v3821_v26, %v3817_v33  ;;  %v2833_v15 = vmul.f32 %v3819_v53, %v4933_v13 }
 0x4d7   : > { %v3825_v38 = vpop.eup %3824  ;;  %v2593_v2 = vmul.f32 1.442695, %v2568_v44  ;;  %v2632_v31 = vmul.f32 1.442695, %v2607_v25  ;;  %v2678_v58 = vpack.c.bf16 %v2668_v56, %v2667_v10 }
 0x4d8   : > { %3838 = vrcp.f32 %v2642_v63  ;;  %v2643_v43 = vadd.f32 %v3825_v38, %v3823_v46  ;;  %v2843_v29 = vpack.c.bf16 %v2833_v15, %v2832_v30 }
 0x4d9   : > { %3840 = vpow2.f32 %v2593_v2  ;;  %3541 = vmatmul.mubr.msk.bf16.gmra.mrb[132].mxu1 %vm2698_vm8, %v2678_v58 }
 0x4da   : > { %v3827_v1 = vpop.eup %3826  ;;  %3842 = vrcp.f32 %v2643_v43  ;;  %3549 = vmatmul.mubr.msk.bf16.gmra.mrb[136].mxu0 %vm2698_vm8, %v2843_v29  ;;  %2789 = vmatprep.mubr.bf16.mxu1 %v5132_v4 }
 0x4db   : > { %v3829_v23 = vpop.eup %3828  ;;  %3844 = vpow2.f32 %v2632_v31  ;;  %2931 = vmatprep.mubr.bf16.mxu0 %v5132_v4  ;;  %v2669_v19 = vmul.f32 %v3827_v1, %v4945_v35  ;;  %v2834_v13 = vmul.f32 %v3827_v1, %v3809_v20 }
 0x4dc   : > { %v3831_v57 = vpop.eup %3830 }
 0x4dd   : > { %v3833_v47 = vpop.eup %3832  ;;  %v2670_v60 = vmul.f32 %v3831_v57, %v3811_v49  ;;  %v2835_v59 = vmul.f32 %v3831_v57, %v3813_v40 }
 0x4de   : > { %v3835_v5 = vpop.eup %3834  ;;  %v2644_v50 = vadd.f32 %v3833_v47, %v3829_v23 }
 0x4df   : > { %v3837_v10 = vpop.eup %3836  ;;  %v2679_v30 = vpack.c.bf16 %v2670_v60, %v2669_v19  ;;  %v2844_v53 = vpack.c.bf16 %v2835_v59, %v2834_v13 }
 0x4e0   : > { %3846 = vrcp.f32 %v2644_v50  ;;  %v2645_v28 = vadd.f32 %v3837_v10, %v3835_v5 }
 0x4e1   : > { %3542 = vmatmul.mubr.msk.bf16.gmra.mrb[136].mxu1 %vm2698_vm8, %v2679_v30 }
 0x4e2   : > { %v3839_v44 = vpop.eup %3838  ;;  %3848 = vrcp.f32 %v2645_v28  ;;  %3550 = vmatmul.mubr.msk.bf16.gmra.mrb[140].mxu0 %vm2698_vm8, %v2844_v53  ;;  %2799 = vmatprep.mubr.bf16.mxu1 %v5132_v4 }
 0x4e3   : > { %v3841_v35 = vpop.eup %3840  ;;  %2941 = vmatprep.mubr.bf16.mxu0 %v5132_v4  ;;  %v2671_v20 = vmul.f32 %v3839_v44, %v3817_v33  ;;  %v2836_v49 = vmul.f32 %v3839_v44, %v3821_v26 }
 0x4e4   : > { %v3843_v40 = vpop.eup %3842 }
 0x4e5   : > { %v3845_v25 = vpop.eup %3844  ;;  %v2672_v9 = vmul.f32 %v3843_v40, %v3823_v46  ;;  %v2837_v56 = vmul.f32 %v3843_v40, %v3825_v38 }
 0x4e6   : > { %v2646_v63 = vadd.f32 %v3845_v25, %v3841_v35 }
 0x4e7   : > { %v2680_v15 = vpack.c.bf16 %v2672_v9, %v2671_v20  ;;  %v2845_v2 = vpack.c.bf16 %v2837_v56, %v2836_v49 }
 0x4e8   : > { %3850 = vrcp.f32 %v2646_v63 }
 0x4e9   : > { %3543 = vmatmul.mubr.msk.bf16.gmra.mrb[140].mxu1 %vm2698_vm8, %v2680_v15 }
 0x4ea   : > { %v3847_v31 = vpop.eup %3846  ;;  %3551 = vmatmul.mubr.msk.bf16.gmra.mrb[144].mxu0 %vm2698_vm8, %v2845_v2  ;;  %2809 = vmatprep.mubr.bf16.mxu1 %v5132_v4 }
 0x4eb   : > { %2951 = vmatprep.mubr.bf16.mxu0 %v5132_v4  ;;  %v2673_v58 = vmul.f32 %v3847_v31, %v3829_v23  ;;  %v2838_v33 = vmul.f32 %v3847_v31, %v3833_v47 }
 0x4ec   : > { %v3849_v26 = vpop.eup %3848 }
 0x4ed   : > { %v2674_v43 = vmul.f32 %v3849_v26, %v3835_v5  ;;  %v2839_v29 = vmul.f32 %v3849_v26, %v3837_v10 }
 0x4ef   : > { %v2681_v46 = vpack.c.bf16 %v2674_v43, %v2673_v58  ;;  %v2846_v38 = vpack.c.bf16 %v2839_v29, %v2838_v33 }
 0x4f1   : > { %3544 = vmatmul.mubr.msk.bf16.gmra.mrb[144].mxu1 %vm2698_vm8, %v2681_v46 }
 0x4f2   : > { %v3851_v1 = vpop.eup %3850  ;;  %3552 = vmatmul.mubr.msk.bf16.gmra.mrb[148].mxu0 %vm2698_vm8, %v2846_v38  ;;  %2819 = vmatprep.mubr.bf16.mxu1 %v5132_v4 }
 0x4f3   : > { %2961 = vmatprep.mubr.bf16.mxu0 %v5132_v4  ;;  %v2675_v19 = vmul.f32 %v3851_v1, %v3841_v35  ;;  %v2840_v13 = vmul.f32 %v3851_v1, %v3845_v25 }
 0x4f5   : > { %v2682_v57 = vpack.c.bf16 %v2675_v19, %v2675_v19  ;;  %v2847_v60 = vpack.c.bf16 %v2840_v13, %v2840_v13 }
 0x4f9   : > { %3545 = vmatmul.mubr.msk.bf16.gmra.mrb[148].mxu1 %vm2698_vm8, %v2682_v57 }
 0x4fa   : > { %3553 = vmatmul.mubr.msk.bf16.gmra.mrb[152].mxu0 %vm2698_vm8, %v2847_v60 }
 0x59b   : > { %v2761_v23 = vpop.f32.mrb[124].mxu1  ;;  %v2903_v47 = vpop.f32.mrb[128].mxu0 }
 0x59c   : > { %v2970_v59 = vmul.f32 %v2761_v23, %v4684_v7  ;;  %v2996_v5 = vmul.f32 %v2903_v47, %v4793_v45  ;;  %v2763_v50 = vpop.f32.mrb[125].mxu1  ;;  %v2905_v10 = vpop.f32.mrb[129].mxu0 }
 0x59d   : > { %v2971_v4 = vmul.f32 %v2763_v50, %v4687_v11  ;;  %v2997_v30 = vmul.f32 %v2905_v10, %v4796_v21  ;;  %v2765_v53 = vpop.f32.mrb[126].mxu1  ;;  %v2907_v28 = vpop.f32.mrb[130].mxu0 }
 0x59e   : > { %v3022_v44 = vadd.f32 %v2996_v5, %v2970_v59  ;;  %v2972_v35 = vmul.f32 %v2765_v53, %v4690_v16  ;;  %v2998_v20 = vmul.f32 %v2907_v28, %v4799_v54  ;;  %v2767_v49 = vpop.f32.mrb[127].mxu1  ;;  %v2909_v40 = vpop.f32.mrb[131].mxu0 }
 0x59f   : > { %v3023_v7 = vadd.f32 %v2997_v30, %v2971_v4  ;;  %v2973_v45 = vmul.f32 %v2767_v49, %v4693_v22  ;;  %v2999_v25 = vmul.f32 %v2909_v40, %v4803_v61 }
 0x5a0   : > { %v3024_v16 = vadd.f32 %v2998_v20, %v2972_v35 }
 0x5a1   : > { %v3569_v21 = vpack.c.bf16 %v3023_v7, %v3022_v44  ;;  %v3025_v54 = vadd.f32 %v2999_v25, %v2973_v45 }
 0x5a3   : > { %3130 = vst.msk [vmem:[%s4994_s18] sm:$0xff] %vm4997_vm10, %v3569_v21  ;;  %v3570_v22 = vpack.c.bf16 %v3025_v54, %v3024_v16  ;;  %v2771_v61 = vpop.f32.mrb[128].mxu1  ;;  %v2913_v9 = vpop.f32.mrb[132].mxu0 }
 0x5a4   : > { %v2974_v56 = vmul.f32 %v2771_v61, %v4696_v34  ;;  %v3000_v63 = vmul.f32 %v2913_v9, %v4806_v0  ;;  %v2773_v15 = vpop.f32.mrb[129].mxu1  ;;  %v2915_v2 = vpop.f32.mrb[133].mxu0  ;;  %v5142_v61 = vld [vmem:[#allocation12_spill] sm:$0xff] }
 0x5a5   : > { %3131 = vst.msk [vmem:[%s4994_s18 + $0x8] sm:$0xff] %vm4997_vm10, %v3570_v22  ;;  %v2975_v31 = vmul.f32 %v2773_v15, %v4700_v41  ;;  %v3001_v58 = vmul.f32 %v2915_v2, %v4810_v14  ;;  %v2775_v33 = vpop.f32.mrb[130].mxu1  ;;  %v2917_v26 = vpop.f32.mrb[134].mxu0 }
 0x5a6   : > { %v3026_v43 = vadd.f32 %v3000_v63, %v2974_v56  ;;  %v2976_v29 = vmul.f32 %v2775_v33, %v4703_v48  ;;  %v3002_v34 = vmul.f32 %v2917_v26, %v4813_v27  ;;  %v2777_v46 = vpop.f32.mrb[131].mxu1  ;;  %v2919_v0 = vpop.f32.mrb[135].mxu0  ;;  %v5143_v56 = vld [vmem:[#allocation23_spill] sm:$0xff] }
 0x5a7   : > { %v3027_v38 = vadd.f32 %v3001_v58, %v2975_v31  ;;  %v2977_v1 = vmul.f32 %v2777_v46, %v4707_v6  ;;  %v3003_v19 = vmul.f32 %v2919_v0, %v4816_v62 }
 0x5a8   : > { %v3028_v13 = vadd.f32 %v3002_v34, %v2976_v29  ;;  %v5146_v34 = vld [vmem:[#allocation14_spill] sm:$0xff] }
 0x5a9   : > { %v3571_v57 = vpack.c.bf16 %v3027_v38, %v3026_v43  ;;  %v3029_v41 = vadd.f32 %v3003_v19, %v2977_v1  ;;  %v5147_v1 = vld [vmem:[#allocation25_spill] sm:$0xff] }
 0x5ab   : > { %3132 = vst.msk [vmem:[%s4994_s18 + $0x10] sm:$0xff] %vm4997_vm10, %v3571_v57  ;;  %v3572_v14 = vpack.c.bf16 %v3029_v41, %v3028_v13  ;;  %v5148_v13 = vld [vmem:[#allocation15_spill] sm:$0xff] }
 0x5ac   : > { %v2781_v60 = vpop.f32.mrb[132].mxu1 }
 0x5ad   : > { %3133 = vst.msk [vmem:[%s4994_s18 + $0x18] sm:$0xff] %vm4997_vm10, %v3572_v14  ;;  %v2978_v48 = vmul.f32 %v2781_v60, %v4713_v18  ;;  %v2923_v27 = vpop.f32.mrb[136].mxu0  ;;  %v2783_v23 = vpop.f32.mrb[133].mxu1 }
 0x5ae   : > { %v3004_v47 = vmul.f32 %v2923_v27, %v4819_v55  ;;  %v2979_v6 = vmul.f32 %v2783_v23, %v4717_v24  ;;  %v2925_v62 = vpop.f32.mrb[137].mxu0  ;;  %v2785_v59 = vpop.f32.mrb[134].mxu1  ;;  %v5150_v23 = vld [vmem:[#allocation16_spill] sm:$0xff] }
 0x5af   : > { %v3005_v5 = vmul.f32 %v2925_v62, %v4823_v37  ;;  %v2980_v50 = vmul.f32 %v2785_v59, %v4720_v32  ;;  %v2927_v10 = vpop.f32.mrb[138].mxu0  ;;  %v2787_v4 = vpop.f32.mrb[135].mxu1  ;;  %v5151_v59 = vld [vmem:[#allocation27_spill] sm:$0xff] }
 0x5b0   : > { %v3030_v30 = vadd.f32 %v3004_v47, %v2978_v48  ;;  %v3006_v53 = vmul.f32 %v2927_v10, %v4826_v3  ;;  %v2981_v18 = vmul.f32 %v2787_v4, %v4724_v39  ;;  %v2929_v28 = vpop.f32.mrb[139].mxu0  ;;  %v5149_v48 = vld [vmem:[#allocation26_spill] sm:$0xff] }
 0x5b1   : > { %v3031_v44 = vadd.f32 %v3005_v5, %v2979_v6  ;;  %v3007_v55 = vmul.f32 %v2929_v28, %v4829_v42 }
 0x5b2   : > { %v3032_v24 = vadd.f32 %v3006_v53, %v2980_v50 }
 0x5b3   : > { %v3573_v35 = vpack.c.bf16 %v3031_v44, %v3030_v30  ;;  %v3033_v20 = vadd.f32 %v3007_v55, %v2981_v18  ;;  %v5152_v18 = vld [vmem:[#allocation17_spill] sm:$0xff] }
 0x5b4   : > { %v2791_v49 = vpop.f32.mrb[136].mxu1 }
 0x5b5   : > { %3134 = vst.msk [vmem:[%s4994_s18 + $0x20] sm:$0xff] %vm4997_vm10, %v3573_v35  ;;  %v3574_v32 = vpack.c.bf16 %v3033_v20, %v3032_v24  ;;  %v2982_v37 = vmul.f32 %v2791_v49, %v4730_v8  ;;  %v2933_v40 = vpop.f32.mrb[140].mxu0  ;;  %v2793_v7 = vpop.f32.mrb[137].mxu1  ;;  %v5153_v24 = vld [vmem:[#allocation28_spill] sm:$0xff]  ;;  %v5154_v20 = vld [vmem:[#allocation18_spill] sm:$0xff] }
 0x5b6   : > { %v3008_v3 = vmul.f32 %v2933_v40, %v4832_v17  ;;  %v2983_v39 = vmul.f32 %v2793_v7, %v4734_v12  ;;  %v2935_v45 = vpop.f32.mrb[141].mxu0  ;;  %v2795_v25 = vpop.f32.mrb[138].mxu1  ;;  %v5155_v40 = vld [vmem:[#allocation29_spill] sm:$0xff] }
 0x5b7   : > { %3135 = vst.msk [vmem:[%s4994_s18 + $0x28] sm:$0xff] %vm4997_vm10, %v3574_v32  ;;  %v3009_v42 = vmul.f32 %v2935_v45, %v4836_v36  ;;  %v2984_v16 = vmul.f32 %v2795_v25, %v4737_v51  ;;  %v2937_v21 = vpop.f32.mrb[142].mxu0  ;;  %v2797_v54 = vpop.f32.mrb[139].mxu1  ;;  %v5144_v36 = vld [vmem:[#allocation13_spill] sm:$0xff] }
 0x5b8   : > { %v3034_v22 = vadd.f32 %v3008_v3, %v2982_v37  ;;  %v3010_v8 = vmul.f32 %v2937_v21, %v4839_v52  ;;  %v2985_v9 = vmul.f32 %v2797_v54, %v5142_v61  ;;  %v2939_v17 = vpop.f32.mrb[143].mxu0  ;;  %v5145_v52 = vld [vmem:[#allocation24_spill] sm:$0xff]  ;;  %v5156_v3 = vld [vmem:[#allocation19_spill] sm:$0xff] }
 0x5b9   : > { %v3035_v12 = vadd.f32 %v3009_v42, %v2983_v39  ;;  %v3011_v63 = vmul.f32 %v2939_v17, %v5143_v56  ;;  %v5158_v54 = vld [vmem:[#allocation20_spill] sm:$0xff] }
 0x5ba   : > { %v3036_v15 = vadd.f32 %v3010_v8, %v2984_v16  ;;  %v5157_v16 = vld [vmem:[#allocation30_spill] sm:$0xff] }
 0x5bb   : > { %v3575_v2 = vpack.c.bf16 %v3035_v12, %v3034_v22  ;;  %v3037_v31 = vadd.f32 %v3011_v63, %v2985_v9  ;;  %v5159_v9 = vld [vmem:[#allocation31_spill] sm:$0xff] }
 0x5bc   : > { %v2801_v58 = vpop.f32.mrb[140].mxu1 }
 0x5bd   : > { %3136 = vst.msk [vmem:[%s4994_s18 + $0x30] sm:$0xff] %vm4997_vm10, %v3575_v2  ;;  %v3576_v51 = vpack.c.bf16 %v3037_v31, %v3036_v15  ;;  %v2986_v33 = vmul.f32 %v2801_v58, %v5144_v36  ;;  %v2943_v26 = vpop.f32.mrb[144].mxu0  ;;  %v2803_v43 = vpop.f32.mrb[141].mxu1  ;;  %v5160_v31 = vld [vmem:[#allocation21_spill] sm:$0xff] }
 0x5be   : > { %v3012_v29 = vmul.f32 %v2943_v26, %v5145_v52  ;;  %v2987_v46 = vmul.f32 %v2803_v43, %v5146_v34  ;;  %v2945_v0 = vpop.f32.mrb[145].mxu0  ;;  %v2805_v38 = vpop.f32.mrb[142].mxu1  ;;  %v5163_v26 = vld [vmem:[#allocation32_spill] sm:$0xff]  ;;  %v5164_v52 = vld [vmem:[#allocation22_spill] sm:$0xff] }
 0x5bf   : > { %3137 = vst.msk [vmem:[%s4994_s18 + $0x38] sm:$0xff] %vm4997_vm10, %v3576_v51  ;;  %v3013_v19 = vmul.f32 %v2945_v0, %v5147_v1  ;;  %v2988_v57 = vmul.f32 %v2805_v38, %v5148_v13  ;;  %v2947_v41 = vpop.f32.mrb[146].mxu0  ;;  %v2807_v14 = vpop.f32.mrb[143].mxu1  ;;  %v5165_v0 = vld [vmem:[#allocation33_spill] sm:$0xff] }
 0x5c0   : > { %v3038_v60 = vadd.f32 %v3012_v29, %v2986_v33  ;;  %v3014_v27 = vmul.f32 %v2947_v41, %v5149_v48  ;;  %v2989_v47 = vmul.f32 %v2807_v14, %v5150_v23  ;;  %v2949_v6 = vpop.f32.mrb[147].mxu0  ;;  %v3149_v14 = vld [vmem:[%s4994_s18 + $0x60] sm:$0x33] }
 0x5c1   : > { %v3039_v62 = vadd.f32 %v3013_v19, %v2987_v46  ;;  %v3015_v5 = vmul.f32 %v2949_v6, %v5151_v59 }
 0x5c2   : > { %v3040_v50 = vadd.f32 %v3014_v27, %v2988_v57 }
 0x5c3   : > { %v3577_v10 = vpack.c.bf16 %v3039_v62, %v3038_v60  ;;  %v3041_v4 = vadd.f32 %v3015_v5, %v2989_v47 }
 0x5c4   : > { %v2811_v30 = vpop.f32.mrb[144].mxu1 }
 0x5c5   : > { %3138 = vst.msk [vmem:[%s4994_s18 + $0x40] sm:$0xff] %vm4997_vm10, %v3577_v10  ;;  %v3578_v53 = vpack.c.bf16 %v3041_v4, %v3040_v50  ;;  %v2990_v28 = vmul.f32 %v2811_v30, %v5152_v18  ;;  %v2953_v44 = vpop.f32.mrb[148].mxu0  ;;  %v2813_v55 = vpop.f32.mrb[145].mxu1 }
 0x5c6   : > { %v3016_v35 = vmul.f32 %v2953_v44, %v5153_v24  ;;  %v2991_v49 = vmul.f32 %v2813_v55, %v5154_v20  ;;  %v2955_v32 = vpop.f32.mrb[149].mxu0  ;;  %v2815_v37 = vpop.f32.mrb[146].mxu1 }
 0x5c7   : > { %3139 = vst.msk [vmem:[%s4994_s18 + $0x48] sm:$0xff] %vm4997_vm10, %v3578_v53  ;;  %v3017_v7 = vmul.f32 %v2955_v32, %v5155_v40  ;;  %v2992_v39 = vmul.f32 %v2815_v37, %v5156_v3  ;;  %v2957_v45 = vpop.f32.mrb[150].mxu0  ;;  %v2817_v25 = vpop.f32.mrb[147].mxu1 }
 0x5c8   : > { %v3042_v42 = vadd.f32 %v3016_v35, %v2990_v28  ;;  %v3018_v21 = vmul.f32 %v2957_v45, %v5157_v16  ;;  %v2993_v22 = vmul.f32 %v2817_v25, %v5158_v54  ;;  %v2959_v8 = vpop.f32.mrb[151].mxu0 }
 0x5c9   : > { %v3043_v61 = vadd.f32 %v3017_v7, %v2991_v49  ;;  %v3019_v17 = vmul.f32 %v2959_v8, %v5159_v9 }
 0x5ca   : > { %v3044_v12 = vadd.f32 %v3018_v21, %v2992_v39 }
 0x5cb   : > { %v3579_v56 = vpack.c.bf16 %v3043_v61, %v3042_v42  ;;  %v3045_v63 = vadd.f32 %v3019_v17, %v2993_v22 }
 0x5cc   : > { %v2821_v15 = vpop.f32.mrb[148].mxu1 }
 0x5cd   : > { %3140 = vst.msk [vmem:[%s4994_s18 + $0x50] sm:$0xff] %vm4997_vm10, %v3579_v56  ;;  %v3580_v2 = vpack.c.bf16 %v3045_v63, %v3044_v12  ;;  %v2994_v58 = vmul.f32 %v2821_v15, %v5160_v31  ;;  %v2963_v51 = vpop.f32.mrb[152].mxu0  ;;  %v2823_v36 = vpop.f32.mrb[149].mxu1 }
 0x5ce   : > { %v3020_v43 = vmul.f32 %v2963_v51, %v5163_v26  ;;  %v2995_v29 = vmul.f32 %v2823_v36, %v5164_v52  ;;  %v2965_v34 = vpop.f32.mrb[153].mxu0  ;;  %v2825_v46 = vpop.f32.mrb[150].mxu1 }
 0x5cf   : > { %3141 = vst.msk [vmem:[%s4994_s18 + $0x58] sm:$0xff] %vm4997_vm10, %v3580_v2  ;;  %v3021_v38 = vmul.f32 %v2965_v34, %v5165_v0  ;;  %v2967_v1 = vpop.f32.mrb[154].mxu0  ;;  %v2826_v19 = vpop.f32.mrb[151].mxu1 }
 0x5d0   : > { %v3046_v13 = vadd.f32 %v3020_v43, %v2994_v58  ;;  %v2968_v57 = vpop.f32.mrb[155].mxu0 }
 0x5d1   : > { %v3047_v41 = vadd.f32 %v3021_v38, %v2995_v29 }
 0x5d3   : > { %v3581_v60 = vpack.c.bf16 %v3047_v41, %v3046_v13 }
 0x5d5   : > { %v3150_v48 = vsel %vm3148_vm0, %v3581_v60, %v3149_v14 }
 0x5d6   : > { %3151 = vst [vmem:[%s4994_s18 + $0x60] sm:$0x33] %v3150_v48 }
 0x5d7 PF: > { %s23_s30 = sadd.s32 1, %s3982_s30  }
 0x5d8   : > { %p20_p1 = scmp.ge.s32.totalorder %s23_s30, 4  }
 0x5da   :  { %22 = sbr.rel (!%p20_p1) target bundleno = 3 (0x3), region = 119 }
 0x5e1   :  { %3218 = vsyncpa [#allocation3], 1 }
 0x5e2   :  { %3220 = vsyncpa [#allocation3 + $0x1], 1 }
 0x5e3   :  { %3221 = vsyncpa [#allocation5], 1 }
 0x5e4   :  { %3222 = vsyncpa [#allocation8], 1 }

// kernel: forward.5
= control target key start
LH: loop header
LB: loop body
LE: loop exit
PB: predicated region body
PF: predicated region fallthrough
CT: control target
= control target key end

     0   :  { %s6092_s21 = smov 0   ;;  %s8580_s0 = inlined_call_operand.vmem [shape: bf16[2,99,200], index: 0, kind: input, shape index: {}]   ;;  %s8581_s1 = inlined_call_operand.vmem [shape: f32[2,99,200], index: 1, kind: input, shape index: {}]   ;;  %s8582_s2 = inlined_call_operand.vmem [shape: bf16[200,200], index: 2, kind: input, shape index: {}]   ;;  %s8583_s3 = inlined_call_operand.vmem [shape: bf16[200,400], index: 3, kind: input, shape index: {}]   ;;  %s8584_s4 = inlined_call_operand.vmem [shape: bf16[400,200], index: 4, kind: input, shape index: {}]   ;;  %s8585_s5 = inlined_call_operand.vmem [shape: f32[8,400], index: 5, kind: input, shape index: {}]   ;;  %s8586_s6 = inlined_call_operand.vmem [shape: bf16[200,384], index: 6, kind: input, shape index: {}]   ;;  %s8587_s7 = inlined_call_operand.vmem [shape: bf16[128,1024], index: 7, kind: input, shape index: {}]   ;;  %s8588_s8 = inlined_call_operand.vmem [shape: bf16[200,20], index: 8, kind: input, shape index: {}]   ;;  %s8589_s9 = inlined_call_operand.vmem [shape: bf16[20,200], index: 9, kind: input, shape index: {}]   ;;  %s8590_s10 = inlined_call_operand.vmem [shape: f32[2,99,200], index: 10, kind: output, shape index: {0}]   ;;  %s8591_s11 = inlined_call_operand.vmem [shape: bf16[2,99,200], index: 11, kind: output, shape index: {1}]   ;;  %s8592_s12 = inlined_call_operand.vmem [shape: f32[2,99,128], index: 12, kind: output, shape index: {2}]  }
   0x1 LB: > { %s5144_s22 = sadd.s32 4294967295, %s6024_s21   ;;  %p5148_p0 = scmp.ge.s32.totalorder %s6024_s21, 1  ;;  %s6024_s21 = sphi %s6092_s21, %s23_s21  }
   0x2   : > { %p377_p1 = scmp.lt.s32.totalorder %s6024_s21, 3 }
   0x4   : > { %p378_p2 = pnand %p5148_p0, %p377_p1 }
   0x6   : > { %381 = sbr.rel (%p378_p2) target bundleno = 2490 (0x9ba), region = 60 }
   0xd   : > { %v5610_v0 = vld [vmem:[%s8582_s2 + $0x4] ss:$8 sps:$4 sm:$0xff]   ;;  %v5612_v1 = vld [vmem:[%s8582_s2] ss:$8 sps:$4 sm:$0xff]   ;;  %v5613_v2 = vld [vmem:[%s8582_s2 + $0x14] ss:$8 sps:$4 sm:$0xff]  }
   0xe   : > { %749 = vmatprep.subr.bf16.mxu0 %v5610_v0  ;;  %p434_p3 = scmp.lt.s32.totalorder %s5144_s22, 1  ;;  %v5615_v3 = vld [vmem:[%s8582_s2 + $0x10] ss:$8 sps:$4 sm:$0xff]   ;;  %v5616_v4 = vld [vmem:[%s8582_s2 + $0x24] ss:$8 sps:$4 sm:$0xff]   ;;  %vm720_vm0 = vcmask 588800  }
   0xf   : > { %750 = vmatpush1.bf16.msra.mxu0 %v5612_v1  ;;  %v5618_v5 = vld [vmem:[%s8582_s2 + $0x20] ss:$8 sps:$4 sm:$0xff]   ;;  %v5619_v6 = vld [vmem:[%s8582_s2 + $0x34] ss:$8 sps:$4 sm:$0xff]   ;;  %v5621_v7 = vld [vmem:[%s8582_s2 + $0x30] ss:$8 sps:$4 sm:$0xff]  }
  0x10   : > { %751 = vmatprep.subr.bf16.mxu0 %v5613_v2  ;;  %s8660_s22 = smov (!%p434_p3, %s5144_s22), 1  ;;  %v5622_v8 = vld [vmem:[%s8582_s2 + $0x44] ss:$8 sps:$4 sm:$0xff]   ;;  %v5624_v9 = vld [vmem:[%s8582_s2 + $0x40] ss:$8 sps:$4 sm:$0xff]   ;;  %vm742_vm1 = vcmask 1043456  }
  0x11   : > { %s6124_s19 = smul.u32 104, %s8660_s22  ;;  %v5625_v10 = vld [vmem:[%s8582_s2 + $0x54] ss:$8 sps:$4 sm:$0xff]   ;;  %v5627_v12 = vld [vmem:[%s8582_s2 + $0x50] ss:$8 sps:$4 sm:$0xff]   ;;  %v534_v24 = vld [vmem:[%s8582_s2 + $0xc0] sm:$0xff] }
  0x12   : > { %v5628_v13 = vld [vmem:[%s8582_s2 + $0x64] ss:$8 sps:$4 sm:$0xff]   ;;  %v5630_v14 = vld [vmem:[%s8582_s2 + $0x60] ss:$8 sps:$4 sm:$0xff]   ;;  %v5631_v15 = vld [vmem:[%s8582_s2 + $0x74] ss:$8 sps:$4 sm:$0xff]   ;;  %v5198_v26 = vcombine.high %v534_v24, %v534_v24  ;;  %v5197_v27 = vcombine.low %v534_v24, %v534_v24 }
  0x13   : > { %752 = vmatpush1.bf16.msra.mxu0 %v5615_v3  ;;  %s6136_s28 = scalar_lea.vmem %s8580_s0, %s6124_s19  ;;  %v5633_v16 = vld [vmem:[%s8582_s2 + $0x70] ss:$8 sps:$4 sm:$0xff]   ;;  %v5634_v17 = vld [vmem:[%s8582_s2 + $0x84] ss:$8 sps:$4 sm:$0xff]   ;;  %v5636_v18 = vld [vmem:[%s8582_s2 + $0x80] ss:$8 sps:$4 sm:$0xff]   ;;  %s7876_s23 = scalar_lea.vmem %s8592_s12, %s6124_s19 }
  0x14   : > { %753 = vmatprep.subr.bf16.mxu0 %v5616_v4  ;;  %v5650_v11 = vld [vmem:[%s6136_s28 + $0x4] ss:$8 sps:$4 sm:$0xff]   ;;  %v5637_v19 = vld [vmem:[%s8582_s2 + $0x94] ss:$8 sps:$4 sm:$0xff]   ;;  %v5639_v20 = vld [vmem:[%s8582_s2 + $0x90] ss:$8 sps:$4 sm:$0xff]  }
  0x15   : > { %5200 = vmatprep.mubr.msk.bf16.mxu0 %vm720_vm0, %v5650_v11  ;;  %v5640_v21 = vld [vmem:[%s8582_s2 + $0xa4] ss:$8 sps:$4 sm:$0xff]   ;;  %v5642_v22 = vld [vmem:[%s8582_s2 + $0xa0] ss:$8 sps:$4 sm:$0xff]   ;;  %v5643_v23 = vld [vmem:[%s8582_s2 + $0xb4] ss:$8 sps:$4 sm:$0xff]  }
  0x16   : > { %v5645_v25 = vld [vmem:[%s8582_s2 + $0xb0] ss:$8 sps:$4 sm:$0xff]   ;;  %v744_v28 = vsel %vm742_vm1, %v5197_v27, 0  ;;  %v5648_v29 = vld [vmem:[%s6136_s28] ss:$8 sps:$4 sm:$0xff]   ;;  %s5600_s15 = smul.u32 208, %s8660_s22 }
  0x17   : > { %754 = vmatpush1.bf16.msra.mxu0 %v5618_v5  ;;  %v5651_v30 = vld [vmem:[%s6136_s28 + $0x14] ss:$8 sps:$4 sm:$0xff]   ;;  %v5653_v31 = vld [vmem:[%s6136_s28 + $0x10] ss:$8 sps:$4 sm:$0xff]   ;;  %v5654_v32 = vld [vmem:[%s6136_s28 + $0x24] ss:$8 sps:$4 sm:$0xff]  }
  0x18   : > { %755 = vmatprep.subr.bf16.mxu0 %v5619_v6  ;;  %v5656_v33 = vld [vmem:[%s6136_s28 + $0x20] ss:$8 sps:$4 sm:$0xff]   ;;  %v5657_v34 = vld [vmem:[%s6136_s28 + $0x34] ss:$8 sps:$4 sm:$0xff]   ;;  %v5659_v35 = vld [vmem:[%s6136_s28 + $0x30] ss:$8 sps:$4 sm:$0xff]   ;;  %s6214_s18 = scalar_lea.vmem %s8581_s1, %s5600_s15  ;;  %s7492_s17 = scalar_lea.vmem %s8590_s10, %s5600_s15 }
  0x19   : > { %v5660_v36 = vld [vmem:[%s6136_s28 + $0x44] ss:$8 sps:$4 sm:$0xff]   ;;  %v5662_v37 = vld [vmem:[%s6136_s28 + $0x40] ss:$8 sps:$4 sm:$0xff]   ;;  %v5663_v38 = vld [vmem:[%s6136_s28 + $0x54] ss:$8 sps:$4 sm:$0xff]  }
  0x1a   : > { %v472_v39 = vld [vmem:[%s6136_s28 + $0x60] sm:$0x33]  ;;  %v5665_v40 = vld [vmem:[%s6136_s28 + $0x50] ss:$8 sps:$4 sm:$0xff]   ;;  %v474_v44 = vld [vmem:[%s6214_s18 + $0x8] sm:$0xff]  ;;  %vm898_vm2 = vcmask 1042432  }
  0x1b   : > { %756 = vmatpush1.bf16.msra.mxu0 %v5621_v7  ;;  %v5172_v41 = vcombine.high %v472_v39, %v472_v39  ;;  %v5171_v42 = vcombine.low %v472_v39, %v472_v39  ;;  %v473_v43 = vld [vmem:[%s6214_s18] sm:$0xff]  ;;  %v475_v46 = vld [vmem:[%s6214_s18 + $0x10] sm:$0xff]  ;;  %v476_v49 = vld [vmem:[%s6214_s18 + $0x18] sm:$0xff]  ;;  %vm900_vm3 = vcmask 583680   ;;  %vm2124_vm4 = vcmask 130048  }
  0x1c   : > { %757 = vmatprep.subr.bf16.mxu0 %v5622_v8  ;;  %v477_v57 = vld [vmem:[%s6214_s18 + $0x20] sm:$0xff]  ;;  %v478_v59 = vld [vmem:[%s6214_s18 + $0x28] sm:$0xff]  ;;  %v479_v61 = vld [vmem:[%s6214_s18 + $0x30] sm:$0xff]  ;;  %vm4566_vm5 = vcmask 1041408   ;;  %vm4544_vm6 = vcmask 162816   ;;  %vm4974_vm7 = vcmask 588804  }
  0x1d   : > { %v480_v0 = vld [vmem:[%s6214_s18 + $0x38] sm:$0xff]  ;;  %v482_v11 = vld [vmem:[%s6214_s18 + $0x48] sm:$0xff]  ;;  %vm8484_vm8 = vmor %vm4974_vm7, %vm742_vm1  ;;  %vm4989_vm9 = vsmask.f32 1280  ;;  %vm4991_vm10 = vcmask 586756  }
  0x1e   : > { %v486_v27 = vld [vmem:[%s6214_s18 + $0x68] sm:$0xff]  ;;  %vm4992_vm11 = vsmask.f32 5376  ;;  %vm8563_vm12 = vmand %vm4566_vm5, %vm4989_vm9 }
  0x1f   : > { %758 = vmatpush1.bf16.msra.mxu0 %v5624_v9  ;;  %v481_v9 = vld [vmem:[%s6214_s18 + $0x40] sm:$0xff]  ;;  %vm4993_vm13 = vmand %vm4991_vm10, %vm4992_vm11 }
  0x20   : > { %759 = vmatprep.subr.bf16.mxu0 %v5625_v10  ;;  %vm4994_vm14 = vmor %vm4993_vm13, %vm8563_vm12 }
  0x23   : > { %760 = vmatpush1.bf16.msra.mxu0 %v5627_v12 }
  0x24   : > { %761 = vmatprep.subr.bf16.mxu0 %v5628_v13  ;;  %v483_v13 = vld [vmem:[%s6214_s18 + $0x50] sm:$0xff] }
  0x27   : > { %762 = vmatpush1.bf16.msra.mxu0 %v5630_v14 }
  0x28   : > { %763 = vmatprep.subr.bf16.mxu0 %v5631_v15 }
  0x2b   : > { %764 = vmatpush1.bf16.msra.mxu0 %v5633_v16  ;;  %v484_v16 = vld [vmem:[%s6214_s18 + $0x58] sm:$0xff] }
  0x2c   : > { %765 = vmatprep.subr.bf16.mxu0 %v5634_v17 }
  0x2f   : > { %766 = vmatpush1.bf16.msra.mxu0 %v5636_v18 }
  0x30   : > { %767 = vmatprep.subr.bf16.mxu0 %v5637_v19 }
  0x33   : > { %768 = vmatpush1.bf16.msra.mxu0 %v5639_v20 }
  0x34   : > { %769 = vmatprep.subr.bf16.mxu0 %v5640_v21 }
  0x37   : > { %770 = vmatpush1.bf16.msra.mxu0 %v5642_v22 }
  0x38   : > { %771 = vmatprep.subr.bf16.mxu0 %v5643_v23 }
  0x3b   : > { %772 = vmatpush1.bf16.msra.mxu0 %v5645_v25  ;;  %v485_v25 = vld [vmem:[%s6214_s18 + $0x60] sm:$0xff] }
  0x3c   : > { %5199 = vmatprep.subr.msk.bf16.mxu0 %vm742_vm1, %v5198_v26 }
  0x3f   : > { %774 = vmatpush1.bf16.msra.mxu0 %v744_v28 }
  0x42   : > { %782 = vmatmul.mubr.bf16.vlgmr.msra.gmra.mrb[0].mxu0 %v5648_v29 }
  0x43   : > { %5201 = vmatprep.mubr.msk.bf16.mxu0 %vm720_vm0, %v5651_v30  ;;  %v487_v30 = vld [vmem:[%s6214_s18 + $0x70] sm:$0xff] }
  0x4a   : > { %792 = vmatmul.mubr.bf16.gmra.mrb[4].mxu0 %v5653_v31 }
  0x4b   : > { %5202 = vmatprep.mubr.msk.bf16.mxu0 %vm720_vm0, %v5654_v32 }
  0x52   : > { %802 = vmatmul.mubr.bf16.gmra.mrb[8].mxu0 %v5656_v33  ;;  %v488_v33 = vld [vmem:[%s6214_s18 + $0x78] sm:$0xff] }
  0x53   : > { %5203 = vmatprep.mubr.msk.bf16.mxu0 %vm720_vm0, %v5657_v34 }
  0x5a   : > { %812 = vmatmul.mubr.bf16.gmra.mrb[12].mxu0 %v5659_v35 }
  0x5b   : > { %5204 = vmatprep.mubr.msk.bf16.mxu0 %vm720_vm0, %v5660_v36 }
  0x62   : > { %822 = vmatmul.mubr.bf16.gmra.mrb[16].mxu0 %v5662_v37 }
  0x63   : > { %5205 = vmatprep.mubr.msk.bf16.mxu0 %vm720_vm0, %v5663_v38 }
  0x6a   : > { %832 = vmatmul.mubr.bf16.gmra.mrb[20].mxu0 %v5665_v40 }
  0x6b   : > { %5206 = vmatprep.mubr.msk.bf16.mxu0 %vm720_vm0, %v5172_v41  ;;  %v489_v41 = vld [vmem:[%s6214_s18 + $0x80] sm:$0xff] }
  0x72   : > { %842 = vmatmul.mubr.bf16.gmra.mrb[24].mxu0 %v5171_v42 }
 0x115   : > { %v783_v45 = vpop.f32.mrb[0].mxu0 }
 0x116   : > { %v6219_v47 = vadd.f32 %v783_v45, %v473_v43  ;;  %v785_v48 = vpop.f32.mrb[1].mxu0  ;;  %v490_v43 = vld [vmem:[%s6214_s18 + $0x88] sm:$0xff] }
 0x117   : > { %v6222_v50 = vadd.f32 %v785_v48, %v474_v44  ;;  %v787_v51 = vpop.f32.mrb[2].mxu0 }
 0x118   : > { %v6224_v52 = vadd.f32 %v787_v51, %v475_v46  ;;  %v789_v53 = vpop.f32.mrb[3].mxu0  ;;  %v491_v46 = vld [vmem:[%s6214_s18 + $0x90] sm:$0xff]  ;;  %v492_v51 = vld [vmem:[%s6214_s18 + $0x98] sm:$0xff] }
 0x119   : > { %v6226_v54 = vadd.f32 %v789_v53, %v476_v49  ;;  %v850_v55 = vsel %vm720_vm0, %v6222_v50, 0.0 }
 0x11a   : > { %v851_v56 = vadd.f32 %v850_v55, %v6219_v47 }
 0x11b   : > { %v854_v58 = vsel %vm720_vm0, %v6226_v54, 0.0 }
 0x11c   : > { %852 = vadd.xlane.f32.xlu0 %v851_v56  ;;  %v855_v1 = vadd.f32 %v854_v58, %v6224_v52 }
 0x11d   : > { %v793_v60 = vpop.f32.mrb[4].mxu0 }
 0x11e   : > { %v6236_v62 = vadd.f32 %v793_v60, %v477_v57  ;;  %v795_v63 = vpop.f32.mrb[5].mxu0 }
 0x11f   : > { %v6240_v2 = vadd.f32 %v795_v63, %v478_v59  ;;  %v797_v3 = vpop.f32.mrb[6].mxu0 }
 0x120   : > { %v6242_v4 = vadd.f32 %v797_v3, %v479_v61  ;;  %v799_v5 = vpop.f32.mrb[7].mxu0  ;;  %856 = vadd.xlane.f32.xlu0 %v855_v1  ;;  %v493_v61 = vld [vmem:[%s6214_s18 + $0xa0] sm:$0xff] }
 0x121   : > { %v6244_v6 = vadd.f32 %v799_v5, %v480_v0  ;;  %v858_v7 = vsel %vm720_vm0, %v6240_v2, 0.0  ;;  %v494_v0 = vld [vmem:[%s6214_s18 + $0xa8] sm:$0xff]  ;;  %v495_v5 = vld [vmem:[%s6214_s18 + $0xb0] sm:$0xff] }
 0x122   : > { %v859_v8 = vadd.f32 %v858_v7, %v6236_v62 }
 0x123   : > { %v862_v10 = vsel %vm720_vm0, %v6244_v6, 0.0 }
 0x124   : > { %860 = vadd.xlane.f32.xlu1 %v859_v8  ;;  %v863_v17 = vadd.f32 %v862_v10, %v6242_v4 }
 0x125   : > { %v803_v12 = vpop.f32.mrb[8].mxu0 }
 0x126   : > { %v6254_v14 = vadd.f32 %v803_v12, %v481_v9  ;;  %v805_v15 = vpop.f32.mrb[9].mxu0  ;;  %v496_v9 = vld [vmem:[%s6214_s18 + $0xb8] sm:$0xff] }
 0x127   : > { %v6258_v18 = vadd.f32 %v805_v15, %v482_v11  ;;  %v807_v19 = vpop.f32.mrb[10].mxu0 }
 0x128   : > { %v6260_v20 = vadd.f32 %v807_v19, %v483_v13  ;;  %v809_v21 = vpop.f32.mrb[11].mxu0  ;;  %864 = vadd.xlane.f32.xlu1 %v863_v17  ;;  %v497_v19 = vld [vmem:[%s6214_s18 + $0xc0] sm:$0x7] }
 0x129   : > { %v6262_v22 = vadd.f32 %v809_v21, %v484_v16  ;;  %v866_v23 = vsel %vm720_vm0, %v6258_v18, 0.0 }
 0x12a   : > { %v867_v24 = vadd.f32 %v866_v23, %v6254_v14  ;;  %v498_v23 = vld [vmem:[%s6214_s18 + $0xc8] sm:$0x7] }
 0x12b   : > { %v870_v26 = vsel %vm720_vm0, %v6262_v22, 0.0 }
 0x12c   : > { %868 = vadd.xlane.f32.xlu0 %v867_v24  ;;  %v871_v28 = vadd.f32 %v870_v26, %v6260_v20 }
 0x12d   : > { %v813_v29 = vpop.f32.mrb[12].mxu0 }
 0x12e   : > { %v6273_v31 = vadd.f32 %v813_v29, %v485_v25  ;;  %v815_v32 = vpop.f32.mrb[13].mxu0  ;;  %872 = vadd.xlane.f32.xlu1 %v871_v28 }
 0x12f   : > { %v6276_v34 = vadd.f32 %v815_v32, %v486_v27  ;;  %v817_v35 = vpop.f32.mrb[14].mxu0 }
 0x130   : > { %v6278_v36 = vadd.f32 %v817_v35, %v487_v30  ;;  %v819_v37 = vpop.f32.mrb[15].mxu0 }
 0x131   : > { %v6280_v38 = vadd.f32 %v819_v37, %v488_v33  ;;  %v874_v39 = vsel %vm720_vm0, %v6276_v34, 0.0  ;;  %v5668_v37 = vld [vmem:[%s8583_s3 + $0x4] ss:$16 sps:$4 sm:$0xff]  }
 0x132   : > { %v875_v40 = vadd.f32 %v874_v39, %v6273_v31  ;;  %v5670_v39 = vld [vmem:[%s8583_s3 + $0x8] ss:$16 sps:$4 sm:$0xff]   ;;  %1531 = vmatprep.subr.bf16.mxu1 %v5668_v37 }
 0x133   : > { %v878_v42 = vsel %vm720_vm0, %v6280_v38, 0.0 }
 0x134   : > { %876 = vadd.xlane.f32.xlu0 %v875_v40  ;;  %v879_v44 = vadd.f32 %v878_v42, %v6278_v36  ;;  %v5672_v40 = vld [vmem:[%s8583_s3 + $0xc] ss:$16 sps:$4 sm:$0xff]   ;;  %v5674_v42 = vld [vmem:[%s8583_s3 + $0x24] ss:$16 sps:$4 sm:$0xff]  }
 0x135   : > { %v823_v45 = vpop.f32.mrb[16].mxu0  ;;  %1632 = vmatprep.subr.bf16.mxu0 %v5672_v40 }
 0x136   : > { %v6291_v48 = vadd.f32 %v823_v45, %v489_v41  ;;  %v825_v49 = vpop.f32.mrb[17].mxu0  ;;  %880 = vadd.xlane.f32.xlu1 %v879_v44  ;;  %v5673_v41 = vld [vmem:[%s8583_s3] ss:$16 sps:$4 sm:$0xff]   ;;  %1633 = vmatpush1.bf16.msra.mxu0 %v5670_v39  ;;  %v5676_v44 = vld [vmem:[%s8583_s3 + $0x28] ss:$16 sps:$4 sm:$0xff]  }
 0x137   : > { %v6294_v53 = vadd.f32 %v825_v49, %v490_v43  ;;  %v827_v55 = vpop.f32.mrb[18].mxu0  ;;  %v5678_v43 = vld [vmem:[%s8583_s3 + $0x2c] ss:$16 sps:$4 sm:$0xff]   ;;  %1532 = vmatpush1.bf16.msra.mxu1 %v5673_v41  ;;  %v5679_v45 = vld [vmem:[%s8583_s3 + $0x20] ss:$16 sps:$4 sm:$0xff]  }
 0x138   : > { %v6296_v56 = vadd.f32 %v827_v55, %v491_v46  ;;  %v829_v57 = vpop.f32.mrb[19].mxu0  ;;  %1533 = vmatprep.subr.bf16.mxu1 %v5674_v42  ;;  %1634 = vmatprep.subr.bf16.mxu0 %v5678_v43  ;;  %v5680_v46 = vld [vmem:[%s8583_s3 + $0x44] ss:$16 sps:$4 sm:$0xff]   ;;  %v5684_v49 = vld [vmem:[%s8583_s3 + $0x4c] ss:$16 sps:$4 sm:$0xff]  }
 0x139   : > { %v6298_v58 = vadd.f32 %v829_v57, %v492_v51  ;;  %v882_v59 = vsel %vm720_vm0, %v6294_v53, 0.0  ;;  %v5682_v51 = vld [vmem:[%s8583_s3 + $0x48] ss:$16 sps:$4 sm:$0xff]   ;;  %v5685_v55 = vld [vmem:[%s8583_s3 + $0x40] ss:$16 sps:$4 sm:$0xff]  }
 0x13a   : > { %v883_v60 = vadd.f32 %v882_v59, %v6291_v48  ;;  %1635 = vmatpush1.bf16.msra.mxu0 %v5676_v44  ;;  %v5686_v57 = vld [vmem:[%s8583_s3 + $0x64] ss:$16 sps:$4 sm:$0xff]   ;;  %v5690_v59 = vld [vmem:[%s8583_s3 + $0x6c] ss:$16 sps:$4 sm:$0xff]  }
 0x13b   : > { %v886_v63 = vsel %vm720_vm0, %v6298_v58, 0.0  ;;  %1534 = vmatpush1.bf16.msra.mxu1 %v5679_v45  ;;  %1636 = vmatprep.subr.bf16.mxu0 %v5684_v49 }
 0x13c   : > { %884 = vadd.xlane.f32.xlu0 %v883_v60  ;;  %v887_v1 = vadd.f32 %v886_v63, %v6296_v56  ;;  %1535 = vmatprep.subr.bf16.mxu1 %v5680_v46  ;;  %v5688_v60 = vld [vmem:[%s8583_s3 + $0x68] ss:$16 sps:$4 sm:$0xff]   ;;  %v5692_v63 = vld [vmem:[%s8583_s3 + $0x84] ss:$16 sps:$4 sm:$0xff]  }
 0x13d   : > { %v833_v3 = vpop.f32.mrb[20].mxu0 }
 0x13e   : > { %v6309_v7 = vadd.f32 %v833_v3, %v493_v61  ;;  %v835_v8 = vpop.f32.mrb[21].mxu0  ;;  %888 = vadd.xlane.f32.xlu1 %v887_v1  ;;  %1637 = vmatpush1.bf16.msra.mxu0 %v5682_v51  ;;  %v5691_v61 = vld [vmem:[%s8583_s3 + $0x60] ss:$16 sps:$4 sm:$0xff]   ;;  %v5694_v1 = vld [vmem:[%s8583_s3 + $0x88] ss:$16 sps:$4 sm:$0xff]  }
 0x13f   : > { %v6312_v10 = vadd.f32 %v835_v8, %v494_v0  ;;  %v837_v11 = vpop.f32.mrb[22].mxu0  ;;  %1536 = vmatpush1.bf16.msra.mxu1 %v5685_v55  ;;  %1638 = vmatprep.subr.bf16.mxu0 %v5690_v59  ;;  %v5696_v0 = vld [vmem:[%s8583_s3 + $0x8c] ss:$16 sps:$4 sm:$0xff]   ;;  %v5697_v3 = vld [vmem:[%s8583_s3 + $0x80] ss:$16 sps:$4 sm:$0xff]  }
 0x140   : > { %v6314_v12 = vadd.f32 %v837_v11, %v495_v5  ;;  %v839_v13 = vpop.f32.mrb[23].mxu0  ;;  %1537 = vmatprep.subr.bf16.mxu1 %v5686_v57  ;;  %v5698_v5 = vld [vmem:[%s8583_s3 + $0xa4] ss:$16 sps:$4 sm:$0xff]   ;;  %v5702_v8 = vld [vmem:[%s8583_s3 + $0xac] ss:$16 sps:$4 sm:$0xff]  }
 0x141   : > { %v6316_v15 = vadd.f32 %v839_v13, %v496_v9  ;;  %v890_v16 = vsel %vm720_vm0, %v6312_v10, 0.0  ;;  %v5700_v9 = vld [vmem:[%s8583_s3 + $0xa8] ss:$16 sps:$4 sm:$0xff]   ;;  %v5703_v11 = vld [vmem:[%s8583_s3 + $0xa0] ss:$16 sps:$4 sm:$0xff]  }
 0x142   : > { %v891_v17 = vadd.f32 %v890_v16, %v6309_v7  ;;  %1639 = vmatpush1.bf16.msra.mxu0 %v5688_v60 }
 0x143   : > { %v894_v21 = vsel %vm720_vm0, %v6316_v15, 0.0  ;;  %1538 = vmatpush1.bf16.msra.mxu1 %v5691_v61  ;;  %1640 = vmatprep.subr.bf16.mxu0 %v5696_v0 }
 0x144   : > { %892 = vadd.xlane.f32.xlu0 %v891_v17  ;;  %v895_v24 = vadd.f32 %v894_v21, %v6314_v12  ;;  %1539 = vmatprep.subr.bf16.mxu1 %v5692_v63 }
 0x145   : > { %v843_v25 = vpop.f32.mrb[24].mxu0 }
 0x146   : > { %v6326_v26 = vadd.f32 %v843_v25, %v497_v19  ;;  %v845_v27 = vpop.f32.mrb[25].mxu0  ;;  %896 = vadd.xlane.f32.xlu1 %v895_v24  ;;  %1641 = vmatpush1.bf16.msra.mxu0 %v5694_v1 }
 0x147   : > { %v6328_v28 = vadd.f32 %v845_v27, %v498_v23  ;;  %v847_v29 = vpop.f32.mrb[26].mxu0  ;;  %1540 = vmatpush1.bf16.msra.mxu1 %v5697_v3  ;;  %1642 = vmatprep.subr.bf16.mxu0 %v5702_v8  ;;  %v5708_v3 = vld [vmem:[%s8583_s3 + $0xcc] ss:$16 sps:$4 sm:$0xff]   ;;  %v5706_v8 = vld [vmem:[%s8583_s3 + $0xc8] ss:$16 sps:$4 sm:$0xff]  }
 0x148   : > { %v848_v30 = vpop.f32.mrb[27].mxu0  ;;  %v899_v32 = vsel %vm898_vm2, %v6326_v26, 0.0  ;;  %1541 = vmatprep.subr.bf16.mxu1 %v5698_v5 }
 0x149   : > { %v901_v33 = vsel %vm900_vm3, %v6328_v28, 0.0 }
 0x14a   : > { %v902_v35 = vadd.f32 %v901_v33, %v899_v32  ;;  %1643 = vmatpush1.bf16.msra.mxu0 %v5700_v9  ;;  %v5709_v9 = vld [vmem:[%s8583_s3 + $0xc0] ss:$16 sps:$4 sm:$0xff]  }
 0x14b   : > { %1542 = vmatpush1.bf16.msra.mxu1 %v5703_v11  ;;  %1644 = vmatprep.subr.bf16.mxu0 %v5708_v3  ;;  %v5727_v3 = vld [vmem:[%s8583_s3 + $0x120] ss:$16 sps:$4 sm:$0xff]  }
 0x14c   : > { %903 = vadd.xlane.f32.xlu0 %v902_v35 }
 0x14e   : > { %1645 = vmatpush1.bf16.msra.mxu0 %v5706_v8 }
 0x1a9   : > { %v853_v13 = vpop.xlane.xlu0 %852 }
 0x1aa   : > { %v906_v16 = vmul.f32 0.005, %v853_v13 }
 0x1ac   : > { %v6407_v17 = vsub.f32 %v6219_v47, %v906_v16  ;;  %v6410_v19 = vsub.f32 %v6222_v50, %v906_v16 }
 0x1ad   : > { %v857_v21 = vpop.xlane.xlu0 %856 }
 0x1ae   : > { %v907_v23 = vmul.f32 0.005, %v857_v21  ;;  %v945_v24 = vmul.f32 %v6407_v17, %v6407_v17  ;;  %v946_v25 = vmul.f32 %v6410_v19, %v6410_v19 }
 0x1b0   : > { %v6417_v27 = vsub.f32 %v6224_v52, %v907_v23  ;;  %v6420_v29 = vsub.f32 %v6226_v54, %v907_v23  ;;  %v971_v47 = vsel %vm720_vm0, %v946_v25, 0.0  ;;  %v5710_v25 = vld [vmem:[%s8583_s3 + $0xe4] ss:$16 sps:$4 sm:$0xff]  }
 0x1b1   : > { %v861_v30 = vpop.xlane.xlu1 %860  ;;  %v972_v32 = vadd.f32 %v971_v47, %v945_v24  ;;  %v5714_v47 = vld [vmem:[%s8583_s3 + $0xec] ss:$16 sps:$4 sm:$0xff]  }
 0x1b2   : > { %v908_v50 = vmul.f32 0.005, %v861_v30  ;;  %v947_v33 = vmul.f32 %v6417_v27, %v6417_v27  ;;  %v948_v35 = vmul.f32 %v6420_v29, %v6420_v29  ;;  %1646 = vmatprep.subr.bf16.mxu0 %v5714_v47 }
 0x1b3   : > { %973 = vadd.xlane.f32.xlu1 %v972_v32 }
 0x1b4   : > { %v6428_v37 = vsub.f32 %v6236_v62, %v908_v50  ;;  %v6431_v52 = vsub.f32 %v6240_v2, %v908_v50  ;;  %v975_v54 = vsel %vm720_vm0, %v948_v35, 0.0  ;;  %v5715_v35 = vld [vmem:[%s8583_s3 + $0xe0] ss:$16 sps:$4 sm:$0xff]  }
 0x1b5   : > { %v865_v39 = vpop.xlane.xlu1 %864  ;;  %v976_v40 = vadd.f32 %v975_v54, %v947_v33  ;;  %v5712_v33 = vld [vmem:[%s8583_s3 + $0xe8] ss:$16 sps:$4 sm:$0xff]  }
 0x1b6   : > { %v909_v41 = vmul.f32 0.005, %v865_v39  ;;  %v949_v42 = vmul.f32 %v6428_v37, %v6428_v37  ;;  %v950_v43 = vmul.f32 %v6431_v52, %v6431_v52  ;;  %1647 = vmatpush1.bf16.msra.mxu0 %v5712_v33  ;;  %v5738_v33 = vld [vmem:[%s8583_s3 + $0x16c] ss:$16 sps:$4 sm:$0xff]  }
 0x1b7   : > { %977 = vadd.xlane.f32.xlu0 %v976_v40  ;;  %v5716_v40 = vld [vmem:[%s8583_s3 + $0x104] ss:$16 sps:$4 sm:$0xff]  }
 0x1b8   : > { %v6439_v44 = vsub.f32 %v6242_v4, %v909_v41  ;;  %v6442_v62 = vsub.f32 %v6244_v6, %v909_v41  ;;  %v979_v2 = vsel %vm720_vm0, %v950_v43, 0.0  ;;  %v5718_v43 = vld [vmem:[%s8583_s3 + $0x108] ss:$16 sps:$4 sm:$0xff]  }
 0x1b9   : > { %v869_v45 = vpop.xlane.xlu0 %868  ;;  %v980_v46 = vadd.f32 %v979_v2, %v949_v42  ;;  %v5721_v2 = vld [vmem:[%s8583_s3 + $0x100] ss:$16 sps:$4 sm:$0xff]  }
 0x1ba   : > { %v910_v49 = vmul.f32 0.005, %v869_v45  ;;  %v951_v51 = vmul.f32 %v6439_v44, %v6439_v44  ;;  %v952_v55 = vmul.f32 %v6442_v62, %v6442_v62 }
 0x1bb   : > { %v873_v57 = vpop.xlane.xlu1 %872  ;;  %981 = vadd.xlane.f32.xlu1 %v980_v46 }
 0x1bc   : > { %v6450_v59 = vsub.f32 %v6254_v14, %v910_v49  ;;  %v6453_v4 = vsub.f32 %v6258_v18, %v910_v49  ;;  %v911_v6 = vmul.f32 0.005, %v873_v57  ;;  %v983_v60 = vsel %vm720_vm0, %v952_v55, 0.0  ;;  %v5704_v18 = vld [vmem:[%s8583_s3 + $0xc4] ss:$16 sps:$4 sm:$0xff]  }
 0x1bd   : > { %v984_v61 = vadd.f32 %v983_v60, %v951_v51  ;;  %1543 = vmatprep.subr.bf16.mxu1 %v5704_v18  ;;  %v5726_v60 = vld [vmem:[%s8583_s3 + $0x12c] ss:$16 sps:$4 sm:$0xff]   ;;  %v5724_v18 = vld [vmem:[%s8583_s3 + $0x128] ss:$16 sps:$4 sm:$0xff]  }
 0x1be   : > { %v6457_v63 = vsub.f32 %v6260_v20, %v911_v6  ;;  %v6460_v0 = vsub.f32 %v6262_v22, %v911_v6  ;;  %v953_v1 = vmul.f32 %v6450_v59, %v6450_v59  ;;  %v954_v14 = vmul.f32 %v6453_v4, %v6453_v4  ;;  %1544 = vmatpush1.bf16.msra.mxu1 %v5709_v9  ;;  %v5722_v6 = vld [vmem:[%s8583_s3 + $0x124] ss:$16 sps:$4 sm:$0xff]  }
 0x1bf   : > { %985 = vadd.xlane.f32.xlu0 %v984_v61  ;;  %1545 = vmatprep.subr.bf16.mxu1 %v5710_v25 }
 0x1c0   : > { %v987_v20 = vsel %vm720_vm0, %v954_v14, 0.0  ;;  %v955_v22 = vmul.f32 %v6457_v63, %v6457_v63  ;;  %v956_v5 = vmul.f32 %v6460_v0, %v6460_v0 }
 0x1c1   : > { %v877_v11 = vpop.xlane.xlu0 %876  ;;  %v988_v13 = vadd.f32 %v987_v20, %v953_v1 }
 0x1c2   : > { %v912_v16 = vmul.f32 0.005, %v877_v11  ;;  %v991_v21 = vsel %vm720_vm0, %v956_v5, 0.0  ;;  %1546 = vmatpush1.bf16.msra.mxu1 %v5715_v35  ;;  %v5728_v5 = vld [vmem:[%s8583_s3 + $0x144] ss:$16 sps:$4 sm:$0xff]  }
 0x1c3   : > { %v881_v23 = vpop.xlane.xlu1 %880  ;;  %989 = vadd.xlane.f32.xlu1 %v988_v13  ;;  %v992_v24 = vadd.f32 %v991_v21, %v955_v22  ;;  %1547 = vmatprep.subr.bf16.mxu1 %v5716_v40  ;;  %v5730_v11 = vld [vmem:[%s8583_s3 + $0x148] ss:$16 sps:$4 sm:$0xff]   ;;  %v5733_v13 = vld [vmem:[%s8583_s3 + $0x140] ss:$16 sps:$4 sm:$0xff]  }
 0x1c4   : > { %v6491_v30 = vsub.f32 %v6273_v31, %v912_v16  ;;  %v6494_v32 = vsub.f32 %v6276_v34, %v912_v16  ;;  %v913_v50 = vmul.f32 0.005, %v881_v23  ;;  %v5736_v40 = vld [vmem:[%s8583_s3 + $0x168] ss:$16 sps:$4 sm:$0xff]  }
 0x1c5   : > { %993 = vadd.xlane.f32.xlu0 %v992_v24 }
 0x1c6   : > { %v6503_v54 = vsub.f32 %v6278_v36, %v913_v50  ;;  %v6506_v31 = vsub.f32 %v6280_v38, %v913_v50  ;;  %v957_v34 = vmul.f32 %v6491_v30, %v6491_v30  ;;  %v958_v39 = vmul.f32 %v6494_v32, %v6494_v32  ;;  %v5720_v36 = vld [vmem:[%s8583_s3 + $0x10c] ss:$16 sps:$4 sm:$0xff]   ;;  %1548 = vmatpush1.bf16.msra.mxu1 %v5721_v2  ;;  %v5734_v50 = vld [vmem:[%s8583_s3 + $0x164] ss:$16 sps:$4 sm:$0xff]  }
 0x1c7   : > { %1648 = vmatprep.subr.bf16.mxu0 %v5720_v36  ;;  %1549 = vmatprep.subr.bf16.mxu1 %v5722_v6  ;;  %v5739_v36 = vld [vmem:[%s8583_s3 + $0x160] ss:$16 sps:$4 sm:$0xff]  }
 0x1c8   : > { %v995_v38 = vsel %vm720_vm0, %v958_v39, 0.0  ;;  %v959_v41 = vmul.f32 %v6503_v54, %v6503_v54  ;;  %v960_v42 = vmul.f32 %v6506_v31, %v6506_v31  ;;  %1649 = vmatpush1.bf16.msra.mxu0 %v5718_v43  ;;  %v1226_v43 = vld [vmem:[%s8583_s3 + $0x188] sm:$0xff] }
 0x1c9   : > { %v885_v45 = vpop.xlane.xlu0 %884  ;;  %v996_v46 = vadd.f32 %v995_v38, %v957_v34  ;;  %1650 = vmatprep.subr.bf16.mxu0 %v5726_v60  ;;  %v5258_v2 = vcombine.high %v1226_v43, %v1226_v43 }
 0x1ca   : > { %v914_v49 = vmul.f32 0.005, %v885_v45  ;;  %v999_v51 = vsel %vm720_vm0, %v960_v42, 0.0  ;;  %1550 = vmatpush1.bf16.msra.mxu1 %v5727_v3  ;;  %v1225_v42 = vld [vmem:[%s8583_s3 + $0x180] sm:$0xff]  ;;  %v5257_v45 = vcombine.low %v1226_v43, %v1226_v43 }
 0x1cb   : > { %v889_v55 = vpop.xlane.xlu1 %888  ;;  %997 = vadd.xlane.f32.xlu1 %v996_v46  ;;  %v1000_v57 = vadd.f32 %v999_v51, %v959_v41  ;;  %1551 = vmatprep.subr.bf16.mxu1 %v5728_v5 }
 0x1cc   : > { %v6537_v61 = vsub.f32 %v6291_v48, %v914_v49  ;;  %v6540_v1 = vsub.f32 %v6294_v53, %v914_v49  ;;  %v915_v14 = vmul.f32 0.005, %v889_v55  ;;  %1651 = vmatpush1.bf16.msra.mxu0 %v5724_v18  ;;  %v1526_v60 = vsel %vm742_vm1, %v5257_v45, 0 }
 0x1cd   : > { %1001 = vadd.xlane.f32.xlu0 %v1000_v57 }
 0x1ce   : > { %v6549_v20 = vsub.f32 %v6296_v56, %v915_v14  ;;  %v6552_v48 = vsub.f32 %v6298_v58, %v915_v14  ;;  %v961_v53 = vmul.f32 %v6537_v61, %v6537_v61  ;;  %v962_v22 = vmul.f32 %v6540_v1, %v6540_v1  ;;  %v5732_v56 = vld [vmem:[%s8583_s3 + $0x14c] ss:$16 sps:$4 sm:$0xff]   ;;  %1552 = vmatpush1.bf16.msra.mxu1 %v5733_v13 }
 0x1cf   : > { %1652 = vmatprep.subr.bf16.mxu0 %v5732_v56  ;;  %1553 = vmatprep.subr.bf16.mxu1 %v5734_v50 }
 0x1d0   : > { %v1003_v8 = vsel %vm720_vm0, %v962_v22, 0.0  ;;  %v963_v58 = vmul.f32 %v6549_v20, %v6549_v20  ;;  %v964_v9 = vmul.f32 %v6552_v48, %v6552_v48  ;;  %1653 = vmatpush1.bf16.msra.mxu0 %v5730_v11 }
 0x1d1   : > { %v893_v16 = vpop.xlane.xlu0 %892  ;;  %v1004_v21 = vadd.f32 %v1003_v8, %v961_v53  ;;  %1654 = vmatprep.subr.bf16.mxu0 %v5738_v33 }
 0x1d2   : > { %v916_v23 = vmul.f32 0.005, %v893_v16  ;;  %v1007_v24 = vsel %vm720_vm0, %v964_v9, 0.0  ;;  %1554 = vmatpush1.bf16.msra.mxu1 %v5739_v36  ;;  %v1090_v16 = vlaneseq }
 0x1d3   : > { %v897_v25 = vpop.xlane.xlu1 %896  ;;  %1005 = vadd.xlane.f32.xlu1 %v1004_v21  ;;  %v1008_v47 = vadd.f32 %v1007_v24, %v963_v58 }
 0x1d4   : > { %v6583_v35 = vsub.f32 %v6309_v7, %v916_v23  ;;  %v6586_v34 = vsub.f32 %v6312_v10, %v916_v23  ;;  %v917_v39 = vmul.f32 0.005, %v897_v25  ;;  %1655 = vmatpush1.bf16.msra.mxu0 %v5736_v40  ;;  %v6635_v25 = vshrl.u32 %v1090_v16, 7 }
 0x1d5   : > { %1009 = vadd.xlane.f32.xlu0 %v1008_v47  ;;  %5267 = vmatprep.subr.msk.bf16.mxu0 %vm742_vm1, %v5258_v2 }
 0x1d6   : > { %v6595_v38 = vsub.f32 %v6314_v12, %v917_v39  ;;  %v6598_v7 = vsub.f32 %v6316_v15, %v917_v39  ;;  %v965_v10 = vmul.f32 %v6583_v35, %v6583_v35  ;;  %v966_v41 = vmul.f32 %v6586_v34, %v6586_v34 }
 0x1d7   : > { %v5256_v12 = vcombine.high %v1225_v42, %v1225_v42  ;;  %v5255_v15 = vcombine.low %v1225_v42, %v1225_v42  ;;  %v6638_v39 = vsub.s32 0, %v6635_v25  ;;  %v6641_v40 = vsub.s32 1, %v6635_v25 }
 0x1d8   : > { %v1011_v46 = vsel %vm720_vm0, %v966_v41, 0.0  ;;  %v967_v49 = vmul.f32 %v6595_v38, %v6595_v38  ;;  %v968_v51 = vmul.f32 %v6598_v7, %v6598_v7  ;;  %1657 = vmatpush1.bf16.msra.mxu0 %v1526_v60 }
 0x1d9   : > { %v904_v55 = vpop.xlane.xlu0 %903  ;;  %v1012_v57 = vadd.f32 %v1011_v46, %v965_v10  ;;  %5259 = vmatprep.subr.msk.bf16.mxu1 %vm742_vm1, %v5256_v12  ;;  %v1520_v6 = vsel %vm742_vm1, %v5255_v15, 0  ;;  %v499_v10 = vld [vmem:[%s8585_s5] ss:$8 sm:$0x3] }
 0x1da   : > { %v918_v14 = vmul.f32 0.005, %v904_v55  ;;  %v1015_v18 = vsel %vm720_vm0, %v968_v51, 0.0  ;;  %1556 = vmatpush1.bf16.msra.mxu1 %v1520_v6  ;;  %v5154_v12 = vld [vmem:[%s8585_s5 + $0x1] ss:$8 sm:$0x3]  ;;  %v6650_v2 = vrot.slane %v499_v10, %v6638_v39  ;;  %v6653_v15 = vrot.slane %v499_v10, %v6641_v40 }
 0x1db   : > { %1013 = vadd.xlane.f32.xlu1 %v1012_v57  ;;  %v1016_v3 = vadd.f32 %v1015_v18, %v967_v49  ;;  %v6658_v57 = vrot.slane %v5154_v12, %v6638_v39  ;;  %v6661_v6 = vrot.slane %v5154_v12, %v6641_v40 }
 0x1dc   : > { %v6621_v53 = vsub.f32 %v6326_v26, %v918_v14  ;;  %v6624_v22 = vsub.f32 %v6328_v28, %v918_v14  ;;  %v5746_v26 = vld [vmem:[%s8584_s4 + $0x4] ss:$8 sps:$4 sm:$0xff]  }
 0x1dd   : > { %1017 = vadd.xlane.f32.xlu0 %v1016_v3  ;;  %2146 = vmatprep.subr.bf16.mxu1 %v5746_v26 }
 0x1de   : > { %v969_v5 = vmul.f32 %v6621_v53, %v6621_v53  ;;  %v970_v56 = vmul.f32 %v6624_v22, %v6624_v22 }
 0x1e0   : > { %v1019_v8 = vsel %vm898_vm2, %v969_v5, 0.0  ;;  %v1020_v58 = vsel %vm900_vm3, %v970_v56, 0.0 }
 0x1e1   : > { %v1021_v9 = vadd.f32 %v1020_v58, %v1019_v8 }
 0x1e3   : > { %1022 = vadd.xlane.f32.xlu1 %v1021_v9 }
 0x240   : > { %v974_v28 = vpop.xlane.xlu1 %973 }
 0x241   : > { %v1024_v11 = vmul.f32 0.005, %v974_v28 }
 0x243   : > { %v1037_v13 = vadd.f32 1e-05, %v1024_v11 }
 0x244   : > { %v978_v21 = vpop.xlane.xlu0 %977 }
 0x245   : > { %5888 = vrsqrt.f32 %v1037_v13  ;;  %v1025_v23 = vmul.f32 0.005, %v978_v21 }
 0x247   : > { %v1038_v24 = vadd.f32 1e-05, %v1025_v23 }
 0x248   : > { %v982_v47 = vpop.xlane.xlu1 %981 }
 0x249   : > { %5890 = vrsqrt.f32 %v1038_v24  ;;  %v1026_v50 = vmul.f32 0.005, %v982_v47 }
 0x24b   : > { %v1039_v33 = vadd.f32 1e-05, %v1026_v50 }
 0x24c   : > { %v986_v36 = vpop.xlane.xlu0 %985 }
 0x24d   : > { %5892 = vrsqrt.f32 %v1039_v33  ;;  %v1027_v41 = vmul.f32 0.005, %v986_v36 }
 0x24f   : > { %v5889_v42 = vpop.eup %5888  ;;  %v1040_v43 = vadd.f32 1e-05, %v1027_v41 }
 0x250   : > { %v990_v45 = vpop.xlane.xlu1 %989  ;;  %v1064_v46 = vmul.f32 %v5889_v42, %v6410_v19  ;;  %v1063_v49 = vmul.f32 %v5889_v42, %v6407_v17 }
 0x251   : > { %5894 = vrsqrt.f32 %v1040_v43  ;;  %v1028_v51 = vmul.f32 0.005, %v990_v45 }
 0x252   : > { %v994_v55 = vpop.xlane.xlu0 %993  ;;  %v1101_v3 = vmul.f32 %v6653_v15, %v1064_v46  ;;  %v1100_v5 = vmul.f32 %v6650_v2, %v1063_v49 }
 0x253   : > { %v5891_v60 = vpop.eup %5890  ;;  %v1041_v14 = vadd.f32 1e-05, %v1028_v51  ;;  %v1029_v18 = vmul.f32 0.005, %v994_v55 }
 0x254   : > { %v1066_v19 = vmul.f32 %v5891_v60, %v6420_v29  ;;  %v1065_v17 = vmul.f32 %v5891_v60, %v6417_v27  ;;  %v6670_v26 = vadd.f32 %v6661_v6, %v1101_v3  ;;  %v6673_v28 = vadd.f32 %v6658_v57, %v1100_v5 }
 0x255   : > { %5896 = vrsqrt.f32 %v1041_v14  ;;  %v1042_v56 = vadd.f32 1e-05, %v1029_v18 }
 0x256   : > { %v1103_v8 = vmul.f32 %v6653_v15, %v1066_v19  ;;  %v1102_v58 = vmul.f32 %v6650_v2, %v1065_v17 }
 0x257   : > { %v5893_v9 = vpop.eup %5892  ;;  %5898 = vrsqrt.f32 %v1042_v56 }
 0x258   : > { %v1068_v11 = vmul.f32 %v5893_v9, %v6431_v52  ;;  %v998_v13 = vpop.xlane.xlu1 %997  ;;  %v6677_v29 = vadd.f32 %v6661_v6, %v1103_v8  ;;  %v6680_v27 = vadd.f32 %v6658_v57, %v1102_v58  ;;  %v1067_v16 = vmul.f32 %v5893_v9, %v6428_v37  ;;  %v5744_v52 = vld [vmem:[%s8584_s4] ss:$8 sps:$4 sm:$0xff]   ;;  %v5749_v37 = vld [vmem:[%s8584_s4 + $0x14] ss:$8 sps:$4 sm:$0xff]  }
 0x259   : > { %v1030_v21 = vmul.f32 0.005, %v998_v13 }
 0x25a   : > { %v1002_v23 = vpop.xlane.xlu0 %1001  ;;  %v1164_v24 = vpack.c.bf16 %v6677_v29, %v6670_v26  ;;  %v1163_v47 = vpack.c.bf16 %v6680_v27, %v6673_v28  ;;  %v1105_v10 = vmul.f32 %v6653_v15, %v1068_v11  ;;  %v1104_v43 = vmul.f32 %v6650_v2, %v1067_v16  ;;  %v5750_v11 = vld [vmem:[%s8584_s4 + $0x20] ss:$8 sps:$4 sm:$0xff]  }
 0x25b   : > { %v5895_v50 = vpop.eup %5894  ;;  %v1043_v33 = vadd.f32 1e-05, %v1030_v21  ;;  %v1031_v36 = vmul.f32 0.005, %v1002_v23 }
 0x25c   : > { %v1070_v41 = vmul.f32 %v5895_v50, %v6442_v62  ;;  %5260 = vmatprep.mubr.msk.bf16.mxu1 %vm720_vm0, %v1164_v24  ;;  %5268 = vmatprep.mubr.msk.bf16.mxu0 %vm720_vm0, %v1164_v24  ;;  %v1069_v42 = vmul.f32 %v5895_v50, %v6439_v44  ;;  %v5747_v62 = vld [vmem:[%s8584_s4 + $0x10] ss:$8 sps:$4 sm:$0xff]   ;;  %v6705_v51 = vadd.f32 %v6661_v6, %v1105_v10  ;;  %v5752_v44 = vld [vmem:[%s8584_s4 + $0x24] ss:$8 sps:$4 sm:$0xff]  }
 0x25d   : > { %5900 = vrsqrt.f32 %v1043_v33  ;;  %v1044_v12 = vadd.f32 1e-05, %v1031_v36  ;;  %1564 = vmatmul.mubr.bf16.vlgmr.msra.gmra.mrb[0].mxu1 %v1163_v47  ;;  %1665 = vmatmul.mubr.bf16.vlgmr.msra.gmra.mrb[28].mxu0 %v1163_v47  ;;  %v6715_v18 = vadd.f32 %v6658_v57, %v1104_v43  ;;  %v5753_v36 = vld [vmem:[%s8584_s4 + $0x30] ss:$8 sps:$4 sm:$0xff]  }
 0x25e   : > { %v1107_v45 = vmul.f32 %v6653_v15, %v1070_v41  ;;  %v1106_v46 = vmul.f32 %v6650_v2, %v1069_v42  ;;  %2147 = vmatpush1.bf16.msra.mxu1 %v5744_v52  ;;  %v5758_v42 = vld [vmem:[%s8584_s4 + $0x44] ss:$8 sps:$4 sm:$0xff]  }
 0x25f   : > { %v5897_v49 = vpop.eup %5896  ;;  %5902 = vrsqrt.f32 %v1044_v12  ;;  %2148 = vmatprep.subr.bf16.mxu1 %v5749_v37 }
 0x260   : > { %v1072_v55 = vmul.f32 %v5897_v49, %v6453_v4  ;;  %v1006_v60 = vpop.xlane.xlu1 %1005  ;;  %v6712_v14 = vadd.f32 %v6661_v6, %v1107_v45  ;;  %v6718_v3 = vadd.f32 %v6658_v57, %v1106_v46  ;;  %v1071_v17 = vmul.f32 %v5897_v49, %v6450_v59 }
 0x261   : > { %v5899_v5 = vpop.eup %5898  ;;  %v1032_v19 = vmul.f32 0.005, %v1006_v60 }
 0x262   : > { %v1074_v56 = vmul.f32 %v5899_v5, %v6460_v0  ;;  %v1010_v8 = vpop.xlane.xlu0 %1009  ;;  %v1166_v4 = vpack.c.bf16 %v6712_v14, %v6705_v51  ;;  %v1165_v58 = vpack.c.bf16 %v6718_v3, %v6715_v18  ;;  %v1109_v9 = vmul.f32 %v6653_v15, %v1072_v55  ;;  %2149 = vmatpush1.bf16.msra.mxu1 %v5747_v62  ;;  %v5755_v0 = vld [vmem:[%s8584_s4 + $0x34] ss:$8 sps:$4 sm:$0xff]  }
 0x263   : > { %v1045_v13 = vadd.f32 1e-05, %v1032_v19  ;;  %v1033_v16 = vmul.f32 0.005, %v1010_v8  ;;  %v1073_v59 = vmul.f32 %v5899_v5, %v6457_v63  ;;  %2150 = vmatprep.subr.bf16.mxu1 %v5752_v44  ;;  %v1108_v24 = vmul.f32 %v6650_v2, %v1071_v17  ;;  %v5761_v17 = vld [vmem:[%s8584_s4 + $0x54] ss:$8 sps:$4 sm:$0xff]  }
 0x264   : > { %5261 = vmatprep.mubr.msk.bf16.mxu1 %vm720_vm0, %v1166_v4  ;;  %5269 = vmatprep.mubr.msk.bf16.mxu0 %vm720_vm0, %v1166_v4  ;;  %v1111_v21 = vmul.f32 %v6653_v15, %v1074_v56  ;;  %v6740_v63 = vadd.f32 %v6661_v6, %v1109_v9 }
 0x265   : > { %5904 = vrsqrt.f32 %v1045_v13  ;;  %v1046_v23 = vadd.f32 1e-05, %v1033_v16  ;;  %1574 = vmatmul.mubr.bf16.gmra.mrb[4].mxu1 %v1165_v58  ;;  %1675 = vmatmul.mubr.bf16.gmra.mrb[32].mxu0 %v1165_v58  ;;  %v1110_v47 = vmul.f32 %v6650_v2, %v1073_v59  ;;  %v6758_v45 = vadd.f32 %v6658_v57, %v1108_v24 }
 0x266   : > { %v6743_v52 = vadd.f32 %v6661_v6, %v1111_v21  ;;  %2151 = vmatpush1.bf16.msra.mxu1 %v5750_v11  ;;  %v5759_v11 = vld [vmem:[%s8584_s4 + $0x50] ss:$8 sps:$4 sm:$0xff]  }
 0x267   : > { %v5901_v50 = vpop.eup %5900  ;;  %5906 = vrsqrt.f32 %v1046_v23  ;;  %v6746_v33 = vadd.f32 %v6658_v57, %v1110_v47  ;;  %2152 = vmatprep.subr.bf16.mxu1 %v5755_v0  ;;  %v5764_v0 = vld [vmem:[%s8584_s4 + $0x64] ss:$8 sps:$4 sm:$0xff]  }
 0x268   : > { %v1076_v10 = vmul.f32 %v5901_v50, %v6494_v32  ;;  %v1014_v37 = vpop.xlane.xlu1 %1013  ;;  %v1168_v41 = vpack.c.bf16 %v6743_v52, %v6740_v63  ;;  %v1075_v46 = vmul.f32 %v5901_v50, %v6491_v30  ;;  %v5756_v30 = vld [vmem:[%s8584_s4 + $0x40] ss:$8 sps:$4 sm:$0xff]  }
 0x269   : > { %v5903_v43 = vpop.eup %5902  ;;  %v1034_v12 = vmul.f32 0.005, %v1014_v37  ;;  %v1167_v5 = vpack.c.bf16 %v6746_v33, %v6758_v45 }
 0x26a   : > { %v1078_v62 = vmul.f32 %v5903_v43, %v6506_v31  ;;  %5262 = vmatprep.mubr.msk.bf16.mxu1 %vm720_vm0, %v1168_v41  ;;  %5270 = vmatprep.mubr.msk.bf16.mxu0 %vm720_vm0, %v1168_v41  ;;  %v1018_v32 = vpop.xlane.xlu0 %1017  ;;  %v1113_v49 = vmul.f32 %v6653_v15, %v1076_v10  ;;  %v1077_v44 = vmul.f32 %v5903_v43, %v6503_v54  ;;  %v5762_v41 = vld [vmem:[%s8584_s4 + $0x60] ss:$8 sps:$4 sm:$0xff]  }
 0x26b   : > { %v1047_v55 = vadd.f32 1e-05, %v1034_v12  ;;  %v1035_v60 = vmul.f32 0.005, %v1018_v32  ;;  %2153 = vmatpush1.bf16.msra.mxu1 %v5753_v36  ;;  %v1112_v56 = vmul.f32 %v6650_v2, %v1075_v46  ;;  %v5765_v32 = vld [vmem:[%s8584_s4 + $0x70] ss:$8 sps:$4 sm:$0xff]  }
 0x26c   : > { %v1115_v31 = vmul.f32 %v6653_v15, %v1078_v62  ;;  %v1114_v19 = vmul.f32 %v6650_v2, %v1077_v44  ;;  %2154 = vmatprep.subr.bf16.mxu1 %v5758_v42  ;;  %v6778_v8 = vadd.f32 %v6661_v6, %v1113_v49  ;;  %v5767_v42 = vld [vmem:[%s8584_s4 + $0x74] ss:$8 sps:$4 sm:$0xff]  }
 0x26d   : > { %5908 = vrsqrt.f32 %v1047_v55  ;;  %v1048_v54 = vadd.f32 1e-05, %v1035_v60  ;;  %1584 = vmatmul.mubr.bf16.gmra.mrb[8].mxu1 %v1167_v5  ;;  %1685 = vmatmul.mubr.bf16.gmra.mrb[36].mxu0 %v1167_v5  ;;  %v6796_v24 = vadd.f32 %v6658_v57, %v1112_v56  ;;  %v5770_v55 = vld [vmem:[%s8584_s4 + $0x84] ss:$8 sps:$4 sm:$0xff]   ;;  %v5773_v56 = vld [vmem:[%s8584_s4 + $0x94] ss:$8 sps:$4 sm:$0xff]  }
 0x26e   : > { %v6781_v4 = vadd.f32 %v6661_v6, %v1115_v31  ;;  %v6784_v9 = vadd.f32 %v6658_v57, %v1114_v19 }
 0x26f   : > { %v5905_v58 = vpop.eup %5904  ;;  %5910 = vrsqrt.f32 %v1048_v54  ;;  %2155 = vmatpush1.bf16.msra.mxu1 %v5756_v30  ;;  %v5768_v54 = vld [vmem:[%s8584_s4 + $0x80] ss:$8 sps:$4 sm:$0xff]  }
 0x270   : > { %v1080_v13 = vmul.f32 %v5905_v58, %v6540_v1  ;;  %v1023_v16 = vpop.xlane.xlu1 %1022  ;;  %v1170_v59 = vpack.c.bf16 %v6781_v4, %v6778_v8  ;;  %2156 = vmatprep.subr.bf16.mxu1 %v5761_v17  ;;  %v1079_v47 = vmul.f32 %v5905_v58, %v6537_v61  ;;  %v1169_v37 = vpack.c.bf16 %v6784_v9, %v6796_v24 }
 0x271   : > { %v5907_v21 = vpop.eup %5906  ;;  %v1036_v23 = vmul.f32 0.005, %v1023_v16 }
 0x272   : > { %v1082_v50 = vmul.f32 %v5907_v21, %v6552_v48  ;;  %5263 = vmatprep.mubr.msk.bf16.mxu1 %vm720_vm0, %v1170_v59  ;;  %5271 = vmatprep.mubr.msk.bf16.mxu0 %vm720_vm0, %v1170_v59  ;;  %v1117_v1 = vmul.f32 %v6653_v15, %v1080_v13  ;;  %v1081_v36 = vmul.f32 %v5907_v21, %v6549_v20  ;;  %v5771_v59 = vld [vmem:[%s8584_s4 + $0x90] ss:$8 sps:$4 sm:$0xff]  }
 0x273   : > { %v1049_v10 = vadd.f32 1e-05, %v1036_v23  ;;  %2157 = vmatpush1.bf16.msra.mxu1 %v5759_v11  ;;  %v1116_v20 = vmul.f32 %v6650_v2, %v1079_v47  ;;  %v5776_v47 = vld [vmem:[%s8584_s4 + $0xa4] ss:$8 sps:$4 sm:$0xff]  }
 0x274   : > { %v1119_v61 = vmul.f32 %v6653_v15, %v1082_v50  ;;  %v1118_v48 = vmul.f32 %v6650_v2, %v1081_v36  ;;  %2158 = vmatprep.subr.bf16.mxu1 %v5764_v0  ;;  %v6816_v43 = vadd.f32 %v6661_v6, %v1117_v1 }
 0x275   : > { %5912 = vrsqrt.f32 %v1049_v10  ;;  %1594 = vmatmul.mubr.bf16.gmra.mrb[12].mxu1 %v1169_v37  ;;  %1695 = vmatmul.mubr.bf16.gmra.mrb[40].mxu0 %v1169_v37  ;;  %v6834_v5 = vadd.f32 %v6658_v57, %v1116_v20  ;;  %v5788_v20 = vld [vmem:[%s8584_s4 + $0xe4] ss:$8 sps:$4 sm:$0xff]  }
 0x276   : > { %v6819_v12 = vadd.f32 %v6661_v6, %v1119_v61  ;;  %v6822_v62 = vadd.f32 %v6658_v57, %v1118_v48  ;;  %v5785_v48 = vld [vmem:[%s8584_s4 + $0xd4] ss:$8 sps:$4 sm:$0xff]  }
 0x277   : > { %v5909_v46 = vpop.eup %5908  ;;  %2159 = vmatpush1.bf16.msra.mxu1 %v5762_v41  ;;  %v5777_v41 = vld [vmem:[%s8584_s4 + $0xb0] ss:$8 sps:$4 sm:$0xff]  }
 0x278   : > { %v1084_v49 = vmul.f32 %v5909_v46, %v6586_v34  ;;  %v1172_v44 = vpack.c.bf16 %v6819_v12, %v6816_v43  ;;  %2160 = vmatprep.subr.bf16.mxu1 %v5767_v42  ;;  %v1083_v30 = vmul.f32 %v5909_v46, %v6583_v35  ;;  %v1171_v17 = vpack.c.bf16 %v6822_v62, %v6834_v5  ;;  %v5783_v42 = vld [vmem:[%s8584_s4 + $0xd0] ss:$8 sps:$4 sm:$0xff]   ;;  %v5786_v46 = vld [vmem:[%s8584_s4 + $0xe0] ss:$8 sps:$4 sm:$0xff]  }
 0x279   : > { %v5911_v60 = vpop.eup %5910 }
 0x27a   : > { %v1086_v31 = vmul.f32 %v5911_v60, %v6598_v7  ;;  %5264 = vmatprep.mubr.msk.bf16.mxu1 %vm720_vm0, %v1172_v44  ;;  %5272 = vmatprep.mubr.msk.bf16.mxu0 %vm720_vm0, %v1172_v44  ;;  %v1121_v34 = vmul.f32 %v6653_v15, %v1084_v49  ;;  %v1085_v19 = vmul.f32 %v5911_v60, %v6595_v38  ;;  %v5789_v49 = vld [vmem:[%s8584_s4 + $0xf0] ss:$8 sps:$4 sm:$0xff]   ;;  %v5794_v44 = vld [vmem:[%s8584_s4 + $0x104] ss:$8 sps:$4 sm:$0xff]  }
 0x27b   : > { %2161 = vmatpush1.bf16.msra.mxu1 %v5765_v32  ;;  %v1120_v38 = vmul.f32 %v6650_v2, %v1083_v30  ;;  %v5791_v32 = vld [vmem:[%s8584_s4 + $0xf4] ss:$8 sps:$4 sm:$0xff]   ;;  %v1242_v30 = vsub.s32 3, %v6635_v25 }
 0x27c   : > { %v1123_v35 = vmul.f32 %v6653_v15, %v1086_v31  ;;  %v1122_v7 = vmul.f32 %v6650_v2, %v1085_v19  ;;  %2162 = vmatprep.subr.bf16.mxu1 %v5770_v55  ;;  %v6854_v58 = vadd.f32 %v6661_v6, %v1121_v34  ;;  %v1238_v55 = vsub.s32 2, %v6635_v25  ;;  %v5157_v60 = vld [vmem:[%s8585_s5 + $0x4] ss:$8 sm:$0xf] }
 0x27d   : > { %1604 = vmatmul.mubr.bf16.gmra.mrb[16].mxu1 %v1171_v17  ;;  %1705 = vmatmul.mubr.bf16.gmra.mrb[44].mxu0 %v1171_v17  ;;  %v6873_v50 = vadd.f32 %v6658_v57, %v1120_v38  ;;  %v6935_v31 = vrot.slane %v5157_v60, %v6638_v39  ;;  %v6940_v19 = vrot.slane %v5157_v60, %v6641_v40 }
 0x27e   : > { %v6857_v11 = vadd.f32 %v6661_v6, %v1123_v35  ;;  %v6860_v16 = vadd.f32 %v6658_v57, %v1122_v7  ;;  %v6937_v34 = vrot.slane %v5157_v60, %v1238_v55  ;;  %v6942_v17 = vrot.slane %v5157_v60, %v1242_v30  ;;  %v5792_v60 = vld [vmem:[%s8584_s4 + $0x100] ss:$8 sps:$4 sm:$0xff]  }
 0x27f   : > { %v5913_v13 = vpop.eup %5912  ;;  %2163 = vmatpush1.bf16.msra.mxu1 %v5768_v54  ;;  %8602 = vst [vmem:[#allocation4_spill] sm:$0xff] %v6873_v50 }
 0x280   : > { %8600 = vst [vmem:[#allocation2_spill] sm:$0xff] %v6857_v11  ;;  %8601 = vst [vmem:[#allocation3_spill] sm:$0xff] %v6860_v16  ;;  %v1088_v0 = vmul.f32 %v5913_v13, %v6624_v22  ;;  %v1174_v21 = vpack.c.bf16 %v6857_v11, %v6854_v58  ;;  %v1087_v23 = vmul.f32 %v5913_v13, %v6621_v53  ;;  %2164 = vmatprep.subr.bf16.mxu1 %v5773_v56  ;;  %v5774_v53 = vld [vmem:[%s8584_s4 + $0xa0] ss:$8 sps:$4 sm:$0xff]  }
 0x281   : > { %v1173_v22 = vpack.c.bf16 %v6860_v16, %v6873_v50 }
 0x282   : > { %5265 = vmatprep.mubr.msk.bf16.mxu1 %vm720_vm0, %v1174_v21  ;;  %5273 = vmatprep.mubr.msk.bf16.mxu0 %vm720_vm0, %v1174_v21  ;;  %v1125_v1 = vmul.f32 %v6653_v15, %v1088_v0  ;;  %v1124_v36 = vmul.f32 %v6650_v2, %v1087_v23  ;;  %v5779_v15 = vld [vmem:[%s8584_s4 + $0xb4] ss:$8 sps:$4 sm:$0xff]  }
 0x283   : > { %2165 = vmatpush1.bf16.msra.mxu1 %v5771_v59 }
 0x284   : > { %v6885_v10 = vadd.f32 %v6661_v6, %v1125_v1  ;;  %2166 = vmatprep.subr.bf16.mxu1 %v5776_v47  ;;  %v6893_v2 = vadd.f32 %v6658_v57, %v1124_v36  ;;  %v5782_v6 = vld [vmem:[%s8584_s4 + $0xc4] ss:$8 sps:$4 sm:$0xff]   ;;  %v5780_v57 = vld [vmem:[%s8584_s4 + $0xc0] ss:$8 sps:$4 sm:$0xff]  }
 0x285   : > { %1614 = vmatmul.mubr.bf16.gmra.mrb[20].mxu1 %v1173_v22  ;;  %1715 = vmatmul.mubr.bf16.gmra.mrb[48].mxu0 %v1173_v22 }
 0x286   : > { %8603 = vst [vmem:[#allocation5_spill] sm:$0xff] %v6885_v10  ;;  %v1176_v37 = vpack.c.bf16 %v6885_v10, %v6885_v10  ;;  %8604 = vst [vmem:[#allocation6_spill] sm:$0xff] %v6893_v2  ;;  %v1175_v61 = vpack.c.bf16 %v6893_v2, %v6893_v2 }
 0x287   : > { %2167 = vmatpush1.bf16.msra.mxu1 %v5774_v53 }
 0x288   : > { %5266 = vmatprep.mubr.msk.bf16.mxu1 %vm720_vm0, %v1176_v37  ;;  %5274 = vmatprep.mubr.msk.bf16.mxu0 %vm720_vm0, %v1176_v37 }
 0x289   : > { %2168 = vmatprep.subr.bf16.mxu1 %v5779_v15 }
 0x28b   : > { %2169 = vmatpush1.bf16.msra.mxu1 %v5777_v41 }
 0x28c   : > { %2170 = vmatprep.subr.bf16.mxu1 %v5782_v6 }
 0x28d   : > { %1624 = vmatmul.mubr.bf16.gmra.mrb[24].mxu1 %v1175_v61  ;;  %1725 = vmatmul.mubr.bf16.gmra.mrb[52].mxu0 %v1175_v61 }
 0x28f   : > { %2171 = vmatpush1.bf16.msra.mxu1 %v5780_v57 }
 0x290   : > { %2172 = vmatprep.subr.bf16.mxu1 %v5785_v48 }
 0x293   : > { %2173 = vmatpush1.bf16.msra.mxu1 %v5783_v42 }
 0x294   : > { %2174 = vmatprep.subr.bf16.mxu1 %v5788_v20 }
 0x297   : > { %2175 = vmatpush1.bf16.msra.mxu1 %v5786_v46 }
 0x298   : > { %2176 = vmatprep.subr.bf16.mxu1 %v5791_v32 }
 0x29b   : > { %2177 = vmatpush1.bf16.msra.mxu1 %v5789_v49 }
 0x29c   : > { %2247 = vmatprep.subr.bf16.mxu1 %v5794_v44 }
 0x330   : > { %v1565_v54 = vpop.f32.mrb[0].mxu1  ;;  %v1666_v35 = vpop.f32.mrb[28].mxu0 }
 0x331   : > { %v1566_v7 = vadd.f32 %v1565_v54, %v6935_v31  ;;  %v1667_v56 = vadd.f32 %v1666_v35, %v6937_v34  ;;  %v1567_v38 = vpop.f32.mrb[1].mxu1  ;;  %v1668_v13 = vpop.f32.mrb[29].mxu0 }
 0x332   : > { %v1568_v25 = vadd.f32 %v1567_v38, %v6940_v19  ;;  %v1669_v59 = vadd.f32 %v1668_v13, %v6942_v17  ;;  %v1569_v0 = vpop.f32.mrb[2].mxu1  ;;  %v1670_v21 = vpop.f32.mrb[30].mxu0 }
 0x333   : > { %v1570_v23 = vadd.f32 %v1569_v0, %v6935_v31  ;;  %v1671_v47 = vadd.f32 %v1670_v21, %v6937_v34  ;;  %v1571_v1 = vpop.f32.mrb[3].mxu1  ;;  %v1672_v22 = vpop.f32.mrb[31].mxu0  ;;  %v1733_v15 = vmax.f32 %v1566_v7, 0.0  ;;  %v1735_v37 = vmax.f32 %v1667_v56, 0.0  ;;  %v5797_v56 = vld [vmem:[%s8584_s4 + $0x114] ss:$8 sps:$4 sm:$0xff]  }
 0x334   : > { %v1572_v36 = vadd.f32 %v1571_v1, %v6940_v19  ;;  %v1673_v53 = vadd.f32 %v1672_v22, %v6942_v17  ;;  %v1734_v61 = vmax.f32 %v1568_v25, 0.0  ;;  %v1736_v57 = vmax.f32 %v1669_v59, 0.0 }
 0x335   : > { %v1737_v41 = vmax.f32 %v1570_v23, 0.0  ;;  %v1739_v6 = vmax.f32 %v1671_v47, 0.0 }
 0x336   : > { %v1738_v48 = vmax.f32 %v1572_v36, 0.0  ;;  %v1740_v42 = vmax.f32 %v1673_v53, 0.0  ;;  %v5795_v36 = vld [vmem:[%s8584_s4 + $0x110] ss:$8 sps:$4 sm:$0xff]  }
 0x337   : > { %v1785_v20 = vpack.c.bf16 %v1737_v41, %v1733_v15  ;;  %v6952_v46 = vpack.c.bf16 %v1739_v6, %v1735_v37  ;;  %v5800_v6 = vld [vmem:[%s8584_s4 + $0x124] ss:$8 sps:$4 sm:$0xff]  }
 0x338   : > { %v1786_v32 = vpack.c.bf16 %v1738_v48, %v1734_v61  ;;  %v6954_v49 = vpack.c.bf16 %v1740_v42, %v1736_v57  ;;  %v1575_v44 = vpop.f32.mrb[4].mxu1  ;;  %v1676_v55 = vpop.f32.mrb[32].mxu0 }
 0x339   : > { %v1576_v30 = vadd.f32 %v1575_v44, %v6935_v31  ;;  %v1677_v54 = vadd.f32 %v1676_v55, %v6937_v34  ;;  %v1577_v35 = vpop.f32.mrb[5].mxu1  ;;  %v1678_v7 = vpop.f32.mrb[33].mxu0 }
 0x33a   : > { %v1578_v38 = vadd.f32 %v1577_v35, %v6940_v19  ;;  %v1679_v13 = vadd.f32 %v1678_v7, %v6942_v17  ;;  %v1579_v25 = vpop.f32.mrb[6].mxu1  ;;  %v1680_v59 = vpop.f32.mrb[34].mxu0  ;;  %2178 = vmatprep.mubr.bf16.mxu1 %v1786_v32 }
 0x33b   : > { %v1580_v0 = vadd.f32 %v1579_v25, %v6935_v31  ;;  %v1681_v21 = vadd.f32 %v1680_v59, %v6937_v34  ;;  %v1581_v23 = vpop.f32.mrb[7].mxu1  ;;  %v1682_v47 = vpop.f32.mrb[35].mxu0  ;;  %2179 = vmatmul.mubr.bf16.vlgmr.msra.gmra.mrb[28].mxu1 %v1785_v20  ;;  %v1741_v53 = vmax.f32 %v1576_v30, 0.0  ;;  %v1743_v15 = vmax.f32 %v1677_v54, 0.0  ;;  %v5798_v54 = vld [vmem:[%s8584_s4 + $0x120] ss:$8 sps:$4 sm:$0xff]  }
 0x33c   : > { %v1582_v1 = vadd.f32 %v1581_v23, %v6940_v19  ;;  %v1683_v22 = vadd.f32 %v1682_v47, %v6942_v17  ;;  %2248 = vmatpush1.bf16.msra.mxu1 %v5792_v60  ;;  %v1742_v61 = vmax.f32 %v1578_v38, 0.0  ;;  %v1744_v57 = vmax.f32 %v1679_v13, 0.0  ;;  %v5803_v13 = vld [vmem:[%s8584_s4 + $0x134] ss:$8 sps:$4 sm:$0xff]  }
 0x33d   : > { %v1745_v37 = vmax.f32 %v1580_v0, 0.0  ;;  %v1747_v41 = vmax.f32 %v1681_v21, 0.0  ;;  %2249 = vmatprep.subr.bf16.mxu1 %v5797_v56 }
 0x33e   : > { %v1746_v48 = vmax.f32 %v1582_v1, 0.0  ;;  %v1748_v42 = vmax.f32 %v1683_v22, 0.0 }
 0x33f   : > { %v1789_v20 = vpack.c.bf16 %v1745_v37, %v1741_v53  ;;  %v6976_v32 = vpack.c.bf16 %v1747_v41, %v1743_v15  ;;  %v5801_v15 = vld [vmem:[%s8584_s4 + $0x130] ss:$8 sps:$4 sm:$0xff]  }
 0x340   : > { %v1790_v44 = vpack.c.bf16 %v1746_v48, %v1742_v61  ;;  %v6978_v55 = vpack.c.bf16 %v1748_v42, %v1744_v57  ;;  %v1585_v60 = vpop.f32.mrb[8].mxu1  ;;  %v1686_v30 = vpop.f32.mrb[36].mxu0  ;;  %2250 = vmatpush1.bf16.msra.mxu1 %v5795_v36  ;;  %v5806_v57 = vld [vmem:[%s8584_s4 + $0x144] ss:$8 sps:$4 sm:$0xff]  }
 0x341   : > { %v1586_v35 = vadd.f32 %v1585_v60, %v6935_v31  ;;  %v1687_v7 = vadd.f32 %v1686_v30, %v6937_v34  ;;  %v1587_v56 = vpop.f32.mrb[9].mxu1  ;;  %v1688_v38 = vpop.f32.mrb[37].mxu0  ;;  %2251 = vmatprep.subr.bf16.mxu1 %v5800_v6 }
 0x342   : > { %v1588_v25 = vadd.f32 %v1587_v56, %v6940_v19  ;;  %v1689_v59 = vadd.f32 %v1688_v38, %v6942_v17  ;;  %v1589_v0 = vpop.f32.mrb[10].mxu1  ;;  %v1690_v21 = vpop.f32.mrb[38].mxu0  ;;  %2188 = vmatprep.mubr.bf16.mxu1 %v1790_v44 }
 0x343   : > { %v1590_v23 = vadd.f32 %v1589_v0, %v6935_v31  ;;  %v1691_v47 = vadd.f32 %v1690_v21, %v6937_v34  ;;  %v1591_v1 = vpop.f32.mrb[11].mxu1  ;;  %v1692_v22 = vpop.f32.mrb[39].mxu0  ;;  %2189 = vmatmul.mubr.bf16.gmra.mrb[32].mxu1 %v1789_v20  ;;  %v1749_v37 = vmax.f32 %v1586_v35, 0.0  ;;  %v1751_v41 = vmax.f32 %v1687_v7, 0.0  ;;  %v5804_v7 = vld [vmem:[%s8584_s4 + $0x140] ss:$8 sps:$4 sm:$0xff]  }
 0x344   : > { %v1592_v36 = vadd.f32 %v1591_v1, %v6940_v19  ;;  %v1693_v53 = vadd.f32 %v1692_v22, %v6942_v17  ;;  %2252 = vmatpush1.bf16.msra.mxu1 %v5798_v54  ;;  %v1750_v48 = vmax.f32 %v1588_v25, 0.0  ;;  %v1752_v42 = vmax.f32 %v1689_v59, 0.0  ;;  %v5809_v21 = vld [vmem:[%s8584_s4 + $0x154] ss:$8 sps:$4 sm:$0xff]  }
 0x345   : > { %v1753_v6 = vmax.f32 %v1590_v23, 0.0  ;;  %v1755_v61 = vmax.f32 %v1691_v47, 0.0  ;;  %2253 = vmatprep.subr.bf16.mxu1 %v5803_v13 }
 0x346   : > { %v1754_v20 = vmax.f32 %v1592_v36, 0.0  ;;  %v1756_v44 = vmax.f32 %v1693_v53, 0.0 }
 0x347   : > { %v1793_v60 = vpack.c.bf16 %v1753_v6, %v1749_v37  ;;  %v7000_v30 = vpack.c.bf16 %v1755_v61, %v1751_v41  ;;  %v5807_v61 = vld [vmem:[%s8584_s4 + $0x150] ss:$8 sps:$4 sm:$0xff]  }
 0x348   : > { %v1794_v54 = vpack.c.bf16 %v1754_v20, %v1750_v48  ;;  %v7002_v56 = vpack.c.bf16 %v1756_v44, %v1752_v42  ;;  %v1595_v38 = vpop.f32.mrb[12].mxu1  ;;  %v1696_v35 = vpop.f32.mrb[40].mxu0  ;;  %2254 = vmatpush1.bf16.msra.mxu1 %v5801_v15  ;;  %v5812_v44 = vld [vmem:[%s8584_s4 + $0x164] ss:$8 sps:$4 sm:$0xff]  }
 0x349   : > { %v1596_v13 = vadd.f32 %v1595_v38, %v6935_v31  ;;  %v1697_v25 = vadd.f32 %v1696_v35, %v6937_v34  ;;  %v1597_v59 = vpop.f32.mrb[13].mxu1  ;;  %v1698_v0 = vpop.f32.mrb[41].mxu0  ;;  %2255 = vmatprep.subr.bf16.mxu1 %v5806_v57 }
 0x34a   : > { %v1598_v23 = vadd.f32 %v1597_v59, %v6940_v19  ;;  %v1699_v47 = vadd.f32 %v1698_v0, %v6942_v17  ;;  %v1599_v1 = vpop.f32.mrb[14].mxu1  ;;  %v1700_v22 = vpop.f32.mrb[42].mxu0  ;;  %2198 = vmatprep.mubr.bf16.mxu1 %v1794_v54 }
 0x34b   : > { %v1600_v36 = vadd.f32 %v1599_v1, %v6935_v31  ;;  %v1701_v53 = vadd.f32 %v1700_v22, %v6937_v34  ;;  %v1601_v15 = vpop.f32.mrb[15].mxu1  ;;  %v1702_v37 = vpop.f32.mrb[43].mxu0  ;;  %2199 = vmatmul.mubr.bf16.gmra.mrb[36].mxu1 %v1793_v60  ;;  %v1757_v57 = vmax.f32 %v1596_v13, 0.0  ;;  %v1759_v48 = vmax.f32 %v1697_v25, 0.0  ;;  %v5810_v25 = vld [vmem:[%s8584_s4 + $0x160] ss:$8 sps:$4 sm:$0xff]  }
 0x34c   : > { %v1602_v41 = vadd.f32 %v1601_v15, %v6940_v19  ;;  %v1703_v6 = vadd.f32 %v1702_v37, %v6942_v17  ;;  %2256 = vmatpush1.bf16.msra.mxu1 %v5804_v7  ;;  %v1758_v54 = vmax.f32 %v1598_v23, 0.0  ;;  %v1760_v60 = vmax.f32 %v1699_v47, 0.0 }
 0x34d   : > { %v1761_v42 = vmax.f32 %v1600_v36, 0.0  ;;  %v1763_v20 = vmax.f32 %v1701_v53, 0.0  ;;  %2257 = vmatprep.subr.bf16.mxu1 %v5809_v21  ;;  %v5815_v53 = vld [vmem:[%s8584_s4 + $0x174] ss:$8 sps:$4 sm:$0xff]  }
 0x34e   : > { %v1762_v38 = vmax.f32 %v1602_v41, 0.0  ;;  %v1764_v35 = vmax.f32 %v1703_v6, 0.0 }
 0x34f   : > { %v1797_v59 = vpack.c.bf16 %v1761_v42, %v1757_v57  ;;  %v7024_v0 = vpack.c.bf16 %v1763_v20, %v1759_v48 }
 0x350   : > { %v1798_v7 = vpack.c.bf16 %v1762_v38, %v1758_v54  ;;  %v7026_v1 = vpack.c.bf16 %v1764_v35, %v1760_v60  ;;  %v1605_v22 = vpop.f32.mrb[16].mxu1  ;;  %v1706_v13 = vpop.f32.mrb[44].mxu0  ;;  %2258 = vmatpush1.bf16.msra.mxu1 %v5807_v61  ;;  %v5813_v54 = vld [vmem:[%s8584_s4 + $0x170] ss:$8 sps:$4 sm:$0xff]  }
 0x351   : > { %v1606_v21 = vadd.f32 %v1605_v22, %v6935_v31  ;;  %v1707_v23 = vadd.f32 %v1706_v13, %v6937_v34  ;;  %v1607_v47 = vpop.f32.mrb[17].mxu1  ;;  %v1708_v36 = vpop.f32.mrb[45].mxu0  ;;  %2259 = vmatprep.subr.bf16.mxu1 %v5812_v44  ;;  %v5818_v22 = vld [vmem:[%s8584_s4 + $0x184] ss:$8 sps:$4 sm:$0xff]  }
 0x352   : > { %v1608_v15 = vadd.f32 %v1607_v47, %v6940_v19  ;;  %v1709_v37 = vadd.f32 %v1708_v36, %v6942_v17  ;;  %v1609_v41 = vpop.f32.mrb[18].mxu1  ;;  %v1710_v6 = vpop.f32.mrb[46].mxu0  ;;  %2208 = vmatprep.mubr.bf16.mxu1 %v1798_v7 }
 0x353   : > { %v1610_v61 = vadd.f32 %v1609_v41, %v6935_v31  ;;  %v1711_v57 = vadd.f32 %v1710_v6, %v6937_v34  ;;  %v1611_v48 = vpop.f32.mrb[19].mxu1  ;;  %v1712_v42 = vpop.f32.mrb[47].mxu0  ;;  %2209 = vmatmul.mubr.bf16.gmra.mrb[40].mxu1 %v1797_v59  ;;  %v1765_v60 = vmax.f32 %v1606_v21, 0.0  ;;  %v1767_v38 = vmax.f32 %v1707_v23, 0.0  ;;  %v5816_v21 = vld [vmem:[%s8584_s4 + $0x180] ss:$8 sps:$4 sm:$0xff]  }
 0x354   : > { %v1612_v20 = vadd.f32 %v1611_v48, %v6940_v19  ;;  %v1713_v44 = vadd.f32 %v1712_v42, %v6942_v17  ;;  %2260 = vmatpush1.bf16.msra.mxu1 %v5810_v25  ;;  %v1766_v13 = vmax.f32 %v1608_v15, 0.0  ;;  %v1768_v59 = vmax.f32 %v1709_v37, 0.0 }
 0x355   : > { %v1769_v35 = vmax.f32 %v1610_v61, 0.0  ;;  %v1771_v7 = vmax.f32 %v1711_v57, 0.0  ;;  %2261 = vmatprep.subr.bf16.mxu1 %v5815_v53 }
 0x356   : > { %v1770_v47 = vmax.f32 %v1612_v20, 0.0  ;;  %v1772_v36 = vmax.f32 %v1713_v44, 0.0 }
 0x357   : > { %v1801_v41 = vpack.c.bf16 %v1769_v35, %v1765_v60  ;;  %v7048_v6 = vpack.c.bf16 %v1771_v7, %v1767_v38 }
 0x358   : > { %v1802_v25 = vpack.c.bf16 %v1770_v47, %v1766_v13  ;;  %v1804_v48 = vpack.c.bf16 %v1772_v36, %v1768_v59  ;;  %v1615_v42 = vpop.f32.mrb[20].mxu1  ;;  %v1716_v10 = vpop.f32.mrb[48].mxu0  ;;  %2262 = vmatpush1.bf16.msra.mxu1 %v5813_v54 }
 0x359   : > { %v1616_v23 = vadd.f32 %v1615_v42, %v6935_v31  ;;  %v1717_v53 = vadd.f32 %v1716_v10, %v6937_v34  ;;  %v1617_v15 = vpop.f32.mrb[21].mxu1  ;;  %v1718_v37 = vpop.f32.mrb[49].mxu0  ;;  %2263 = vmatprep.subr.bf16.mxu1 %v5818_v22 }
 0x35a   : > { %v1618_v61 = vadd.f32 %v1617_v15, %v6940_v19  ;;  %v1719_v57 = vadd.f32 %v1718_v37, %v6942_v17  ;;  %v1619_v20 = vpop.f32.mrb[22].mxu1  ;;  %v1720_v44 = vpop.f32.mrb[50].mxu0  ;;  %2218 = vmatprep.mubr.bf16.mxu1 %v1802_v25 }
 0x35b   : > { %v1620_v54 = vadd.f32 %v1619_v20, %v6935_v31  ;;  %v1721_v60 = vadd.f32 %v1720_v44, %v6937_v34  ;;  %v1621_v38 = vpop.f32.mrb[23].mxu1  ;;  %v1722_v35 = vpop.f32.mrb[51].mxu0  ;;  %2219 = vmatmul.mubr.bf16.gmra.mrb[44].mxu1 %v1801_v41  ;;  %v1773_v22 = vmax.f32 %v1616_v23, 0.0  ;;  %v1775_v13 = vmax.f32 %v1717_v53, 0.0 }
 0x35c   : > { %v1622_v7 = vadd.f32 %v1621_v38, %v6940_v19  ;;  %v1723_v10 = vadd.f32 %v1722_v35, %v6942_v17  ;;  %2264 = vmatpush1.bf16.msra.mxu1 %v5816_v21  ;;  %v1774_v36 = vmax.f32 %v1618_v61, 0.0  ;;  %v1776_v42 = vmax.f32 %v1719_v57, 0.0 }
 0x35d   : > { %v1777_v59 = vmax.f32 %v1620_v54, 0.0  ;;  %v1779_v47 = vmax.f32 %v1721_v60, 0.0 }
 0x35e   : > { %v1778_v15 = vmax.f32 %v1622_v7, 0.0  ;;  %v1780_v25 = vmax.f32 %v1723_v10, 0.0 }
 0x35f   : > { %v1805_v37 = vpack.c.bf16 %v1777_v59, %v1773_v22  ;;  %v1807_v20 = vpack.c.bf16 %v1779_v47, %v1775_v13 }
 0x360   : > { %v1806_v2 = vpack.c.bf16 %v1778_v15, %v1774_v36  ;;  %v1808_v44 = vpack.c.bf16 %v1780_v25, %v1776_v42  ;;  %v1625_v16 = vpop.f32.mrb[24].mxu1  ;;  %v1726_v11 = vpop.f32.mrb[52].mxu0 }
 0x361   : > { %v1626_v41 = vadd.f32 %v1625_v16, %v6935_v31  ;;  %v1627_v38 = vpop.f32.mrb[25].mxu1  ;;  %v1728_v50 = vpop.f32.mrb[53].mxu0  ;;  %v1727_v31 = vadd.f32 %v1726_v11, %v6937_v34 }
 0x362   : > { %v1628_v21 = vadd.f32 %v1627_v38, %v6940_v19  ;;  %v1629_v23 = vpop.f32.mrb[26].mxu1  ;;  %v1730_v53 = vpop.f32.mrb[54].mxu0  ;;  %2228 = vmatprep.mubr.bf16.mxu1 %v1806_v2  ;;  %v1729_v16 = vadd.f32 %v1728_v50, %v6942_v17  ;;  %v5158_v17 = vld [vmem:[%s8585_s5 + $0x5] ss:$8 sm:$0x3] }
 0x363   : > { %v1630_v54 = vpop.f32.mrb[27].mxu1  ;;  %v1731_v61 = vpop.f32.mrb[55].mxu0  ;;  %2229 = vmatmul.mubr.bf16.gmra.mrb[48].mxu1 %v1805_v37  ;;  %v1781_v60 = vmax.f32 %v1626_v41, 0.0  ;;  %v7092_v11 = vrot.slane %v5158_v17, %v6641_v40 }
 0x364   : > { %v1782_v57 = vmax.f32 %v1628_v21, 0.0  ;;  %v1784_v2 = vmax.f32 %v1729_v16, 0.0 }
 0x365   : > { %v1809_v7 = vpack.c.bf16 %v1781_v60, %v1781_v60 }
 0x366   : > { %v1810_v35 = vpack.c.bf16 %v1782_v57, %v1782_v57  ;;  %v1812_v19 = vpack.c.bf16 %v1784_v2, %v1784_v2 }
 0x368   : > { %2238 = vmatprep.mubr.bf16.mxu1 %v1810_v35 }
 0x36b   : > { %2239 = vmatmul.mubr.bf16.gmra.mrb[52].mxu1 %v1809_v7 }
 0x36c   : > { %5325 = vmatprep.mubr.msk.bf16.mxu1 %vm2124_vm4, %v6954_v49 }
 0x373   : > { %2280 = vmatmul.mubr.bf16.vlgmr.msra.gmra.mrb[28].mxu1 %v6952_v46  ;;  %v1783_v46 = vmax.f32 %v1727_v31, 0.0 }
 0x374   : > { %5326 = vmatprep.mubr.msk.bf16.mxu1 %vm2124_vm4, %v6978_v55 }
 0x375   : > { %v1811_v49 = vpack.c.bf16 %v1783_v46, %v1783_v46 }
 0x37b   : > { %2290 = vmatmul.mubr.bf16.gmra.mrb[32].mxu1 %v6976_v32 }
 0x37c   : > { %5327 = vmatprep.mubr.msk.bf16.mxu1 %vm2124_vm4, %v7002_v56  ;;  %v7089_v56 = vrot.slane %v5158_v17, %v6638_v39 }
 0x383   : > { %2300 = vmatmul.mubr.bf16.gmra.mrb[36].mxu1 %v7000_v30 }
 0x384   : > { %5328 = vmatprep.mubr.msk.bf16.mxu1 %vm2124_vm4, %v7026_v1 }
 0x38b   : > { %2310 = vmatmul.mubr.bf16.gmra.mrb[40].mxu1 %v7024_v0 }
 0x38c   : > { %5329 = vmatprep.mubr.msk.bf16.mxu1 %vm2124_vm4, %v1804_v48 }
 0x393   : > { %2320 = vmatmul.mubr.bf16.gmra.mrb[44].mxu1 %v7048_v6 }
 0x394   : > { %5330 = vmatprep.mubr.msk.bf16.mxu1 %vm2124_vm4, %v1808_v44 }
 0x39b   : > { %2330 = vmatmul.mubr.bf16.gmra.mrb[48].mxu1 %v1807_v20 }
 0x39c   : > { %5331 = vmatprep.mubr.msk.bf16.mxu1 %vm2124_vm4, %v1812_v19 }
 0x3a3   : > { %2340 = vmatmul.mubr.bf16.gmra.mrb[56].mxu1 %v1811_v49 }
 0x43e   : > { %v7081_v32 = vpop.f32.mrb[52].mxu1 }
 0x43f   : > { %v7083_v55 = vpop.f32.mrb[53].mxu1 }
 0x440   : > { %v2244_v30 = vpop.f32.mrb[54].mxu1 }
 0x441   : > { %v2245_v50 = vpop.f32.mrb[55].mxu1 }
 0x446   : > { %v2281_v34 = vpop.f32.mrb[28].mxu1 }
 0x447   : > { %v5551_v0 = vadd.f32 %v2281_v34, %v7089_v56  ;;  %v2283_v1 = vpop.f32.mrb[29].mxu1 }
 0x448   : > { %v5552_v6 = vadd.f32 %v2283_v1, %v7092_v11  ;;  %v2285_v48 = vpop.f32.mrb[30].mxu1 }
 0x449   : > { %v5553_v10 = vadd.f32 %v2285_v48, %v7089_v56  ;;  %v2287_v22 = vpop.f32.mrb[31].mxu1  ;;  %v7102_v47 = vadd.f32 %v5551_v0, %v6673_v28 }
 0x44a   : > { %v7098_v13 = vadd.f32 %v5552_v6, %v6670_v26  ;;  %v5554_v59 = vadd.f32 %v2287_v22, %v7092_v11 }
 0x44b   : > { %v7110_v15 = vadd.f32 %v5553_v10, %v6680_v27 }
 0x44c   : > { %v7105_v36 = vadd.f32 %v5554_v59, %v6677_v29  ;;  %v2374_v42 = vsel %vm720_vm0, %v7098_v13, 0.0 }
 0x44d   : > { %v2375_v25 = vadd.f32 %v2374_v42, %v7102_v47 }
 0x44e   : > { %v2291_v37 = vpop.f32.mrb[32].mxu1  ;;  %v2378_v26 = vsel %vm720_vm0, %v7105_v36, 0.0 }
 0x44f   : > { %v5555_v20 = vadd.f32 %v2291_v37, %v7089_v56  ;;  %v2293_v44 = vpop.f32.mrb[33].mxu1  ;;  %2376 = vadd.xlane.f32.xlu0 %v2375_v25  ;;  %v2379_v28 = vadd.f32 %v2378_v26, %v7110_v15 }
 0x450   : > { %v5556_v29 = vadd.f32 %v2293_v44, %v7092_v11  ;;  %v2295_v41 = vpop.f32.mrb[34].mxu1 }
 0x451   : > { %v5557_v38 = vadd.f32 %v2295_v41, %v7089_v56  ;;  %v2297_v21 = vpop.f32.mrb[35].mxu1  ;;  %2380 = vadd.xlane.f32.xlu1 %v2379_v28  ;;  %v7124_v53 = vadd.f32 %v5555_v20, %v6715_v18 }
 0x452   : > { %v7120_v27 = vadd.f32 %v5556_v29, %v6705_v51  ;;  %v5558_v23 = vadd.f32 %v2297_v21, %v7092_v11 }
 0x453   : > { %v7132_v57 = vadd.f32 %v5557_v38, %v6718_v3 }
 0x454   : > { %v7127_v54 = vadd.f32 %v5558_v23, %v6712_v14  ;;  %v2382_v61 = vsel %vm720_vm0, %v7120_v27, 0.0 }
 0x455   : > { %v2383_v60 = vadd.f32 %v2382_v61, %v7124_v53 }
 0x456   : > { %v2301_v35 = vpop.f32.mrb[36].mxu1  ;;  %v2386_v51 = vsel %vm720_vm0, %v7127_v54, 0.0 }
 0x457   : > { %v5559_v7 = vadd.f32 %v2301_v35, %v7089_v56  ;;  %v2303_v16 = vpop.f32.mrb[37].mxu1  ;;  %2384 = vadd.xlane.f32.xlu0 %v2383_v60  ;;  %v2387_v18 = vadd.f32 %v2386_v51, %v7132_v57 }
 0x458   : > { %v5560_v14 = vadd.f32 %v2303_v16, %v7092_v11  ;;  %v2305_v2 = vpop.f32.mrb[38].mxu1 }
 0x459   : > { %v5561_v31 = vadd.f32 %v2305_v2, %v7089_v56  ;;  %v2307_v19 = vpop.f32.mrb[39].mxu1  ;;  %2388 = vadd.xlane.f32.xlu1 %v2387_v18  ;;  %v7146_v49 = vadd.f32 %v5559_v7, %v6758_v45 }
 0x45a   : > { %v7142_v3 = vadd.f32 %v5560_v14, %v6740_v63  ;;  %v5562_v46 = vadd.f32 %v2307_v19, %v7092_v11 }
 0x45b   : > { %v7154_v17 = vadd.f32 %v5561_v31, %v6746_v33 }
 0x45c   : > { %v7149_v30 = vadd.f32 %v5562_v46, %v6743_v52  ;;  %v2390_v50 = vsel %vm720_vm0, %v7142_v3, 0.0 }
 0x45d   : > { %v2391_v34 = vadd.f32 %v2390_v50, %v7146_v49  ;;  %v8605_v50 = vld [vmem:[#allocation4_spill] sm:$0xff] }
 0x45e   : > { %v2311_v0 = vpop.f32.mrb[40].mxu1  ;;  %v2394_v63 = vsel %vm720_vm0, %v7149_v30, 0.0 }
 0x45f   : > { %v5563_v1 = vadd.f32 %v2311_v0, %v7089_v56  ;;  %v2313_v6 = vpop.f32.mrb[41].mxu1  ;;  %2392 = vadd.xlane.f32.xlu0 %v2391_v34  ;;  %v2395_v45 = vadd.f32 %v2394_v63, %v7154_v17  ;;  %v8606_v0 = vld [vmem:[#allocation2_spill] sm:$0xff] }
 0x460   : > { %v5564_v52 = vadd.f32 %v2313_v6, %v7092_v11  ;;  %v2315_v48 = vpop.f32.mrb[42].mxu1  ;;  %v2241_v6 = vadd.f32 %v7081_v32, %v7089_v56  ;;  %v8608_v32 = vld [vmem:[#allocation6_spill] sm:$0xff] }
 0x461   : > { %v5565_v10 = vadd.f32 %v2315_v48, %v7089_v56  ;;  %v2317_v22 = vpop.f32.mrb[43].mxu1  ;;  %2396 = vadd.xlane.f32.xlu1 %v2395_v45  ;;  %v7168_v42 = vadd.f32 %v5563_v1, %v6796_v24  ;;  %v8607_v45 = vld [vmem:[#allocation3_spill] sm:$0xff]  ;;  %v2243_v48 = vadd.f32 %v7083_v55, %v7092_v11 }
 0x462   : > { %v7164_v33 = vadd.f32 %v5564_v52, %v6778_v8  ;;  %v5566_v59 = vadd.f32 %v2317_v22, %v7092_v11 }
 0x463   : > { %v7176_v26 = vadd.f32 %v5565_v10, %v6784_v9 }
 0x464   : > { %v7171_v25 = vadd.f32 %v5566_v59, %v6781_v4  ;;  %v2398_v37 = vsel %vm720_vm0, %v7164_v33, 0.0 }
 0x465   : > { %v2399_v20 = vadd.f32 %v2398_v37, %v7168_v42 }
 0x466   : > { %v2321_v44 = vpop.f32.mrb[44].mxu1  ;;  %v2402_v8 = vsel %vm720_vm0, %v7171_v25, 0.0 }
 0x467   : > { %v5567_v28 = vadd.f32 %v2321_v44, %v7089_v56  ;;  %v2323_v29 = vpop.f32.mrb[45].mxu1  ;;  %2400 = vadd.xlane.f32.xlu0 %v2399_v20  ;;  %v2403_v24 = vadd.f32 %v2402_v8, %v7176_v26 }
 0x468   : > { %v5568_v4 = vadd.f32 %v2323_v29, %v7092_v11  ;;  %v2325_v41 = vpop.f32.mrb[46].mxu1  ;;  %v8609_v29 = vld [vmem:[#allocation5_spill] sm:$0xff] }
 0x469   : > { %v5569_v38 = vadd.f32 %v2325_v41, %v7089_v56  ;;  %v2327_v21 = vpop.f32.mrb[47].mxu1  ;;  %2404 = vadd.xlane.f32.xlu1 %v2403_v24  ;;  %v7190_v61 = vadd.f32 %v5567_v28, %v6834_v5  ;;  %v5819_v41 = vld [vmem:[%s8586_s6] ss:$12 sps:$4 sm:$0xff]  }
 0x46a   : > { %v7186_v9 = vadd.f32 %v5568_v4, %v6816_v43  ;;  %v5570_v23 = vadd.f32 %v2327_v21, %v7092_v11  ;;  %v5824_v21 = vld [vmem:[%s8586_s6 + $0x1c] ss:$12 sps:$4 sm:$0xff]  }
 0x46b   : > { %v7198_v51 = vadd.f32 %v5569_v38, %v6822_v62  ;;  %v5821_v38 = vld [vmem:[%s8586_s6 + $0x4] ss:$12 sps:$4 sm:$0xff]  }
 0x46c   : > { %v7193_v60 = vadd.f32 %v5570_v23, %v6819_v12  ;;  %v2406_v35 = vsel %vm720_vm0, %v7186_v9, 0.0  ;;  %3004 = vmatprep.subr.bf16.mxu0 %v5821_v38  ;;  %v5822_v23 = vld [vmem:[%s8586_s6 + $0x18] ss:$12 sps:$4 sm:$0xff]  }
 0x46d   : > { %v2407_v7 = vadd.f32 %v2406_v35, %v7190_v61  ;;  %3005 = vmatpush1.bf16.msra.mxu0 %v5819_v41  ;;  %v5827_v35 = vld [vmem:[%s8586_s6 + $0x34] ss:$12 sps:$4 sm:$0xff]  }
 0x46e   : > { %v2331_v16 = vpop.f32.mrb[48].mxu1  ;;  %v2410_v43 = vsel %vm720_vm0, %v7193_v60, 0.0  ;;  %3006 = vmatprep.subr.bf16.mxu0 %v5824_v21 }
 0x46f   : > { %v5571_v18 = vadd.f32 %v2331_v16, %v7089_v56  ;;  %v2333_v14 = vpop.f32.mrb[49].mxu1  ;;  %2408 = vadd.xlane.f32.xlu0 %v2407_v7  ;;  %v2411_v5 = vadd.f32 %v2410_v43, %v7198_v51  ;;  %v5825_v7 = vld [vmem:[%s8586_s6 + $0x30] ss:$12 sps:$4 sm:$0xff]   ;;  %v5830_v16 = vld [vmem:[%s8586_s6 + $0x4c] ss:$12 sps:$4 sm:$0xff]  }
 0x470   : > { %v5572_v12 = vadd.f32 %v2333_v14, %v7092_v11  ;;  %v2335_v2 = vpop.f32.mrb[50].mxu1  ;;  %v5828_v43 = vld [vmem:[%s8586_s6 + $0x48] ss:$12 sps:$4 sm:$0xff]   ;;  %v5831_v14 = vld [vmem:[%s8586_s6 + $0x60] ss:$12 sps:$4 sm:$0xff]  }
 0x471   : > { %v5573_v31 = vadd.f32 %v2335_v2, %v7089_v56  ;;  %v2337_v19 = vpop.f32.mrb[51].mxu1  ;;  %2412 = vadd.xlane.f32.xlu1 %v2411_v5  ;;  %v7212_v34 = vadd.f32 %v5571_v18, %v8605_v50  ;;  %3007 = vmatpush1.bf16.msra.mxu0 %v5822_v23  ;;  %v5833_v18 = vld [vmem:[%s8586_s6 + $0x64] ss:$12 sps:$4 sm:$0xff]   ;;  %v5836_v5 = vld [vmem:[%s8586_s6 + $0x7c] ss:$12 sps:$4 sm:$0xff]  }
 0x472   : > { %v7208_v62 = vadd.f32 %v5572_v12, %v6854_v58  ;;  %v5574_v46 = vadd.f32 %v2337_v19, %v7092_v11  ;;  %3008 = vmatprep.subr.bf16.mxu0 %v5827_v35  ;;  %v5834_v12 = vld [vmem:[%s8586_s6 + $0x78] ss:$12 sps:$4 sm:$0xff]   ;;  %v5839_v2 = vld [vmem:[%s8586_s6 + $0x94] ss:$12 sps:$4 sm:$0xff]  }
 0x473   : > { %v7222_v52 = vadd.f32 %v5573_v31, %v8607_v45  ;;  %v5837_v31 = vld [vmem:[%s8586_s6 + $0x90] ss:$12 sps:$4 sm:$0xff]  }
 0x474   : > { %v7215_v63 = vadd.f32 %v5574_v46, %v8606_v0  ;;  %v2414_v1 = vsel %vm720_vm0, %v7208_v62, 0.0 }
 0x475   : > { %v2415_v58 = vadd.f32 %v2414_v1, %v7212_v34  ;;  %3009 = vmatpush1.bf16.msra.mxu0 %v5825_v7 }
 0x476   : > { %v2341_v10 = vpop.f32.mrb[56].mxu1  ;;  %v2418_v22 = vsel %vm720_vm0, %v7215_v63, 0.0  ;;  %3010 = vmatprep.subr.bf16.mxu0 %v5830_v16 }
 0x477   : > { %v2342_v59 = vadd.f32 %v2341_v10, %v2241_v6  ;;  %v2343_v37 = vpop.f32.mrb[57].mxu1  ;;  %2416 = vadd.xlane.f32.xlu0 %v2415_v58  ;;  %v2419_v20 = vadd.f32 %v2418_v22, %v7222_v52 }
 0x478   : > { %v2344_v44 = vadd.f32 %v2343_v37, %v2243_v48  ;;  %v2345_v8 = vpop.f32.mrb[58].mxu1 }
 0x479   : > { %v7231_v56 = vadd.f32 %v2342_v59, %v8608_v32  ;;  %v2346_v28 = vpop.f32.mrb[59].mxu1  ;;  %2420 = vadd.xlane.f32.xlu1 %v2419_v20  ;;  %3011 = vmatpush1.bf16.msra.mxu0 %v5828_v43 }
 0x47a   : > { %v7234_v24 = vadd.f32 %v2344_v44, %v8609_v29  ;;  %3012 = vmatprep.subr.bf16.mxu0 %v5833_v18 }
 0x47b   : > { %v2422_v55 = vsel %vm898_vm2, %v7231_v56, 0.0 }
 0x47c   : > { %v2423_v11 = vsel %vm900_vm3, %v7234_v24, 0.0 }
 0x47d   : > { %v2424_v4 = vadd.f32 %v2423_v11, %v2422_v55  ;;  %3013 = vmatpush1.bf16.msra.mxu0 %v5831_v14 }
 0x47e   : > { %3014 = vmatprep.subr.bf16.mxu0 %v5836_v5 }
 0x47f   : > { %2425 = vadd.xlane.f32.xlu0 %v2424_v4 }
 0x481   : > { %3015 = vmatpush1.bf16.msra.mxu0 %v5834_v12 }
 0x482   : > { %3016 = vmatprep.subr.bf16.mxu0 %v5839_v2 }
 0x485   : > { %3017 = vmatpush1.bf16.msra.mxu0 %v5837_v31 }
 0x4dc   : > { %v2377_v19 = vpop.xlane.xlu0 %2376 }
 0x4dd   : > { %v2427_v46 = vmul.f32 0.005, %v2377_v19 }
 0x4de   : > { %v2381_v50 = vpop.xlane.xlu1 %2380 }
 0x4df   : > { %v7283_v0 = vsub.f32 %v7102_v47, %v2427_v46  ;;  %v7286_v1 = vsub.f32 %v7098_v13, %v2427_v46  ;;  %v2428_v6 = vmul.f32 0.005, %v2381_v50  ;;  %v5842_v46 = vld [vmem:[%s8586_s6 + $0xac] ss:$12 sps:$4 sm:$0xff]  }
 0x4e0   : > { %3018 = vmatprep.subr.bf16.mxu0 %v5842_v46 }
 0x4e1   : > { %v7289_v45 = vsub.f32 %v7110_v15, %v2428_v6  ;;  %v7292_v58 = vsub.f32 %v7105_v36, %v2428_v6  ;;  %v2466_v48 = vmul.f32 %v7283_v0, %v7283_v0  ;;  %v2467_v10 = vmul.f32 %v7286_v1, %v7286_v1 }
 0x4e3   : > { %v2492_v22 = vsel %vm720_vm0, %v2467_v10, 0.0  ;;  %v2468_v47 = vmul.f32 %v7289_v45, %v7289_v45  ;;  %v2469_v13 = vmul.f32 %v7292_v58, %v7292_v58 }
 0x4e4   : > { %v2385_v59 = vpop.xlane.xlu0 %2384  ;;  %v2493_v15 = vadd.f32 %v2492_v22, %v2466_v48  ;;  %v5840_v48 = vld [vmem:[%s8586_s6 + $0xa8] ss:$12 sps:$4 sm:$0xff]  }
 0x4e5   : > { %v2429_v37 = vmul.f32 0.005, %v2385_v59  ;;  %v2496_v36 = vsel %vm720_vm0, %v2469_v13, 0.0  ;;  %3019 = vmatpush1.bf16.msra.mxu0 %v5840_v48  ;;  %v2772_v48 = vld [vmem:[%s8586_s6 + $0x120] sm:$0xff] }
 0x4e6   : > { %v2389_v20 = vpop.xlane.xlu1 %2388  ;;  %2494 = vadd.xlane.f32.xlu1 %v2493_v15  ;;  %v2497_v44 = vadd.f32 %v2496_v36, %v2468_v47 }
 0x4e7   : > { %v7305_v8 = vsub.f32 %v7124_v53, %v2429_v37  ;;  %v7308_v32 = vsub.f32 %v7120_v27, %v2429_v37  ;;  %v2430_v28 = vmul.f32 0.005, %v2389_v20  ;;  %v5843_v37 = vld [vmem:[%s8586_s6 + $0xc0] ss:$12 sps:$4 sm:$0xff]  }
 0x4e8   : > { %2498 = vadd.xlane.f32.xlu0 %v2497_v44 }
 0x4e9   : > { %v7311_v29 = vsub.f32 %v7132_v57, %v2430_v28  ;;  %v7314_v55 = vsub.f32 %v7127_v54, %v2430_v28  ;;  %v2470_v11 = vmul.f32 %v7305_v8, %v7305_v8  ;;  %v2471_v4 = vmul.f32 %v7308_v32, %v7308_v32 }
 0x4eb   : > { %v2500_v53 = vsel %vm720_vm0, %v2471_v4, 0.0  ;;  %v2472_v27 = vmul.f32 %v7311_v29, %v7311_v29  ;;  %v2473_v41 = vmul.f32 %v7314_v55, %v7314_v55  ;;  %v5848_v4 = vld [vmem:[%s8586_s6 + $0xdc] ss:$12 sps:$4 sm:$0xff]  }
 0x4ec   : > { %v2393_v38 = vpop.xlane.xlu0 %2392  ;;  %v2501_v57 = vadd.f32 %v2500_v53, %v2470_v11 }
 0x4ed   : > { %v2431_v21 = vmul.f32 0.005, %v2393_v38  ;;  %v2504_v54 = vsel %vm720_vm0, %v2473_v41, 0.0  ;;  %v5846_v41 = vld [vmem:[%s8586_s6 + $0xd8] ss:$12 sps:$4 sm:$0xff]  }
 0x4ee   : > { %v2397_v23 = vpop.xlane.xlu1 %2396  ;;  %2502 = vadd.xlane.f32.xlu1 %v2501_v57  ;;  %v2505_v35 = vadd.f32 %v2504_v54, %v2472_v27 }
 0x4ef   : > { %v7327_v7 = vsub.f32 %v7146_v49, %v2431_v21  ;;  %v7330_v16 = vsub.f32 %v7142_v3, %v2431_v21  ;;  %v2432_v43 = vmul.f32 0.005, %v2397_v23 }
 0x4f0   : > { %2506 = vadd.xlane.f32.xlu0 %v2505_v35 }
 0x4f1   : > { %v7333_v18 = vsub.f32 %v7154_v17, %v2432_v43  ;;  %v7336_v14 = vsub.f32 %v7149_v30, %v2432_v43  ;;  %v2474_v5 = vmul.f32 %v7327_v7, %v7327_v7  ;;  %v2475_v12 = vmul.f32 %v7330_v16, %v7330_v16  ;;  %v5849_v43 = vld [vmem:[%s8586_s6 + $0xf0] ss:$12 sps:$4 sm:$0xff]  }
 0x4f3   : > { %v2508_v49 = vsel %vm720_vm0, %v2475_v12, 0.0  ;;  %v2476_v3 = vmul.f32 %v7333_v18, %v7333_v18  ;;  %v2477_v2 = vmul.f32 %v7336_v14, %v7336_v14 }
 0x4f4   : > { %v2401_v31 = vpop.xlane.xlu0 %2400  ;;  %v2509_v17 = vadd.f32 %v2508_v49, %v2474_v5 }
 0x4f5   : > { %v2433_v19 = vmul.f32 0.005, %v2401_v31  ;;  %v2512_v30 = vsel %vm720_vm0, %v2477_v2, 0.0  ;;  %v5854_v31 = vld [vmem:[%s8586_s6 + $0x10c] ss:$12 sps:$4 sm:$0xff]  }
 0x4f6   : > { %v2405_v50 = vpop.xlane.xlu1 %2404  ;;  %2510 = vadd.xlane.f32.xlu1 %v2509_v17  ;;  %v2513_v6 = vadd.f32 %v2512_v30, %v2476_v3  ;;  %v5852_v30 = vld [vmem:[%s8586_s6 + $0x108] ss:$12 sps:$4 sm:$0xff]  }
 0x4f7   : > { %v7355_v10 = vsub.f32 %v7168_v42, %v2433_v19  ;;  %v7358_v22 = vsub.f32 %v7164_v33, %v2433_v19  ;;  %v2434_v47 = vmul.f32 0.005, %v2405_v50  ;;  %v5845_v33 = vld [vmem:[%s8586_s6 + $0xc4] ss:$12 sps:$4 sm:$0xff]  }
 0x4f8   : > { %2514 = vadd.xlane.f32.xlu0 %v2513_v6  ;;  %3020 = vmatprep.subr.bf16.mxu0 %v5845_v33  ;;  %v5368_v33 = vcombine.low %v2772_v48, %v2772_v48 }
 0x4f9   : > { %v7361_v13 = vsub.f32 %v7176_v26, %v2434_v47  ;;  %v7364_v59 = vsub.f32 %v7171_v25, %v2434_v47  ;;  %v2478_v15 = vmul.f32 %v7355_v10, %v7355_v10  ;;  %v2479_v42 = vmul.f32 %v7358_v22, %v7358_v22  ;;  %3021 = vmatpush1.bf16.msra.mxu0 %v5843_v37 }
 0x4fa   : > { %3022 = vmatprep.subr.bf16.mxu0 %v5848_v4 }
 0x4fb   : > { %v2516_v26 = vsel %vm720_vm0, %v2479_v42, 0.0  ;;  %v2480_v25 = vmul.f32 %v7361_v13, %v7361_v13  ;;  %v2481_v36 = vmul.f32 %v7364_v59, %v7364_v59  ;;  %v5369_v42 = vcombine.high %v2772_v48, %v2772_v48 }
 0x4fc   : > { %v2409_v20 = vpop.xlane.xlu0 %2408  ;;  %v2517_v44 = vadd.f32 %v2516_v26, %v2478_v15 }
 0x4fd   : > { %v2435_v28 = vmul.f32 0.005, %v2409_v20  ;;  %v2520_v11 = vsel %vm720_vm0, %v2481_v36, 0.0  ;;  %3023 = vmatpush1.bf16.msra.mxu0 %v5846_v41 }
 0x4fe   : > { %v2413_v53 = vpop.xlane.xlu1 %2412  ;;  %2518 = vadd.xlane.f32.xlu1 %v2517_v44  ;;  %v2521_v27 = vadd.f32 %v2520_v11, %v2480_v25 }
 0x4ff   : > { %v7389_v38 = vsub.f32 %v7190_v61, %v2435_v28  ;;  %v7392_v57 = vsub.f32 %v7186_v9, %v2435_v28  ;;  %v2436_v21 = vmul.f32 0.005, %v2413_v53  ;;  %v5851_v9 = vld [vmem:[%s8586_s6 + $0xf4] ss:$12 sps:$4 sm:$0xff]  }
 0x500   : > { %2522 = vadd.xlane.f32.xlu0 %v2521_v27  ;;  %3024 = vmatprep.subr.bf16.mxu0 %v5851_v9 }
 0x501   : > { %v7395_v54 = vsub.f32 %v7198_v51, %v2436_v21  ;;  %v7398_v23 = vsub.f32 %v7193_v60, %v2436_v21  ;;  %v2482_v35 = vmul.f32 %v7389_v38, %v7389_v38  ;;  %v2483_v61 = vmul.f32 %v7392_v57, %v7392_v57  ;;  %3025 = vmatpush1.bf16.msra.mxu0 %v5849_v43 }
 0x502   : > { %3026 = vmatprep.subr.bf16.mxu0 %v5854_v31 }
 0x503   : > { %v2524_v51 = vsel %vm720_vm0, %v2483_v61, 0.0  ;;  %v2484_v60 = vmul.f32 %v7395_v54, %v7395_v54  ;;  %v2485_v5 = vmul.f32 %v7398_v23, %v7398_v23 }
 0x504   : > { %v2417_v12 = vpop.xlane.xlu0 %2416  ;;  %v2525_v49 = vadd.f32 %v2524_v51, %v2482_v35  ;;  %v8598_v35 = vmov 0  }
 0x505   : > { %v2437_v3 = vmul.f32 0.005, %v2417_v12  ;;  %v2528_v2 = vsel %vm720_vm0, %v2485_v5, 0.0  ;;  %3027 = vmatpush1.bf16.msra.mxu0 %v5852_v30  ;;  %3616 = vmatprep.mubr.bf16.mxu1 %v8598_v35 }
 0x506   : > { %v2421_v17 = vpop.xlane.xlu1 %2420  ;;  %2526 = vadd.xlane.f32.xlu1 %v2525_v49  ;;  %v2529_v19 = vadd.f32 %v2528_v2, %v2484_v60  ;;  %5371 = vmatprep.subr.msk.bf16.mxu0 %vm742_vm1, %v5369_v42  ;;  %v5155_v49 = vld [vmem:[%s8585_s5 + $0x2] ss:$8 sm:$0x3] }
 0x507   : > { %v7423_v46 = vsub.f32 %v7212_v34, %v2437_v3  ;;  %v7426_v50 = vsub.f32 %v7208_v62, %v2437_v3  ;;  %v2438_v6 = vmul.f32 0.005, %v2421_v17  ;;  %v7470_v30 = vrot.slane %v5155_v49, %v6638_v39 }
 0x508   : > { %2530 = vadd.xlane.f32.xlu0 %v2529_v19  ;;  %v5156_v19 = vld [vmem:[%s8585_s5 + $0x3] ss:$8 sm:$0x3] }
 0x509   : > { %v7432_v47 = vsub.f32 %v7222_v52, %v2438_v6  ;;  %v7435_v15 = vsub.f32 %v7215_v63, %v2438_v6  ;;  %v2486_v34 = vmul.f32 %v7423_v46, %v7423_v46  ;;  %v2487_v62 = vmul.f32 %v7426_v50, %v7426_v50 }
 0x50a   : > { %v2996_v63 = vsel %vm742_vm1, %v5368_v33, 0  ;;  %v7473_v6 = vrot.slane %v5155_v49, %v6641_v40  ;;  %v7478_v33 = vrot.slane %v5156_v19, %v6638_v39 }
 0x50b   : > { %v2532_v37 = vsel %vm720_vm0, %v2487_v62, 0.0  ;;  %v2488_v26 = vmul.f32 %v7432_v47, %v7432_v47  ;;  %v2489_v52 = vmul.f32 %v7435_v15, %v7435_v15  ;;  %3029 = vmatpush1.bf16.msra.mxu0 %v2996_v63 }
 0x50c   : > { %v2426_v25 = vpop.xlane.xlu0 %2425  ;;  %v2533_v36 = vadd.f32 %v2532_v37, %v2486_v34  ;;  %3105 = vmatprep.subr.bf16.mxu0 %v8598_v35  ;;  %v7481_v37 = vrot.slane %v5156_v19, %v6641_v40 }
 0x50d   : > { %v2439_v20 = vmul.f32 0.005, %v2426_v25  ;;  %v2536_v44 = vsel %vm720_vm0, %v2489_v52, 0.0 }
 0x50e   : > { %2534 = vadd.xlane.f32.xlu1 %v2533_v36  ;;  %v2537_v28 = vadd.f32 %v2536_v44, %v2488_v26 }
 0x50f   : > { %v7450_v11 = vsub.f32 %v7231_v56, %v2439_v20  ;;  %v7453_v4 = vsub.f32 %v7234_v24, %v2439_v20 }
 0x510   : > { %2538 = vadd.xlane.f32.xlu0 %v2537_v28 }
 0x511   : > { %v2490_v53 = vmul.f32 %v7450_v11, %v7450_v11  ;;  %v2491_v27 = vmul.f32 %v7453_v4, %v7453_v4 }
 0x513   : > { %v2540_v41 = vsel %vm898_vm2, %v2490_v53, 0.0  ;;  %v2541_v21 = vsel %vm900_vm3, %v2491_v27, 0.0 }
 0x514   : > { %v2542_v56 = vadd.f32 %v2541_v21, %v2540_v41 }
 0x516   : > { %2543 = vadd.xlane.f32.xlu1 %v2542_v56 }
 0x573   : > { %v2495_v24 = vpop.xlane.xlu1 %2494 }
 0x574   : > { %v2545_v61 = vmul.f32 0.005, %v2495_v24 }
 0x575   : > { %v2499_v9 = vpop.xlane.xlu0 %2498 }
 0x576   : > { %v2558_v43 = vadd.f32 1e-05, %v2545_v61  ;;  %v2546_v51 = vmul.f32 0.005, %v2499_v9  ;;  %v5857_v9 = vld [vmem:[%s8586_s6 + $0x8] ss:$12 sps:$4 sm:$0xff]  }
 0x578   : > { %5914 = vrsqrt.f32 %v2558_v43  ;;  %v2559_v60 = vadd.f32 1e-05, %v2546_v51 }
 0x57a   : > { %5916 = vrsqrt.f32 %v2559_v60 }
 0x57b   : > { %v2503_v5 = vpop.xlane.xlu1 %2502 }
 0x57c   : > { %v2547_v12 = vmul.f32 0.005, %v2503_v5 }
 0x57d   : > { %v2507_v3 = vpop.xlane.xlu0 %2506 }
 0x57e   : > { %v2560_v2 = vadd.f32 1e-05, %v2547_v12  ;;  %v2548_v31 = vmul.f32 0.005, %v2507_v3 }
 0x580   : > { %5918 = vrsqrt.f32 %v2560_v2  ;;  %v2561_v17 = vadd.f32 1e-05, %v2548_v31 }
 0x582   : > { %v5915_v48 = vpop.eup %5914  ;;  %5920 = vrsqrt.f32 %v2561_v17 }
 0x583   : > { %v2584_v34 = vmul.f32 %v5915_v48, %v7283_v0  ;;  %v2585_v62 = vmul.f32 %v5915_v48, %v7286_v1  ;;  %v2511_v42 = vpop.xlane.xlu1 %2510 }
 0x584   : > { %v5917_v26 = vpop.eup %5916  ;;  %v2549_v52 = vmul.f32 0.005, %v2511_v42 }
 0x585   : > { %v2621_v25 = vmul.f32 %v7470_v30, %v2584_v34  ;;  %v2586_v36 = vmul.f32 %v5917_v26, %v7289_v45  ;;  %v2587_v63 = vmul.f32 %v5917_v26, %v7292_v58  ;;  %v2515_v20 = vpop.xlane.xlu0 %2514  ;;  %v2622_v0 = vmul.f32 %v7473_v6, %v2585_v62 }
 0x586   : > { %v2562_v39 = vadd.f32 1e-05, %v2549_v52  ;;  %v2550_v40 = vmul.f32 0.005, %v2515_v20 }
 0x587   : > { %v2623_v1 = vmul.f32 %v7470_v30, %v2586_v36  ;;  %v2624_v45 = vmul.f32 %v7473_v6, %v2587_v63  ;;  %v2659_v58 = vadd.f32 %v7481_v37, %v2622_v0  ;;  %v2658_v44 = vadd.f32 %v7478_v33, %v2621_v25  ;;  %v5859_v63 = vld [vmem:[%s8586_s6 + $0x38] ss:$12 sps:$4 sm:$0xff]  }
 0x588   : > { %5922 = vrsqrt.f32 %v2562_v39  ;;  %v2563_v28 = vadd.f32 1e-05, %v2550_v40 }
 0x589   : > { %v2661_v53 = vadd.f32 %v7481_v37, %v2624_v45  ;;  %2685 = vst.msk [vmem:[%s7492_s17 + $0x8] sm:$0xff] %vm720_vm0, %v2659_v58  ;;  %v2660_v27 = vadd.f32 %v7478_v33, %v2623_v1  ;;  %2684 = vst [vmem:[%s7492_s17] sm:$0xff] %v2658_v44 }
 0x58a   : > { %v5919_v41 = vpop.eup %5918  ;;  %5924 = vrsqrt.f32 %v2563_v28 }
 0x58b   : > { %v2589_v21 = vmul.f32 %v5919_v41, %v7308_v32  ;;  %v2519_v56 = vpop.xlane.xlu1 %2518  ;;  %2687 = vst.msk [vmem:[%s7492_s17 + $0x18] sm:$0xff] %vm720_vm0, %v2661_v53  ;;  %v7506_v24 = vpack.c.bf16 %v2661_v53, %v2659_v58  ;;  %2686 = vst [vmem:[%s7492_s17 + $0x10] sm:$0xff] %v2660_v27  ;;  %v7509_v61 = vpack.c.bf16 %v2660_v27, %v2658_v44 }
 0x58c   : > { %v2588_v43 = vmul.f32 %v5919_v41, %v7305_v8  ;;  %v5921_v51 = vpop.eup %5920  ;;  %v2551_v60 = vmul.f32 0.005, %v2519_v56  ;;  %v5858_v8 = vld [vmem:[%s8586_s6 + $0x20] ss:$12 sps:$4 sm:$0xff]  }
 0x58d   : > { %v2591_v5 = vmul.f32 %v5921_v51, %v7314_v55  ;;  %5372 = vmatprep.mubr.msk.bf16.mxu0 %vm720_vm0, %v7506_v24  ;;  %v2523_v32 = vpop.xlane.xlu0 %2522  ;;  %v2626_v12 = vmul.f32 %v7473_v6, %v2589_v21  ;;  %v2590_v49 = vmul.f32 %v5921_v51, %v7311_v29 }
 0x58e   : > { %v2625_v3 = vmul.f32 %v7470_v30, %v2588_v43  ;;  %v2564_v2 = vadd.f32 1e-05, %v2551_v60  ;;  %v2552_v31 = vmul.f32 0.005, %v2523_v32  ;;  %3037 = vmatmul.mubr.bf16.vlgmr.msra.gmra.mrb[56].mxu0 %v7509_v61  ;;  %v5861_v32 = vld [vmem:[%s8586_s6 + $0x68] ss:$12 sps:$4 sm:$0xff]  }
 0x58f   : > { %3106 = vmatpush1.bf16.msra.mxu0 %v5857_v9  ;;  %v2628_v55 = vmul.f32 %v7473_v6, %v2591_v5  ;;  %v2663_v17 = vadd.f32 %v7481_v37, %v2626_v12  ;;  %v2627_v19 = vmul.f32 %v7470_v30, %v2590_v49 }
 0x590   : > { %v2662_v29 = vadd.f32 %v7478_v33, %v2625_v3  ;;  %5926 = vrsqrt.f32 %v2564_v2  ;;  %v2565_v48 = vadd.f32 1e-05, %v2552_v31  ;;  %3107 = vmatprep.subr.bf16.mxu0 %v8598_v35 }
 0x591   : > { %v2665_v34 = vadd.f32 %v7481_v37, %v2628_v55  ;;  %2689 = vst.msk [vmem:[%s7492_s17 + $0x28] sm:$0xff] %vm720_vm0, %v2663_v17  ;;  %v2664_v62 = vadd.f32 %v7478_v33, %v2627_v19 }
 0x592   : > { %2688 = vst [vmem:[%s7492_s17 + $0x20] sm:$0xff] %v2662_v29  ;;  %v5923_v42 = vpop.eup %5922  ;;  %5928 = vrsqrt.f32 %v2565_v48 }
 0x593   : > { %v2593_v26 = vmul.f32 %v5923_v42, %v7330_v16  ;;  %v2527_v52 = vpop.xlane.xlu1 %2526  ;;  %3108 = vmatpush1.bf16.msra.mxu0 %v5858_v8  ;;  %2691 = vst.msk [vmem:[%s7492_s17 + $0x38] sm:$0xff] %vm720_vm0, %v2665_v34  ;;  %v7538_v25 = vpack.c.bf16 %v2665_v34, %v2663_v17  ;;  %2690 = vst [vmem:[%s7492_s17 + $0x30] sm:$0xff] %v2664_v62  ;;  %v7541_v36 = vpack.c.bf16 %v2664_v62, %v2662_v29 }
 0x594   : > { %v2592_v20 = vmul.f32 %v5923_v42, %v7327_v7  ;;  %v5925_v0 = vpop.eup %5924  ;;  %v2553_v39 = vmul.f32 0.005, %v2527_v52  ;;  %3109 = vmatprep.subr.bf16.mxu0 %v8598_v35 }
 0x595   : > { %v2595_v16 = vmul.f32 %v5925_v0, %v7336_v14  ;;  %5373 = vmatprep.mubr.msk.bf16.mxu0 %vm720_vm0, %v7538_v25  ;;  %v2531_v40 = vpop.xlane.xlu0 %2530  ;;  %v2630_v1 = vmul.f32 %v7473_v6, %v2593_v26  ;;  %v2594_v45 = vmul.f32 %v5925_v0, %v7333_v18  ;;  %v5860_v14 = vld [vmem:[%s8586_s6 + $0x50] ss:$12 sps:$4 sm:$0xff]  }
 0x596   : > { %v2629_v58 = vmul.f32 %v7470_v30, %v2592_v20  ;;  %v2566_v44 = vadd.f32 1e-05, %v2553_v39  ;;  %v2554_v7 = vmul.f32 0.005, %v2531_v40  ;;  %3047 = vmatmul.mubr.bf16.gmra.mrb[60].mxu0 %v7541_v36  ;;  %v5863_v39 = vld [vmem:[%s8586_s6 + $0x98] ss:$12 sps:$4 sm:$0xff]  }
 0x597   : > { %3110 = vmatpush1.bf16.msra.mxu0 %v5859_v63  ;;  %v2632_v28 = vmul.f32 %v7473_v6, %v2595_v16  ;;  %v2667_v53 = vadd.f32 %v7481_v37, %v2630_v1  ;;  %v2631_v27 = vmul.f32 %v7470_v30, %v2594_v45 }
 0x598   : > { %v2666_v18 = vadd.f32 %v7478_v33, %v2629_v58  ;;  %5930 = vrsqrt.f32 %v2566_v44  ;;  %v2567_v41 = vadd.f32 1e-05, %v2554_v7  ;;  %3111 = vmatprep.subr.bf16.mxu0 %v8598_v35 }
 0x599   : > { %v2669_v21 = vadd.f32 %v7481_v37, %v2632_v28  ;;  %2693 = vst.msk [vmem:[%s7492_s17 + $0x48] sm:$0xff] %vm720_vm0, %v2667_v53  ;;  %v2668_v56 = vadd.f32 %v7478_v33, %v2631_v27 }
 0x59a   : > { %2692 = vst [vmem:[%s7492_s17 + $0x40] sm:$0xff] %v2666_v18  ;;  %v5927_v9 = vpop.eup %5926  ;;  %5932 = vrsqrt.f32 %v2567_v41 }
 0x59b   : > { %v2597_v43 = vmul.f32 %v5927_v9, %v7358_v22  ;;  %v2535_v51 = vpop.xlane.xlu1 %2534  ;;  %3112 = vmatpush1.bf16.msra.mxu0 %v5860_v14  ;;  %2695 = vst.msk [vmem:[%s7492_s17 + $0x58] sm:$0xff] %vm720_vm0, %v2669_v21  ;;  %v7571_v60 = vpack.c.bf16 %v2669_v21, %v2667_v53  ;;  %2694 = vst [vmem:[%s7492_s17 + $0x50] sm:$0xff] %v2668_v56  ;;  %v7574_v5 = vpack.c.bf16 %v2668_v56, %v2666_v18  ;;  %v5864_v14 = vld [vmem:[%s8586_s6 + $0xb0] ss:$12 sps:$4 sm:$0xff]  }
 0x59c   : > { %v2596_v12 = vmul.f32 %v5927_v9, %v7355_v10  ;;  %v5929_v49 = vpop.eup %5928  ;;  %v2555_v3 = vmul.f32 0.005, %v2535_v51  ;;  %3113 = vmatprep.subr.bf16.mxu0 %v8598_v35  ;;  %v5865_v9 = vld [vmem:[%s8586_s6 + $0xc8] ss:$12 sps:$4 sm:$0xff]  }
 0x59d   : > { %v2599_v22 = vmul.f32 %v5929_v49, %v7364_v59  ;;  %5374 = vmatprep.mubr.msk.bf16.mxu0 %vm720_vm0, %v7571_v60  ;;  %v2539_v2 = vpop.xlane.xlu0 %2538  ;;  %v2634_v31 = vmul.f32 %v7473_v6, %v2597_v43  ;;  %v2598_v8 = vmul.f32 %v5929_v49, %v7361_v13  ;;  %v5862_v59 = vld [vmem:[%s8586_s6 + $0x80] ss:$12 sps:$4 sm:$0xff]  }
 0x59e   : > { %v2633_v55 = vmul.f32 %v7470_v30, %v2596_v12  ;;  %v2568_v17 = vadd.f32 1e-05, %v2555_v3  ;;  %v2556_v10 = vmul.f32 0.005, %v2539_v2  ;;  %3057 = vmatmul.mubr.bf16.gmra.mrb[64].mxu0 %v7574_v5 }
 0x59f   : > { %3114 = vmatpush1.bf16.msra.mxu0 %v5861_v32  ;;  %v2636_v19 = vmul.f32 %v7473_v6, %v2599_v22  ;;  %v2671_v29 = vadd.f32 %v7481_v37, %v2634_v31  ;;  %v2635_v48 = vmul.f32 %v7470_v30, %v2598_v8 }
 0x5a0   : > { %v2670_v13 = vadd.f32 %v7478_v33, %v2633_v55  ;;  %5934 = vrsqrt.f32 %v2568_v17  ;;  %v2569_v34 = vadd.f32 1e-05, %v2556_v10  ;;  %3115 = vmatprep.subr.bf16.mxu0 %v8598_v35 }
 0x5a1   : > { %v2673_v62 = vadd.f32 %v7481_v37, %v2636_v19  ;;  %2697 = vst.msk [vmem:[%s7492_s17 + $0x68] sm:$0xff] %vm720_vm0, %v2671_v29  ;;  %v2672_v42 = vadd.f32 %v7478_v33, %v2635_v48 }
 0x5a2   : > { %2696 = vst [vmem:[%s7492_s17 + $0x60] sm:$0xff] %v2670_v13  ;;  %v5931_v26 = vpop.eup %5930  ;;  %5936 = vrsqrt.f32 %v2569_v34  ;;  %v5868_v34 = vld [vmem:[%s8586_s6 + $0x110] ss:$12 sps:$4 sm:$0xff]  }
 0x5a3   : > { %v2601_v52 = vmul.f32 %v5931_v26, %v7392_v57  ;;  %v2544_v63 = vpop.xlane.xlu1 %2543  ;;  %3116 = vmatpush1.bf16.msra.mxu0 %v5862_v59  ;;  %2699 = vst.msk [vmem:[%s7492_s17 + $0x78] sm:$0xff] %vm720_vm0, %v2673_v62  ;;  %v7604_v20 = vpack.c.bf16 %v2673_v62, %v2671_v29  ;;  %2698 = vst [vmem:[%s7492_s17 + $0x70] sm:$0xff] %v2672_v42  ;;  %v7607_v0 = vpack.c.bf16 %v2672_v42, %v2670_v13  ;;  %v5867_v59 = vld [vmem:[%s8586_s6 + $0xf8] ss:$12 sps:$4 sm:$0xff]  }
 0x5a4   : > { %v2600_v16 = vmul.f32 %v5931_v26, %v7389_v38  ;;  %v5933_v40 = vpop.eup %5932  ;;  %v2557_v1 = vmul.f32 0.005, %v2544_v63  ;;  %3117 = vmatprep.subr.bf16.mxu0 %v8598_v35  ;;  %v3216_v42 = vld [vmem:[%s8587_s7 + $0x80] sm:$0xff] }
 0x5a5   : > { %v2603_v57 = vmul.f32 %v5933_v40, %v7398_v23  ;;  %5375 = vmatprep.mubr.msk.bf16.mxu0 %vm720_vm0, %v7604_v20  ;;  %v2638_v45 = vmul.f32 %v7473_v6, %v2601_v52  ;;  %v2602_v58 = vmul.f32 %v5933_v40, %v7395_v54  ;;  %v3220_v26 = vld [vmem:[%s8587_s7 + $0xa0] sm:$0xff]  ;;  %v3201_v40 = vld [vmem:[%s8587_s7 + $0x8] sm:$0xff] }
 0x5a6   : > { %v2637_v44 = vmul.f32 %v7470_v30, %v2600_v16  ;;  %v2570_v7 = vadd.f32 1e-05, %v2557_v1  ;;  %3067 = vmatmul.mubr.bf16.gmra.mrb[68].mxu0 %v7607_v0  ;;  %v5402_v52 = vcombine.low %v3216_v42, %v3220_v26  ;;  %v5403_v63 = vcombine.high %v3216_v42, %v3220_v26  ;;  %v3205_v1 = vld [vmem:[%s8587_s7 + $0x28] sm:$0xff] }
 0x5a7   : > { %3118 = vmatpush1.bf16.msra.mxu0 %v5863_v39  ;;  %v2640_v38 = vmul.f32 %v7473_v6, %v2603_v57  ;;  %v2675_v23 = vadd.f32 %v7481_v37, %v2638_v45  ;;  %v2639_v28 = vmul.f32 %v7470_v30, %v2602_v58  ;;  %v5388_v57 = vcombine.low %v3201_v40, %v3205_v1  ;;  %v3209_v58 = vld [vmem:[%s8587_s7 + $0x48] sm:$0xff] }
 0x5a8   : > { %v2674_v54 = vadd.f32 %v7478_v33, %v2637_v44  ;;  %5938 = vrsqrt.f32 %v2570_v7  ;;  %3119 = vmatprep.subr.bf16.mxu0 %v8598_v35  ;;  %v5389_v45 = vcombine.high %v3201_v40, %v3205_v1  ;;  %v3213_v44 = vld [vmem:[%s8587_s7 + $0x68] sm:$0xff]  ;;  %v3232_v7 = vld [vmem:[%s8587_s7 + $0x100] sm:$0xff] }
 0x5a9   : > { %v2677_v53 = vadd.f32 %v7481_v37, %v2640_v38  ;;  %2701 = vst.msk [vmem:[%s7492_s17 + $0x88] sm:$0xff] %vm720_vm0, %v2675_v23  ;;  %v2676_v27 = vadd.f32 %v7478_v33, %v2639_v28  ;;  %v3236_v38 = vld [vmem:[%s8587_s7 + $0x120] sm:$0xff] }
 0x5aa   : > { %2700 = vst [vmem:[%s7492_s17 + $0x80] sm:$0xff] %v2674_v54  ;;  %v5935_v18 = vpop.eup %5934  ;;  %v5419_v28 = vcombine.high %v3232_v7, %v3236_v38 }
 0x5ab   : > { %v2605_v41 = vmul.f32 %v5935_v18, %v7426_v50  ;;  %2703 = vst.msk [vmem:[%s7492_s17 + $0x98] sm:$0xff] %vm720_vm0, %v2677_v53  ;;  %v7637_v21 = vpack.c.bf16 %v2677_v53, %v2675_v23  ;;  %3120 = vmatpush1.bf16.msra.mxu0 %v5864_v14  ;;  %2702 = vst [vmem:[%s7492_s17 + $0x90] sm:$0xff] %v2676_v27  ;;  %v7640_v56 = vpack.c.bf16 %v2676_v27, %v2674_v54  ;;  %v3217_v53 = vld [vmem:[%s8587_s7 + $0x88] sm:$0xff] }
 0x5ac   : > { %v2604_v43 = vmul.f32 %v5935_v18, %v7423_v46  ;;  %v5937_v51 = vpop.eup %5936  ;;  %3121 = vmatprep.subr.bf16.mxu0 %v8598_v35  ;;  %v5397_v23 = vcombine.high %v3209_v58, %v3213_v44  ;;  %v5418_v14 = vcombine.low %v3232_v7, %v3236_v38  ;;  %v5396_v54 = vcombine.low %v3209_v58, %v3213_v44  ;;  %v3221_v27 = vld [vmem:[%s8587_s7 + $0xa8] sm:$0xff]  ;;  %v3240_v18 = vld [vmem:[%s8587_s7 + $0x140] sm:$0xff] }
 0x5ad   : > { %v2607_v50 = vmul.f32 %v5937_v51, %v7435_v15  ;;  %5376 = vmatprep.mubr.msk.bf16.mxu0 %vm720_vm0, %v7637_v21  ;;  %v2642_v32 = vmul.f32 %v7473_v6, %v2605_v41  ;;  %v2606_v12 = vmul.f32 %v5937_v51, %v7432_v47  ;;  %v5866_v15 = vld [vmem:[%s8586_s6 + $0xe0] ss:$12 sps:$4 sm:$0xff]   ;;  %v5404_v41 = vcombine.low %v3217_v53, %v3221_v27 }
 0x5ae   : > { %v2641_v49 = vmul.f32 %v7470_v30, %v2604_v43  ;;  %3077 = vmatmul.mubr.bf16.gmra.mrb[72].mxu0 %v7640_v56  ;;  %v3225_v51 = vld [vmem:[%s8587_s7 + $0xc8] sm:$0xff] }
 0x5af   : > { %3122 = vmatpush1.bf16.msra.mxu0 %v5865_v9  ;;  %v2644_v46 = vmul.f32 %v7473_v6, %v2607_v50  ;;  %v2679_v3 = vadd.f32 %v7481_v37, %v2642_v32  ;;  %v2643_v22 = vmul.f32 %v7470_v30, %v2606_v12  ;;  %v3229_v50 = vld [vmem:[%s8587_s7 + $0xe8] sm:$0xff] }
 0x5b0   : > { %v2678_v2 = vadd.f32 %v7478_v33, %v2641_v49  ;;  %3123 = vmatprep.subr.bf16.mxu0 %v8598_v35  ;;  %v5413_v32 = vcombine.high %v3225_v51, %v3229_v50  ;;  %v5412_v12 = vcombine.low %v3225_v51, %v3229_v50  ;;  %v3233_v49 = vld [vmem:[%s8587_s7 + $0x108] sm:$0xff] }
 0x5b1   : > { %v2681_v47 = vadd.f32 %v7481_v37, %v2644_v46  ;;  %2705 = vst.msk [vmem:[%s7492_s17 + $0xa8] sm:$0xff] %vm720_vm0, %v2679_v3  ;;  %v2680_v31 = vadd.f32 %v7478_v33, %v2643_v22  ;;  %v3237_v46 = vld [vmem:[%s8587_s7 + $0x128] sm:$0xff] }
 0x5b2   : > { %2704 = vst [vmem:[%s7492_s17 + $0xa0] sm:$0xff] %v2678_v2  ;;  %v5939_v8 = vpop.eup %5938  ;;  %v5421_v22 = vcombine.high %v3233_v49, %v3237_v46 }
 0x5b3   : > { %v2609_v55 = vmul.f32 %v5939_v8, %v7453_v4  ;;  %2707 = vst.msk [vmem:[%s7492_s17 + $0xb8] sm:$0xff] %vm720_vm0, %v2681_v47  ;;  %v2721_v17 = vpack.c.bf16 %v2681_v47, %v2679_v3  ;;  %3124 = vmatpush1.bf16.msra.mxu0 %v5866_v15  ;;  %2706 = vst [vmem:[%s7492_s17 + $0xb0] sm:$0xff] %v2680_v31  ;;  %v2720_v10 = vpack.c.bf16 %v2680_v31, %v2678_v2  ;;  %v3248_v3 = vld [vmem:[%s8587_s7 + $0x180] sm:$0xff] }
 0x5b4   : > { %v2608_v19 = vmul.f32 %v5939_v8, %v7450_v11  ;;  %3125 = vmatprep.subr.bf16.mxu0 %v8598_v35  ;;  %v5869_v11 = vld [vmem:[%s8586_s6 + $0x128] ss:$0 sps:$4 sm:$0xff]   ;;  %v5420_v15 = vcombine.low %v3233_v49, %v3237_v46  ;;  %v3252_v2 = vld [vmem:[%s8587_s7 + $0x1a0] sm:$0xff] }
 0x5b5   : > { %5377 = vmatprep.mubr.msk.bf16.mxu0 %vm720_vm0, %v2721_v17  ;;  %v2646_v4 = vmul.f32 %v7473_v6, %v2609_v55  ;;  %v5434_v47 = vcombine.low %v3248_v3, %v3252_v2  ;;  %v5435_v31 = vcombine.high %v3248_v3, %v3252_v2  ;;  %v3241_v8 = vld [vmem:[%s8587_s7 + $0x148] sm:$0xff]  ;;  %v3211_v3 = vld [vmem:[%s8587_s7 + $0x58] sm:$0xff] }
 0x5b6   : > { %v2645_v29 = vmul.f32 %v7470_v30, %v2608_v19  ;;  %3087 = vmatmul.mubr.bf16.gmra.mrb[76].mxu0 %v2720_v10  ;;  %v3245_v55 = vld [vmem:[%s8587_s7 + $0x168] sm:$0xff]  ;;  %v3260_v19 = vld [vmem:[%s8587_s7 + $0x1e0] sm:$0xff] }
 0x5b7   : > { %3126 = vmatpush1.bf16.msra.mxu0 %v5867_v59  ;;  %v2683_v48 = vadd.f32 %v7481_v37, %v2646_v4  ;;  %v3200_v37 = vld [vmem:[%s8587_s7] sm:$0xff]  ;;  %v3249_v4 = vld [vmem:[%s8587_s7 + $0x188] sm:$0xff] }
 0x5b8   : > { %v2682_v13 = vadd.f32 %v7478_v33, %v2645_v29  ;;  %3127 = vmatprep.subr.bf16.mxu0 %v8598_v35  ;;  %v3002_v33 = vsel %vm742_vm1, %v5869_v11, 0  ;;  %v3256_v59 = vld [vmem:[%s8587_s7 + $0x1c0] sm:$0xff] }
 0x5b9   : > { %2709 = vst.msk [vmem:[%s7492_s17 + $0xc8] sm:$0x7] %vm900_vm3, %v2683_v48  ;;  %v2723_v6 = vpack.c.bf16 %v2683_v48, %v2683_v48  ;;  %v5442_v29 = vcombine.low %v3256_v59, %v3260_v19  ;;  %v5443_v48 = vcombine.high %v3256_v59, %v3260_v19  ;;  %v3226_v19 = vld [vmem:[%s8587_s7 + $0xd0] sm:$0xff] }
 0x5ba   : > { %2708 = vst [vmem:[%s7492_s17 + $0xc0] sm:$0x7] %v2682_v13  ;;  %v2722_v30 = vpack.c.bf16 %v2682_v13, %v2682_v13  ;;  %v3253_v13 = vld [vmem:[%s8587_s7 + $0x1a8] sm:$0xff] }
 0x5bb   : > { %5378 = vmatprep.mubr.msk.bf16.mxu0 %vm720_vm0, %v2723_v6  ;;  %3128 = vmatpush1.bf16.msra.mxu0 %v5868_v34  ;;  %v5436_v34 = vcombine.low %v3249_v4, %v3253_v13  ;;  %v5437_v11 = vcombine.high %v3249_v4, %v3253_v13  ;;  %v3230_v4 = vld [vmem:[%s8587_s7 + $0xf0] sm:$0xff]  ;;  %v3219_v13 = vld [vmem:[%s8587_s7 + $0x98] sm:$0xff] }
 0x5bc   : > { %3129 = vmatprep.subr.bf16.mxu0 %v8598_v35 }
 0x5be   : > { %3097 = vmatmul.mubr.bf16.gmra.mrb[80].mxu0 %v2722_v30 }
 0x5bf   : > { %5379 = vmatprep.mubr.msk.bf16.mxu0 %vm720_vm0, %v7506_v24  ;;  %3130 = vmatpush1.bf16.msra.mxu0 %v3002_v33  ;;  %v3204_v24 = vld [vmem:[%s8587_s7 + $0x20] sm:$0xff] }
 0x5c0   : > { %3685 = vmatprep.subr.bf16.mxu0 %v5389_v45 }
 0x5c6   : > { %3138 = vmatmul.mubr.bf16.vlgmr.msra.gmra.mrb[84].mxu0 %v7509_v61  ;;  %v5386_v61 = vcombine.low %v3200_v37, %v3204_v24 }
 0x5c7   : > { %5380 = vmatprep.mubr.msk.bf16.mxu0 %vm720_vm0, %v7538_v25  ;;  %v5387_v25 = vcombine.high %v3200_v37, %v3204_v24  ;;  %3686 = vmatpush1.bf16.msra.mxu0 %v5388_v57  ;;  %v3202_v24 = vld [vmem:[%s8587_s7 + $0x10] sm:$0xff] }
 0x5c8   : > { %3687 = vmatprep.subr.bf16.mxu0 %v5397_v23 }
 0x5c9   : > { %3584 = vmatprep.subr.bf16.mxu1 %v5387_v25 }
 0x5ca   : > { %3585 = vmatpush1.bf16.msra.mxu1 %v5386_v61  ;;  %v3206_v61 = vld [vmem:[%s8587_s7 + $0x30] sm:$0xff] }
 0x5cb   : > { %3688 = vmatpush1.bf16.msra.mxu0 %v5396_v54  ;;  %v5390_v25 = vcombine.low %v3202_v24, %v3206_v61 }
 0x5ce   : > { %3146 = vmatmul.mubr.bf16.gmra.mrb[88].mxu0 %v7541_v36  ;;  %v3208_v36 = vld [vmem:[%s8587_s7 + $0x40] sm:$0xff] }
 0x5cf   : > { %5381 = vmatprep.mubr.msk.bf16.mxu0 %vm720_vm0, %v7571_v60  ;;  %v3212_v60 = vld [vmem:[%s8587_s7 + $0x60] sm:$0xff] }
 0x5d0   : > { %v5395_v62 = vcombine.high %v3208_v36, %v3212_v60 }
 0x5d2   : > { %3586 = vmatprep.subr.bf16.mxu1 %v5395_v62 }
 0x5d6   : > { %3154 = vmatmul.mubr.bf16.gmra.mrb[92].mxu0 %v7574_v5  ;;  %v5394_v5 = vcombine.low %v3208_v36, %v3212_v60  ;;  %v5391_v36 = vcombine.high %v3202_v24, %v3206_v61  ;;  %v3203_v60 = vld [vmem:[%s8587_s7 + $0x18] sm:$0xff] }
 0x5d7   : > { %5382 = vmatprep.mubr.msk.bf16.mxu0 %vm720_vm0, %v7604_v20  ;;  %v3224_v20 = vld [vmem:[%s8587_s7 + $0xc0] sm:$0xff]  ;;  %v3227_v24 = vld [vmem:[%s8587_s7 + $0xd8] sm:$0xff] }
 0x5d8   : > { %3587 = vmatpush1.bf16.msra.mxu1 %v5394_v5  ;;  %v3207_v5 = vld [vmem:[%s8587_s7 + $0x38] sm:$0xff] }
 0x5d9   : > { %3588 = vmatprep.subr.bf16.mxu1 %v5403_v63  ;;  %v5393_v62 = vcombine.high %v3203_v60, %v3207_v5  ;;  %v5392_v42 = vcombine.low %v3203_v60, %v3207_v5  ;;  %v3231_v61 = vld [vmem:[%s8587_s7 + $0xf8] sm:$0xff] }
 0x5dc   : > { %3589 = vmatpush1.bf16.msra.mxu1 %v5402_v52 }
 0x5de   : > { %3162 = vmatmul.mubr.bf16.gmra.mrb[96].mxu0 %v7607_v0  ;;  %v3228_v0 = vld [vmem:[%s8587_s7 + $0xe0] sm:$0xff] }
 0x5df   : > { %5383 = vmatprep.mubr.msk.bf16.mxu0 %vm720_vm0, %v7637_v21  ;;  %v5410_v39 = vcombine.low %v3224_v20, %v3228_v0  ;;  %v5411_v16 = vcombine.high %v3224_v20, %v3228_v0  ;;  %v5405_v21 = vcombine.high %v3217_v53, %v3221_v27 }
 0x5e1   : > { %3590 = vmatprep.subr.bf16.mxu1 %v5411_v16  ;;  %3689 = vmatprep.subr.bf16.mxu0 %v5405_v21 }
 0x5e2   : > { %3591 = vmatpush1.bf16.msra.mxu1 %v5410_v39  ;;  %3690 = vmatpush1.bf16.msra.mxu0 %v5404_v41 }
 0x5e3   : > { %3592 = vmatprep.subr.bf16.mxu1 %v5419_v28  ;;  %3691 = vmatprep.subr.bf16.mxu0 %v5413_v32  ;;  %v3210_v32 = vld [vmem:[%s8587_s7 + $0x50] sm:$0xff] }
 0x5e6   : > { %3170 = vmatmul.mubr.bf16.gmra.mrb[100].mxu0 %v7640_v56  ;;  %3593 = vmatpush1.bf16.msra.mxu1 %v5418_v14  ;;  %v3244_v56 = vld [vmem:[%s8587_s7 + $0x160] sm:$0xff] }
 0x5e7   : > { %5384 = vmatprep.mubr.msk.bf16.mxu0 %vm720_vm0, %v2721_v17  ;;  %v5426_v9 = vcombine.low %v3240_v18, %v3244_v56  ;;  %v5427_v43 = vcombine.high %v3240_v18, %v3244_v56  ;;  %3692 = vmatpush1.bf16.msra.mxu0 %v5412_v12  ;;  %v5429_v17 = vcombine.high %v3241_v8, %v3245_v55  ;;  %v3214_v12 = vld [vmem:[%s8587_s7 + $0x70] sm:$0xff] }
 0x5e8   : > { %3693 = vmatprep.subr.bf16.mxu0 %v5421_v22 }
 0x5e9   : > { %3594 = vmatprep.subr.bf16.mxu1 %v5427_v43 }
 0x5ea   : > { %3595 = vmatpush1.bf16.msra.mxu1 %v5426_v9 }
 0x5eb   : > { %3596 = vmatprep.subr.bf16.mxu1 %v5435_v31  ;;  %3694 = vmatpush1.bf16.msra.mxu0 %v5420_v15  ;;  %v3215_v15 = vld [vmem:[%s8587_s7 + $0x78] sm:$0xff]  ;;  %v3218_v31 = vld [vmem:[%s8587_s7 + $0x90] sm:$0xff] }
 0x5ec   : > { %3695 = vmatprep.subr.bf16.mxu0 %v5429_v17  ;;  %v5398_v17 = vcombine.low %v3210_v32, %v3214_v12 }
 0x5ee   : > { %3178 = vmatmul.mubr.bf16.gmra.mrb[104].mxu0 %v2720_v10  ;;  %3597 = vmatpush1.bf16.msra.mxu1 %v5434_v47  ;;  %v5428_v10 = vcombine.low %v3241_v8, %v3245_v55  ;;  %v5399_v47 = vcombine.high %v3210_v32, %v3214_v12  ;;  %v3222_v8 = vld [vmem:[%s8587_s7 + $0xb0] sm:$0xff]  ;;  %v5401_v55 = vcombine.high %v3211_v3, %v3215_v15 }
 0x5ef   : > { %5385 = vmatprep.mubr.msk.bf16.mxu0 %vm720_vm0, %v2723_v6  ;;  %3598 = vmatprep.subr.bf16.mxu1 %v5443_v48  ;;  %v3257_v6 = vld [vmem:[%s8587_s7 + $0x1c8] sm:$0xff]  ;;  %v3246_v12 = vld [vmem:[%s8587_s7 + $0x170] sm:$0xff] }
 0x5f0   : > { %3696 = vmatpush1.bf16.msra.mxu0 %v5428_v10  ;;  %v5407_v10 = vcombine.high %v3218_v31, %v3222_v8 }
 0x5f1   : > { %3697 = vmatprep.subr.bf16.mxu0 %v5437_v11 }
 0x5f2   : > { %3599 = vmatpush1.bf16.msra.mxu1 %v5442_v29  ;;  %v5400_v29 = vcombine.low %v3211_v3, %v3215_v15 }
 0x5f3   : > { %3786 = vmatprep.subr.bf16.mxu1 %v5391_v36  ;;  %v3238_v36 = vld [vmem:[%s8587_s7 + $0x130] sm:$0xff] }
 0x5f4   : > { %3698 = vmatpush1.bf16.msra.mxu0 %v5436_v34  ;;  %v3223_v34 = vld [vmem:[%s8587_s7 + $0xb8] sm:$0xff] }
 0x5f5   : > { %v5409_v60 = vcombine.high %v3219_v13, %v3223_v34  ;;  %v5408_v5 = vcombine.low %v3219_v13, %v3223_v34 }
 0x5f6   : > { %3186 = vmatmul.mubr.bf16.gmra.mrb[108].mxu0 %v2722_v30  ;;  %v3261_v30 = vld [vmem:[%s8587_s7 + $0x1e8] sm:$0xff] }
 0x5f7   : > { %3717 = vmatprep.mubr.bf16.mxu0 %v8598_v35  ;;  %v5445_v33 = vcombine.high %v3257_v6, %v3261_v30  ;;  %v5444_v37 = vcombine.low %v3257_v6, %v3261_v30  ;;  %v5406_v6 = vcombine.low %v3218_v31, %v3222_v8  ;;  %v5416_v31 = vcombine.low %v3227_v24, %v3231_v61 }
 0x5f9   : > { %3699 = vmatprep.subr.bf16.mxu0 %v5445_v33 }
 0x5fa   : > { %3700 = vmatpush1.bf16.msra.mxu0 %v5444_v37  ;;  %v5415_v37 = vcombine.high %v3226_v19, %v3230_v4 }
 0x5fb   : > { %3887 = vmatprep.subr.bf16.mxu0 %v5393_v62  ;;  %v5414_v62 = vcombine.low %v3226_v19, %v3230_v4  ;;  %v3247_v19 = vld [vmem:[%s8587_s7 + $0x178] sm:$0xff] }
 0x661   : > { %v7820_v26 = vpop.f32.mrb[56].mxu0 }
 0x662   : > { %v7822_v52 = vpop.f32.mrb[57].mxu0 }
 0x663   : > { %v7824_v63 = vpop.f32.mrb[58].mxu0 }
 0x664   : > { %v7826_v20 = vpop.f32.mrb[59].mxu0 }
 0x669   : > { %v7828_v0 = vpop.f32.mrb[60].mxu0 }
 0x66a   : > { %v7830_v39 = vpop.f32.mrb[61].mxu0 }
 0x66b   : > { %v7832_v16 = vpop.f32.mrb[62].mxu0 }
 0x66c   : > { %v7834_v40 = vpop.f32.mrb[63].mxu0 }
 0x671   : > { %v7836_v1 = vpop.f32.mrb[64].mxu0 }
 0x672   : > { %v7838_v57 = vpop.f32.mrb[65].mxu0 }
 0x673   : > { %v7840_v45 = vpop.f32.mrb[66].mxu0 }
 0x674   : > { %v7842_v58 = vpop.f32.mrb[67].mxu0 }
 0x679   : > { %v7844_v44 = vpop.f32.mrb[68].mxu0 }
 0x67a   : > { %v7846_v7 = vpop.f32.mrb[69].mxu0 }
 0x67b   : > { %v7848_v38 = vpop.f32.mrb[70].mxu0 }
 0x67c   : > { %v7850_v23 = vpop.f32.mrb[71].mxu0 }
 0x681   : > { %v7852_v14 = vpop.f32.mrb[72].mxu0 }
 0x682   : > { %v7854_v28 = vpop.f32.mrb[73].mxu0 }
 0x683   : > { %v7856_v54 = vpop.f32.mrb[74].mxu0 }
 0x684   : > { %v7858_v53 = vpop.f32.mrb[75].mxu0 }
 0x689   : > { %v7860_v27 = vpop.f32.mrb[76].mxu0 }
 0x68a   : > { %v7862_v18 = vpop.f32.mrb[77].mxu0 }
 0x68b   : > { %v7864_v41 = vpop.f32.mrb[78].mxu0 }
 0x68c   : > { %v7866_v21 = vpop.f32.mrb[79].mxu0 }
 0x691   : > { %v7868_v56 = vpop.f32.mrb[80].mxu0 }
 0x692   : > { %v7870_v9 = vpop.f32.mrb[81].mxu0 }
 0x693   : > { %v3102_v43 = vpop.f32.mrb[82].mxu0 }
 0x694   : > { %v3103_v51 = vpop.f32.mrb[83].mxu0 }
 0x699   : > { %v3139_v50 = vpop.f32.mrb[84].mxu0 }
 0x69a   : > { %4998 = vst [vmem:[%s7876_s23] sm:$0xff] %v3139_v50  ;;  %v3141_v49 = vpop.f32.mrb[85].mxu0 }
 0x69b   : > { %v3142_v46 = vpop.f32.mrb[86].mxu0  ;;  %v3235_v49 = vld [vmem:[%s8587_s7 + $0x118] sm:$0xff] }
 0x69c   : > { %v7891_v22 = vpack.c.bf16 %v3142_v46, %v3139_v50  ;;  %4999 = vst [vmem:[%s7876_s23 + $0x8] sm:$0xff] %v3142_v46  ;;  %v3144_v2 = vpop.f32.mrb[87].mxu0  ;;  %v3242_v50 = vld [vmem:[%s8587_s7 + $0x150] sm:$0xff]  ;;  %v3239_v46 = vld [vmem:[%s8587_s7 + $0x138] sm:$0xff] }
 0x69d   : > { %v5431_v8 = vcombine.high %v3242_v50, %v3246_v12  ;;  %v5430_v4 = vcombine.low %v3242_v50, %v3246_v12 }
 0x69e   : > { %3617 = vmatmul.mubr.bf16.vlgmr.msra.gmra.mrb[60].mxu1 %v7891_v22  ;;  %3718 = vmatmul.mubr.bf16.vlgmr.msra.gmra.mrb[112].mxu0 %v7891_v22 }
 0x69f   : > { %3787 = vmatpush1.bf16.msra.mxu1 %v5390_v25  ;;  %3626 = vmatprep.mubr.bf16.mxu1 %v8598_v35  ;;  %v3234_v25 = vld [vmem:[%s8587_s7 + $0x110] sm:$0xff] }
 0x6a0   : > { %3788 = vmatprep.subr.bf16.mxu1 %v5399_v47  ;;  %3727 = vmatprep.mubr.bf16.mxu0 %v8598_v35  ;;  %v5423_v43 = vcombine.high %v3234_v25, %v3238_v36  ;;  %v5422_v47 = vcombine.low %v3234_v25, %v3238_v36 }
 0x6a1   : > { %v3147_v59 = vpop.f32.mrb[88].mxu0  ;;  %3888 = vmatpush1.bf16.msra.mxu0 %v5392_v42  ;;  %v5417_v42 = vcombine.high %v3227_v24, %v3231_v61  ;;  %v3255_v24 = vld [vmem:[%s8587_s7 + $0x1b8] sm:$0xff] }
 0x6a2   : > { %5000 = vst [vmem:[%s7876_s23 + $0x10] sm:$0xff] %v3147_v59  ;;  %v3149_v48 = vpop.f32.mrb[89].mxu0  ;;  %3889 = vmatprep.subr.bf16.mxu0 %v5401_v55  ;;  %v5425_v55 = vcombine.high %v3235_v49, %v3239_v46 }
 0x6a3   : > { %v3150_v11 = vpop.f32.mrb[90].mxu0  ;;  %3789 = vmatpush1.bf16.msra.mxu1 %v5398_v17  ;;  %v3250_v17 = vld [vmem:[%s8587_s7 + $0x190] sm:$0xff] }
 0x6a4   : > { %v7917_v30 = vpack.c.bf16 %v3150_v11, %v3147_v59  ;;  %5001 = vst [vmem:[%s7876_s23 + $0x18] sm:$0xff] %v3150_v11  ;;  %v3152_v33 = vpop.f32.mrb[91].mxu0  ;;  %3790 = vmatprep.subr.bf16.mxu1 %v5407_v10  ;;  %v3254_v10 = vld [vmem:[%s8587_s7 + $0x1b0] sm:$0xff]  ;;  %v3243_v59 = vld [vmem:[%s8587_s7 + $0x158] sm:$0xff] }
 0x6a5   : > { %3890 = vmatpush1.bf16.msra.mxu0 %v5400_v29  ;;  %v5424_v29 = vcombine.low %v3235_v49, %v3239_v46  ;;  %v5439_v13 = vcombine.high %v3250_v17, %v3254_v10  ;;  %v5433_v34 = vcombine.high %v3243_v59, %v3247_v19  ;;  %v3251_v11 = vld [vmem:[%s8587_s7 + $0x198] sm:$0xff]  ;;  %v3258_v33 = vld [vmem:[%s8587_s7 + $0x1d0] sm:$0xff] }
 0x6a6   : > { %3627 = vmatmul.mubr.bf16.gmra.mrb[64].mxu1 %v7917_v30  ;;  %3728 = vmatmul.mubr.bf16.gmra.mrb[116].mxu0 %v7917_v30 }
 0x6a7   : > { %3791 = vmatpush1.bf16.msra.mxu1 %v5406_v6  ;;  %3636 = vmatprep.mubr.bf16.mxu1 %v8598_v35 }
 0x6a8   : > { %3737 = vmatprep.mubr.bf16.mxu0 %v8598_v35  ;;  %3792 = vmatprep.subr.bf16.mxu1 %v5415_v37  ;;  %v3262_v37 = vld [vmem:[%s8587_s7 + $0x1f0] sm:$0xff] }
 0x6a9   : > { %v3155_v51 = vpop.f32.mrb[92].mxu0  ;;  %3891 = vmatprep.subr.bf16.mxu0 %v5409_v60  ;;  %v5438_v60 = vcombine.low %v3250_v17, %v3254_v10  ;;  %v5446_v50 = vcombine.low %v3258_v33, %v3262_v37 }
 0x6aa   : > { %5002 = vst [vmem:[%s7876_s23 + $0x20] sm:$0xff] %v3155_v51  ;;  %v3157_v32 = vpop.f32.mrb[93].mxu0  ;;  %3892 = vmatpush1.bf16.msra.mxu0 %v5408_v5  ;;  %v5432_v5 = vcombine.low %v3243_v59, %v3247_v19 }
 0x6ab   : > { %v3158_v3 = vpop.f32.mrb[94].mxu0  ;;  %3793 = vmatpush1.bf16.msra.mxu1 %v5414_v62  ;;  %3893 = vmatprep.subr.bf16.mxu0 %v5417_v42  ;;  %v5447_v62 = vcombine.high %v3258_v33, %v3262_v37  ;;  %v5441_v42 = vcombine.high %v3251_v11, %v3255_v24  ;;  %v5440_v32 = vcombine.low %v3251_v11, %v3255_v24  ;;  %v8032_v11 = vld [vmem:[%s8588_s8 + $0x8] sm:$0xff]   ;;  %v8098_v37 = vld [vmem:[%s8588_s8 + $0x38] sm:$0xff]   ;;  %v8107_v24 = vld [vmem:[%s8588_s8 + $0x40] sm:$0xff]  }
 0x6ac   : > { %v7949_v15 = vpack.c.bf16 %v3158_v3, %v3155_v51  ;;  %5003 = vst [vmem:[%s7876_s23 + $0x28] sm:$0xff] %v3158_v3  ;;  %v3160_v2 = vpop.f32.mrb[95].mxu0  ;;  %3794 = vmatprep.subr.bf16.mxu1 %v5423_v43  ;;  %v3259_v43 = vld [vmem:[%s8587_s7 + $0x1d8] sm:$0xff]  ;;  %v8076_v33 = vld [vmem:[%s8588_s8 + $0x28] sm:$0xff]  }
 0x6ad   : > { %v3263_v51 = vld [vmem:[%s8587_s7 + $0x1f8] sm:$0xff] }
 0x6ae   : > { %3637 = vmatmul.mubr.bf16.gmra.mrb[68].mxu1 %v7949_v15  ;;  %3738 = vmatmul.mubr.bf16.gmra.mrb[120].mxu0 %v7949_v15  ;;  %v5449_v49 = vcombine.high %v3259_v43, %v3263_v51 }
 0x6af   : > { %3646 = vmatprep.mubr.bf16.mxu1 %v8598_v35  ;;  %3747 = vmatprep.mubr.bf16.mxu0 %v8598_v35 }
 0x6b0   : > { %3795 = vmatpush1.bf16.msra.mxu1 %v5422_v47  ;;  %3894 = vmatpush1.bf16.msra.mxu0 %v5416_v31  ;;  %v5448_v31 = vcombine.low %v3259_v43, %v3263_v51 }
 0x6b1   : > { %v3163_v48 = vpop.f32.mrb[96].mxu0  ;;  %3796 = vmatprep.subr.bf16.mxu1 %v5431_v8  ;;  %3895 = vmatprep.subr.bf16.mxu0 %v5425_v55 }
 0x6b2   : > { %5004 = vst [vmem:[%s7876_s23 + $0x30] sm:$0xff] %v3163_v48  ;;  %v3165_v6 = vpop.f32.mrb[97].mxu0 }
 0x6b3   : > { %v3166_v61 = vpop.f32.mrb[98].mxu0  ;;  %v8054_v6 = vld [vmem:[%s8588_s8 + $0x18] sm:$0xff]  }
 0x6b4   : > { %v7981_v25 = vpack.c.bf16 %v3166_v61, %v3163_v48  ;;  %5005 = vst [vmem:[%s7876_s23 + $0x38] sm:$0xff] %v3166_v61  ;;  %v3168_v36 = vpop.f32.mrb[99].mxu0  ;;  %3797 = vmatpush1.bf16.msra.mxu1 %v5430_v4  ;;  %3896 = vmatpush1.bf16.msra.mxu0 %v5424_v29  ;;  %v8120_v61 = vld [vmem:[%s8588_s8 + $0x48] sm:$0xff]  }
 0x6b5   : > { %3798 = vmatprep.subr.bf16.mxu1 %v5439_v13  ;;  %3897 = vmatprep.subr.bf16.mxu0 %v5433_v34  ;;  %v8022_v34 = vld [vmem:[%s8588_s8] sm:$0xff]   ;;  %v8142_v36 = vld [vmem:[%s8588_s8 + $0x58] sm:$0xff]  }
 0x6b6   : > { %3647 = vmatmul.mubr.bf16.gmra.mrb[72].mxu1 %v7981_v25  ;;  %3748 = vmatmul.mubr.bf16.gmra.mrb[124].mxu0 %v7981_v25 }
 0x6b7   : > { %3656 = vmatprep.mubr.bf16.mxu1 %v8598_v35  ;;  %3757 = vmatprep.mubr.bf16.mxu0 %v8598_v35 }
 0x6b8   : > { %3799 = vmatpush1.bf16.msra.mxu1 %v5438_v60  ;;  %3898 = vmatpush1.bf16.msra.mxu0 %v5432_v5  ;;  %v5882_v60 = vld [vmem:[%s8588_s8 + $0x60] ss:$0 sps:$4 sm:$0xff]  }
 0x6b9   : > { %v3171_v12 = vpop.f32.mrb[100].mxu0  ;;  %3800 = vmatprep.subr.bf16.mxu1 %v5447_v62  ;;  %3899 = vmatprep.subr.bf16.mxu0 %v5441_v42  ;;  %v8154_v5 = vsel %vm742_vm1, %v5882_v60, 0 }
 0x6ba   : > { %5006 = vst [vmem:[%s7876_s23 + $0x40] sm:$0xff] %v3171_v12  ;;  %v3173_v46 = vpop.f32.mrb[101].mxu0 }
 0x6bb   : > { %v3174_v3 = vpop.f32.mrb[102].mxu0 }
 0x6bc   : > { %v7995_v2 = vpack.c.bf16 %v3174_v3, %v3171_v12  ;;  %5007 = vst [vmem:[%s7876_s23 + $0x48] sm:$0xff] %v3174_v3  ;;  %v3176_v47 = vpop.f32.mrb[103].mxu0  ;;  %3801 = vmatpush1.bf16.msra.mxu1 %v5446_v50  ;;  %3900 = vmatpush1.bf16.msra.mxu0 %v5440_v32 }
 0x6bd   : > { %3901 = vmatprep.subr.bf16.mxu0 %v5449_v49  ;;  %4152 = vmatprep.subr.bf16.mxu1 %v8598_v35 }
 0x6be   : > { %3657 = vmatmul.mubr.bf16.gmra.mrb[76].mxu1 %v7995_v2  ;;  %3758 = vmatmul.mubr.bf16.gmra.mrb[128].mxu0 %v7995_v2 }
 0x6bf   : > { %3666 = vmatprep.mubr.bf16.mxu1 %v8598_v35  ;;  %3767 = vmatprep.mubr.bf16.mxu0 %v8598_v35 }
 0x6c0   : > { %3902 = vmatpush1.bf16.msra.mxu0 %v5448_v31 }
 0x6c1   : > { %v3179_v8 = vpop.f32.mrb[104].mxu0  ;;  %4301 = vmatprep.subr.bf16.mxu0 %v8598_v35 }
 0x6c2   : > { %5008 = vst [vmem:[%s7876_s23 + $0x50] sm:$0xff] %v3179_v8  ;;  %v3181_v55 = vpop.f32.mrb[105].mxu0 }
 0x6c3   : > { %v3182_v17 = vpop.f32.mrb[106].mxu0 }
 0x6c4   : > { %v8005_v10 = vpack.c.bf16 %v3182_v17, %v3179_v8  ;;  %5009 = vst [vmem:[%s7876_s23 + $0x58] sm:$0xff] %v3182_v17  ;;  %v3184_v59 = vpop.f32.mrb[107].mxu0 }
 0x6c6   : > { %3667 = vmatmul.mubr.bf16.gmra.mrb[80].mxu1 %v8005_v10  ;;  %3768 = vmatmul.mubr.bf16.gmra.mrb[132].mxu0 %v8005_v10 }
 0x6c7   : > { %3676 = vmatprep.mubr.bf16.mxu1 %v8598_v35  ;;  %3777 = vmatprep.mubr.bf16.mxu0 %v8598_v35 }
 0x6c9   : > { %v3187_v19 = vpop.f32.mrb[108].mxu0 }
 0x6ca   : > { %5010 = vst [vmem:[%s7876_s23 + $0x60] sm:$0x7] %v3187_v19  ;;  %v3189_v4 = vpop.f32.mrb[109].mxu0  ;;  %v8013_v48 = vpack.c.bf16 %v3187_v19, %v3187_v19  ;;  %s8481_s23 = scalar_lea.vmem %s8591_s11, %s6124_s19 }
 0x6cb   : > { %v3190_v29 = vpop.f32.mrb[110].mxu0 }
 0x6cc   : > { %v3191_v13 = vpop.f32.mrb[111].mxu0 }
 0x6ce   : > { %3677 = vmatmul.mubr.bf16.gmra.mrb[84].mxu1 %v8013_v48  ;;  %3778 = vmatmul.mubr.bf16.gmra.mrb[136].mxu0 %v8013_v48 }
 0x6cf   : > { %3818 = vmatprep.mubr.bf16.mxu1 %v8598_v35  ;;  %3919 = vmatprep.mubr.bf16.mxu0 %v8598_v35 }
 0x6d6   : > { %3819 = vmatmul.mubr.bf16.vlgmr.msra.gmra.mrb[88].mxu1 %v7891_v22  ;;  %3920 = vmatmul.mubr.bf16.vlgmr.msra.gmra.mrb[140].mxu0 %v7891_v22  ;;  %v8041_v22 = vld [vmem:[%s8588_s8 + $0x10] sm:$0xff]  }
 0x6d7   : > { %3828 = vmatprep.mubr.bf16.mxu1 %v8598_v35  ;;  %3929 = vmatprep.mubr.bf16.mxu0 %v8598_v35 }
 0x6d8   : > { %4153 = vmatpush1.bf16.msra.mxu1 %v8022_v34  ;;  %4302 = vmatpush1.bf16.msra.mxu0 %v8022_v34 }
 0x6d9   : > { %4154 = vmatprep.subr.bf16.mxu1 %v8598_v35  ;;  %4303 = vmatprep.subr.bf16.mxu0 %v8598_v35 }
 0x6dc   : > { %4155 = vmatpush1.bf16.msra.mxu1 %v8032_v11  ;;  %4304 = vmatpush1.bf16.msra.mxu0 %v8032_v11 }
 0x6dd   : > { %4156 = vmatprep.subr.bf16.mxu1 %v8598_v35  ;;  %4305 = vmatprep.subr.bf16.mxu0 %v8598_v35 }
 0x6de   : > { %3829 = vmatmul.mubr.bf16.gmra.mrb[92].mxu1 %v7917_v30  ;;  %3930 = vmatmul.mubr.bf16.gmra.mrb[144].mxu0 %v7917_v30  ;;  %v8063_v30 = vld [vmem:[%s8588_s8 + $0x20] sm:$0xff]  }
 0x6df   : > { %3838 = vmatprep.mubr.bf16.mxu1 %v8598_v35  ;;  %3939 = vmatprep.mubr.bf16.mxu0 %v8598_v35 }
 0x6e0   : > { %4157 = vmatpush1.bf16.msra.mxu1 %v8041_v22  ;;  %4306 = vmatpush1.bf16.msra.mxu0 %v8041_v22 }
 0x6e1   : > { %4158 = vmatprep.subr.bf16.mxu1 %v8598_v35  ;;  %4307 = vmatprep.subr.bf16.mxu0 %v8598_v35 }
 0x6e4   : > { %4159 = vmatpush1.bf16.msra.mxu1 %v8054_v6  ;;  %4308 = vmatpush1.bf16.msra.mxu0 %v8054_v6 }
 0x6e5   : > { %4160 = vmatprep.subr.bf16.mxu1 %v8598_v35  ;;  %4309 = vmatprep.subr.bf16.mxu0 %v8598_v35 }
 0x6e6   : > { %3839 = vmatmul.mubr.bf16.gmra.mrb[96].mxu1 %v7949_v15  ;;  %3940 = vmatmul.mubr.bf16.gmra.mrb[148].mxu0 %v7949_v15  ;;  %v8085_v15 = vld [vmem:[%s8588_s8 + $0x30] sm:$0xff]  }
 0x6e7   : > { %3848 = vmatprep.mubr.bf16.mxu1 %v8598_v35  ;;  %3949 = vmatprep.mubr.bf16.mxu0 %v8598_v35 }
 0x6e8   : > { %4161 = vmatpush1.bf16.msra.mxu1 %v8063_v30  ;;  %4310 = vmatpush1.bf16.msra.mxu0 %v8063_v30 }
 0x6e9   : > { %4162 = vmatprep.subr.bf16.mxu1 %v8598_v35  ;;  %4311 = vmatprep.subr.bf16.mxu0 %v8598_v35 }
 0x6ec   : > { %4163 = vmatpush1.bf16.msra.mxu1 %v8076_v33  ;;  %4312 = vmatpush1.bf16.msra.mxu0 %v8076_v33 }
 0x6ed   : > { %4164 = vmatprep.subr.bf16.mxu1 %v8598_v35  ;;  %4313 = vmatprep.subr.bf16.mxu0 %v8598_v35 }
 0x6ee   : > { %3849 = vmatmul.mubr.bf16.gmra.mrb[100].mxu1 %v7981_v25  ;;  %3950 = vmatmul.mubr.bf16.gmra.mrb[152].mxu0 %v7981_v25  ;;  %v8129_v25 = vld [vmem:[%s8588_s8 + $0x50] sm:$0xff]  }
 0x6ef   : > { %3858 = vmatprep.mubr.bf16.mxu1 %v8598_v35  ;;  %3959 = vmatprep.mubr.bf16.mxu0 %v8598_v35 }
 0x6f0   : > { %4165 = vmatpush1.bf16.msra.mxu1 %v8085_v15  ;;  %4314 = vmatpush1.bf16.msra.mxu0 %v8085_v15 }
 0x6f1   : > { %4166 = vmatprep.subr.bf16.mxu1 %v8598_v35  ;;  %4315 = vmatprep.subr.bf16.mxu0 %v8598_v35 }
 0x6f4   : > { %4167 = vmatpush1.bf16.msra.mxu1 %v8098_v37  ;;  %4316 = vmatpush1.bf16.msra.mxu0 %v8098_v37 }
 0x6f5   : > { %4168 = vmatprep.subr.bf16.mxu1 %v8598_v35  ;;  %4317 = vmatprep.subr.bf16.mxu0 %v8598_v35 }
 0x6f6   : > { %3859 = vmatmul.mubr.bf16.gmra.mrb[104].mxu1 %v7995_v2  ;;  %3960 = vmatmul.mubr.bf16.gmra.mrb[156].mxu0 %v7995_v2 }
 0x6f7   : > { %3868 = vmatprep.mubr.bf16.mxu1 %v8598_v35  ;;  %3969 = vmatprep.mubr.bf16.mxu0 %v8598_v35 }
 0x6f8   : > { %4169 = vmatpush1.bf16.msra.mxu1 %v8107_v24  ;;  %4318 = vmatpush1.bf16.msra.mxu0 %v8107_v24 }
 0x6f9   : > { %4170 = vmatprep.subr.bf16.mxu1 %v8598_v35  ;;  %4319 = vmatprep.subr.bf16.mxu0 %v8598_v35 }
 0x6fc   : > { %4171 = vmatpush1.bf16.msra.mxu1 %v8120_v61  ;;  %4320 = vmatpush1.bf16.msra.mxu0 %v8120_v61 }
 0x6fd   : > { %4172 = vmatprep.subr.bf16.mxu1 %v8598_v35  ;;  %4321 = vmatprep.subr.bf16.mxu0 %v8598_v35 }
 0x6fe   : > { %3869 = vmatmul.mubr.bf16.gmra.mrb[108].mxu1 %v8005_v10  ;;  %3970 = vmatmul.mubr.bf16.gmra.mrb[160].mxu0 %v8005_v10 }
 0x6ff   : > { %3878 = vmatprep.mubr.bf16.mxu1 %v8598_v35  ;;  %3979 = vmatprep.mubr.bf16.mxu0 %v8598_v35 }
 0x700   : > { %4173 = vmatpush1.bf16.msra.mxu1 %v8129_v25  ;;  %4322 = vmatpush1.bf16.msra.mxu0 %v8129_v25 }
 0x701   : > { %4174 = vmatprep.subr.bf16.mxu1 %v8598_v35  ;;  %4323 = vmatprep.subr.bf16.mxu0 %v8598_v35 }
 0x704   : > { %4175 = vmatpush1.bf16.msra.mxu1 %v8142_v36  ;;  %4324 = vmatpush1.bf16.msra.mxu0 %v8142_v36 }
 0x705   : > { %4176 = vmatprep.subr.bf16.mxu1 %v8598_v35  ;;  %4325 = vmatprep.subr.bf16.mxu0 %v8598_v35 }
 0x706   : > { %3879 = vmatmul.mubr.bf16.gmra.mrb[112].mxu1 %v8013_v48  ;;  %3980 = vmatmul.mubr.bf16.gmra.mrb[164].mxu0 %v8013_v48 }
 0x708   : > { %4177 = vmatpush1.bf16.msra.mxu1 %v8154_v5  ;;  %4326 = vmatpush1.bf16.msra.mxu0 %v8154_v5 }
 0x709   : > { %5525 = vmatprep.subr.bf16.mxu1 %v8598_v35 }
 0x771   : > { %v3618_v62 = vpop.f32.mrb[60].mxu1  ;;  %v8162_v42 = vpop.f32.mrb[112].mxu0 }
 0x772   : > { %v4013_v43 = vmul.f32 %v3618_v62, %v7820_v26  ;;  %v3620_v51 = vpop.f32.mrb[61].mxu1  ;;  %v8165_v50 = vpop.f32.mrb[113].mxu0 }
 0x773   : > { %v4014_v32 = vmul.f32 %v3620_v51, %v7822_v52  ;;  %v3622_v12 = vpop.f32.mrb[62].mxu1  ;;  %v8168_v49 = vpop.f32.mrb[114].mxu0 }
 0x774   : > { %v4015_v46 = vmul.f32 %v3622_v12, %v7824_v63  ;;  %v3624_v3 = vpop.f32.mrb[63].mxu1  ;;  %v8171_v2 = vpop.f32.mrb[115].mxu0 }
 0x775   : > { %v4016_v47 = vmul.f32 %v3624_v3, %v7826_v20 }
 0x776   : > { %v4039_v31 = vpack.c.bf16 %v4015_v46, %v4013_v43 }
 0x777   : > { %v4040_v8 = vpack.c.bf16 %v4016_v47, %v4014_v32 }
 0x779   : > { %v3628_v55 = vpop.f32.mrb[64].mxu1  ;;  %v8174_v17 = vpop.f32.mrb[116].mxu0  ;;  %5463 = vmatprep.mubr.msk.bf16.mxu1 %vm720_vm0, %v4040_v8 }
 0x77a   : > { %v4017_v10 = vmul.f32 %v3628_v55, %v7828_v0  ;;  %v3630_v59 = vpop.f32.mrb[65].mxu1  ;;  %v8178_v19 = vpop.f32.mrb[117].mxu0  ;;  %4185 = vmatmul.mubr.bf16.vlgmr.msra.gmra.mrb[116].mxu1 %v4039_v31 }
 0x77b   : > { %v4018_v4 = vmul.f32 %v3630_v59, %v7830_v39  ;;  %v3632_v29 = vpop.f32.mrb[66].mxu1  ;;  %v8181_v48 = vpop.f32.mrb[118].mxu0  ;;  %5538 = vmatpush1.bf16.msra.mxu1 %v8022_v34 }
 0x77c   : > { %v4019_v13 = vmul.f32 %v3632_v29, %v7832_v16  ;;  %v3634_v60 = vpop.f32.mrb[67].mxu1  ;;  %v8185_v62 = vpop.f32.mrb[119].mxu0  ;;  %5526 = vmatprep.subr.bf16.mxu1 %v8598_v35 }
 0x77d   : > { %v4020_v43 = vmul.f32 %v3634_v60, %v7834_v40 }
 0x77e   : > { %v4041_v51 = vpack.c.bf16 %v4019_v13, %v4017_v10 }
 0x77f   : > { %v4042_v32 = vpack.c.bf16 %v4020_v43, %v4018_v4  ;;  %5539 = vmatpush1.bf16.msra.mxu1 %v8032_v11 }
 0x780   : > { %5527 = vmatprep.subr.bf16.mxu1 %v8598_v35 }
 0x781   : > { %v3638_v12 = vpop.f32.mrb[68].mxu1  ;;  %v8191_v46 = vpop.f32.mrb[120].mxu0  ;;  %5464 = vmatprep.mubr.msk.bf16.mxu1 %vm720_vm0, %v4042_v32 }
 0x782   : > { %v4021_v34 = vmul.f32 %v3638_v12, %v7836_v1  ;;  %v3640_v3 = vpop.f32.mrb[69].mxu1  ;;  %v8195_v47 = vpop.f32.mrb[121].mxu0  ;;  %4193 = vmatmul.mubr.bf16.gmra.mrb[120].mxu1 %v4041_v51 }
 0x783   : > { %v4022_v31 = vmul.f32 %v3640_v3, %v7838_v57  ;;  %v3642_v8 = vpop.f32.mrb[70].mxu1  ;;  %v8198_v55 = vpop.f32.mrb[122].mxu0  ;;  %5540 = vmatpush1.bf16.msra.mxu1 %v8041_v22 }
 0x784   : > { %v4023_v11 = vmul.f32 %v3642_v8, %v7840_v45  ;;  %v3644_v10 = vpop.f32.mrb[71].mxu1  ;;  %v8202_v59 = vpop.f32.mrb[123].mxu0  ;;  %5528 = vmatprep.subr.bf16.mxu1 %v8598_v35 }
 0x785   : > { %v4024_v4 = vmul.f32 %v3644_v10, %v7842_v58 }
 0x786   : > { %v4043_v29 = vpack.c.bf16 %v4023_v11, %v4021_v34 }
 0x787   : > { %v4044_v13 = vpack.c.bf16 %v4024_v4, %v4022_v31  ;;  %5541 = vmatpush1.bf16.msra.mxu1 %v8054_v6 }
 0x788   : > { %5529 = vmatprep.subr.bf16.mxu1 %v8598_v35 }
 0x789   : > { %v3648_v60 = vpop.f32.mrb[72].mxu1  ;;  %v8208_v43 = vpop.f32.mrb[124].mxu0  ;;  %5465 = vmatprep.mubr.msk.bf16.mxu1 %vm720_vm0, %v4044_v13 }
 0x78a   : > { %v4025_v22 = vmul.f32 %v3648_v60, %v7844_v44  ;;  %v3650_v51 = vpop.f32.mrb[73].mxu1  ;;  %v8212_v32 = vpop.f32.mrb[125].mxu0  ;;  %4201 = vmatmul.mubr.bf16.gmra.mrb[124].mxu1 %v4043_v29 }
 0x78b   : > { %v4026_v12 = vmul.f32 %v3650_v51, %v7846_v7  ;;  %v3652_v3 = vpop.f32.mrb[74].mxu1  ;;  %v8215_v34 = vpop.f32.mrb[126].mxu0  ;;  %5542 = vmatpush1.bf16.msra.mxu1 %v8063_v30 }
 0x78c   : > { %v4027_v6 = vmul.f32 %v3652_v3, %v7848_v38  ;;  %v3654_v31 = vpop.f32.mrb[75].mxu1  ;;  %v8219_v8 = vpop.f32.mrb[127].mxu0  ;;  %5530 = vmatprep.subr.bf16.mxu1 %v8598_v35 }
 0x78d   : > { %8610 = vst [vmem:[#allocation4_spill] sm:$0xff] %v8219_v8  ;;  %v4028_v11 = vmul.f32 %v3654_v31, %v7850_v23 }
 0x78e   : > { %v4045_v10 = vpack.c.bf16 %v4027_v6, %v4025_v22 }
 0x78f   : > { %v4046_v4 = vpack.c.bf16 %v4028_v11, %v4026_v12  ;;  %5543 = vmatpush1.bf16.msra.mxu1 %v8076_v33 }
 0x790   : > { %5531 = vmatprep.subr.bf16.mxu1 %v8598_v35 }
 0x791   : > { %v3658_v29 = vpop.f32.mrb[76].mxu1  ;;  %v8225_v13 = vpop.f32.mrb[128].mxu0  ;;  %5466 = vmatprep.mubr.msk.bf16.mxu1 %vm720_vm0, %v4046_v4 }
 0x792   : > { %8611 = vst [vmem:[#allocation2_spill] sm:$0xff] %v8225_v13  ;;  %v4029_v30 = vmul.f32 %v3658_v29, %v7852_v14  ;;  %v3660_v60 = vpop.f32.mrb[77].mxu1  ;;  %v8229_v51 = vpop.f32.mrb[129].mxu0  ;;  %4209 = vmatmul.mubr.bf16.gmra.mrb[128].mxu1 %v4045_v10 }
 0x793   : > { %8612 = vst [vmem:[#allocation3_spill] sm:$0xff] %v8229_v51  ;;  %v4030_v3 = vmul.f32 %v3660_v60, %v7854_v28  ;;  %v3662_v31 = vpop.f32.mrb[78].mxu1  ;;  %v8232_v22 = vpop.f32.mrb[130].mxu0  ;;  %5544 = vmatpush1.bf16.msra.mxu1 %v8085_v15 }
 0x794   : > { %8613 = vst [vmem:[#allocation6_spill] sm:$0xff] %v8232_v22  ;;  %v4031_v33 = vmul.f32 %v3662_v31, %v7856_v54  ;;  %v3664_v12 = vpop.f32.mrb[79].mxu1  ;;  %v8236_v6 = vpop.f32.mrb[131].mxu0  ;;  %5532 = vmatprep.subr.bf16.mxu1 %v8598_v35 }
 0x795   : > { %8614 = vst [vmem:[#allocation5_spill] sm:$0xff] %v8236_v6  ;;  %v4032_v11 = vmul.f32 %v3664_v12, %v7858_v53 }
 0x796   : > { %v4047_v4 = vpack.c.bf16 %v4031_v33, %v4029_v30 }
 0x797   : > { %v4048_v29 = vpack.c.bf16 %v4032_v11, %v4030_v3  ;;  %5545 = vmatpush1.bf16.msra.mxu1 %v8098_v37 }
 0x798   : > { %5533 = vmatprep.subr.bf16.mxu1 %v8598_v35 }
 0x799   : > { %v3668_v10 = vpop.f32.mrb[80].mxu1  ;;  %v8242_v60 = vpop.f32.mrb[132].mxu0  ;;  %5467 = vmatprep.mubr.msk.bf16.mxu1 %vm720_vm0, %v4048_v29 }
 0x79a   : > { %8615 = vst [vmem:[#allocation7_spill] sm:$0xff] %v8242_v60  ;;  %v4033_v15 = vmul.f32 %v3668_v10, %v7860_v27  ;;  %v3670_v31 = vpop.f32.mrb[81].mxu1  ;;  %v8246_v22 = vpop.f32.mrb[133].mxu0  ;;  %4217 = vmatmul.mubr.bf16.gmra.mrb[132].mxu1 %v4047_v4 }
 0x79b   : > { %8616 = vst [vmem:[#allocation8_spill] sm:$0xff] %v8246_v22  ;;  %v4034_v6 = vmul.f32 %v3670_v31, %v7862_v18  ;;  %v3672_v12 = vpop.f32.mrb[82].mxu1  ;;  %v8249_v30 = vpop.f32.mrb[134].mxu0  ;;  %5546 = vmatpush1.bf16.msra.mxu1 %v8107_v24 }
 0x79c   : > { %8617 = vst [vmem:[#allocation9_spill] sm:$0xff] %v8249_v30  ;;  %v4035_v37 = vmul.f32 %v3672_v12, %v7864_v41  ;;  %v3674_v3 = vpop.f32.mrb[83].mxu1  ;;  %v8253_v33 = vpop.f32.mrb[135].mxu0  ;;  %5534 = vmatprep.subr.bf16.mxu1 %v8598_v35 }
 0x79d   : > { %8618 = vst [vmem:[#allocation10_spill] sm:$0xff] %v8253_v33  ;;  %v4036_v11 = vmul.f32 %v3674_v3, %v7866_v21 }
 0x79e   : > { %v4049_v29 = vpack.c.bf16 %v4035_v37, %v4033_v15 }
 0x79f   : > { %v4050_v10 = vpack.c.bf16 %v4036_v11, %v4034_v6  ;;  %5547 = vmatpush1.bf16.msra.mxu1 %v8120_v61 }
 0x7a0   : > { %5535 = vmatprep.subr.bf16.mxu1 %v8598_v35 }
 0x7a1   : > { %v3678_v4 = vpop.f32.mrb[84].mxu1  ;;  %v8259_v31 = vpop.f32.mrb[136].mxu0  ;;  %5468 = vmatprep.mubr.msk.bf16.mxu1 %vm720_vm0, %v4050_v10 }
 0x7a2   : > { %8619 = vst [vmem:[#allocation11_spill] sm:$0xff] %v8259_v31  ;;  %v4037_v24 = vmul.f32 %v3678_v4, %v7868_v56  ;;  %v3680_v12 = vpop.f32.mrb[85].mxu1  ;;  %v8263_v30 = vpop.f32.mrb[137].mxu0  ;;  %4225 = vmatmul.mubr.bf16.gmra.mrb[136].mxu1 %v4049_v29 }
 0x7a3   : > { %8620 = vst [vmem:[#allocation12_spill] sm:$0xff] %v8263_v30  ;;  %v4038_v33 = vmul.f32 %v3680_v12, %v7870_v9  ;;  %v3682_v3 = vpop.f32.mrb[86].mxu1  ;;  %v3783_v15 = vpop.f32.mrb[138].mxu0  ;;  %5548 = vmatpush1.bf16.msra.mxu1 %v8129_v25  ;;  %v8625_v30 = vmov 0  }
 0x7a4   : > { %v3683_v61 = vpop.f32.mrb[87].mxu1  ;;  %v3784_v6 = vpop.f32.mrb[139].mxu0  ;;  %5536 = vmatprep.subr.bf16.mxu1 %v8598_v35  ;;  %v4051_v11 = vpack.c.bf16 %v4037_v24, %v4037_v24 }
 0x7a5   : > { %v4052_v37 = vpack.c.bf16 %v4038_v33, %v4038_v33 }
 0x7a7   : > { %5469 = vmatprep.mubr.msk.bf16.mxu1 %vm720_vm0, %v4052_v37  ;;  %5549 = vmatpush1.bf16.msra.mxu1 %v8142_v36 }
 0x7a8   : > { %5537 = vmatprep.subr.bf16.mxu1 %v8598_v35 }
 0x7a9   : > { %v3820_v10 = vpop.f32.mrb[88].mxu1  ;;  %v8271_v29 = vpop.f32.mrb[140].mxu0 }
 0x7aa   : > { %v4240_v4 = vmul.f32 %v3820_v10, %v7820_v26  ;;  %v3822_v12 = vpop.f32.mrb[89].mxu1  ;;  %v8274_v3 = vpop.f32.mrb[141].mxu0  ;;  %4233 = vmatmul.mubr.bf16.gmra.mrb[140].mxu1 %v4051_v11 }
 0x7ab   : > { %v4241_v25 = vmul.f32 %v3822_v12, %v7822_v52  ;;  %v3824_v15 = vpop.f32.mrb[90].mxu1  ;;  %v8277_v33 = vpop.f32.mrb[142].mxu0  ;;  %5550 = vmatpush1.bf16.msra.mxu1 %v8154_v5 }
 0x7ac   : > { %v4242_v36 = vmul.f32 %v3824_v15, %v7824_v63  ;;  %v3826_v24 = vpop.f32.mrb[91].mxu1  ;;  %v8281_v61 = vpop.f32.mrb[143].mxu0 }
 0x7ad   : > { %v4243_v6 = vmul.f32 %v3826_v24, %v7826_v20 }
 0x7ae   : > { %v4266_v37 = vpack.c.bf16 %v4242_v36, %v4240_v4 }
 0x7af   : > { %v4267_v26 = vpack.c.bf16 %v4243_v6, %v4241_v25 }
 0x7b1   : > { %v3830_v10 = vpop.f32.mrb[92].mxu1  ;;  %v8284_v35 = vpop.f32.mrb[144].mxu0  ;;  %5470 = vmatprep.mubr.msk.bf16.mxu0 %vm720_vm0, %v4267_v26 }
 0x7b2   : > { %v4244_v52 = vmul.f32 %v3830_v10, %v7828_v0  ;;  %v3832_v11 = vpop.f32.mrb[93].mxu1  ;;  %v8288_v12 = vpop.f32.mrb[145].mxu0  ;;  %4334 = vmatmul.mubr.bf16.vlgmr.msra.gmra.mrb[168].mxu0 %v4266_v37 }
 0x7b3   : > { %v4245_v63 = vmul.f32 %v3832_v11, %v7830_v39  ;;  %v3834_v5 = vpop.f32.mrb[94].mxu1  ;;  %v8291_v15 = vpop.f32.mrb[146].mxu0 }
 0x7b4   : > { %v4246_v20 = vmul.f32 %v3834_v5, %v7832_v16  ;;  %v3836_v4 = vpop.f32.mrb[95].mxu1  ;;  %v8294_v25 = vpop.f32.mrb[147].mxu0 }
 0x7b5   : > { %v4247_v36 = vmul.f32 %v3836_v4, %v7834_v40 }
 0x7b6   : > { %v4268_v24 = vpack.c.bf16 %v4246_v20, %v4244_v52 }
 0x7b7   : > { %v4269_v6 = vpack.c.bf16 %v4247_v36, %v4245_v63 }
 0x7b9   : > { %v3840_v26 = vpop.f32.mrb[96].mxu1  ;;  %v8297_v0 = vpop.f32.mrb[148].mxu0  ;;  %5471 = vmatprep.mubr.msk.bf16.mxu0 %vm720_vm0, %v4269_v6 }
 0x7ba   : > { %v4248_v37 = vmul.f32 %v3840_v26, %v7836_v1  ;;  %v3842_v39 = vpop.f32.mrb[97].mxu1  ;;  %v8301_v10 = vpop.f32.mrb[149].mxu0  ;;  %4342 = vmatmul.mubr.bf16.gmra.mrb[172].mxu0 %v4268_v24 }
 0x7bb   : > { %v4249_v16 = vmul.f32 %v3842_v39, %v7838_v57  ;;  %v3844_v11 = vpop.f32.mrb[98].mxu1  ;;  %v8304_v5 = vpop.f32.mrb[150].mxu0 }
 0x7bc   : > { %v4250_v40 = vmul.f32 %v3844_v11, %v7840_v45  ;;  %v3846_v52 = vpop.f32.mrb[99].mxu1  ;;  %v8307_v63 = vpop.f32.mrb[151].mxu0 }
 0x7bd   : > { %v4251_v20 = vmul.f32 %v3846_v52, %v7842_v58 }
 0x7be   : > { %v4270_v4 = vpack.c.bf16 %v4250_v40, %v4248_v37 }
 0x7bf   : > { %v4271_v36 = vpack.c.bf16 %v4251_v20, %v4249_v16 }
 0x7c1   : > { %v3850_v6 = vpop.f32.mrb[100].mxu1  ;;  %v8310_v1 = vpop.f32.mrb[152].mxu0  ;;  %5472 = vmatprep.mubr.msk.bf16.mxu0 %vm720_vm0, %v4271_v36 }
 0x7c2   : > { %v4252_v24 = vmul.f32 %v3850_v6, %v7844_v44  ;;  %v3852_v57 = vpop.f32.mrb[101].mxu1  ;;  %v8314_v26 = vpop.f32.mrb[153].mxu0  ;;  %4350 = vmatmul.mubr.bf16.gmra.mrb[176].mxu0 %v4270_v4 }
 0x7c3   : > { %v4253_v45 = vmul.f32 %v3852_v57, %v7846_v7  ;;  %v3854_v39 = vpop.f32.mrb[102].mxu1  ;;  %v8317_v11 = vpop.f32.mrb[154].mxu0 }
 0x7c4   : > { %v4254_v58 = vmul.f32 %v3854_v39, %v7848_v38  ;;  %v3856_v37 = vpop.f32.mrb[103].mxu1  ;;  %v8320_v16 = vpop.f32.mrb[155].mxu0 }
 0x7c5   : > { %8621 = vst [vmem:[#allocation13_spill] sm:$0xff] %v8320_v16  ;;  %v4255_v40 = vmul.f32 %v3856_v37, %v7850_v23 }
 0x7c6   : > { %v4272_v52 = vpack.c.bf16 %v4254_v58, %v4252_v24 }
 0x7c7   : > { %v4273_v20 = vpack.c.bf16 %v4255_v40, %v4253_v45 }
 0x7c9   : > { %v3860_v36 = vpop.f32.mrb[104].mxu1  ;;  %v8323_v44 = vpop.f32.mrb[156].mxu0  ;;  %5473 = vmatprep.mubr.msk.bf16.mxu0 %vm720_vm0, %v4273_v20 }
 0x7ca   : > { %8622 = vst [vmem:[#allocation14_spill] sm:$0xff] %v8323_v44  ;;  %v4256_v4 = vmul.f32 %v3860_v36, %v7852_v14  ;;  %v3862_v7 = vpop.f32.mrb[105].mxu1  ;;  %v8327_v6 = vpop.f32.mrb[157].mxu0  ;;  %4358 = vmatmul.mubr.bf16.gmra.mrb[180].mxu0 %v4272_v52 }
 0x7cb   : > { %8623 = vst [vmem:[#allocation15_spill] sm:$0xff] %v8327_v6  ;;  %v4257_v38 = vmul.f32 %v3862_v7, %v7854_v28  ;;  %v3864_v57 = vpop.f32.mrb[106].mxu1  ;;  %v8330_v39 = vpop.f32.mrb[158].mxu0  ;;  %4747 = vmatprep.mubr.bf16.mxu0 %v8625_v30 }
 0x7cc   : > { %8624 = vst [vmem:[#allocation16_spill] sm:$0xff] %v8330_v39  ;;  %v4258_v23 = vmul.f32 %v3864_v57, %v7856_v54  ;;  %v3866_v24 = vpop.f32.mrb[107].mxu1  ;;  %v8334_v45 = vpop.f32.mrb[159].mxu0 }
 0x7cd   : > { %8626 = vst [vmem:[#allocation17_spill] sm:$0xff] %v8334_v45  ;;  %v4259_v58 = vmul.f32 %v3866_v24, %v7858_v53 }
 0x7ce   : > { %v4274_v37 = vpack.c.bf16 %v4258_v23, %v4256_v4 }
 0x7cf   : > { %v4275_v14 = vpack.c.bf16 %v4259_v58, %v4257_v38 }
 0x7d1   : > { %v3870_v40 = vpop.f32.mrb[108].mxu1  ;;  %v8337_v20 = vpop.f32.mrb[160].mxu0  ;;  %5474 = vmatprep.mubr.msk.bf16.mxu1 %vm720_vm0, %v4275_v14 }
 0x7d2   : > { %8627 = vst [vmem:[#allocation18_spill] sm:$0xff] %v8337_v20  ;;  %v4260_v28 = vmul.f32 %v3870_v40, %v7860_v27  ;;  %v3872_v52 = vpop.f32.mrb[109].mxu1  ;;  %v8341_v36 = vpop.f32.mrb[161].mxu0  ;;  %4366 = vmatmul.mubr.bf16.vlgmr.msra.gmra.mrb[144].mxu1 %v4274_v37 }
 0x7d3   : > { %8628 = vst [vmem:[#allocation19_spill] sm:$0xff] %v8341_v36  ;;  %v4261_v54 = vmul.f32 %v3872_v52, %v7862_v18  ;;  %v3874_v7 = vpop.f32.mrb[110].mxu1  ;;  %v8344_v57 = vpop.f32.mrb[162].mxu0 }
 0x7d4   : > { %8629 = vst [vmem:[#allocation20_spill] sm:$0xff] %v8344_v57  ;;  %v4262_v53 = vmul.f32 %v3874_v7, %v7864_v41  ;;  %v3876_v4 = vpop.f32.mrb[111].mxu1  ;;  %v8347_v38 = vpop.f32.mrb[163].mxu0 }
 0x7d5   : > { %8630 = vst [vmem:[#allocation21_spill] sm:$0xff] %v8347_v38  ;;  %v4263_v23 = vmul.f32 %v3876_v4, %v7866_v21 }
 0x7d6   : > { %v4276_v24 = vpack.c.bf16 %v4262_v53, %v4260_v28 }
 0x7d7   : > { %v4277_v58 = vpack.c.bf16 %v4263_v23, %v4261_v54  ;;  %v5883_v54 = vld [vmem:[%s8589_s9] ss:$8 sps:$4 sm:$0xff]  }
 0x7d9   : > { %v3880_v14 = vpop.f32.mrb[112].mxu1  ;;  %v8350_v27 = vpop.f32.mrb[164].mxu0  ;;  %5475 = vmatprep.mubr.msk.bf16.mxu1 %vm720_vm0, %v4277_v58 }
 0x7da   : > { %8631 = vst [vmem:[#allocation22_spill] sm:$0xff] %v8350_v27  ;;  %v4264_v37 = vmul.f32 %v3880_v14, %v7868_v56  ;;  %v3882_v18 = vpop.f32.mrb[113].mxu1  ;;  %v8354_v40 = vpop.f32.mrb[165].mxu0  ;;  %4374 = vmatmul.mubr.bf16.gmra.mrb[148].mxu1 %v4276_v24  ;;  %v5885_v56 = vld [vmem:[%s8589_s9 + $0x4] ss:$8 sps:$4 sm:$0xff]  }
 0x7db   : > { %8632 = vst [vmem:[#allocation23_spill] sm:$0xff] %v8354_v40  ;;  %v4265_v41 = vmul.f32 %v3882_v18, %v7870_v9  ;;  %v3884_v52 = vpop.f32.mrb[114].mxu1  ;;  %v3985_v7 = vpop.f32.mrb[166].mxu0  ;;  %4715 = vmatprep.subr.bf16.mxu0 %v5885_v56  ;;  %4573 = vmatprep.subr.bf16.mxu1 %v5885_v56  ;;  %v4508_v9 = vld [vmem:[%s8589_s9 + $0x10] sm:$0x33] }
 0x7dc   : > { %v3885_v31 = vpop.f32.mrb[115].mxu1  ;;  %v3986_v38 = vpop.f32.mrb[167].mxu0  ;;  %v4278_v28 = vpack.c.bf16 %v4264_v37, %v4264_v37  ;;  %4716 = vmatpush1.bf16.msra.mxu0 %v5883_v54  ;;  %4574 = vmatpush1.bf16.msra.mxu1 %v5883_v54  ;;  %v5479_v53 = vcombine.low %v4508_v9, %v4508_v9 }
 0x7dd   : > { %v4279_v21 = vpack.c.bf16 %v4265_v41, %v4265_v41  ;;  %v5480_v31 = vcombine.high %v4508_v9, %v4508_v9 }
 0x7de   : > { %v4568_v4 = vsel %vm4566_vm5, %v5479_v53, 0 }
 0x7df   : > { %5476 = vmatprep.mubr.msk.bf16.mxu1 %vm720_vm0, %v4279_v21  ;;  %5489 = vmatprep.subr.msk.bf16.mxu0 %vm4566_vm5, %v5480_v31 }
 0x7e0   : > { %5481 = vmatprep.subr.msk.bf16.mxu1 %vm4566_vm5, %v5480_v31  ;;  %4718 = vmatpush1.bf16.msra.mxu0 %v4568_v4 }
 0x7e1   : > { %4576 = vmatpush1.bf16.msra.mxu1 %v4568_v4 }
 0x7e2   : > { %4382 = vmatmul.mubr.bf16.gmra.mrb[152].mxu1 %v4278_v28 }
 0x7e3   : > { %4605 = vmatprep.mubr.bf16.mxu1 %v8625_v30 }
 0x84d   : > { %v4186_v38 = vpop.f32.mrb[116].mxu1 }
 0x84e   : > { %v4188_v23 = vpop.f32.mrb[117].mxu1 }
 0x84f   : > { %v4189_v24 = vpop.f32.mrb[118].mxu1 }
 0x850   : > { %v4191_v58 = vpop.f32.mrb[119].mxu1 }
 0x855   : > { %v4194_v14 = vpop.f32.mrb[120].mxu1 }
 0x856   : > { %v4196_v37 = vpop.f32.mrb[121].mxu1 }
 0x857   : > { %v4197_v18 = vpop.f32.mrb[122].mxu1 }
 0x858   : > { %v4199_v41 = vpop.f32.mrb[123].mxu1 }
 0x85d   : > { %v8371_v52 = vpop.f32.mrb[124].mxu1 }
 0x85e   : > { %v4204_v7 = vpop.f32.mrb[125].mxu1 }
 0x85f   : > { %v8373_v21 = vpop.f32.mrb[126].mxu1 }
 0x860   : > { %v4207_v28 = vpop.f32.mrb[127].mxu1 }
 0x865   : > { %v8375_v56 = vpop.f32.mrb[128].mxu1 }
 0x866   : > { %v4212_v54 = vpop.f32.mrb[129].mxu1 }
 0x867   : > { %v8377_v9 = vpop.f32.mrb[130].mxu1 }
 0x868   : > { %v4215_v31 = vpop.f32.mrb[131].mxu1 }
 0x86d   : > { %v8379_v53 = vpop.f32.mrb[132].mxu1 }
 0x86e   : > { %v4220_v4 = vpop.f32.mrb[133].mxu1 }
 0x86f   : > { %v8381_v23 = vpop.f32.mrb[134].mxu1 }
 0x870   : > { %v4223_v58 = vpop.f32.mrb[135].mxu1 }
 0x875   : > { %v8383_v37 = vpop.f32.mrb[136].mxu1 }
 0x876   : > { %v4228_v41 = vpop.f32.mrb[137].mxu1 }
 0x877   : > { %v8385_v40 = vpop.f32.mrb[138].mxu1 }
 0x878   : > { %v4231_v7 = vpop.f32.mrb[139].mxu1 }
 0x87d   : > { %v8387_v27 = vpop.f32.mrb[140].mxu1 }
 0x87e   : > { %v4236_v28 = vpop.f32.mrb[141].mxu1 }
 0x87f   : > { %v4237_v57 = vpop.f32.mrb[142].mxu1 }
 0x880   : > { %v4238_v54 = vpop.f32.mrb[143].mxu1 }
 0x885   : > { %v4335_v36 = vpop.f32.mrb[168].mxu0 }
 0x886   : > { %v4389_v22 = vmax.f32 %v4186_v38, %v4335_v36  ;;  %v4337_v31 = vpop.f32.mrb[169].mxu0 }
 0x887   : > { %v4338_v20 = vpop.f32.mrb[170].mxu0 }
 0x888   : > { %v4402_v60 = vsub.f32 %v4186_v38, %v4389_v22  ;;  %v4441_v4 = vsub.f32 %v4335_v36, %v4389_v22  ;;  %v4390_v45 = vmax.f32 %v4189_v24, %v4338_v20  ;;  %v4340_v39 = vpop.f32.mrb[171].mxu0 }
 0x88a   : > { %v4415_v58 = vmul.f32 1.442695, %v4402_v60  ;;  %v4454_v6 = vmul.f32 1.442695, %v4441_v4  ;;  %v4403_v51 = vsub.f32 %v4189_v24, %v4390_v45  ;;  %v4442_v41 = vsub.f32 %v4338_v20, %v4390_v45 }
 0x88c   : > { %5940 = vpow2.f32 %v4415_v58  ;;  %v4417_v44 = vmul.f32 1.442695, %v4403_v51  ;;  %v4456_v7 = vmul.f32 1.442695, %v4442_v41 }
 0x88d   : > { %5942 = vpow2.f32 %v4454_v6  ;;  %v4343_v13 = vpop.f32.mrb[172].mxu0 }
 0x88e   : > { %5944 = vpow2.f32 %v4417_v44  ;;  %v4391_v57 = vmax.f32 %v4194_v14, %v4343_v13  ;;  %v4345_v28 = vpop.f32.mrb[173].mxu0 }
 0x88f   : > { %5946 = vpow2.f32 %v4456_v7  ;;  %v4346_v54 = vpop.f32.mrb[174].mxu0 }
 0x890   : > { %v4404_v31 = vsub.f32 %v4194_v14, %v4391_v57  ;;  %v4443_v16 = vsub.f32 %v4343_v13, %v4391_v57  ;;  %v4392_v38 = vmax.f32 %v4197_v18, %v4346_v54  ;;  %v4348_v22 = vpop.f32.mrb[175].mxu0 }
 0x892   : > { %v4419_v36 = vmul.f32 1.442695, %v4404_v31  ;;  %v4458_v39 = vmul.f32 1.442695, %v4443_v16  ;;  %v4405_v60 = vsub.f32 %v4197_v18, %v4392_v38  ;;  %v4444_v4 = vsub.f32 %v4346_v54, %v4392_v38 }
 0x894   : > { %5948 = vpow2.f32 %v4419_v36  ;;  %v4421_v45 = vmul.f32 1.442695, %v4405_v60  ;;  %v4460_v20 = vmul.f32 1.442695, %v4444_v4 }
 0x895   : > { %5950 = vpow2.f32 %v4458_v39  ;;  %v4351_v51 = vpop.f32.mrb[176].mxu0 }
 0x896   : > { %v5941_v6 = vpop.eup %5940  ;;  %5952 = vpow2.f32 %v4421_v45  ;;  %v4393_v44 = vmax.f32 %v8371_v52, %v4351_v51  ;;  %v4353_v24 = vpop.f32.mrb[177].mxu0 }
 0x897   : > { %v5943_v58 = vpop.eup %5942  ;;  %5954 = vpow2.f32 %v4460_v20  ;;  %v4354_v14 = vpop.f32.mrb[178].mxu0 }
 0x898   : > { %v5945_v13 = vpop.eup %5944  ;;  %v4480_v41 = vadd.f32 %v5943_v58, %v5941_v6  ;;  %v4406_v7 = vsub.f32 %v8371_v52, %v4393_v44  ;;  %v4445_v16 = vsub.f32 %v4351_v51, %v4393_v44  ;;  %v4394_v18 = vmax.f32 %v8373_v21, %v4354_v14  ;;  %v4356_v57 = vpop.f32.mrb[179].mxu0 }
 0x899   : > { %v5947_v28 = vpop.eup %5946 }
 0x89a   : > { %5956 = vrcp.f32 %v4480_v41  ;;  %v4481_v54 = vadd.f32 %v5947_v28, %v5945_v13  ;;  %v4423_v31 = vmul.f32 1.442695, %v4406_v7  ;;  %v4462_v38 = vmul.f32 1.442695, %v4445_v16 }
 0x89b   : > { %v4407_v22 = vsub.f32 %v8373_v21, %v4394_v18  ;;  %v4446_v36 = vsub.f32 %v4354_v14, %v4394_v18 }
 0x89c   : > { %5958 = vrcp.f32 %v4481_v54 }
 0x89d   : > { %5960 = vpow2.f32 %v4423_v31  ;;  %v4425_v39 = vmul.f32 1.442695, %v4407_v22  ;;  %v4464_v60 = vmul.f32 1.442695, %v4446_v36  ;;  %v4359_v4 = vpop.f32.mrb[180].mxu0 }
 0x89e   : > { %v8393_v45 = vpop.eup %5948  ;;  %5962 = vpow2.f32 %v4462_v38  ;;  %v4395_v52 = vmax.f32 %v8375_v56, %v4359_v4  ;;  %v4361_v20 = vpop.f32.mrb[181].mxu0 }
 0x89f   : > { %v8396_v51 = vpop.eup %5950  ;;  %5964 = vpow2.f32 %v4425_v39  ;;  %v4362_v44 = vpop.f32.mrb[182].mxu0 }
 0x8a0   : > { %v8398_v24 = vpop.eup %5952  ;;  %v4482_v21 = vadd.f32 %v8396_v51, %v8393_v45  ;;  %5966 = vpow2.f32 %v4464_v60  ;;  %v4408_v14 = vsub.f32 %v8375_v56, %v4395_v52  ;;  %v4447_v41 = vsub.f32 %v4359_v4, %v4395_v52  ;;  %v4364_v7 = vpop.f32.mrb[183].mxu0 }
 0x8a1   : > { %v8403_v16 = vpop.eup %5954  ;;  %v4396_v18 = vmax.f32 %v8377_v9, %v4362_v44 }
 0x8a2   : > { %5968 = vrcp.f32 %v4482_v21  ;;  %v4483_v57 = vadd.f32 %v8403_v16, %v8398_v24  ;;  %v4427_v54 = vmul.f32 1.442695, %v4408_v14  ;;  %v4466_v31 = vmul.f32 1.442695, %v4447_v41 }
 0x8a3   : > { %v4409_v38 = vsub.f32 %v8377_v9, %v4396_v18  ;;  %v4448_v22 = vsub.f32 %v4362_v44, %v4396_v18 }
 0x8a4   : > { %v5957_v36 = vpop.eup %5956  ;;  %5970 = vrcp.f32 %v4483_v57 }
 0x8a5   : > { %v4509_v39 = vmul.f32 %v5957_v36, %v5941_v6  ;;  %v4674_v60 = vmul.f32 %v5957_v36, %v5943_v58  ;;  %5972 = vpow2.f32 %v4427_v54  ;;  %v4429_v56 = vmul.f32 1.442695, %v4409_v38  ;;  %v4367_v4 = vpop.f32.mrb[144].mxu1 }
 0x8a6   : > { %v5959_v52 = vpop.eup %5958  ;;  %5974 = vpow2.f32 %v4466_v31  ;;  %v4468_v20 = vmul.f32 1.442695, %v4448_v22  ;;  %v4397_v21 = vmax.f32 %v8379_v53, %v4367_v4  ;;  %v4369_v7 = vpop.f32.mrb[145].mxu1 }
 0x8a7   : > { %v8410_v8 = vpop.eup %5960  ;;  %v4510_v14 = vmul.f32 %v5959_v52, %v5945_v13  ;;  %v4675_v41 = vmul.f32 %v5959_v52, %v5947_v28  ;;  %5976 = vpow2.f32 %v4429_v56  ;;  %v4370_v9 = vpop.f32.mrb[146].mxu1 }
 0x8a8   : > { %v8412_v44 = vpop.eup %5962  ;;  %5978 = vpow2.f32 %v4468_v20  ;;  %v4410_v6 = vsub.f32 %v8379_v53, %v4397_v21  ;;  %v4449_v58 = vsub.f32 %v4367_v4, %v4397_v21  ;;  %v4398_v18 = vmax.f32 %v8381_v23, %v4370_v9  ;;  %v4372_v57 = vpop.f32.mrb[147].mxu1 }
 0x8a9   : > { %v8416_v54 = vpop.eup %5964  ;;  %v4687_v31 = vpack.c.bf16 %v4675_v41, %v4674_v60  ;;  %v4484_v38 = vadd.f32 %v8412_v44, %v8410_v8  ;;  %v4522_v13 = vpack.c.bf16 %v4510_v14, %v4509_v39 }
 0x8aa   : > { %v8420_v28 = vpop.eup %5966  ;;  %v4431_v22 = vmul.f32 1.442695, %v4410_v6  ;;  %v4470_v36 = vmul.f32 1.442695, %v4449_v58  ;;  %v4411_v56 = vsub.f32 %v8381_v23, %v4398_v18  ;;  %v4450_v52 = vsub.f32 %v4370_v9, %v4398_v18 }
 0x8ab   : > { %5980 = vrcp.f32 %v4484_v38  ;;  %v4485_v53 = vadd.f32 %v8420_v28, %v8416_v54  ;;  %5482 = vmatmul.mubr.msk.bf16.vlgmr.msra.gmra.mrb[156].mxu1 %vm4544_vm6, %v4522_v13  ;;  %5490 = vmatmul.mubr.msk.bf16.vlgmr.msra.gmra.mrb[184].mxu0 %vm4544_vm6, %v4687_v31 }
 0x8ac   : > { %v5969_v60 = vpop.eup %5968  ;;  %5982 = vpow2.f32 %v4431_v22  ;;  %v4433_v4 = vmul.f32 1.442695, %v4411_v56  ;;  %v4472_v20 = vmul.f32 1.442695, %v4450_v52  ;;  %4615 = vmatprep.mubr.bf16.mxu1 %v8625_v30  ;;  %4757 = vmatprep.mubr.bf16.mxu0 %v8625_v30 }
 0x8ad   : > { %5984 = vrcp.f32 %v4485_v53  ;;  %v4375_v39 = vpop.f32.mrb[148].mxu1  ;;  %v4511_v23 = vmul.f32 %v5969_v60, %v8393_v45  ;;  %v4676_v21 = vmul.f32 %v5969_v60, %v8396_v51 }
 0x8ae   : > { %v5971_v7 = vpop.eup %5970  ;;  %5986 = vpow2.f32 %v4470_v36  ;;  %v4399_v14 = vmax.f32 %v8383_v37, %v4375_v39  ;;  %v4377_v41 = vpop.f32.mrb[149].mxu1 }
 0x8af   : > { %v8432_v9 = vpop.eup %5972  ;;  %5988 = vpow2.f32 %v4433_v4  ;;  %v4378_v6 = vpop.f32.mrb[150].mxu1  ;;  %v4512_v58 = vmul.f32 %v5971_v7, %v8398_v24  ;;  %v4677_v18 = vmul.f32 %v5971_v7, %v8403_v16 }
 0x8b0   : > { %v5975_v57 = vpop.eup %5974  ;;  %5990 = vpow2.f32 %v4472_v20  ;;  %v4412_v31 = vsub.f32 %v8383_v37, %v4399_v14  ;;  %v4451_v45 = vsub.f32 %v4375_v39, %v4399_v14  ;;  %v4400_v51 = vmax.f32 %v8385_v40, %v4378_v6  ;;  %v4380_v38 = vpop.f32.mrb[151].mxu1 }
 0x8b1   : > { %v5977_v13 = vpop.eup %5976  ;;  %v4486_v22 = vadd.f32 %v5975_v57, %v8432_v9  ;;  %v4523_v36 = vpack.c.bf16 %v4512_v58, %v4511_v23  ;;  %v4688_v56 = vpack.c.bf16 %v4677_v18, %v4676_v21 }
 0x8b2   : > { %v5979_v52 = vpop.eup %5978  ;;  %v4435_v53 = vmul.f32 1.442695, %v4412_v31  ;;  %v4474_v60 = vmul.f32 1.442695, %v4451_v45  ;;  %v4413_v24 = vsub.f32 %v8385_v40, %v4400_v51  ;;  %v4452_v4 = vsub.f32 %v4378_v6, %v4400_v51 }
 0x8b3   : > { %5992 = vrcp.f32 %v4486_v22  ;;  %v4487_v16 = vadd.f32 %v5979_v52, %v5977_v13  ;;  %5483 = vmatmul.mubr.msk.bf16.gmra.mrb[160].mxu1 %vm4544_vm6, %v4523_v36  ;;  %5491 = vmatmul.mubr.msk.bf16.gmra.mrb[188].mxu0 %vm4544_vm6, %v4688_v56 }
 0x8b4   : > { %5994 = vpow2.f32 %v4435_v53  ;;  %v4437_v37 = vmul.f32 1.442695, %v4413_v24  ;;  %v4476_v20 = vmul.f32 1.442695, %v4452_v4  ;;  %4625 = vmatprep.mubr.bf16.mxu1 %v8625_v30  ;;  %4767 = vmatprep.mubr.bf16.mxu0 %v8625_v30 }
 0x8b5   : > { %v5981_v39 = vpop.eup %5980  ;;  %5996 = vrcp.f32 %v4487_v16  ;;  %v4383_v23 = vpop.f32.mrb[152].mxu1 }
 0x8b6   : > { %v5983_v21 = vpop.eup %5982  ;;  %5998 = vpow2.f32 %v4474_v60  ;;  %v4401_v40 = vmax.f32 %v8387_v27, %v4383_v23  ;;  %v4385_v7 = vpop.f32.mrb[153].mxu1  ;;  %v4513_v14 = vmul.f32 %v5981_v39, %v8410_v8  ;;  %v4678_v41 = vmul.f32 %v5981_v39, %v8412_v44 }
 0x8b7   : > { %v5985_v6 = vpop.eup %5984  ;;  %6000 = vpow2.f32 %v4437_v37  ;;  %v4386_v58 = vpop.f32.mrb[154].mxu1 }
 0x8b8   : > { %v5987_v18 = vpop.eup %5986  ;;  %6002 = vpow2.f32 %v4476_v20  ;;  %v4414_v31 = vsub.f32 %v8387_v27, %v4401_v40  ;;  %v4453_v45 = vsub.f32 %v4383_v23, %v4401_v40  ;;  %v4387_v51 = vpop.f32.mrb[155].mxu1  ;;  %v4514_v38 = vmul.f32 %v5985_v6, %v8416_v54 }
 0x8b9   : > { %v5989_v22 = vpop.eup %5988  ;;  %v4488_v36 = vadd.f32 %v5987_v18, %v5983_v21  ;;  %v4679_v56 = vmul.f32 %v5985_v6, %v8420_v28 }
 0x8ba   : > { %v5991_v53 = vpop.eup %5990  ;;  %v4439_v60 = vmul.f32 1.442695, %v4414_v31  ;;  %v4478_v8 = vmul.f32 1.442695, %v4453_v45  ;;  %v4524_v24 = vpack.c.bf16 %v4514_v38, %v4513_v14 }
 0x8bb   : > { %6004 = vrcp.f32 %v4488_v36  ;;  %v4489_v44 = vadd.f32 %v5991_v53, %v5989_v22  ;;  %v4689_v4 = vpack.c.bf16 %v4679_v56, %v4678_v41 }
 0x8bc   : > { %6006 = vpow2.f32 %v4439_v60  ;;  %5484 = vmatmul.mubr.msk.bf16.gmra.mrb[164].mxu1 %vm4544_vm6, %v4524_v24 }
 0x8bd   : > { %v5993_v16 = vpop.eup %5992  ;;  %6008 = vrcp.f32 %v4489_v44  ;;  %5492 = vmatmul.mubr.msk.bf16.gmra.mrb[192].mxu0 %vm4544_vm6, %v4689_v4  ;;  %4635 = vmatprep.mubr.bf16.mxu1 %v8625_v30 }
 0x8be   : > { %v5995_v27 = vpop.eup %5994  ;;  %6010 = vpow2.f32 %v4478_v8  ;;  %4777 = vmatprep.mubr.bf16.mxu0 %v8625_v30  ;;  %v4515_v54 = vmul.f32 %v5993_v16, %v8432_v9  ;;  %v4680_v28 = vmul.f32 %v5993_v16, %v5975_v57 }
 0x8bf   : > { %v5997_v37 = vpop.eup %5996 }
 0x8c0   : > { %v5999_v20 = vpop.eup %5998  ;;  %v4516_v39 = vmul.f32 %v5997_v37, %v5977_v13  ;;  %v4681_v23 = vmul.f32 %v5997_v37, %v5979_v52 }
 0x8c1   : > { %v6001_v40 = vpop.eup %6000  ;;  %v4490_v7 = vadd.f32 %v5999_v20, %v5995_v27 }
 0x8c2   : > { %v6003_v14 = vpop.eup %6002  ;;  %v4525_v41 = vpack.c.bf16 %v4516_v39, %v4515_v54  ;;  %v4690_v6 = vpack.c.bf16 %v4681_v23, %v4680_v28 }
 0x8c3   : > { %6012 = vrcp.f32 %v4490_v7  ;;  %v4491_v58 = vadd.f32 %v6003_v14, %v6001_v40 }
 0x8c4   : > { %5485 = vmatmul.mubr.msk.bf16.gmra.mrb[168].mxu1 %vm4544_vm6, %v4525_v41 }
 0x8c5   : > { %v6005_v31 = vpop.eup %6004  ;;  %6014 = vrcp.f32 %v4491_v58  ;;  %5493 = vmatmul.mubr.msk.bf16.gmra.mrb[196].mxu0 %vm4544_vm6, %v4690_v6  ;;  %4645 = vmatprep.mubr.bf16.mxu1 %v8625_v30 }
 0x8c6   : > { %v6007_v9 = vpop.eup %6006  ;;  %4787 = vmatprep.mubr.bf16.mxu0 %v8625_v30  ;;  %v4517_v57 = vmul.f32 %v6005_v31, %v5983_v21  ;;  %v4682_v13 = vmul.f32 %v6005_v31, %v5987_v18 }
 0x8c7   : > { %v6009_v52 = vpop.eup %6008 }
 0x8c8   : > { %v6011_v45 = vpop.eup %6010  ;;  %v4518_v51 = vmul.f32 %v6009_v52, %v5989_v22  ;;  %v4683_v38 = vmul.f32 %v6009_v52, %v5991_v53 }
 0x8c9   : > { %v4492_v36 = vadd.f32 %v6011_v45, %v6007_v9 }
 0x8ca   : > { %v4526_v56 = vpack.c.bf16 %v4518_v51, %v4517_v57  ;;  %v4691_v60 = vpack.c.bf16 %v4683_v38, %v4682_v13 }
 0x8cb   : > { %6016 = vrcp.f32 %v4492_v36 }
 0x8cc   : > { %5486 = vmatmul.mubr.msk.bf16.gmra.mrb[172].mxu1 %vm4544_vm6, %v4526_v56 }
 0x8cd   : > { %v6013_v8 = vpop.eup %6012  ;;  %5494 = vmatmul.mubr.msk.bf16.gmra.mrb[200].mxu0 %vm4544_vm6, %v4691_v60  ;;  %4655 = vmatprep.mubr.bf16.mxu1 %v8625_v30 }
 0x8ce   : > { %4797 = vmatprep.mubr.bf16.mxu0 %v8625_v30  ;;  %v4519_v24 = vmul.f32 %v6013_v8, %v5995_v27  ;;  %v4684_v21 = vmul.f32 %v6013_v8, %v5999_v20 }
 0x8cf   : > { %v6015_v18 = vpop.eup %6014 }
 0x8d0   : > { %v4520_v44 = vmul.f32 %v6015_v18, %v6001_v40  ;;  %v4685_v4 = vmul.f32 %v6015_v18, %v6003_v14 }
 0x8d2   : > { %v4527_v22 = vpack.c.bf16 %v4520_v44, %v4519_v24  ;;  %v4692_v53 = vpack.c.bf16 %v4685_v4, %v4684_v21 }
 0x8d4   : > { %5487 = vmatmul.mubr.msk.bf16.gmra.mrb[176].mxu1 %vm4544_vm6, %v4527_v22 }
 0x8d5   : > { %v6017_v16 = vpop.eup %6016  ;;  %5495 = vmatmul.mubr.msk.bf16.gmra.mrb[204].mxu0 %vm4544_vm6, %v4692_v53  ;;  %4665 = vmatprep.mubr.bf16.mxu1 %v8625_v30 }
 0x8d6   : > { %4807 = vmatprep.mubr.bf16.mxu0 %v8625_v30  ;;  %v4521_v54 = vmul.f32 %v6017_v16, %v6007_v9  ;;  %v4686_v28 = vmul.f32 %v6017_v16, %v6011_v45 }
 0x8d8   : > { %v4528_v37 = vpack.c.bf16 %v4521_v54, %v4521_v54  ;;  %v4693_v39 = vpack.c.bf16 %v4686_v28, %v4686_v28 }
 0x8dc   : > { %5488 = vmatmul.mubr.msk.bf16.gmra.mrb[180].mxu1 %vm4544_vm6, %v4528_v37 }
 0x8dd   : > { %5496 = vmatmul.mubr.msk.bf16.gmra.mrb[208].mxu0 %vm4544_vm6, %v4693_v39 }
 0x97e   : > { %v4607_v27 = vpop.f32.mrb[156].mxu1  ;;  %v4749_v20 = vpop.f32.mrb[184].mxu0 }
 0x97f   : > { %v4816_v23 = vmul.f32 %v4607_v27, %v8162_v42  ;;  %v4842_v40 = vmul.f32 %v4749_v20, %v8271_v29  ;;  %v4609_v7 = vpop.f32.mrb[157].mxu1  ;;  %v4751_v14 = vpop.f32.mrb[185].mxu0 }
 0x980   : > { %v4817_v41 = vmul.f32 %v4609_v7, %v8165_v50  ;;  %v4843_v30 = vmul.f32 %v4751_v14, %v8274_v3  ;;  %v4611_v6 = vpop.f32.mrb[158].mxu1  ;;  %v4753_v58 = vpop.f32.mrb[186].mxu0 }
 0x981   : > { %v4868_v31 = vadd.f32 %v4842_v40, %v4816_v23  ;;  %v4818_v9 = vmul.f32 %v4611_v6, %v8168_v49  ;;  %v4844_v57 = vmul.f32 %v4753_v58, %v8277_v33  ;;  %v4613_v13 = vpop.f32.mrb[159].mxu1  ;;  %v4755_v52 = vpop.f32.mrb[187].mxu0 }
 0x982   : > { %v4869_v42 = vadd.f32 %v4843_v30, %v4817_v41  ;;  %v4819_v29 = vmul.f32 %v4613_v13, %v8171_v2  ;;  %v4845_v45 = vmul.f32 %v4755_v52, %v8281_v61 }
 0x983   : > { %v4870_v49 = vadd.f32 %v4844_v57, %v4818_v9 }
 0x984   : > { %v5512_v3 = vpack.c.bf16 %v4869_v42, %v4868_v31  ;;  %v4871_v33 = vadd.f32 %v4845_v45, %v4819_v29 }
 0x986   : > { %4976 = vst.msk [vmem:[%s8481_s23] sm:$0xff] %vm8484_vm8, %v5512_v3  ;;  %v5513_v2 = vpack.c.bf16 %v4871_v33, %v4870_v49  ;;  %v4617_v61 = vpop.f32.mrb[160].mxu1  ;;  %v4759_v51 = vpop.f32.mrb[188].mxu0 }
 0x987   : > { %v4820_v38 = vmul.f32 %v4617_v61, %v8174_v17  ;;  %v4846_v36 = vmul.f32 %v4759_v51, %v8284_v35  ;;  %v4619_v56 = vpop.f32.mrb[161].mxu1  ;;  %v4761_v60 = vpop.f32.mrb[189].mxu0  ;;  %v8635_v61 = vld [vmem:[#allocation4_spill] sm:$0xff] }
 0x988   : > { %4977 = vst.msk [vmem:[%s8481_s23 + $0x8] sm:$0xff] %vm8484_vm8, %v5513_v2  ;;  %v4821_v8 = vmul.f32 %v4619_v56, %v8178_v19  ;;  %v4847_v24 = vmul.f32 %v4761_v60, %v8288_v12  ;;  %v4621_v21 = vpop.f32.mrb[162].mxu1  ;;  %v4763_v18 = vpop.f32.mrb[190].mxu0 }
 0x989   : > { %v4872_v44 = vadd.f32 %v4846_v36, %v4820_v38  ;;  %v4822_v4 = vmul.f32 %v4621_v21, %v8181_v48  ;;  %v4848_v17 = vmul.f32 %v4763_v18, %v8291_v15  ;;  %v4623_v22 = vpop.f32.mrb[163].mxu1  ;;  %v4765_v35 = vpop.f32.mrb[191].mxu0  ;;  %v8636_v38 = vld [vmem:[#allocation13_spill] sm:$0xff] }
 0x98a   : > { %v4873_v53 = vadd.f32 %v4847_v24, %v4821_v8  ;;  %v4823_v16 = vmul.f32 %v4623_v22, %v8185_v62  ;;  %v4849_v54 = vmul.f32 %v4765_v35, %v8294_v25 }
 0x98b   : > { %v4874_v28 = vadd.f32 %v4848_v17, %v4822_v4  ;;  %v8639_v17 = vld [vmem:[#allocation3_spill] sm:$0xff] }
 0x98c   : > { %v5514_v37 = vpack.c.bf16 %v4873_v53, %v4872_v44  ;;  %v4875_v19 = vadd.f32 %v4849_v54, %v4823_v16  ;;  %v8640_v16 = vld [vmem:[#allocation15_spill] sm:$0xff] }
 0x98e   : > { %4978 = vst.msk [vmem:[%s8481_s23 + $0x10] sm:$0xff] %vm8484_vm8, %v5514_v37  ;;  %v5515_v12 = vpack.c.bf16 %v4875_v19, %v4874_v28  ;;  %v8641_v28 = vld [vmem:[#allocation6_spill] sm:$0xff] }
 0x98f   : > { %v4627_v39 = vpop.f32.mrb[164].mxu1 }
 0x990   : > { %4979 = vst.msk [vmem:[%s8481_s23 + $0x18] sm:$0xff] %vm8484_vm8, %v5515_v12  ;;  %v4824_v48 = vmul.f32 %v4627_v39, %v8191_v46  ;;  %v4769_v15 = vpop.f32.mrb[192].mxu0  ;;  %v4629_v27 = vpop.f32.mrb[165].mxu1 }
 0x991   : > { %v4850_v20 = vmul.f32 %v4769_v15, %v8297_v0  ;;  %v4825_v62 = vmul.f32 %v4629_v27, %v8195_v47  ;;  %v4771_v25 = vpop.f32.mrb[193].mxu0  ;;  %v4631_v23 = vpop.f32.mrb[166].mxu1  ;;  %v8643_v27 = vld [vmem:[#allocation5_spill] sm:$0xff] }
 0x992   : > { %v4851_v40 = vmul.f32 %v4771_v25, %v8301_v10  ;;  %v4826_v7 = vmul.f32 %v4631_v23, %v8198_v55  ;;  %v4773_v14 = vpop.f32.mrb[194].mxu0  ;;  %v4633_v41 = vpop.f32.mrb[167].mxu1  ;;  %v8644_v23 = vld [vmem:[#allocation17_spill] sm:$0xff] }
 0x993   : > { %v4876_v30 = vadd.f32 %v4850_v20, %v4824_v48  ;;  %v4852_v6 = vmul.f32 %v4773_v14, %v8304_v5  ;;  %v4827_v46 = vmul.f32 %v4633_v41, %v8202_v59  ;;  %v4775_v58 = vpop.f32.mrb[195].mxu0  ;;  %v8642_v48 = vld [vmem:[#allocation16_spill] sm:$0xff] }
 0x994   : > { %v4877_v31 = vadd.f32 %v4851_v40, %v4825_v62  ;;  %v4853_v0 = vmul.f32 %v4775_v58, %v8307_v63 }
 0x995   : > { %v4878_v47 = vadd.f32 %v4852_v6, %v4826_v7 }
 0x996   : > { %v5516_v9 = vpack.c.bf16 %v4877_v31, %v4876_v30  ;;  %v4879_v57 = vadd.f32 %v4853_v0, %v4827_v46  ;;  %v8645_v46 = vld [vmem:[#allocation7_spill] sm:$0xff] }
 0x997   : > { %v4637_v13 = vpop.f32.mrb[168].mxu1 }
 0x998   : > { %4980 = vst.msk [vmem:[%s8481_s23 + $0x20] sm:$0xff] %vm8484_vm8, %v5516_v9  ;;  %v5517_v55 = vpack.c.bf16 %v4879_v57, %v4878_v47  ;;  %v4828_v10 = vmul.f32 %v4637_v13, %v8208_v43  ;;  %v4779_v52 = vpop.f32.mrb[196].mxu0  ;;  %v4639_v42 = vpop.f32.mrb[169].mxu1  ;;  %v8646_v47 = vld [vmem:[#allocation18_spill] sm:$0xff]  ;;  %v8647_v57 = vld [vmem:[#allocation8_spill] sm:$0xff] }
 0x999   : > { %v4854_v5 = vmul.f32 %v4779_v52, %v8310_v1  ;;  %v4829_v59 = vmul.f32 %v4639_v42, %v8212_v32  ;;  %v4781_v29 = vpop.f32.mrb[197].mxu0  ;;  %v4641_v45 = vpop.f32.mrb[170].mxu1  ;;  %v8648_v52 = vld [vmem:[#allocation19_spill] sm:$0xff] }
 0x99a   : > { %4981 = vst.msk [vmem:[%s8481_s23 + $0x28] sm:$0xff] %vm8484_vm8, %v5517_v55  ;;  %v4855_v63 = vmul.f32 %v4781_v29, %v8314_v26  ;;  %v4830_v49 = vmul.f32 %v4641_v45, %v8215_v34  ;;  %v4783_v3 = vpop.f32.mrb[198].mxu0  ;;  %v4643_v33 = vpop.f32.mrb[171].mxu1  ;;  %v8637_v26 = vld [vmem:[#allocation2_spill] sm:$0xff] }
 0x99b   : > { %v4880_v2 = vadd.f32 %v4854_v5, %v4828_v10  ;;  %v4856_v43 = vmul.f32 %v4783_v3, %v8317_v11  ;;  %v4831_v51 = vmul.f32 %v4643_v33, %v8635_v61  ;;  %v4785_v1 = vpop.f32.mrb[199].mxu0  ;;  %v8638_v11 = vld [vmem:[#allocation14_spill] sm:$0xff]  ;;  %v8649_v5 = vld [vmem:[#allocation9_spill] sm:$0xff] }
 0x99c   : > { %v4881_v32 = vadd.f32 %v4855_v63, %v4829_v59  ;;  %v4857_v36 = vmul.f32 %v4785_v1, %v8636_v38  ;;  %v8651_v33 = vld [vmem:[#allocation10_spill] sm:$0xff] }
 0x99d   : > { %v4882_v56 = vadd.f32 %v4856_v43, %v4830_v49  ;;  %v8650_v49 = vld [vmem:[#allocation20_spill] sm:$0xff] }
 0x99e   : > { %v5518_v60 = vpack.c.bf16 %v4881_v32, %v4880_v2  ;;  %v4883_v8 = vadd.f32 %v4857_v36, %v4831_v51  ;;  %v8652_v51 = vld [vmem:[#allocation21_spill] sm:$0xff] }
 0x99f   : > { %v4647_v24 = vpop.f32.mrb[172].mxu1 }
 0x9a0   : > { %4982 = vst.msk [vmem:[%s8481_s23 + $0x30] sm:$0xff] %vm8484_vm8, %v5518_v60  ;;  %v5519_v34 = vpack.c.bf16 %v4883_v8, %v4882_v56  ;;  %v4832_v21 = vmul.f32 %v4647_v24, %v8637_v26  ;;  %v4789_v18 = vpop.f32.mrb[200].mxu0  ;;  %v4649_v44 = vpop.f32.mrb[173].mxu1  ;;  %v8653_v8 = vld [vmem:[#allocation11_spill] sm:$0xff] }
 0x9a1   : > { %v4858_v4 = vmul.f32 %v4789_v18, %v8638_v11  ;;  %v4833_v22 = vmul.f32 %v4649_v44, %v8639_v17  ;;  %v4791_v35 = vpop.f32.mrb[201].mxu0  ;;  %v4651_v53 = vpop.f32.mrb[174].mxu1  ;;  %v8656_v18 = vld [vmem:[#allocation22_spill] sm:$0xff]  ;;  %v8657_v11 = vld [vmem:[#allocation12_spill] sm:$0xff] }
 0x9a2   : > { %4983 = vst.msk [vmem:[%s8481_s23 + $0x38] sm:$0xff] %vm8484_vm8, %v5519_v34  ;;  %v4859_v54 = vmul.f32 %v4791_v35, %v8640_v16  ;;  %v4834_v37 = vmul.f32 %v4651_v53, %v8641_v28  ;;  %v4793_v19 = vpop.f32.mrb[202].mxu0  ;;  %v4653_v12 = vpop.f32.mrb[175].mxu1  ;;  %v8658_v35 = vld [vmem:[#allocation23_spill] sm:$0xff] }
 0x9a3   : > { %v4884_v39 = vadd.f32 %v4858_v4, %v4832_v21  ;;  %v4860_v15 = vmul.f32 %v4793_v19, %v8642_v48  ;;  %v4835_v20 = vmul.f32 %v4653_v12, %v8643_v27  ;;  %v4795_v62 = vpop.f32.mrb[203].mxu0  ;;  %v4995_v12 = vld [vmem:[%s8481_s23 + $0x60] sm:$0x33] }
 0x9a4   : > { %v4885_v25 = vadd.f32 %v4859_v54, %v4833_v22  ;;  %v4861_v40 = vmul.f32 %v4795_v62, %v8644_v23 }
 0x9a5   : > { %v4886_v7 = vadd.f32 %v4860_v15, %v4834_v37 }
 0x9a6   : > { %v5520_v14 = vpack.c.bf16 %v4885_v25, %v4884_v39  ;;  %v4887_v41 = vadd.f32 %v4861_v40, %v4835_v20 }
 0x9a7   : > { %v4657_v30 = vpop.f32.mrb[176].mxu1 }
 0x9a8   : > { %4984 = vst.msk [vmem:[%s8481_s23 + $0x40] sm:$0xff] %vm8484_vm8, %v5520_v14  ;;  %v5521_v6 = vpack.c.bf16 %v4887_v41, %v4886_v7  ;;  %v4836_v58 = vmul.f32 %v4657_v30, %v8645_v46  ;;  %v4799_v31 = vpop.f32.mrb[204].mxu0  ;;  %v4659_v0 = vpop.f32.mrb[177].mxu1 }
 0x9a9   : > { %v4862_v9 = vmul.f32 %v4799_v31, %v8646_v47  ;;  %v4837_v13 = vmul.f32 %v4659_v0, %v8647_v57  ;;  %v4801_v55 = vpop.f32.mrb[205].mxu0  ;;  %v4661_v10 = vpop.f32.mrb[178].mxu1 }
 0x9aa   : > { %4985 = vst.msk [vmem:[%s8481_s23 + $0x48] sm:$0xff] %vm8484_vm8, %v5521_v6  ;;  %v4863_v42 = vmul.f32 %v4801_v55, %v8648_v52  ;;  %v4838_v59 = vmul.f32 %v4661_v10, %v8649_v5  ;;  %v4803_v29 = vpop.f32.mrb[206].mxu0  ;;  %v4663_v45 = vpop.f32.mrb[179].mxu1 }
 0x9ab   : > { %v4888_v63 = vadd.f32 %v4862_v9, %v4836_v58  ;;  %v4864_v3 = vmul.f32 %v4803_v29, %v8650_v49  ;;  %v4839_v2 = vmul.f32 %v4663_v45, %v8651_v33  ;;  %v4805_v43 = vpop.f32.mrb[207].mxu0 }
 0x9ac   : > { %v4889_v61 = vadd.f32 %v4863_v42, %v4837_v13  ;;  %v4865_v1 = vmul.f32 %v4805_v43, %v8652_v51 }
 0x9ad   : > { %v4890_v32 = vadd.f32 %v4864_v3, %v4838_v59 }
 0x9ae   : > { %v5522_v38 = vpack.c.bf16 %v4889_v61, %v4888_v63  ;;  %v4891_v36 = vadd.f32 %v4865_v1, %v4839_v2 }
 0x9af   : > { %v4667_v56 = vpop.f32.mrb[180].mxu1 }
 0x9b0   : > { %4986 = vst.msk [vmem:[%s8481_s23 + $0x50] sm:$0xff] %vm8484_vm8, %v5522_v38  ;;  %v5523_v60 = vpack.c.bf16 %v4891_v36, %v4890_v32  ;;  %v4840_v24 = vmul.f32 %v4667_v56, %v8653_v8  ;;  %v4809_v34 = vpop.f32.mrb[208].mxu0  ;;  %v4669_v26 = vpop.f32.mrb[181].mxu1 }
 0x9b1   : > { %v4866_v44 = vmul.f32 %v4809_v34, %v8656_v18  ;;  %v4841_v4 = vmul.f32 %v4669_v26, %v8657_v11  ;;  %v4811_v17 = vpop.f32.mrb[209].mxu0  ;;  %v4671_v22 = vpop.f32.mrb[182].mxu1 }
 0x9b2   : > { %4987 = vst.msk [vmem:[%s8481_s23 + $0x58] sm:$0xff] %vm8484_vm8, %v5523_v60  ;;  %v4867_v53 = vmul.f32 %v4811_v17, %v8658_v35  ;;  %v4813_v16 = vpop.f32.mrb[210].mxu0  ;;  %v4672_v54 = vpop.f32.mrb[183].mxu1 }
 0x9b3   : > { %v4892_v28 = vadd.f32 %v4866_v44, %v4840_v24  ;;  %v4814_v37 = vpop.f32.mrb[211].mxu0 }
 0x9b4   : > { %v4893_v19 = vadd.f32 %v4867_v53, %v4841_v4 }
 0x9b6   : > { %v5524_v39 = vpack.c.bf16 %v4893_v19, %v4892_v28 }
 0x9b8   : > { %v4996_v48 = vsel %vm4994_vm14, %v5524_v39, %v4995_v12 }
 0x9b9   : > { %4997 = vst [vmem:[%s8481_s23 + $0x60] sm:$0x33] %v4996_v48 }
 0x9ba PF: > { %s23_s21 = sadd.s32 1, %s6024_s21  }
 0x9bb   : > { %p20_p4 = scmp.ge.s32.totalorder %s23_s21, 4  }
 0x9bd   :  { %22 = sbr.rel (!%p20_p4) target bundleno = 1 (0x1), region = 122 }

// kernel: forward.7
= control target key start
LH: loop header
LB: loop body
LE: loop exit
PB: predicated region body
PF: predicated region fallthrough
CT: control target
= control target key end

     0   :  { %s3878_s24 = smov 0   ;;  %s5715_s0 = inlined_call_operand.vmem [shape: bf16[2,99,200], index: 0, kind: input, shape index: {}]   ;;  %s5716_s1 = inlined_call_operand.vmem [shape: f32[2,99,200], index: 1, kind: input, shape index: {}]   ;;  %s5717_s2 = inlined_call_operand.vmem [shape: bf16[200,200], index: 2, kind: input, shape index: {}]   ;;  %s5718_s3 = inlined_call_operand.vmem [shape: bf16[200,400], index: 3, kind: input, shape index: {}]   ;;  %s5719_s4 = inlined_call_operand.vmem [shape: bf16[400,200], index: 4, kind: input, shape index: {}]   ;;  %s5720_s5 = inlined_call_operand.vmem [shape: f32[8,400], index: 5, kind: input, shape index: {}]   ;;  %s5721_s6 = inlined_call_operand.vmem [shape: bf16[200,256], index: 6, kind: input, shape index: {}]   ;;  %s5722_s7 = inlined_call_operand.vmem [shape: f32[2,99,256], index: 7, kind: output, shape index: {}]  }
   0x1 LB: > { %s3223_s25 = sadd.s32 4294967295, %s3836_s24   ;;  %p3227_p0 = scmp.ge.s32.totalorder %s3836_s24, 1  ;;  %s3836_s24 = sphi %s3878_s24, %s17_s24  }
   0x2   : > { %p247_p1 = scmp.lt.s32.totalorder %s3836_s24, 3 }
   0x4   : > { %p248_p2 = pnand %p3227_p0, %p247_p1 }
   0x6   : > { %251 = sbr.rel (%p248_p2) target bundleno = 2002 (0x7d2), region = 48 }
   0xd   : > { %v3505_v0 = vld [vmem:[%s5717_s2 + $0x4] ss:$8 sps:$4 sm:$0xff]   ;;  %v3507_v1 = vld [vmem:[%s5717_s2] ss:$8 sps:$4 sm:$0xff]   ;;  %v3508_v2 = vld [vmem:[%s5717_s2 + $0x14] ss:$8 sps:$4 sm:$0xff]  }
   0xe   : > { %589 = vmatprep.subr.bf16.mxu0 %v3505_v0  ;;  %p284_p3 = scmp.lt.s32.totalorder %s3223_s25, 1  ;;  %v3510_v3 = vld [vmem:[%s5717_s2 + $0x10] ss:$8 sps:$4 sm:$0xff]   ;;  %v3511_v4 = vld [vmem:[%s5717_s2 + $0x24] ss:$8 sps:$4 sm:$0xff]   ;;  %vm560_vm0 = vcmask 588800  }
   0xf   : > { %590 = vmatpush1.bf16.msra.mxu0 %v3507_v1  ;;  %v3513_v5 = vld [vmem:[%s5717_s2 + $0x20] ss:$8 sps:$4 sm:$0xff]   ;;  %v3514_v6 = vld [vmem:[%s5717_s2 + $0x34] ss:$8 sps:$4 sm:$0xff]   ;;  %v3516_v7 = vld [vmem:[%s5717_s2 + $0x30] ss:$8 sps:$4 sm:$0xff]  }
  0x10   : > { %591 = vmatprep.subr.bf16.mxu0 %v3508_v2  ;;  %s5739_s25 = smov (!%p284_p3, %s3223_s25), 1  ;;  %v3517_v8 = vld [vmem:[%s5717_s2 + $0x44] ss:$8 sps:$4 sm:$0xff]   ;;  %v3519_v9 = vld [vmem:[%s5717_s2 + $0x40] ss:$8 sps:$4 sm:$0xff]   ;;  %vm582_vm1 = vcmask 1043456  }
  0x11   : > { %s3495_s17 = smul.u32 104, %s5739_s25  ;;  %v3520_v10 = vld [vmem:[%s5717_s2 + $0x54] ss:$8 sps:$4 sm:$0xff]   ;;  %v3522_v12 = vld [vmem:[%s5717_s2 + $0x50] ss:$8 sps:$4 sm:$0xff]   ;;  %v374_v24 = vld [vmem:[%s5717_s2 + $0xc0] sm:$0xff] }
  0x12   : > { %v3523_v13 = vld [vmem:[%s5717_s2 + $0x64] ss:$8 sps:$4 sm:$0xff]   ;;  %v3525_v14 = vld [vmem:[%s5717_s2 + $0x60] ss:$8 sps:$4 sm:$0xff]   ;;  %v3526_v15 = vld [vmem:[%s5717_s2 + $0x74] ss:$8 sps:$4 sm:$0xff]   ;;  %v3275_v26 = vcombine.high %v374_v24, %v374_v24  ;;  %v3274_v27 = vcombine.low %v374_v24, %v374_v24 }
  0x13   : > { %592 = vmatpush1.bf16.msra.mxu0 %v3510_v3  ;;  %s3919_s26 = scalar_lea.vmem %s5715_s0, %s3495_s17  ;;  %v3528_v16 = vld [vmem:[%s5717_s2 + $0x70] ss:$8 sps:$4 sm:$0xff]   ;;  %v3529_v17 = vld [vmem:[%s5717_s2 + $0x84] ss:$8 sps:$4 sm:$0xff]   ;;  %v3531_v18 = vld [vmem:[%s5717_s2 + $0x80] ss:$8 sps:$4 sm:$0xff]  }
  0x14   : > { %593 = vmatprep.subr.bf16.mxu0 %v3511_v4  ;;  %v3545_v11 = vld [vmem:[%s3919_s26 + $0x4] ss:$8 sps:$4 sm:$0xff]   ;;  %v3532_v19 = vld [vmem:[%s5717_s2 + $0x94] ss:$8 sps:$4 sm:$0xff]   ;;  %v3534_v20 = vld [vmem:[%s5717_s2 + $0x90] ss:$8 sps:$4 sm:$0xff]  }
  0x15   : > { %3277 = vmatprep.mubr.msk.bf16.mxu0 %vm560_vm0, %v3545_v11  ;;  %v3535_v21 = vld [vmem:[%s5717_s2 + $0xa4] ss:$8 sps:$4 sm:$0xff]   ;;  %v3537_v22 = vld [vmem:[%s5717_s2 + $0xa0] ss:$8 sps:$4 sm:$0xff]   ;;  %v3538_v23 = vld [vmem:[%s5717_s2 + $0xb4] ss:$8 sps:$4 sm:$0xff]  }
  0x16   : > { %v3540_v25 = vld [vmem:[%s5717_s2 + $0xb0] ss:$8 sps:$4 sm:$0xff]   ;;  %v584_v28 = vsel %vm582_vm1, %v3274_v27, 0  ;;  %v3543_v29 = vld [vmem:[%s3919_s26] ss:$8 sps:$4 sm:$0xff]   ;;  %s3496_s16 = smul.u32 208, %s5739_s25 }
  0x17   : > { %594 = vmatpush1.bf16.msra.mxu0 %v3513_v5  ;;  %v3546_v30 = vld [vmem:[%s3919_s26 + $0x14] ss:$8 sps:$4 sm:$0xff]   ;;  %v3548_v31 = vld [vmem:[%s3919_s26 + $0x10] ss:$8 sps:$4 sm:$0xff]   ;;  %v3549_v32 = vld [vmem:[%s3919_s26 + $0x24] ss:$8 sps:$4 sm:$0xff]  }
  0x18   : > { %595 = vmatprep.subr.bf16.mxu0 %v3514_v6  ;;  %v3551_v33 = vld [vmem:[%s3919_s26 + $0x20] ss:$8 sps:$4 sm:$0xff]   ;;  %v3552_v34 = vld [vmem:[%s3919_s26 + $0x34] ss:$8 sps:$4 sm:$0xff]   ;;  %v3554_v35 = vld [vmem:[%s3919_s26 + $0x30] ss:$8 sps:$4 sm:$0xff]   ;;  %s3997_s19 = scalar_lea.vmem %s5716_s1, %s3496_s16  ;;  %s5684_s30 = scalar_lea.vmem %s5722_s7, %s3496_s16 }
  0x19   : > { %v3555_v36 = vld [vmem:[%s3919_s26 + $0x44] ss:$8 sps:$4 sm:$0xff]   ;;  %v3557_v37 = vld [vmem:[%s3919_s26 + $0x40] ss:$8 sps:$4 sm:$0xff]   ;;  %v3558_v38 = vld [vmem:[%s3919_s26 + $0x54] ss:$8 sps:$4 sm:$0xff]  }
  0x1a   : > { %v312_v39 = vld [vmem:[%s3919_s26 + $0x60] sm:$0x33]  ;;  %v3560_v40 = vld [vmem:[%s3919_s26 + $0x50] ss:$8 sps:$4 sm:$0xff]   ;;  %v314_v44 = vld [vmem:[%s3997_s19 + $0x8] sm:$0xff]  ;;  %vm738_vm2 = vcmask 1042432  }
  0x1b   : > { %596 = vmatpush1.bf16.msra.mxu0 %v3516_v7  ;;  %v3249_v41 = vcombine.high %v312_v39, %v312_v39  ;;  %v3248_v42 = vcombine.low %v312_v39, %v312_v39  ;;  %v313_v43 = vld [vmem:[%s3997_s19] sm:$0xff]  ;;  %v315_v46 = vld [vmem:[%s3997_s19 + $0x10] sm:$0xff]  ;;  %v316_v49 = vld [vmem:[%s3997_s19 + $0x18] sm:$0xff]  ;;  %vm740_vm3 = vcmask 583680   ;;  %vm1964_vm4 = vcmask 130048  }
  0x1c   : > { %597 = vmatprep.subr.bf16.mxu0 %v3517_v8  ;;  %v317_v57 = vld [vmem:[%s3997_s19 + $0x20] sm:$0xff]  ;;  %v318_v59 = vld [vmem:[%s3997_s19 + $0x28] sm:$0xff]  ;;  %v319_v61 = vld [vmem:[%s3997_s19 + $0x30] sm:$0xff] }
  0x1d   : > { %v320_v0 = vld [vmem:[%s3997_s19 + $0x38] sm:$0xff]  ;;  %v322_v11 = vld [vmem:[%s3997_s19 + $0x48] sm:$0xff] }
  0x1e   : > { %v326_v27 = vld [vmem:[%s3997_s19 + $0x68] sm:$0xff] }
  0x1f   : > { %598 = vmatpush1.bf16.msra.mxu0 %v3519_v9  ;;  %v321_v9 = vld [vmem:[%s3997_s19 + $0x40] sm:$0xff] }
  0x20   : > { %599 = vmatprep.subr.bf16.mxu0 %v3520_v10 }
  0x23   : > { %600 = vmatpush1.bf16.msra.mxu0 %v3522_v12 }
  0x24   : > { %601 = vmatprep.subr.bf16.mxu0 %v3523_v13  ;;  %v323_v13 = vld [vmem:[%s3997_s19 + $0x50] sm:$0xff] }
  0x27   : > { %602 = vmatpush1.bf16.msra.mxu0 %v3525_v14 }
  0x28   : > { %603 = vmatprep.subr.bf16.mxu0 %v3526_v15 }
  0x2b   : > { %604 = vmatpush1.bf16.msra.mxu0 %v3528_v16  ;;  %v324_v16 = vld [vmem:[%s3997_s19 + $0x58] sm:$0xff] }
  0x2c   : > { %605 = vmatprep.subr.bf16.mxu0 %v3529_v17 }
  0x2f   : > { %606 = vmatpush1.bf16.msra.mxu0 %v3531_v18 }
  0x30   : > { %607 = vmatprep.subr.bf16.mxu0 %v3532_v19 }
  0x33   : > { %608 = vmatpush1.bf16.msra.mxu0 %v3534_v20 }
  0x34   : > { %609 = vmatprep.subr.bf16.mxu0 %v3535_v21 }
  0x37   : > { %610 = vmatpush1.bf16.msra.mxu0 %v3537_v22 }
  0x38   : > { %611 = vmatprep.subr.bf16.mxu0 %v3538_v23 }
  0x3b   : > { %612 = vmatpush1.bf16.msra.mxu0 %v3540_v25  ;;  %v325_v25 = vld [vmem:[%s3997_s19 + $0x60] sm:$0xff] }
  0x3c   : > { %3276 = vmatprep.subr.msk.bf16.mxu0 %vm582_vm1, %v3275_v26 }
  0x3f   : > { %614 = vmatpush1.bf16.msra.mxu0 %v584_v28 }
  0x42   : > { %622 = vmatmul.mubr.bf16.vlgmr.msra.gmra.mrb[0].mxu0 %v3543_v29 }
  0x43   : > { %3278 = vmatprep.mubr.msk.bf16.mxu0 %vm560_vm0, %v3546_v30  ;;  %v327_v30 = vld [vmem:[%s3997_s19 + $0x70] sm:$0xff] }
  0x4a   : > { %632 = vmatmul.mubr.bf16.gmra.mrb[4].mxu0 %v3548_v31 }
  0x4b   : > { %3279 = vmatprep.mubr.msk.bf16.mxu0 %vm560_vm0, %v3549_v32 }
  0x52   : > { %642 = vmatmul.mubr.bf16.gmra.mrb[8].mxu0 %v3551_v33  ;;  %v328_v33 = vld [vmem:[%s3997_s19 + $0x78] sm:$0xff] }
  0x53   : > { %3280 = vmatprep.mubr.msk.bf16.mxu0 %vm560_vm0, %v3552_v34 }
  0x5a   : > { %652 = vmatmul.mubr.bf16.gmra.mrb[12].mxu0 %v3554_v35 }
  0x5b   : > { %3281 = vmatprep.mubr.msk.bf16.mxu0 %vm560_vm0, %v3555_v36 }
  0x62   : > { %662 = vmatmul.mubr.bf16.gmra.mrb[16].mxu0 %v3557_v37 }
  0x63   : > { %3282 = vmatprep.mubr.msk.bf16.mxu0 %vm560_vm0, %v3558_v38 }
  0x6a   : > { %672 = vmatmul.mubr.bf16.gmra.mrb[20].mxu0 %v3560_v40 }
  0x6b   : > { %3283 = vmatprep.mubr.msk.bf16.mxu0 %vm560_vm0, %v3249_v41  ;;  %v329_v41 = vld [vmem:[%s3997_s19 + $0x80] sm:$0xff] }
  0x72   : > { %682 = vmatmul.mubr.bf16.gmra.mrb[24].mxu0 %v3248_v42 }
 0x115   : > { %v623_v45 = vpop.f32.mrb[0].mxu0 }
 0x116   : > { %v4002_v47 = vadd.f32 %v623_v45, %v313_v43  ;;  %v625_v48 = vpop.f32.mrb[1].mxu0  ;;  %v330_v43 = vld [vmem:[%s3997_s19 + $0x88] sm:$0xff] }
 0x117   : > { %v4005_v50 = vadd.f32 %v625_v48, %v314_v44  ;;  %v627_v51 = vpop.f32.mrb[2].mxu0 }
 0x118   : > { %v4007_v52 = vadd.f32 %v627_v51, %v315_v46  ;;  %v629_v53 = vpop.f32.mrb[3].mxu0  ;;  %v331_v46 = vld [vmem:[%s3997_s19 + $0x90] sm:$0xff]  ;;  %v332_v51 = vld [vmem:[%s3997_s19 + $0x98] sm:$0xff] }
 0x119   : > { %v4009_v54 = vadd.f32 %v629_v53, %v316_v49  ;;  %v690_v55 = vsel %vm560_vm0, %v4005_v50, 0.0 }
 0x11a   : > { %v691_v56 = vadd.f32 %v690_v55, %v4002_v47 }
 0x11b   : > { %v694_v58 = vsel %vm560_vm0, %v4009_v54, 0.0 }
 0x11c   : > { %692 = vadd.xlane.f32.xlu0 %v691_v56  ;;  %v695_v1 = vadd.f32 %v694_v58, %v4007_v52 }
 0x11d   : > { %v633_v60 = vpop.f32.mrb[4].mxu0 }
 0x11e   : > { %v4019_v62 = vadd.f32 %v633_v60, %v317_v57  ;;  %v635_v63 = vpop.f32.mrb[5].mxu0 }
 0x11f   : > { %v4023_v2 = vadd.f32 %v635_v63, %v318_v59  ;;  %v637_v3 = vpop.f32.mrb[6].mxu0 }
 0x120   : > { %v4025_v4 = vadd.f32 %v637_v3, %v319_v61  ;;  %v639_v5 = vpop.f32.mrb[7].mxu0  ;;  %696 = vadd.xlane.f32.xlu0 %v695_v1  ;;  %v333_v61 = vld [vmem:[%s3997_s19 + $0xa0] sm:$0xff] }
 0x121   : > { %v4027_v6 = vadd.f32 %v639_v5, %v320_v0  ;;  %v698_v7 = vsel %vm560_vm0, %v4023_v2, 0.0  ;;  %v334_v0 = vld [vmem:[%s3997_s19 + $0xa8] sm:$0xff]  ;;  %v335_v5 = vld [vmem:[%s3997_s19 + $0xb0] sm:$0xff] }
 0x122   : > { %v699_v8 = vadd.f32 %v698_v7, %v4019_v62 }
 0x123   : > { %v702_v10 = vsel %vm560_vm0, %v4027_v6, 0.0 }
 0x124   : > { %700 = vadd.xlane.f32.xlu1 %v699_v8  ;;  %v703_v17 = vadd.f32 %v702_v10, %v4025_v4 }
 0x125   : > { %v643_v12 = vpop.f32.mrb[8].mxu0 }
 0x126   : > { %v4037_v14 = vadd.f32 %v643_v12, %v321_v9  ;;  %v645_v15 = vpop.f32.mrb[9].mxu0  ;;  %v336_v9 = vld [vmem:[%s3997_s19 + $0xb8] sm:$0xff] }
 0x127   : > { %v4041_v18 = vadd.f32 %v645_v15, %v322_v11  ;;  %v647_v19 = vpop.f32.mrb[10].mxu0 }
 0x128   : > { %v4043_v20 = vadd.f32 %v647_v19, %v323_v13  ;;  %v649_v21 = vpop.f32.mrb[11].mxu0  ;;  %704 = vadd.xlane.f32.xlu1 %v703_v17  ;;  %v337_v19 = vld [vmem:[%s3997_s19 + $0xc0] sm:$0x7] }
 0x129   : > { %v4045_v22 = vadd.f32 %v649_v21, %v324_v16  ;;  %v706_v23 = vsel %vm560_vm0, %v4041_v18, 0.0 }
 0x12a   : > { %v707_v24 = vadd.f32 %v706_v23, %v4037_v14  ;;  %v338_v23 = vld [vmem:[%s3997_s19 + $0xc8] sm:$0x7] }
 0x12b   : > { %v710_v26 = vsel %vm560_vm0, %v4045_v22, 0.0 }
 0x12c   : > { %708 = vadd.xlane.f32.xlu0 %v707_v24  ;;  %v711_v28 = vadd.f32 %v710_v26, %v4043_v20 }
 0x12d   : > { %v653_v29 = vpop.f32.mrb[12].mxu0 }
 0x12e   : > { %v4056_v31 = vadd.f32 %v653_v29, %v325_v25  ;;  %v655_v32 = vpop.f32.mrb[13].mxu0  ;;  %712 = vadd.xlane.f32.xlu1 %v711_v28 }
 0x12f   : > { %v4059_v34 = vadd.f32 %v655_v32, %v326_v27  ;;  %v657_v35 = vpop.f32.mrb[14].mxu0 }
 0x130   : > { %v4061_v36 = vadd.f32 %v657_v35, %v327_v30  ;;  %v659_v37 = vpop.f32.mrb[15].mxu0 }
 0x131   : > { %v4063_v38 = vadd.f32 %v659_v37, %v328_v33  ;;  %v714_v39 = vsel %vm560_vm0, %v4059_v34, 0.0  ;;  %v3563_v37 = vld [vmem:[%s5718_s3 + $0x4] ss:$16 sps:$4 sm:$0xff]  }
 0x132   : > { %v715_v40 = vadd.f32 %v714_v39, %v4056_v31  ;;  %v3565_v39 = vld [vmem:[%s5718_s3 + $0x8] ss:$16 sps:$4 sm:$0xff]   ;;  %1371 = vmatprep.subr.bf16.mxu1 %v3563_v37 }
 0x133   : > { %v718_v42 = vsel %vm560_vm0, %v4063_v38, 0.0 }
 0x134   : > { %716 = vadd.xlane.f32.xlu0 %v715_v40  ;;  %v719_v44 = vadd.f32 %v718_v42, %v4061_v36  ;;  %v3567_v40 = vld [vmem:[%s5718_s3 + $0xc] ss:$16 sps:$4 sm:$0xff]   ;;  %v3569_v42 = vld [vmem:[%s5718_s3 + $0x24] ss:$16 sps:$4 sm:$0xff]  }
 0x135   : > { %v663_v45 = vpop.f32.mrb[16].mxu0  ;;  %1472 = vmatprep.subr.bf16.mxu0 %v3567_v40 }
 0x136   : > { %v4074_v48 = vadd.f32 %v663_v45, %v329_v41  ;;  %v665_v49 = vpop.f32.mrb[17].mxu0  ;;  %720 = vadd.xlane.f32.xlu1 %v719_v44  ;;  %v3568_v41 = vld [vmem:[%s5718_s3] ss:$16 sps:$4 sm:$0xff]   ;;  %1473 = vmatpush1.bf16.msra.mxu0 %v3565_v39  ;;  %v3571_v44 = vld [vmem:[%s5718_s3 + $0x28] ss:$16 sps:$4 sm:$0xff]  }
 0x137   : > { %v4077_v53 = vadd.f32 %v665_v49, %v330_v43  ;;  %v667_v55 = vpop.f32.mrb[18].mxu0  ;;  %v3573_v43 = vld [vmem:[%s5718_s3 + $0x2c] ss:$16 sps:$4 sm:$0xff]   ;;  %1372 = vmatpush1.bf16.msra.mxu1 %v3568_v41  ;;  %v3574_v45 = vld [vmem:[%s5718_s3 + $0x20] ss:$16 sps:$4 sm:$0xff]  }
 0x138   : > { %v4079_v56 = vadd.f32 %v667_v55, %v331_v46  ;;  %v669_v57 = vpop.f32.mrb[19].mxu0  ;;  %1373 = vmatprep.subr.bf16.mxu1 %v3569_v42  ;;  %1474 = vmatprep.subr.bf16.mxu0 %v3573_v43  ;;  %v3575_v46 = vld [vmem:[%s5718_s3 + $0x44] ss:$16 sps:$4 sm:$0xff]   ;;  %v3579_v49 = vld [vmem:[%s5718_s3 + $0x4c] ss:$16 sps:$4 sm:$0xff]  }
 0x139   : > { %v4081_v58 = vadd.f32 %v669_v57, %v332_v51  ;;  %v722_v59 = vsel %vm560_vm0, %v4077_v53, 0.0  ;;  %v3577_v51 = vld [vmem:[%s5718_s3 + $0x48] ss:$16 sps:$4 sm:$0xff]   ;;  %v3580_v55 = vld [vmem:[%s5718_s3 + $0x40] ss:$16 sps:$4 sm:$0xff]  }
 0x13a   : > { %v723_v60 = vadd.f32 %v722_v59, %v4074_v48  ;;  %1475 = vmatpush1.bf16.msra.mxu0 %v3571_v44  ;;  %v3581_v57 = vld [vmem:[%s5718_s3 + $0x64] ss:$16 sps:$4 sm:$0xff]   ;;  %v3585_v59 = vld [vmem:[%s5718_s3 + $0x6c] ss:$16 sps:$4 sm:$0xff]  }
 0x13b   : > { %v726_v63 = vsel %vm560_vm0, %v4081_v58, 0.0  ;;  %1374 = vmatpush1.bf16.msra.mxu1 %v3574_v45  ;;  %1476 = vmatprep.subr.bf16.mxu0 %v3579_v49 }
 0x13c   : > { %724 = vadd.xlane.f32.xlu0 %v723_v60  ;;  %v727_v1 = vadd.f32 %v726_v63, %v4079_v56  ;;  %1375 = vmatprep.subr.bf16.mxu1 %v3575_v46  ;;  %v3583_v60 = vld [vmem:[%s5718_s3 + $0x68] ss:$16 sps:$4 sm:$0xff]   ;;  %v3587_v63 = vld [vmem:[%s5718_s3 + $0x84] ss:$16 sps:$4 sm:$0xff]  }
 0x13d   : > { %v673_v3 = vpop.f32.mrb[20].mxu0 }
 0x13e   : > { %v4092_v7 = vadd.f32 %v673_v3, %v333_v61  ;;  %v675_v8 = vpop.f32.mrb[21].mxu0  ;;  %728 = vadd.xlane.f32.xlu1 %v727_v1  ;;  %1477 = vmatpush1.bf16.msra.mxu0 %v3577_v51  ;;  %v3586_v61 = vld [vmem:[%s5718_s3 + $0x60] ss:$16 sps:$4 sm:$0xff]   ;;  %v3589_v1 = vld [vmem:[%s5718_s3 + $0x88] ss:$16 sps:$4 sm:$0xff]  }
 0x13f   : > { %v4095_v10 = vadd.f32 %v675_v8, %v334_v0  ;;  %v677_v11 = vpop.f32.mrb[22].mxu0  ;;  %1376 = vmatpush1.bf16.msra.mxu1 %v3580_v55  ;;  %1478 = vmatprep.subr.bf16.mxu0 %v3585_v59  ;;  %v3591_v0 = vld [vmem:[%s5718_s3 + $0x8c] ss:$16 sps:$4 sm:$0xff]   ;;  %v3592_v3 = vld [vmem:[%s5718_s3 + $0x80] ss:$16 sps:$4 sm:$0xff]  }
 0x140   : > { %v4097_v12 = vadd.f32 %v677_v11, %v335_v5  ;;  %v679_v13 = vpop.f32.mrb[23].mxu0  ;;  %1377 = vmatprep.subr.bf16.mxu1 %v3581_v57  ;;  %v3593_v5 = vld [vmem:[%s5718_s3 + $0xa4] ss:$16 sps:$4 sm:$0xff]   ;;  %v3597_v8 = vld [vmem:[%s5718_s3 + $0xac] ss:$16 sps:$4 sm:$0xff]  }
 0x141   : > { %v4099_v15 = vadd.f32 %v679_v13, %v336_v9  ;;  %v730_v16 = vsel %vm560_vm0, %v4095_v10, 0.0  ;;  %v3595_v9 = vld [vmem:[%s5718_s3 + $0xa8] ss:$16 sps:$4 sm:$0xff]   ;;  %v3598_v11 = vld [vmem:[%s5718_s3 + $0xa0] ss:$16 sps:$4 sm:$0xff]  }
 0x142   : > { %v731_v17 = vadd.f32 %v730_v16, %v4092_v7  ;;  %1479 = vmatpush1.bf16.msra.mxu0 %v3583_v60 }
 0x143   : > { %v734_v21 = vsel %vm560_vm0, %v4099_v15, 0.0  ;;  %1378 = vmatpush1.bf16.msra.mxu1 %v3586_v61  ;;  %1480 = vmatprep.subr.bf16.mxu0 %v3591_v0 }
 0x144   : > { %732 = vadd.xlane.f32.xlu0 %v731_v17  ;;  %v735_v24 = vadd.f32 %v734_v21, %v4097_v12  ;;  %1379 = vmatprep.subr.bf16.mxu1 %v3587_v63 }
 0x145   : > { %v683_v25 = vpop.f32.mrb[24].mxu0 }
 0x146   : > { %v4109_v26 = vadd.f32 %v683_v25, %v337_v19  ;;  %v685_v27 = vpop.f32.mrb[25].mxu0  ;;  %736 = vadd.xlane.f32.xlu1 %v735_v24  ;;  %1481 = vmatpush1.bf16.msra.mxu0 %v3589_v1 }
 0x147   : > { %v4111_v28 = vadd.f32 %v685_v27, %v338_v23  ;;  %v687_v29 = vpop.f32.mrb[26].mxu0  ;;  %1380 = vmatpush1.bf16.msra.mxu1 %v3592_v3  ;;  %1482 = vmatprep.subr.bf16.mxu0 %v3597_v8  ;;  %v3603_v3 = vld [vmem:[%s5718_s3 + $0xcc] ss:$16 sps:$4 sm:$0xff]   ;;  %v3601_v8 = vld [vmem:[%s5718_s3 + $0xc8] ss:$16 sps:$4 sm:$0xff]  }
 0x148   : > { %v688_v30 = vpop.f32.mrb[27].mxu0  ;;  %v739_v32 = vsel %vm738_vm2, %v4109_v26, 0.0  ;;  %1381 = vmatprep.subr.bf16.mxu1 %v3593_v5 }
 0x149   : > { %v741_v33 = vsel %vm740_vm3, %v4111_v28, 0.0 }
 0x14a   : > { %v742_v35 = vadd.f32 %v741_v33, %v739_v32  ;;  %1483 = vmatpush1.bf16.msra.mxu0 %v3595_v9  ;;  %v3604_v9 = vld [vmem:[%s5718_s3 + $0xc0] ss:$16 sps:$4 sm:$0xff]  }
 0x14b   : > { %1382 = vmatpush1.bf16.msra.mxu1 %v3598_v11  ;;  %1484 = vmatprep.subr.bf16.mxu0 %v3603_v3  ;;  %v3622_v3 = vld [vmem:[%s5718_s3 + $0x120] ss:$16 sps:$4 sm:$0xff]  }
 0x14c   : > { %743 = vadd.xlane.f32.xlu0 %v742_v35 }
 0x14e   : > { %1485 = vmatpush1.bf16.msra.mxu0 %v3601_v8 }
 0x1a9   : > { %v693_v13 = vpop.xlane.xlu0 %692 }
 0x1aa   : > { %v746_v16 = vmul.f32 0.005, %v693_v13 }
 0x1ac   : > { %v4190_v17 = vsub.f32 %v4002_v47, %v746_v16  ;;  %v4193_v19 = vsub.f32 %v4005_v50, %v746_v16 }
 0x1ad   : > { %v697_v21 = vpop.xlane.xlu0 %696 }
 0x1ae   : > { %v747_v23 = vmul.f32 0.005, %v697_v21  ;;  %v785_v24 = vmul.f32 %v4190_v17, %v4190_v17  ;;  %v786_v25 = vmul.f32 %v4193_v19, %v4193_v19 }
 0x1b0   : > { %v4200_v27 = vsub.f32 %v4007_v52, %v747_v23  ;;  %v4203_v29 = vsub.f32 %v4009_v54, %v747_v23  ;;  %v811_v47 = vsel %vm560_vm0, %v786_v25, 0.0  ;;  %v3605_v25 = vld [vmem:[%s5718_s3 + $0xe4] ss:$16 sps:$4 sm:$0xff]  }
 0x1b1   : > { %v701_v30 = vpop.xlane.xlu1 %700  ;;  %v812_v32 = vadd.f32 %v811_v47, %v785_v24  ;;  %v3609_v47 = vld [vmem:[%s5718_s3 + $0xec] ss:$16 sps:$4 sm:$0xff]  }
 0x1b2   : > { %v748_v50 = vmul.f32 0.005, %v701_v30  ;;  %v787_v33 = vmul.f32 %v4200_v27, %v4200_v27  ;;  %v788_v35 = vmul.f32 %v4203_v29, %v4203_v29  ;;  %1486 = vmatprep.subr.bf16.mxu0 %v3609_v47 }
 0x1b3   : > { %813 = vadd.xlane.f32.xlu1 %v812_v32 }
 0x1b4   : > { %v4211_v37 = vsub.f32 %v4019_v62, %v748_v50  ;;  %v4214_v52 = vsub.f32 %v4023_v2, %v748_v50  ;;  %v815_v54 = vsel %vm560_vm0, %v788_v35, 0.0  ;;  %v3610_v35 = vld [vmem:[%s5718_s3 + $0xe0] ss:$16 sps:$4 sm:$0xff]  }
 0x1b5   : > { %v705_v39 = vpop.xlane.xlu1 %704  ;;  %v816_v40 = vadd.f32 %v815_v54, %v787_v33  ;;  %v3607_v33 = vld [vmem:[%s5718_s3 + $0xe8] ss:$16 sps:$4 sm:$0xff]  }
 0x1b6   : > { %v749_v41 = vmul.f32 0.005, %v705_v39  ;;  %v789_v42 = vmul.f32 %v4211_v37, %v4211_v37  ;;  %v790_v43 = vmul.f32 %v4214_v52, %v4214_v52  ;;  %1487 = vmatpush1.bf16.msra.mxu0 %v3607_v33  ;;  %v3633_v33 = vld [vmem:[%s5718_s3 + $0x16c] ss:$16 sps:$4 sm:$0xff]  }
 0x1b7   : > { %817 = vadd.xlane.f32.xlu0 %v816_v40  ;;  %v3611_v40 = vld [vmem:[%s5718_s3 + $0x104] ss:$16 sps:$4 sm:$0xff]  }
 0x1b8   : > { %v4222_v44 = vsub.f32 %v4025_v4, %v749_v41  ;;  %v4225_v62 = vsub.f32 %v4027_v6, %v749_v41  ;;  %v819_v2 = vsel %vm560_vm0, %v790_v43, 0.0  ;;  %v3613_v43 = vld [vmem:[%s5718_s3 + $0x108] ss:$16 sps:$4 sm:$0xff]  }
 0x1b9   : > { %v709_v45 = vpop.xlane.xlu0 %708  ;;  %v820_v46 = vadd.f32 %v819_v2, %v789_v42  ;;  %v3616_v2 = vld [vmem:[%s5718_s3 + $0x100] ss:$16 sps:$4 sm:$0xff]  }
 0x1ba   : > { %v750_v49 = vmul.f32 0.005, %v709_v45  ;;  %v791_v51 = vmul.f32 %v4222_v44, %v4222_v44  ;;  %v792_v55 = vmul.f32 %v4225_v62, %v4225_v62 }
 0x1bb   : > { %v713_v57 = vpop.xlane.xlu1 %712  ;;  %821 = vadd.xlane.f32.xlu1 %v820_v46 }
 0x1bc   : > { %v4233_v59 = vsub.f32 %v4037_v14, %v750_v49  ;;  %v4236_v4 = vsub.f32 %v4041_v18, %v750_v49  ;;  %v751_v6 = vmul.f32 0.005, %v713_v57  ;;  %v823_v60 = vsel %vm560_vm0, %v792_v55, 0.0  ;;  %v3599_v18 = vld [vmem:[%s5718_s3 + $0xc4] ss:$16 sps:$4 sm:$0xff]  }
 0x1bd   : > { %v824_v61 = vadd.f32 %v823_v60, %v791_v51  ;;  %1383 = vmatprep.subr.bf16.mxu1 %v3599_v18  ;;  %v3621_v60 = vld [vmem:[%s5718_s3 + $0x12c] ss:$16 sps:$4 sm:$0xff]   ;;  %v3619_v18 = vld [vmem:[%s5718_s3 + $0x128] ss:$16 sps:$4 sm:$0xff]  }
 0x1be   : > { %v4240_v63 = vsub.f32 %v4043_v20, %v751_v6  ;;  %v4243_v0 = vsub.f32 %v4045_v22, %v751_v6  ;;  %v793_v1 = vmul.f32 %v4233_v59, %v4233_v59  ;;  %v794_v14 = vmul.f32 %v4236_v4, %v4236_v4  ;;  %1384 = vmatpush1.bf16.msra.mxu1 %v3604_v9  ;;  %v3617_v6 = vld [vmem:[%s5718_s3 + $0x124] ss:$16 sps:$4 sm:$0xff]  }
 0x1bf   : > { %825 = vadd.xlane.f32.xlu0 %v824_v61  ;;  %1385 = vmatprep.subr.bf16.mxu1 %v3605_v25 }
 0x1c0   : > { %v827_v20 = vsel %vm560_vm0, %v794_v14, 0.0  ;;  %v795_v22 = vmul.f32 %v4240_v63, %v4240_v63  ;;  %v796_v5 = vmul.f32 %v4243_v0, %v4243_v0 }
 0x1c1   : > { %v717_v11 = vpop.xlane.xlu0 %716  ;;  %v828_v13 = vadd.f32 %v827_v20, %v793_v1 }
 0x1c2   : > { %v752_v16 = vmul.f32 0.005, %v717_v11  ;;  %v831_v21 = vsel %vm560_vm0, %v796_v5, 0.0  ;;  %1386 = vmatpush1.bf16.msra.mxu1 %v3610_v35  ;;  %v3623_v5 = vld [vmem:[%s5718_s3 + $0x144] ss:$16 sps:$4 sm:$0xff]  }
 0x1c3   : > { %v721_v23 = vpop.xlane.xlu1 %720  ;;  %829 = vadd.xlane.f32.xlu1 %v828_v13  ;;  %v832_v24 = vadd.f32 %v831_v21, %v795_v22  ;;  %1387 = vmatprep.subr.bf16.mxu1 %v3611_v40  ;;  %v3625_v11 = vld [vmem:[%s5718_s3 + $0x148] ss:$16 sps:$4 sm:$0xff]   ;;  %v3628_v13 = vld [vmem:[%s5718_s3 + $0x140] ss:$16 sps:$4 sm:$0xff]  }
 0x1c4   : > { %v4274_v30 = vsub.f32 %v4056_v31, %v752_v16  ;;  %v4277_v32 = vsub.f32 %v4059_v34, %v752_v16  ;;  %v753_v50 = vmul.f32 0.005, %v721_v23  ;;  %v3631_v40 = vld [vmem:[%s5718_s3 + $0x168] ss:$16 sps:$4 sm:$0xff]  }
 0x1c5   : > { %833 = vadd.xlane.f32.xlu0 %v832_v24 }
 0x1c6   : > { %v4286_v54 = vsub.f32 %v4061_v36, %v753_v50  ;;  %v4289_v31 = vsub.f32 %v4063_v38, %v753_v50  ;;  %v797_v34 = vmul.f32 %v4274_v30, %v4274_v30  ;;  %v798_v39 = vmul.f32 %v4277_v32, %v4277_v32  ;;  %v3615_v36 = vld [vmem:[%s5718_s3 + $0x10c] ss:$16 sps:$4 sm:$0xff]   ;;  %1388 = vmatpush1.bf16.msra.mxu1 %v3616_v2  ;;  %v3629_v50 = vld [vmem:[%s5718_s3 + $0x164] ss:$16 sps:$4 sm:$0xff]  }
 0x1c7   : > { %1488 = vmatprep.subr.bf16.mxu0 %v3615_v36  ;;  %1389 = vmatprep.subr.bf16.mxu1 %v3617_v6  ;;  %v3634_v36 = vld [vmem:[%s5718_s3 + $0x160] ss:$16 sps:$4 sm:$0xff]  }
 0x1c8   : > { %v835_v38 = vsel %vm560_vm0, %v798_v39, 0.0  ;;  %v799_v41 = vmul.f32 %v4286_v54, %v4286_v54  ;;  %v800_v42 = vmul.f32 %v4289_v31, %v4289_v31  ;;  %1489 = vmatpush1.bf16.msra.mxu0 %v3613_v43  ;;  %v1066_v43 = vld [vmem:[%s5718_s3 + $0x188] sm:$0xff] }
 0x1c9   : > { %v725_v45 = vpop.xlane.xlu0 %724  ;;  %v836_v46 = vadd.f32 %v835_v38, %v797_v34  ;;  %1490 = vmatprep.subr.bf16.mxu0 %v3621_v60  ;;  %v3335_v2 = vcombine.high %v1066_v43, %v1066_v43 }
 0x1ca   : > { %v754_v49 = vmul.f32 0.005, %v725_v45  ;;  %v839_v51 = vsel %vm560_vm0, %v800_v42, 0.0  ;;  %1390 = vmatpush1.bf16.msra.mxu1 %v3622_v3  ;;  %v1065_v42 = vld [vmem:[%s5718_s3 + $0x180] sm:$0xff]  ;;  %v3334_v45 = vcombine.low %v1066_v43, %v1066_v43 }
 0x1cb   : > { %v729_v55 = vpop.xlane.xlu1 %728  ;;  %837 = vadd.xlane.f32.xlu1 %v836_v46  ;;  %v840_v57 = vadd.f32 %v839_v51, %v799_v41  ;;  %1391 = vmatprep.subr.bf16.mxu1 %v3623_v5 }
 0x1cc   : > { %v4320_v61 = vsub.f32 %v4074_v48, %v754_v49  ;;  %v4323_v1 = vsub.f32 %v4077_v53, %v754_v49  ;;  %v755_v14 = vmul.f32 0.005, %v729_v55  ;;  %1491 = vmatpush1.bf16.msra.mxu0 %v3619_v18  ;;  %v1366_v60 = vsel %vm582_vm1, %v3334_v45, 0 }
 0x1cd   : > { %841 = vadd.xlane.f32.xlu0 %v840_v57 }
 0x1ce   : > { %v4332_v20 = vsub.f32 %v4079_v56, %v755_v14  ;;  %v4335_v48 = vsub.f32 %v4081_v58, %v755_v14  ;;  %v801_v53 = vmul.f32 %v4320_v61, %v4320_v61  ;;  %v802_v22 = vmul.f32 %v4323_v1, %v4323_v1  ;;  %v3627_v56 = vld [vmem:[%s5718_s3 + $0x14c] ss:$16 sps:$4 sm:$0xff]   ;;  %1392 = vmatpush1.bf16.msra.mxu1 %v3628_v13 }
 0x1cf   : > { %1492 = vmatprep.subr.bf16.mxu0 %v3627_v56  ;;  %1393 = vmatprep.subr.bf16.mxu1 %v3629_v50 }
 0x1d0   : > { %v843_v8 = vsel %vm560_vm0, %v802_v22, 0.0  ;;  %v803_v58 = vmul.f32 %v4332_v20, %v4332_v20  ;;  %v804_v9 = vmul.f32 %v4335_v48, %v4335_v48  ;;  %1493 = vmatpush1.bf16.msra.mxu0 %v3625_v11 }
 0x1d1   : > { %v733_v16 = vpop.xlane.xlu0 %732  ;;  %v844_v21 = vadd.f32 %v843_v8, %v801_v53  ;;  %1494 = vmatprep.subr.bf16.mxu0 %v3633_v33 }
 0x1d2   : > { %v756_v23 = vmul.f32 0.005, %v733_v16  ;;  %v847_v24 = vsel %vm560_vm0, %v804_v9, 0.0  ;;  %1394 = vmatpush1.bf16.msra.mxu1 %v3634_v36  ;;  %v930_v16 = vlaneseq }
 0x1d3   : > { %v737_v25 = vpop.xlane.xlu1 %736  ;;  %845 = vadd.xlane.f32.xlu1 %v844_v21  ;;  %v848_v47 = vadd.f32 %v847_v24, %v803_v58 }
 0x1d4   : > { %v4366_v35 = vsub.f32 %v4092_v7, %v756_v23  ;;  %v4369_v34 = vsub.f32 %v4095_v10, %v756_v23  ;;  %v757_v39 = vmul.f32 0.005, %v737_v25  ;;  %1495 = vmatpush1.bf16.msra.mxu0 %v3631_v40  ;;  %v4418_v25 = vshrl.u32 %v930_v16, 7 }
 0x1d5   : > { %849 = vadd.xlane.f32.xlu0 %v848_v47  ;;  %3344 = vmatprep.subr.msk.bf16.mxu0 %vm582_vm1, %v3335_v2 }
 0x1d6   : > { %v4378_v38 = vsub.f32 %v4097_v12, %v757_v39  ;;  %v4381_v7 = vsub.f32 %v4099_v15, %v757_v39  ;;  %v805_v10 = vmul.f32 %v4366_v35, %v4366_v35  ;;  %v806_v41 = vmul.f32 %v4369_v34, %v4369_v34 }
 0x1d7   : > { %v3333_v12 = vcombine.high %v1065_v42, %v1065_v42  ;;  %v3332_v15 = vcombine.low %v1065_v42, %v1065_v42  ;;  %v4421_v39 = vsub.s32 0, %v4418_v25  ;;  %v4424_v40 = vsub.s32 1, %v4418_v25 }
 0x1d8   : > { %v851_v46 = vsel %vm560_vm0, %v806_v41, 0.0  ;;  %v807_v49 = vmul.f32 %v4378_v38, %v4378_v38  ;;  %v808_v51 = vmul.f32 %v4381_v7, %v4381_v7  ;;  %1497 = vmatpush1.bf16.msra.mxu0 %v1366_v60 }
 0x1d9   : > { %v744_v55 = vpop.xlane.xlu0 %743  ;;  %v852_v57 = vadd.f32 %v851_v46, %v805_v10  ;;  %3336 = vmatprep.subr.msk.bf16.mxu1 %vm582_vm1, %v3333_v12  ;;  %v1360_v6 = vsel %vm582_vm1, %v3332_v15, 0  ;;  %v339_v10 = vld [vmem:[%s5720_s5] ss:$8 sm:$0x3] }
 0x1da   : > { %v758_v14 = vmul.f32 0.005, %v744_v55  ;;  %v855_v18 = vsel %vm560_vm0, %v808_v51, 0.0  ;;  %1396 = vmatpush1.bf16.msra.mxu1 %v1360_v6  ;;  %v3231_v12 = vld [vmem:[%s5720_s5 + $0x1] ss:$8 sm:$0x3]  ;;  %v4433_v2 = vrot.slane %v339_v10, %v4421_v39  ;;  %v4436_v15 = vrot.slane %v339_v10, %v4424_v40 }
 0x1db   : > { %853 = vadd.xlane.f32.xlu1 %v852_v57  ;;  %v856_v3 = vadd.f32 %v855_v18, %v807_v49  ;;  %v4441_v57 = vrot.slane %v3231_v12, %v4421_v39  ;;  %v4444_v6 = vrot.slane %v3231_v12, %v4424_v40 }
 0x1dc   : > { %v4404_v53 = vsub.f32 %v4109_v26, %v758_v14  ;;  %v4407_v22 = vsub.f32 %v4111_v28, %v758_v14  ;;  %v3641_v26 = vld [vmem:[%s5719_s4 + $0x4] ss:$8 sps:$4 sm:$0xff]  }
 0x1dd   : > { %857 = vadd.xlane.f32.xlu0 %v856_v3  ;;  %1986 = vmatprep.subr.bf16.mxu1 %v3641_v26 }
 0x1de   : > { %v809_v5 = vmul.f32 %v4404_v53, %v4404_v53  ;;  %v810_v56 = vmul.f32 %v4407_v22, %v4407_v22 }
 0x1e0   : > { %v859_v8 = vsel %vm738_vm2, %v809_v5, 0.0  ;;  %v860_v58 = vsel %vm740_vm3, %v810_v56, 0.0 }
 0x1e1   : > { %v861_v9 = vadd.f32 %v860_v58, %v859_v8 }
 0x1e3   : > { %862 = vadd.xlane.f32.xlu1 %v861_v9 }
 0x240   : > { %v814_v28 = vpop.xlane.xlu1 %813 }
 0x241   : > { %v864_v11 = vmul.f32 0.005, %v814_v28 }
 0x243   : > { %v877_v13 = vadd.f32 1e-05, %v864_v11 }
 0x244   : > { %v818_v21 = vpop.xlane.xlu0 %817 }
 0x245   : > { %3752 = vrsqrt.f32 %v877_v13  ;;  %v865_v23 = vmul.f32 0.005, %v818_v21 }
 0x247   : > { %v878_v24 = vadd.f32 1e-05, %v865_v23 }
 0x248   : > { %v822_v47 = vpop.xlane.xlu1 %821 }
 0x249   : > { %3754 = vrsqrt.f32 %v878_v24  ;;  %v866_v50 = vmul.f32 0.005, %v822_v47 }
 0x24b   : > { %v879_v33 = vadd.f32 1e-05, %v866_v50 }
 0x24c   : > { %v826_v36 = vpop.xlane.xlu0 %825 }
 0x24d   : > { %3756 = vrsqrt.f32 %v879_v33  ;;  %v867_v41 = vmul.f32 0.005, %v826_v36 }
 0x24f   : > { %v3753_v42 = vpop.eup %3752  ;;  %v880_v43 = vadd.f32 1e-05, %v867_v41 }
 0x250   : > { %v830_v45 = vpop.xlane.xlu1 %829  ;;  %v904_v46 = vmul.f32 %v3753_v42, %v4193_v19  ;;  %v903_v49 = vmul.f32 %v3753_v42, %v4190_v17 }
 0x251   : > { %3758 = vrsqrt.f32 %v880_v43  ;;  %v868_v51 = vmul.f32 0.005, %v830_v45 }
 0x252   : > { %v834_v55 = vpop.xlane.xlu0 %833  ;;  %v941_v3 = vmul.f32 %v4436_v15, %v904_v46  ;;  %v940_v5 = vmul.f32 %v4433_v2, %v903_v49 }
 0x253   : > { %v3755_v60 = vpop.eup %3754  ;;  %v881_v14 = vadd.f32 1e-05, %v868_v51  ;;  %v869_v18 = vmul.f32 0.005, %v834_v55 }
 0x254   : > { %v906_v19 = vmul.f32 %v3755_v60, %v4203_v29  ;;  %v905_v17 = vmul.f32 %v3755_v60, %v4200_v27  ;;  %v4453_v26 = vadd.f32 %v4444_v6, %v941_v3  ;;  %v4456_v28 = vadd.f32 %v4441_v57, %v940_v5 }
 0x255   : > { %3760 = vrsqrt.f32 %v881_v14  ;;  %v882_v56 = vadd.f32 1e-05, %v869_v18 }
 0x256   : > { %v943_v8 = vmul.f32 %v4436_v15, %v906_v19  ;;  %v942_v58 = vmul.f32 %v4433_v2, %v905_v17 }
 0x257   : > { %v3757_v9 = vpop.eup %3756  ;;  %3762 = vrsqrt.f32 %v882_v56 }
 0x258   : > { %v908_v11 = vmul.f32 %v3757_v9, %v4214_v52  ;;  %v838_v13 = vpop.xlane.xlu1 %837  ;;  %v4460_v29 = vadd.f32 %v4444_v6, %v943_v8  ;;  %v4463_v27 = vadd.f32 %v4441_v57, %v942_v58  ;;  %v907_v16 = vmul.f32 %v3757_v9, %v4211_v37  ;;  %v3639_v52 = vld [vmem:[%s5719_s4] ss:$8 sps:$4 sm:$0xff]   ;;  %v3644_v37 = vld [vmem:[%s5719_s4 + $0x14] ss:$8 sps:$4 sm:$0xff]  }
 0x259   : > { %v870_v21 = vmul.f32 0.005, %v838_v13 }
 0x25a   : > { %v842_v23 = vpop.xlane.xlu0 %841  ;;  %v1004_v24 = vpack.c.bf16 %v4460_v29, %v4453_v26  ;;  %v1003_v47 = vpack.c.bf16 %v4463_v27, %v4456_v28  ;;  %v945_v10 = vmul.f32 %v4436_v15, %v908_v11  ;;  %v944_v43 = vmul.f32 %v4433_v2, %v907_v16  ;;  %v3645_v11 = vld [vmem:[%s5719_s4 + $0x20] ss:$8 sps:$4 sm:$0xff]  }
 0x25b   : > { %v3759_v50 = vpop.eup %3758  ;;  %v883_v33 = vadd.f32 1e-05, %v870_v21  ;;  %v871_v36 = vmul.f32 0.005, %v842_v23 }
 0x25c   : > { %v910_v41 = vmul.f32 %v3759_v50, %v4225_v62  ;;  %3337 = vmatprep.mubr.msk.bf16.mxu1 %vm560_vm0, %v1004_v24  ;;  %3345 = vmatprep.mubr.msk.bf16.mxu0 %vm560_vm0, %v1004_v24  ;;  %v909_v42 = vmul.f32 %v3759_v50, %v4222_v44  ;;  %v3642_v62 = vld [vmem:[%s5719_s4 + $0x10] ss:$8 sps:$4 sm:$0xff]   ;;  %v4488_v51 = vadd.f32 %v4444_v6, %v945_v10  ;;  %v3647_v44 = vld [vmem:[%s5719_s4 + $0x24] ss:$8 sps:$4 sm:$0xff]  }
 0x25d   : > { %3764 = vrsqrt.f32 %v883_v33  ;;  %v884_v12 = vadd.f32 1e-05, %v871_v36  ;;  %1404 = vmatmul.mubr.bf16.vlgmr.msra.gmra.mrb[0].mxu1 %v1003_v47  ;;  %1505 = vmatmul.mubr.bf16.vlgmr.msra.gmra.mrb[28].mxu0 %v1003_v47  ;;  %v4498_v18 = vadd.f32 %v4441_v57, %v944_v43  ;;  %v3648_v36 = vld [vmem:[%s5719_s4 + $0x30] ss:$8 sps:$4 sm:$0xff]  }
 0x25e   : > { %v947_v45 = vmul.f32 %v4436_v15, %v910_v41  ;;  %v946_v46 = vmul.f32 %v4433_v2, %v909_v42  ;;  %1987 = vmatpush1.bf16.msra.mxu1 %v3639_v52  ;;  %v3653_v42 = vld [vmem:[%s5719_s4 + $0x44] ss:$8 sps:$4 sm:$0xff]  }
 0x25f   : > { %v3761_v49 = vpop.eup %3760  ;;  %3766 = vrsqrt.f32 %v884_v12  ;;  %1988 = vmatprep.subr.bf16.mxu1 %v3644_v37 }
 0x260   : > { %v912_v55 = vmul.f32 %v3761_v49, %v4236_v4  ;;  %v846_v60 = vpop.xlane.xlu1 %845  ;;  %v4495_v14 = vadd.f32 %v4444_v6, %v947_v45  ;;  %v4501_v3 = vadd.f32 %v4441_v57, %v946_v46  ;;  %v911_v17 = vmul.f32 %v3761_v49, %v4233_v59 }
 0x261   : > { %v3763_v5 = vpop.eup %3762  ;;  %v872_v19 = vmul.f32 0.005, %v846_v60 }
 0x262   : > { %v914_v56 = vmul.f32 %v3763_v5, %v4243_v0  ;;  %v850_v8 = vpop.xlane.xlu0 %849  ;;  %v1006_v4 = vpack.c.bf16 %v4495_v14, %v4488_v51  ;;  %v1005_v58 = vpack.c.bf16 %v4501_v3, %v4498_v18  ;;  %v949_v9 = vmul.f32 %v4436_v15, %v912_v55  ;;  %1989 = vmatpush1.bf16.msra.mxu1 %v3642_v62  ;;  %v3650_v0 = vld [vmem:[%s5719_s4 + $0x34] ss:$8 sps:$4 sm:$0xff]  }
 0x263   : > { %v885_v13 = vadd.f32 1e-05, %v872_v19  ;;  %v873_v16 = vmul.f32 0.005, %v850_v8  ;;  %v913_v59 = vmul.f32 %v3763_v5, %v4240_v63  ;;  %1990 = vmatprep.subr.bf16.mxu1 %v3647_v44  ;;  %v948_v24 = vmul.f32 %v4433_v2, %v911_v17  ;;  %v3656_v17 = vld [vmem:[%s5719_s4 + $0x54] ss:$8 sps:$4 sm:$0xff]  }
 0x264   : > { %3338 = vmatprep.mubr.msk.bf16.mxu1 %vm560_vm0, %v1006_v4  ;;  %3346 = vmatprep.mubr.msk.bf16.mxu0 %vm560_vm0, %v1006_v4  ;;  %v951_v21 = vmul.f32 %v4436_v15, %v914_v56  ;;  %v4523_v63 = vadd.f32 %v4444_v6, %v949_v9 }
 0x265   : > { %3768 = vrsqrt.f32 %v885_v13  ;;  %v886_v23 = vadd.f32 1e-05, %v873_v16  ;;  %1414 = vmatmul.mubr.bf16.gmra.mrb[4].mxu1 %v1005_v58  ;;  %1515 = vmatmul.mubr.bf16.gmra.mrb[32].mxu0 %v1005_v58  ;;  %v950_v47 = vmul.f32 %v4433_v2, %v913_v59  ;;  %v4541_v45 = vadd.f32 %v4441_v57, %v948_v24 }
 0x266   : > { %v4526_v52 = vadd.f32 %v4444_v6, %v951_v21  ;;  %1991 = vmatpush1.bf16.msra.mxu1 %v3645_v11  ;;  %v3654_v11 = vld [vmem:[%s5719_s4 + $0x50] ss:$8 sps:$4 sm:$0xff]  }
 0x267   : > { %v3765_v50 = vpop.eup %3764  ;;  %3770 = vrsqrt.f32 %v886_v23  ;;  %v4529_v33 = vadd.f32 %v4441_v57, %v950_v47  ;;  %1992 = vmatprep.subr.bf16.mxu1 %v3650_v0  ;;  %v3659_v0 = vld [vmem:[%s5719_s4 + $0x64] ss:$8 sps:$4 sm:$0xff]  }
 0x268   : > { %v916_v10 = vmul.f32 %v3765_v50, %v4277_v32  ;;  %v854_v37 = vpop.xlane.xlu1 %853  ;;  %v1008_v41 = vpack.c.bf16 %v4526_v52, %v4523_v63  ;;  %v915_v46 = vmul.f32 %v3765_v50, %v4274_v30  ;;  %v3651_v30 = vld [vmem:[%s5719_s4 + $0x40] ss:$8 sps:$4 sm:$0xff]  }
 0x269   : > { %v3767_v43 = vpop.eup %3766  ;;  %v874_v12 = vmul.f32 0.005, %v854_v37  ;;  %v1007_v5 = vpack.c.bf16 %v4529_v33, %v4541_v45 }
 0x26a   : > { %v918_v62 = vmul.f32 %v3767_v43, %v4289_v31  ;;  %3339 = vmatprep.mubr.msk.bf16.mxu1 %vm560_vm0, %v1008_v41  ;;  %3347 = vmatprep.mubr.msk.bf16.mxu0 %vm560_vm0, %v1008_v41  ;;  %v858_v32 = vpop.xlane.xlu0 %857  ;;  %v953_v49 = vmul.f32 %v4436_v15, %v916_v10  ;;  %v917_v44 = vmul.f32 %v3767_v43, %v4286_v54  ;;  %v3657_v41 = vld [vmem:[%s5719_s4 + $0x60] ss:$8 sps:$4 sm:$0xff]  }
 0x26b   : > { %v887_v55 = vadd.f32 1e-05, %v874_v12  ;;  %v875_v60 = vmul.f32 0.005, %v858_v32  ;;  %1993 = vmatpush1.bf16.msra.mxu1 %v3648_v36  ;;  %v952_v56 = vmul.f32 %v4433_v2, %v915_v46  ;;  %v3660_v32 = vld [vmem:[%s5719_s4 + $0x70] ss:$8 sps:$4 sm:$0xff]  }
 0x26c   : > { %v955_v31 = vmul.f32 %v4436_v15, %v918_v62  ;;  %v954_v19 = vmul.f32 %v4433_v2, %v917_v44  ;;  %1994 = vmatprep.subr.bf16.mxu1 %v3653_v42  ;;  %v4561_v8 = vadd.f32 %v4444_v6, %v953_v49  ;;  %v3662_v42 = vld [vmem:[%s5719_s4 + $0x74] ss:$8 sps:$4 sm:$0xff]  }
 0x26d   : > { %3772 = vrsqrt.f32 %v887_v55  ;;  %v888_v54 = vadd.f32 1e-05, %v875_v60  ;;  %1424 = vmatmul.mubr.bf16.gmra.mrb[8].mxu1 %v1007_v5  ;;  %1525 = vmatmul.mubr.bf16.gmra.mrb[36].mxu0 %v1007_v5  ;;  %v4579_v24 = vadd.f32 %v4441_v57, %v952_v56  ;;  %v3665_v55 = vld [vmem:[%s5719_s4 + $0x84] ss:$8 sps:$4 sm:$0xff]   ;;  %v3668_v56 = vld [vmem:[%s5719_s4 + $0x94] ss:$8 sps:$4 sm:$0xff]  }
 0x26e   : > { %v4564_v4 = vadd.f32 %v4444_v6, %v955_v31  ;;  %v4567_v9 = vadd.f32 %v4441_v57, %v954_v19 }
 0x26f   : > { %v3769_v58 = vpop.eup %3768  ;;  %3774 = vrsqrt.f32 %v888_v54  ;;  %1995 = vmatpush1.bf16.msra.mxu1 %v3651_v30  ;;  %v3663_v54 = vld [vmem:[%s5719_s4 + $0x80] ss:$8 sps:$4 sm:$0xff]  }
 0x270   : > { %v920_v13 = vmul.f32 %v3769_v58, %v4323_v1  ;;  %v863_v16 = vpop.xlane.xlu1 %862  ;;  %v1010_v59 = vpack.c.bf16 %v4564_v4, %v4561_v8  ;;  %1996 = vmatprep.subr.bf16.mxu1 %v3656_v17  ;;  %v919_v47 = vmul.f32 %v3769_v58, %v4320_v61  ;;  %v1009_v37 = vpack.c.bf16 %v4567_v9, %v4579_v24 }
 0x271   : > { %v3771_v21 = vpop.eup %3770  ;;  %v876_v23 = vmul.f32 0.005, %v863_v16 }
 0x272   : > { %v922_v50 = vmul.f32 %v3771_v21, %v4335_v48  ;;  %3340 = vmatprep.mubr.msk.bf16.mxu1 %vm560_vm0, %v1010_v59  ;;  %3348 = vmatprep.mubr.msk.bf16.mxu0 %vm560_vm0, %v1010_v59  ;;  %v957_v1 = vmul.f32 %v4436_v15, %v920_v13  ;;  %v921_v36 = vmul.f32 %v3771_v21, %v4332_v20  ;;  %v3666_v59 = vld [vmem:[%s5719_s4 + $0x90] ss:$8 sps:$4 sm:$0xff]  }
 0x273   : > { %v889_v10 = vadd.f32 1e-05, %v876_v23  ;;  %1997 = vmatpush1.bf16.msra.mxu1 %v3654_v11  ;;  %v956_v20 = vmul.f32 %v4433_v2, %v919_v47  ;;  %v3671_v47 = vld [vmem:[%s5719_s4 + $0xa4] ss:$8 sps:$4 sm:$0xff]  }
 0x274   : > { %v959_v61 = vmul.f32 %v4436_v15, %v922_v50  ;;  %v958_v48 = vmul.f32 %v4433_v2, %v921_v36  ;;  %1998 = vmatprep.subr.bf16.mxu1 %v3659_v0  ;;  %v4599_v43 = vadd.f32 %v4444_v6, %v957_v1 }
 0x275   : > { %3776 = vrsqrt.f32 %v889_v10  ;;  %1434 = vmatmul.mubr.bf16.gmra.mrb[12].mxu1 %v1009_v37  ;;  %1535 = vmatmul.mubr.bf16.gmra.mrb[40].mxu0 %v1009_v37  ;;  %v4617_v5 = vadd.f32 %v4441_v57, %v956_v20  ;;  %v3683_v20 = vld [vmem:[%s5719_s4 + $0xe4] ss:$8 sps:$4 sm:$0xff]  }
 0x276   : > { %v4602_v12 = vadd.f32 %v4444_v6, %v959_v61  ;;  %v4605_v62 = vadd.f32 %v4441_v57, %v958_v48  ;;  %v3680_v48 = vld [vmem:[%s5719_s4 + $0xd4] ss:$8 sps:$4 sm:$0xff]  }
 0x277   : > { %v3773_v46 = vpop.eup %3772  ;;  %1999 = vmatpush1.bf16.msra.mxu1 %v3657_v41  ;;  %v3672_v41 = vld [vmem:[%s5719_s4 + $0xb0] ss:$8 sps:$4 sm:$0xff]  }
 0x278   : > { %v924_v49 = vmul.f32 %v3773_v46, %v4369_v34  ;;  %v1012_v44 = vpack.c.bf16 %v4602_v12, %v4599_v43  ;;  %2000 = vmatprep.subr.bf16.mxu1 %v3662_v42  ;;  %v923_v30 = vmul.f32 %v3773_v46, %v4366_v35  ;;  %v1011_v17 = vpack.c.bf16 %v4605_v62, %v4617_v5  ;;  %v3678_v42 = vld [vmem:[%s5719_s4 + $0xd0] ss:$8 sps:$4 sm:$0xff]   ;;  %v3681_v46 = vld [vmem:[%s5719_s4 + $0xe0] ss:$8 sps:$4 sm:$0xff]  }
 0x279   : > { %v3775_v60 = vpop.eup %3774 }
 0x27a   : > { %v926_v31 = vmul.f32 %v3775_v60, %v4381_v7  ;;  %3341 = vmatprep.mubr.msk.bf16.mxu1 %vm560_vm0, %v1012_v44  ;;  %3349 = vmatprep.mubr.msk.bf16.mxu0 %vm560_vm0, %v1012_v44  ;;  %v961_v34 = vmul.f32 %v4436_v15, %v924_v49  ;;  %v925_v19 = vmul.f32 %v3775_v60, %v4378_v38  ;;  %v3684_v49 = vld [vmem:[%s5719_s4 + $0xf0] ss:$8 sps:$4 sm:$0xff]   ;;  %v3689_v44 = vld [vmem:[%s5719_s4 + $0x104] ss:$8 sps:$4 sm:$0xff]  }
 0x27b   : > { %2001 = vmatpush1.bf16.msra.mxu1 %v3660_v32  ;;  %v960_v38 = vmul.f32 %v4433_v2, %v923_v30  ;;  %v3686_v32 = vld [vmem:[%s5719_s4 + $0xf4] ss:$8 sps:$4 sm:$0xff]   ;;  %v1082_v30 = vsub.s32 3, %v4418_v25 }
 0x27c   : > { %v963_v35 = vmul.f32 %v4436_v15, %v926_v31  ;;  %v962_v7 = vmul.f32 %v4433_v2, %v925_v19  ;;  %2002 = vmatprep.subr.bf16.mxu1 %v3665_v55  ;;  %v4637_v58 = vadd.f32 %v4444_v6, %v961_v34  ;;  %v1078_v55 = vsub.s32 2, %v4418_v25  ;;  %v3234_v60 = vld [vmem:[%s5720_s5 + $0x4] ss:$8 sm:$0xf] }
 0x27d   : > { %1444 = vmatmul.mubr.bf16.gmra.mrb[16].mxu1 %v1011_v17  ;;  %1545 = vmatmul.mubr.bf16.gmra.mrb[44].mxu0 %v1011_v17  ;;  %v4656_v50 = vadd.f32 %v4441_v57, %v960_v38  ;;  %v4718_v31 = vrot.slane %v3234_v60, %v4421_v39  ;;  %v4723_v19 = vrot.slane %v3234_v60, %v4424_v40 }
 0x27e   : > { %v4640_v11 = vadd.f32 %v4444_v6, %v963_v35  ;;  %v4643_v16 = vadd.f32 %v4441_v57, %v962_v7  ;;  %v4720_v34 = vrot.slane %v3234_v60, %v1078_v55  ;;  %v4725_v17 = vrot.slane %v3234_v60, %v1082_v30  ;;  %v3687_v60 = vld [vmem:[%s5719_s4 + $0x100] ss:$8 sps:$4 sm:$0xff]  }
 0x27f   : > { %v3777_v13 = vpop.eup %3776  ;;  %2003 = vmatpush1.bf16.msra.mxu1 %v3663_v54  ;;  %5730 = vst [vmem:[#allocation4_spill] sm:$0xff] %v4656_v50 }
 0x280   : > { %5728 = vst [vmem:[#allocation2_spill] sm:$0xff] %v4640_v11  ;;  %5729 = vst [vmem:[#allocation3_spill] sm:$0xff] %v4643_v16  ;;  %v928_v0 = vmul.f32 %v3777_v13, %v4407_v22  ;;  %v1014_v21 = vpack.c.bf16 %v4640_v11, %v4637_v58  ;;  %v927_v23 = vmul.f32 %v3777_v13, %v4404_v53  ;;  %2004 = vmatprep.subr.bf16.mxu1 %v3668_v56  ;;  %v3669_v53 = vld [vmem:[%s5719_s4 + $0xa0] ss:$8 sps:$4 sm:$0xff]  }
 0x281   : > { %v1013_v22 = vpack.c.bf16 %v4643_v16, %v4656_v50 }
 0x282   : > { %3342 = vmatprep.mubr.msk.bf16.mxu1 %vm560_vm0, %v1014_v21  ;;  %3350 = vmatprep.mubr.msk.bf16.mxu0 %vm560_vm0, %v1014_v21  ;;  %v965_v1 = vmul.f32 %v4436_v15, %v928_v0  ;;  %v964_v36 = vmul.f32 %v4433_v2, %v927_v23  ;;  %v3674_v15 = vld [vmem:[%s5719_s4 + $0xb4] ss:$8 sps:$4 sm:$0xff]  }
 0x283   : > { %2005 = vmatpush1.bf16.msra.mxu1 %v3666_v59 }
 0x284   : > { %v4668_v10 = vadd.f32 %v4444_v6, %v965_v1  ;;  %2006 = vmatprep.subr.bf16.mxu1 %v3671_v47  ;;  %v4676_v2 = vadd.f32 %v4441_v57, %v964_v36  ;;  %v3677_v6 = vld [vmem:[%s5719_s4 + $0xc4] ss:$8 sps:$4 sm:$0xff]   ;;  %v3675_v57 = vld [vmem:[%s5719_s4 + $0xc0] ss:$8 sps:$4 sm:$0xff]  }
 0x285   : > { %1454 = vmatmul.mubr.bf16.gmra.mrb[20].mxu1 %v1013_v22  ;;  %1555 = vmatmul.mubr.bf16.gmra.mrb[48].mxu0 %v1013_v22 }
 0x286   : > { %5731 = vst [vmem:[#allocation5_spill] sm:$0xff] %v4668_v10  ;;  %v1016_v37 = vpack.c.bf16 %v4668_v10, %v4668_v10  ;;  %5732 = vst [vmem:[#allocation6_spill] sm:$0xff] %v4676_v2  ;;  %v1015_v61 = vpack.c.bf16 %v4676_v2, %v4676_v2 }
 0x287   : > { %2007 = vmatpush1.bf16.msra.mxu1 %v3669_v53 }
 0x288   : > { %3343 = vmatprep.mubr.msk.bf16.mxu1 %vm560_vm0, %v1016_v37  ;;  %3351 = vmatprep.mubr.msk.bf16.mxu0 %vm560_vm0, %v1016_v37 }
 0x289   : > { %2008 = vmatprep.subr.bf16.mxu1 %v3674_v15 }
 0x28b   : > { %2009 = vmatpush1.bf16.msra.mxu1 %v3672_v41 }
 0x28c   : > { %2010 = vmatprep.subr.bf16.mxu1 %v3677_v6 }
 0x28d   : > { %1464 = vmatmul.mubr.bf16.gmra.mrb[24].mxu1 %v1015_v61  ;;  %1565 = vmatmul.mubr.bf16.gmra.mrb[52].mxu0 %v1015_v61 }
 0x28f   : > { %2011 = vmatpush1.bf16.msra.mxu1 %v3675_v57 }
 0x290   : > { %2012 = vmatprep.subr.bf16.mxu1 %v3680_v48 }
 0x293   : > { %2013 = vmatpush1.bf16.msra.mxu1 %v3678_v42 }
 0x294   : > { %2014 = vmatprep.subr.bf16.mxu1 %v3683_v20 }
 0x297   : > { %2015 = vmatpush1.bf16.msra.mxu1 %v3681_v46 }
 0x298   : > { %2016 = vmatprep.subr.bf16.mxu1 %v3686_v32 }
 0x29b   : > { %2017 = vmatpush1.bf16.msra.mxu1 %v3684_v49 }
 0x29c   : > { %2087 = vmatprep.subr.bf16.mxu1 %v3689_v44 }
 0x330   : > { %v1405_v54 = vpop.f32.mrb[0].mxu1  ;;  %v1506_v35 = vpop.f32.mrb[28].mxu0 }
 0x331   : > { %v1406_v7 = vadd.f32 %v1405_v54, %v4718_v31  ;;  %v1507_v56 = vadd.f32 %v1506_v35, %v4720_v34  ;;  %v1407_v38 = vpop.f32.mrb[1].mxu1  ;;  %v1508_v13 = vpop.f32.mrb[29].mxu0 }
 0x332   : > { %v1408_v25 = vadd.f32 %v1407_v38, %v4723_v19  ;;  %v1509_v59 = vadd.f32 %v1508_v13, %v4725_v17  ;;  %v1409_v0 = vpop.f32.mrb[2].mxu1  ;;  %v1510_v21 = vpop.f32.mrb[30].mxu0 }
 0x333   : > { %v1410_v23 = vadd.f32 %v1409_v0, %v4718_v31  ;;  %v1511_v47 = vadd.f32 %v1510_v21, %v4720_v34  ;;  %v1411_v1 = vpop.f32.mrb[3].mxu1  ;;  %v1512_v22 = vpop.f32.mrb[31].mxu0  ;;  %v1573_v15 = vmax.f32 %v1406_v7, 0.0  ;;  %v1575_v37 = vmax.f32 %v1507_v56, 0.0  ;;  %v3692_v56 = vld [vmem:[%s5719_s4 + $0x114] ss:$8 sps:$4 sm:$0xff]  }
 0x334   : > { %v1412_v36 = vadd.f32 %v1411_v1, %v4723_v19  ;;  %v1513_v53 = vadd.f32 %v1512_v22, %v4725_v17  ;;  %v1574_v61 = vmax.f32 %v1408_v25, 0.0  ;;  %v1576_v57 = vmax.f32 %v1509_v59, 0.0 }
 0x335   : > { %v1577_v41 = vmax.f32 %v1410_v23, 0.0  ;;  %v1579_v6 = vmax.f32 %v1511_v47, 0.0 }
 0x336   : > { %v1578_v48 = vmax.f32 %v1412_v36, 0.0  ;;  %v1580_v42 = vmax.f32 %v1513_v53, 0.0  ;;  %v3690_v36 = vld [vmem:[%s5719_s4 + $0x110] ss:$8 sps:$4 sm:$0xff]  }
 0x337   : > { %v1625_v20 = vpack.c.bf16 %v1577_v41, %v1573_v15  ;;  %v4735_v46 = vpack.c.bf16 %v1579_v6, %v1575_v37  ;;  %v3695_v6 = vld [vmem:[%s5719_s4 + $0x124] ss:$8 sps:$4 sm:$0xff]  }
 0x338   : > { %v1626_v32 = vpack.c.bf16 %v1578_v48, %v1574_v61  ;;  %v4737_v49 = vpack.c.bf16 %v1580_v42, %v1576_v57  ;;  %v1415_v44 = vpop.f32.mrb[4].mxu1  ;;  %v1516_v55 = vpop.f32.mrb[32].mxu0 }
 0x339   : > { %v1416_v30 = vadd.f32 %v1415_v44, %v4718_v31  ;;  %v1517_v54 = vadd.f32 %v1516_v55, %v4720_v34  ;;  %v1417_v35 = vpop.f32.mrb[5].mxu1  ;;  %v1518_v7 = vpop.f32.mrb[33].mxu0 }
 0x33a   : > { %v1418_v38 = vadd.f32 %v1417_v35, %v4723_v19  ;;  %v1519_v13 = vadd.f32 %v1518_v7, %v4725_v17  ;;  %v1419_v25 = vpop.f32.mrb[6].mxu1  ;;  %v1520_v59 = vpop.f32.mrb[34].mxu0  ;;  %2018 = vmatprep.mubr.bf16.mxu1 %v1626_v32 }
 0x33b   : > { %v1420_v0 = vadd.f32 %v1419_v25, %v4718_v31  ;;  %v1521_v21 = vadd.f32 %v1520_v59, %v4720_v34  ;;  %v1421_v23 = vpop.f32.mrb[7].mxu1  ;;  %v1522_v47 = vpop.f32.mrb[35].mxu0  ;;  %2019 = vmatmul.mubr.bf16.vlgmr.msra.gmra.mrb[28].mxu1 %v1625_v20  ;;  %v1581_v53 = vmax.f32 %v1416_v30, 0.0  ;;  %v1583_v15 = vmax.f32 %v1517_v54, 0.0  ;;  %v3693_v54 = vld [vmem:[%s5719_s4 + $0x120] ss:$8 sps:$4 sm:$0xff]  }
 0x33c   : > { %v1422_v1 = vadd.f32 %v1421_v23, %v4723_v19  ;;  %v1523_v22 = vadd.f32 %v1522_v47, %v4725_v17  ;;  %2088 = vmatpush1.bf16.msra.mxu1 %v3687_v60  ;;  %v1582_v61 = vmax.f32 %v1418_v38, 0.0  ;;  %v1584_v57 = vmax.f32 %v1519_v13, 0.0  ;;  %v3698_v13 = vld [vmem:[%s5719_s4 + $0x134] ss:$8 sps:$4 sm:$0xff]  }
 0x33d   : > { %v1585_v37 = vmax.f32 %v1420_v0, 0.0  ;;  %v1587_v41 = vmax.f32 %v1521_v21, 0.0  ;;  %2089 = vmatprep.subr.bf16.mxu1 %v3692_v56 }
 0x33e   : > { %v1586_v48 = vmax.f32 %v1422_v1, 0.0  ;;  %v1588_v42 = vmax.f32 %v1523_v22, 0.0 }
 0x33f   : > { %v1629_v20 = vpack.c.bf16 %v1585_v37, %v1581_v53  ;;  %v4759_v32 = vpack.c.bf16 %v1587_v41, %v1583_v15  ;;  %v3696_v15 = vld [vmem:[%s5719_s4 + $0x130] ss:$8 sps:$4 sm:$0xff]  }
 0x340   : > { %v1630_v44 = vpack.c.bf16 %v1586_v48, %v1582_v61  ;;  %v4761_v55 = vpack.c.bf16 %v1588_v42, %v1584_v57  ;;  %v1425_v60 = vpop.f32.mrb[8].mxu1  ;;  %v1526_v30 = vpop.f32.mrb[36].mxu0  ;;  %2090 = vmatpush1.bf16.msra.mxu1 %v3690_v36  ;;  %v3701_v57 = vld [vmem:[%s5719_s4 + $0x144] ss:$8 sps:$4 sm:$0xff]  }
 0x341   : > { %v1426_v35 = vadd.f32 %v1425_v60, %v4718_v31  ;;  %v1527_v7 = vadd.f32 %v1526_v30, %v4720_v34  ;;  %v1427_v56 = vpop.f32.mrb[9].mxu1  ;;  %v1528_v38 = vpop.f32.mrb[37].mxu0  ;;  %2091 = vmatprep.subr.bf16.mxu1 %v3695_v6 }
 0x342   : > { %v1428_v25 = vadd.f32 %v1427_v56, %v4723_v19  ;;  %v1529_v59 = vadd.f32 %v1528_v38, %v4725_v17  ;;  %v1429_v0 = vpop.f32.mrb[10].mxu1  ;;  %v1530_v21 = vpop.f32.mrb[38].mxu0  ;;  %2028 = vmatprep.mubr.bf16.mxu1 %v1630_v44 }
 0x343   : > { %v1430_v23 = vadd.f32 %v1429_v0, %v4718_v31  ;;  %v1531_v47 = vadd.f32 %v1530_v21, %v4720_v34  ;;  %v1431_v1 = vpop.f32.mrb[11].mxu1  ;;  %v1532_v22 = vpop.f32.mrb[39].mxu0  ;;  %2029 = vmatmul.mubr.bf16.gmra.mrb[32].mxu1 %v1629_v20  ;;  %v1589_v37 = vmax.f32 %v1426_v35, 0.0  ;;  %v1591_v41 = vmax.f32 %v1527_v7, 0.0  ;;  %v3699_v7 = vld [vmem:[%s5719_s4 + $0x140] ss:$8 sps:$4 sm:$0xff]  }
 0x344   : > { %v1432_v36 = vadd.f32 %v1431_v1, %v4723_v19  ;;  %v1533_v53 = vadd.f32 %v1532_v22, %v4725_v17  ;;  %2092 = vmatpush1.bf16.msra.mxu1 %v3693_v54  ;;  %v1590_v48 = vmax.f32 %v1428_v25, 0.0  ;;  %v1592_v42 = vmax.f32 %v1529_v59, 0.0  ;;  %v3704_v21 = vld [vmem:[%s5719_s4 + $0x154] ss:$8 sps:$4 sm:$0xff]  }
 0x345   : > { %v1593_v6 = vmax.f32 %v1430_v23, 0.0  ;;  %v1595_v61 = vmax.f32 %v1531_v47, 0.0  ;;  %2093 = vmatprep.subr.bf16.mxu1 %v3698_v13 }
 0x346   : > { %v1594_v20 = vmax.f32 %v1432_v36, 0.0  ;;  %v1596_v44 = vmax.f32 %v1533_v53, 0.0 }
 0x347   : > { %v1633_v60 = vpack.c.bf16 %v1593_v6, %v1589_v37  ;;  %v4783_v30 = vpack.c.bf16 %v1595_v61, %v1591_v41  ;;  %v3702_v61 = vld [vmem:[%s5719_s4 + $0x150] ss:$8 sps:$4 sm:$0xff]  }
 0x348   : > { %v1634_v54 = vpack.c.bf16 %v1594_v20, %v1590_v48  ;;  %v4785_v56 = vpack.c.bf16 %v1596_v44, %v1592_v42  ;;  %v1435_v38 = vpop.f32.mrb[12].mxu1  ;;  %v1536_v35 = vpop.f32.mrb[40].mxu0  ;;  %2094 = vmatpush1.bf16.msra.mxu1 %v3696_v15  ;;  %v3707_v44 = vld [vmem:[%s5719_s4 + $0x164] ss:$8 sps:$4 sm:$0xff]  }
 0x349   : > { %v1436_v13 = vadd.f32 %v1435_v38, %v4718_v31  ;;  %v1537_v25 = vadd.f32 %v1536_v35, %v4720_v34  ;;  %v1437_v59 = vpop.f32.mrb[13].mxu1  ;;  %v1538_v0 = vpop.f32.mrb[41].mxu0  ;;  %2095 = vmatprep.subr.bf16.mxu1 %v3701_v57 }
 0x34a   : > { %v1438_v23 = vadd.f32 %v1437_v59, %v4723_v19  ;;  %v1539_v47 = vadd.f32 %v1538_v0, %v4725_v17  ;;  %v1439_v1 = vpop.f32.mrb[14].mxu1  ;;  %v1540_v22 = vpop.f32.mrb[42].mxu0  ;;  %2038 = vmatprep.mubr.bf16.mxu1 %v1634_v54 }
 0x34b   : > { %v1440_v36 = vadd.f32 %v1439_v1, %v4718_v31  ;;  %v1541_v53 = vadd.f32 %v1540_v22, %v4720_v34  ;;  %v1441_v15 = vpop.f32.mrb[15].mxu1  ;;  %v1542_v37 = vpop.f32.mrb[43].mxu0  ;;  %2039 = vmatmul.mubr.bf16.gmra.mrb[36].mxu1 %v1633_v60  ;;  %v1597_v57 = vmax.f32 %v1436_v13, 0.0  ;;  %v1599_v48 = vmax.f32 %v1537_v25, 0.0  ;;  %v3705_v25 = vld [vmem:[%s5719_s4 + $0x160] ss:$8 sps:$4 sm:$0xff]  }
 0x34c   : > { %v1442_v41 = vadd.f32 %v1441_v15, %v4723_v19  ;;  %v1543_v6 = vadd.f32 %v1542_v37, %v4725_v17  ;;  %2096 = vmatpush1.bf16.msra.mxu1 %v3699_v7  ;;  %v1598_v54 = vmax.f32 %v1438_v23, 0.0  ;;  %v1600_v60 = vmax.f32 %v1539_v47, 0.0 }
 0x34d   : > { %v1601_v42 = vmax.f32 %v1440_v36, 0.0  ;;  %v1603_v20 = vmax.f32 %v1541_v53, 0.0  ;;  %2097 = vmatprep.subr.bf16.mxu1 %v3704_v21  ;;  %v3710_v53 = vld [vmem:[%s5719_s4 + $0x174] ss:$8 sps:$4 sm:$0xff]  }
 0x34e   : > { %v1602_v38 = vmax.f32 %v1442_v41, 0.0  ;;  %v1604_v35 = vmax.f32 %v1543_v6, 0.0 }
 0x34f   : > { %v1637_v59 = vpack.c.bf16 %v1601_v42, %v1597_v57  ;;  %v4807_v0 = vpack.c.bf16 %v1603_v20, %v1599_v48 }
 0x350   : > { %v1638_v7 = vpack.c.bf16 %v1602_v38, %v1598_v54  ;;  %v4809_v1 = vpack.c.bf16 %v1604_v35, %v1600_v60  ;;  %v1445_v22 = vpop.f32.mrb[16].mxu1  ;;  %v1546_v13 = vpop.f32.mrb[44].mxu0  ;;  %2098 = vmatpush1.bf16.msra.mxu1 %v3702_v61  ;;  %v3708_v54 = vld [vmem:[%s5719_s4 + $0x170] ss:$8 sps:$4 sm:$0xff]  }
 0x351   : > { %v1446_v21 = vadd.f32 %v1445_v22, %v4718_v31  ;;  %v1547_v23 = vadd.f32 %v1546_v13, %v4720_v34  ;;  %v1447_v47 = vpop.f32.mrb[17].mxu1  ;;  %v1548_v36 = vpop.f32.mrb[45].mxu0  ;;  %2099 = vmatprep.subr.bf16.mxu1 %v3707_v44  ;;  %v3713_v22 = vld [vmem:[%s5719_s4 + $0x184] ss:$8 sps:$4 sm:$0xff]  }
 0x352   : > { %v1448_v15 = vadd.f32 %v1447_v47, %v4723_v19  ;;  %v1549_v37 = vadd.f32 %v1548_v36, %v4725_v17  ;;  %v1449_v41 = vpop.f32.mrb[18].mxu1  ;;  %v1550_v6 = vpop.f32.mrb[46].mxu0  ;;  %2048 = vmatprep.mubr.bf16.mxu1 %v1638_v7 }
 0x353   : > { %v1450_v61 = vadd.f32 %v1449_v41, %v4718_v31  ;;  %v1551_v57 = vadd.f32 %v1550_v6, %v4720_v34  ;;  %v1451_v48 = vpop.f32.mrb[19].mxu1  ;;  %v1552_v42 = vpop.f32.mrb[47].mxu0  ;;  %2049 = vmatmul.mubr.bf16.gmra.mrb[40].mxu1 %v1637_v59  ;;  %v1605_v60 = vmax.f32 %v1446_v21, 0.0  ;;  %v1607_v38 = vmax.f32 %v1547_v23, 0.0  ;;  %v3711_v21 = vld [vmem:[%s5719_s4 + $0x180] ss:$8 sps:$4 sm:$0xff]  }
 0x354   : > { %v1452_v20 = vadd.f32 %v1451_v48, %v4723_v19  ;;  %v1553_v44 = vadd.f32 %v1552_v42, %v4725_v17  ;;  %2100 = vmatpush1.bf16.msra.mxu1 %v3705_v25  ;;  %v1606_v13 = vmax.f32 %v1448_v15, 0.0  ;;  %v1608_v59 = vmax.f32 %v1549_v37, 0.0 }
 0x355   : > { %v1609_v35 = vmax.f32 %v1450_v61, 0.0  ;;  %v1611_v7 = vmax.f32 %v1551_v57, 0.0  ;;  %2101 = vmatprep.subr.bf16.mxu1 %v3710_v53 }
 0x356   : > { %v1610_v47 = vmax.f32 %v1452_v20, 0.0  ;;  %v1612_v36 = vmax.f32 %v1553_v44, 0.0 }
 0x357   : > { %v1641_v41 = vpack.c.bf16 %v1609_v35, %v1605_v60  ;;  %v4831_v6 = vpack.c.bf16 %v1611_v7, %v1607_v38 }
 0x358   : > { %v1642_v25 = vpack.c.bf16 %v1610_v47, %v1606_v13  ;;  %v1644_v48 = vpack.c.bf16 %v1612_v36, %v1608_v59  ;;  %v1455_v42 = vpop.f32.mrb[20].mxu1  ;;  %v1556_v10 = vpop.f32.mrb[48].mxu0  ;;  %2102 = vmatpush1.bf16.msra.mxu1 %v3708_v54 }
 0x359   : > { %v1456_v23 = vadd.f32 %v1455_v42, %v4718_v31  ;;  %v1557_v53 = vadd.f32 %v1556_v10, %v4720_v34  ;;  %v1457_v15 = vpop.f32.mrb[21].mxu1  ;;  %v1558_v37 = vpop.f32.mrb[49].mxu0  ;;  %2103 = vmatprep.subr.bf16.mxu1 %v3713_v22 }
 0x35a   : > { %v1458_v61 = vadd.f32 %v1457_v15, %v4723_v19  ;;  %v1559_v57 = vadd.f32 %v1558_v37, %v4725_v17  ;;  %v1459_v20 = vpop.f32.mrb[22].mxu1  ;;  %v1560_v44 = vpop.f32.mrb[50].mxu0  ;;  %2058 = vmatprep.mubr.bf16.mxu1 %v1642_v25 }
 0x35b   : > { %v1460_v54 = vadd.f32 %v1459_v20, %v4718_v31  ;;  %v1561_v60 = vadd.f32 %v1560_v44, %v4720_v34  ;;  %v1461_v38 = vpop.f32.mrb[23].mxu1  ;;  %v1562_v35 = vpop.f32.mrb[51].mxu0  ;;  %2059 = vmatmul.mubr.bf16.gmra.mrb[44].mxu1 %v1641_v41  ;;  %v1613_v22 = vmax.f32 %v1456_v23, 0.0  ;;  %v1615_v13 = vmax.f32 %v1557_v53, 0.0 }
 0x35c   : > { %v1462_v7 = vadd.f32 %v1461_v38, %v4723_v19  ;;  %v1563_v10 = vadd.f32 %v1562_v35, %v4725_v17  ;;  %2104 = vmatpush1.bf16.msra.mxu1 %v3711_v21  ;;  %v1614_v36 = vmax.f32 %v1458_v61, 0.0  ;;  %v1616_v42 = vmax.f32 %v1559_v57, 0.0 }
 0x35d   : > { %v1617_v59 = vmax.f32 %v1460_v54, 0.0  ;;  %v1619_v47 = vmax.f32 %v1561_v60, 0.0 }
 0x35e   : > { %v1618_v15 = vmax.f32 %v1462_v7, 0.0  ;;  %v1620_v25 = vmax.f32 %v1563_v10, 0.0 }
 0x35f   : > { %v1645_v37 = vpack.c.bf16 %v1617_v59, %v1613_v22  ;;  %v1647_v20 = vpack.c.bf16 %v1619_v47, %v1615_v13 }
 0x360   : > { %v1646_v2 = vpack.c.bf16 %v1618_v15, %v1614_v36  ;;  %v1648_v44 = vpack.c.bf16 %v1620_v25, %v1616_v42  ;;  %v1465_v16 = vpop.f32.mrb[24].mxu1  ;;  %v1566_v11 = vpop.f32.mrb[52].mxu0 }
 0x361   : > { %v1466_v41 = vadd.f32 %v1465_v16, %v4718_v31  ;;  %v1467_v38 = vpop.f32.mrb[25].mxu1  ;;  %v1568_v50 = vpop.f32.mrb[53].mxu0  ;;  %v1567_v31 = vadd.f32 %v1566_v11, %v4720_v34 }
 0x362   : > { %v1468_v21 = vadd.f32 %v1467_v38, %v4723_v19  ;;  %v1469_v23 = vpop.f32.mrb[26].mxu1  ;;  %v1570_v53 = vpop.f32.mrb[54].mxu0  ;;  %2068 = vmatprep.mubr.bf16.mxu1 %v1646_v2  ;;  %v1569_v16 = vadd.f32 %v1568_v50, %v4725_v17  ;;  %v3235_v17 = vld [vmem:[%s5720_s5 + $0x5] ss:$8 sm:$0x3] }
 0x363   : > { %v1470_v54 = vpop.f32.mrb[27].mxu1  ;;  %v1571_v61 = vpop.f32.mrb[55].mxu0  ;;  %2069 = vmatmul.mubr.bf16.gmra.mrb[48].mxu1 %v1645_v37  ;;  %v1621_v60 = vmax.f32 %v1466_v41, 0.0  ;;  %v4875_v11 = vrot.slane %v3235_v17, %v4424_v40 }
 0x364   : > { %v1622_v57 = vmax.f32 %v1468_v21, 0.0  ;;  %v1624_v2 = vmax.f32 %v1569_v16, 0.0 }
 0x365   : > { %v1649_v7 = vpack.c.bf16 %v1621_v60, %v1621_v60 }
 0x366   : > { %v1650_v35 = vpack.c.bf16 %v1622_v57, %v1622_v57  ;;  %v1652_v19 = vpack.c.bf16 %v1624_v2, %v1624_v2 }
 0x368   : > { %2078 = vmatprep.mubr.bf16.mxu1 %v1650_v35 }
 0x36b   : > { %2079 = vmatmul.mubr.bf16.gmra.mrb[52].mxu1 %v1649_v7 }
 0x36c   : > { %3402 = vmatprep.mubr.msk.bf16.mxu1 %vm1964_vm4, %v4737_v49 }
 0x373   : > { %2120 = vmatmul.mubr.bf16.vlgmr.msra.gmra.mrb[28].mxu1 %v4735_v46  ;;  %v1623_v46 = vmax.f32 %v1567_v31, 0.0 }
 0x374   : > { %3403 = vmatprep.mubr.msk.bf16.mxu1 %vm1964_vm4, %v4761_v55 }
 0x375   : > { %v1651_v49 = vpack.c.bf16 %v1623_v46, %v1623_v46 }
 0x37b   : > { %2130 = vmatmul.mubr.bf16.gmra.mrb[32].mxu1 %v4759_v32 }
 0x37c   : > { %3404 = vmatprep.mubr.msk.bf16.mxu1 %vm1964_vm4, %v4785_v56  ;;  %v4872_v56 = vrot.slane %v3235_v17, %v4421_v39 }
 0x383   : > { %2140 = vmatmul.mubr.bf16.gmra.mrb[36].mxu1 %v4783_v30 }
 0x384   : > { %3405 = vmatprep.mubr.msk.bf16.mxu1 %vm1964_vm4, %v4809_v1 }
 0x38b   : > { %2150 = vmatmul.mubr.bf16.gmra.mrb[40].mxu1 %v4807_v0 }
 0x38c   : > { %3406 = vmatprep.mubr.msk.bf16.mxu1 %vm1964_vm4, %v1644_v48 }
 0x393   : > { %2160 = vmatmul.mubr.bf16.gmra.mrb[44].mxu1 %v4831_v6 }
 0x394   : > { %3407 = vmatprep.mubr.msk.bf16.mxu1 %vm1964_vm4, %v1648_v44 }
 0x39b   : > { %2170 = vmatmul.mubr.bf16.gmra.mrb[48].mxu1 %v1647_v20 }
 0x39c   : > { %3408 = vmatprep.mubr.msk.bf16.mxu1 %vm1964_vm4, %v1652_v19 }
 0x3a3   : > { %2180 = vmatmul.mubr.bf16.gmra.mrb[56].mxu1 %v1651_v49 }
 0x43e   : > { %v4864_v32 = vpop.f32.mrb[52].mxu1 }
 0x43f   : > { %v4866_v55 = vpop.f32.mrb[53].mxu1 }
 0x440   : > { %v2084_v30 = vpop.f32.mrb[54].mxu1 }
 0x441   : > { %v2085_v50 = vpop.f32.mrb[55].mxu1 }
 0x446   : > { %v2121_v34 = vpop.f32.mrb[28].mxu1 }
 0x447   : > { %v3447_v0 = vadd.f32 %v2121_v34, %v4872_v56  ;;  %v2123_v1 = vpop.f32.mrb[29].mxu1 }
 0x448   : > { %v3448_v6 = vadd.f32 %v2123_v1, %v4875_v11  ;;  %v2125_v48 = vpop.f32.mrb[30].mxu1 }
 0x449   : > { %v3449_v10 = vadd.f32 %v2125_v48, %v4872_v56  ;;  %v2127_v22 = vpop.f32.mrb[31].mxu1  ;;  %v4885_v47 = vadd.f32 %v3447_v0, %v4456_v28 }
 0x44a   : > { %v4881_v13 = vadd.f32 %v3448_v6, %v4453_v26  ;;  %v3450_v59 = vadd.f32 %v2127_v22, %v4875_v11 }
 0x44b   : > { %v4893_v15 = vadd.f32 %v3449_v10, %v4463_v27 }
 0x44c   : > { %v4888_v36 = vadd.f32 %v3450_v59, %v4460_v29  ;;  %v2214_v42 = vsel %vm560_vm0, %v4881_v13, 0.0 }
 0x44d   : > { %v2215_v25 = vadd.f32 %v2214_v42, %v4885_v47 }
 0x44e   : > { %v2131_v37 = vpop.f32.mrb[32].mxu1  ;;  %v2218_v26 = vsel %vm560_vm0, %v4888_v36, 0.0 }
 0x44f   : > { %v3451_v20 = vadd.f32 %v2131_v37, %v4872_v56  ;;  %v2133_v44 = vpop.f32.mrb[33].mxu1  ;;  %2216 = vadd.xlane.f32.xlu0 %v2215_v25  ;;  %v2219_v28 = vadd.f32 %v2218_v26, %v4893_v15 }
 0x450   : > { %v3452_v29 = vadd.f32 %v2133_v44, %v4875_v11  ;;  %v2135_v41 = vpop.f32.mrb[34].mxu1 }
 0x451   : > { %v3453_v38 = vadd.f32 %v2135_v41, %v4872_v56  ;;  %v2137_v21 = vpop.f32.mrb[35].mxu1  ;;  %2220 = vadd.xlane.f32.xlu1 %v2219_v28  ;;  %v4907_v53 = vadd.f32 %v3451_v20, %v4498_v18 }
 0x452   : > { %v4903_v27 = vadd.f32 %v3452_v29, %v4488_v51  ;;  %v3454_v23 = vadd.f32 %v2137_v21, %v4875_v11 }
 0x453   : > { %v4915_v57 = vadd.f32 %v3453_v38, %v4501_v3 }
 0x454   : > { %v4910_v54 = vadd.f32 %v3454_v23, %v4495_v14  ;;  %v2222_v61 = vsel %vm560_vm0, %v4903_v27, 0.0 }
 0x455   : > { %v2223_v60 = vadd.f32 %v2222_v61, %v4907_v53 }
 0x456   : > { %v2141_v35 = vpop.f32.mrb[36].mxu1  ;;  %v2226_v51 = vsel %vm560_vm0, %v4910_v54, 0.0 }
 0x457   : > { %v3455_v7 = vadd.f32 %v2141_v35, %v4872_v56  ;;  %v2143_v16 = vpop.f32.mrb[37].mxu1  ;;  %2224 = vadd.xlane.f32.xlu0 %v2223_v60  ;;  %v2227_v18 = vadd.f32 %v2226_v51, %v4915_v57 }
 0x458   : > { %v3456_v14 = vadd.f32 %v2143_v16, %v4875_v11  ;;  %v2145_v2 = vpop.f32.mrb[38].mxu1 }
 0x459   : > { %v3457_v31 = vadd.f32 %v2145_v2, %v4872_v56  ;;  %v2147_v19 = vpop.f32.mrb[39].mxu1  ;;  %2228 = vadd.xlane.f32.xlu1 %v2227_v18  ;;  %v4929_v49 = vadd.f32 %v3455_v7, %v4541_v45 }
 0x45a   : > { %v4925_v3 = vadd.f32 %v3456_v14, %v4523_v63  ;;  %v3458_v46 = vadd.f32 %v2147_v19, %v4875_v11 }
 0x45b   : > { %v4937_v17 = vadd.f32 %v3457_v31, %v4529_v33 }
 0x45c   : > { %v4932_v30 = vadd.f32 %v3458_v46, %v4526_v52  ;;  %v2230_v50 = vsel %vm560_vm0, %v4925_v3, 0.0 }
 0x45d   : > { %v2231_v34 = vadd.f32 %v2230_v50, %v4929_v49  ;;  %v5733_v50 = vld [vmem:[#allocation4_spill] sm:$0xff] }
 0x45e   : > { %v2151_v0 = vpop.f32.mrb[40].mxu1  ;;  %v2234_v63 = vsel %vm560_vm0, %v4932_v30, 0.0 }
 0x45f   : > { %v3459_v1 = vadd.f32 %v2151_v0, %v4872_v56  ;;  %v2153_v6 = vpop.f32.mrb[41].mxu1  ;;  %2232 = vadd.xlane.f32.xlu0 %v2231_v34  ;;  %v2235_v45 = vadd.f32 %v2234_v63, %v4937_v17  ;;  %v5734_v0 = vld [vmem:[#allocation2_spill] sm:$0xff] }
 0x460   : > { %v3460_v52 = vadd.f32 %v2153_v6, %v4875_v11  ;;  %v2155_v48 = vpop.f32.mrb[42].mxu1  ;;  %v2081_v6 = vadd.f32 %v4864_v32, %v4872_v56  ;;  %v5736_v32 = vld [vmem:[#allocation6_spill] sm:$0xff] }
 0x461   : > { %v3461_v10 = vadd.f32 %v2155_v48, %v4872_v56  ;;  %v2157_v22 = vpop.f32.mrb[43].mxu1  ;;  %2236 = vadd.xlane.f32.xlu1 %v2235_v45  ;;  %v4951_v42 = vadd.f32 %v3459_v1, %v4579_v24  ;;  %v5735_v45 = vld [vmem:[#allocation3_spill] sm:$0xff]  ;;  %v2083_v48 = vadd.f32 %v4866_v55, %v4875_v11 }
 0x462   : > { %v4947_v33 = vadd.f32 %v3460_v52, %v4561_v8  ;;  %v3462_v59 = vadd.f32 %v2157_v22, %v4875_v11 }
 0x463   : > { %v4959_v26 = vadd.f32 %v3461_v10, %v4567_v9 }
 0x464   : > { %v4954_v25 = vadd.f32 %v3462_v59, %v4564_v4  ;;  %v2238_v37 = vsel %vm560_vm0, %v4947_v33, 0.0 }
 0x465   : > { %v2239_v20 = vadd.f32 %v2238_v37, %v4951_v42 }
 0x466   : > { %v2161_v44 = vpop.f32.mrb[44].mxu1  ;;  %v2242_v8 = vsel %vm560_vm0, %v4954_v25, 0.0 }
 0x467   : > { %v3463_v28 = vadd.f32 %v2161_v44, %v4872_v56  ;;  %v2163_v29 = vpop.f32.mrb[45].mxu1  ;;  %2240 = vadd.xlane.f32.xlu0 %v2239_v20  ;;  %v2243_v24 = vadd.f32 %v2242_v8, %v4959_v26 }
 0x468   : > { %v3464_v4 = vadd.f32 %v2163_v29, %v4875_v11  ;;  %v2165_v41 = vpop.f32.mrb[46].mxu1  ;;  %v5737_v29 = vld [vmem:[#allocation5_spill] sm:$0xff] }
 0x469   : > { %v3465_v38 = vadd.f32 %v2165_v41, %v4872_v56  ;;  %v2167_v21 = vpop.f32.mrb[47].mxu1  ;;  %2244 = vadd.xlane.f32.xlu1 %v2243_v24  ;;  %v4973_v61 = vadd.f32 %v3463_v28, %v4617_v5 }
 0x46a   : > { %v4969_v9 = vadd.f32 %v3464_v4, %v4599_v43  ;;  %v3466_v23 = vadd.f32 %v2167_v21, %v4875_v11 }
 0x46b   : > { %v4981_v51 = vadd.f32 %v3465_v38, %v4605_v62 }
 0x46c   : > { %v4976_v60 = vadd.f32 %v3466_v23, %v4602_v12  ;;  %v2246_v35 = vsel %vm560_vm0, %v4969_v9, 0.0 }
 0x46d   : > { %v2247_v7 = vadd.f32 %v2246_v35, %v4973_v61 }
 0x46e   : > { %v2171_v16 = vpop.f32.mrb[48].mxu1  ;;  %v2250_v43 = vsel %vm560_vm0, %v4976_v60, 0.0 }
 0x46f   : > { %v3467_v18 = vadd.f32 %v2171_v16, %v4872_v56  ;;  %v2173_v14 = vpop.f32.mrb[49].mxu1  ;;  %2248 = vadd.xlane.f32.xlu0 %v2247_v7  ;;  %v2251_v5 = vadd.f32 %v2250_v43, %v4981_v51 }
 0x470   : > { %v3468_v12 = vadd.f32 %v2173_v14, %v4875_v11  ;;  %v2175_v2 = vpop.f32.mrb[50].mxu1 }
 0x471   : > { %v3469_v31 = vadd.f32 %v2175_v2, %v4872_v56  ;;  %v2177_v19 = vpop.f32.mrb[51].mxu1  ;;  %2252 = vadd.xlane.f32.xlu1 %v2251_v5  ;;  %v4995_v34 = vadd.f32 %v3467_v18, %v5733_v50 }
 0x472   : > { %v4991_v62 = vadd.f32 %v3468_v12, %v4637_v58  ;;  %v3470_v46 = vadd.f32 %v2177_v19, %v4875_v11 }
 0x473   : > { %v5005_v52 = vadd.f32 %v3469_v31, %v5735_v45 }
 0x474   : > { %v4998_v63 = vadd.f32 %v3470_v46, %v5734_v0  ;;  %v2254_v1 = vsel %vm560_vm0, %v4991_v62, 0.0 }
 0x475   : > { %v2255_v58 = vadd.f32 %v2254_v1, %v4995_v34 }
 0x476   : > { %v2181_v10 = vpop.f32.mrb[56].mxu1  ;;  %v2258_v22 = vsel %vm560_vm0, %v4998_v63, 0.0 }
 0x477   : > { %v2182_v59 = vadd.f32 %v2181_v10, %v2081_v6  ;;  %v2183_v37 = vpop.f32.mrb[57].mxu1  ;;  %2256 = vadd.xlane.f32.xlu0 %v2255_v58  ;;  %v2259_v20 = vadd.f32 %v2258_v22, %v5005_v52 }
 0x478   : > { %v2184_v44 = vadd.f32 %v2183_v37, %v2083_v48  ;;  %v2185_v8 = vpop.f32.mrb[58].mxu1 }
 0x479   : > { %v5014_v56 = vadd.f32 %v2182_v59, %v5736_v32  ;;  %v2186_v28 = vpop.f32.mrb[59].mxu1  ;;  %2260 = vadd.xlane.f32.xlu1 %v2259_v20 }
 0x47a   : > { %v5017_v24 = vadd.f32 %v2184_v44, %v5737_v29 }
 0x47b   : > { %v2262_v55 = vsel %vm738_vm2, %v5014_v56, 0.0 }
 0x47c   : > { %v2263_v11 = vsel %vm740_vm3, %v5017_v24, 0.0 }
 0x47d   : > { %v2264_v4 = vadd.f32 %v2263_v11, %v2262_v55 }
 0x47f   : > { %2265 = vadd.xlane.f32.xlu0 %v2264_v4 }
 0x4dc   : > { %v2217_v41 = vpop.xlane.xlu0 %2216 }
 0x4dd   : > { %v2267_v38 = vmul.f32 0.005, %v2217_v41 }
 0x4de   : > { %v2221_v21 = vpop.xlane.xlu1 %2220 }
 0x4df   : > { %v5024_v23 = vsub.f32 %v4885_v47, %v2267_v38  ;;  %v5027_v35 = vsub.f32 %v4881_v13, %v2267_v38  ;;  %v2268_v7 = vmul.f32 0.005, %v2221_v21 }
 0x4e1   : > { %v5030_v16 = vsub.f32 %v4893_v15, %v2268_v7  ;;  %v5033_v43 = vsub.f32 %v4888_v36, %v2268_v7  ;;  %v2306_v18 = vmul.f32 %v5024_v23, %v5024_v23  ;;  %v2307_v14 = vmul.f32 %v5027_v35, %v5027_v35 }
 0x4e3   : > { %v2332_v5 = vsel %vm560_vm0, %v2307_v14, 0.0  ;;  %v2308_v47 = vmul.f32 %v5030_v16, %v5030_v16  ;;  %v2309_v13 = vmul.f32 %v5033_v43, %v5033_v43 }
 0x4e4   : > { %v2225_v12 = vpop.xlane.xlu0 %2224  ;;  %v2333_v15 = vadd.f32 %v2332_v5, %v2306_v18 }
 0x4e5   : > { %v2269_v2 = vmul.f32 0.005, %v2225_v12  ;;  %v2336_v36 = vsel %vm560_vm0, %v2309_v13, 0.0 }
 0x4e6   : > { %v2229_v31 = vpop.xlane.xlu1 %2228  ;;  %2334 = vadd.xlane.f32.xlu1 %v2333_v15  ;;  %v2337_v19 = vadd.f32 %v2336_v36, %v2308_v47 }
 0x4e7   : > { %v5046_v46 = vsub.f32 %v4907_v53, %v2269_v2  ;;  %v5049_v50 = vsub.f32 %v4903_v27, %v2269_v2  ;;  %v2270_v0 = vmul.f32 0.005, %v2229_v31 }
 0x4e8   : > { %2338 = vadd.xlane.f32.xlu0 %v2337_v19 }
 0x4e9   : > { %v5052_v1 = vsub.f32 %v4915_v57, %v2270_v0  ;;  %v5055_v6 = vsub.f32 %v4910_v54, %v2270_v0  ;;  %v2310_v45 = vmul.f32 %v5046_v46, %v5046_v46  ;;  %v2311_v58 = vmul.f32 %v5049_v50, %v5049_v50 }
 0x4eb   : > { %v2340_v53 = vsel %vm560_vm0, %v2311_v58, 0.0  ;;  %v2312_v27 = vmul.f32 %v5052_v1, %v5052_v1  ;;  %v2313_v48 = vmul.f32 %v5055_v6, %v5055_v6 }
 0x4ec   : > { %v2233_v10 = vpop.xlane.xlu0 %2232  ;;  %v2341_v57 = vadd.f32 %v2340_v53, %v2310_v45 }
 0x4ed   : > { %v2271_v22 = vmul.f32 0.005, %v2233_v10  ;;  %v2344_v54 = vsel %vm560_vm0, %v2313_v48, 0.0 }
 0x4ee   : > { %v2237_v59 = vpop.xlane.xlu1 %2236  ;;  %2342 = vadd.xlane.f32.xlu1 %v2341_v57  ;;  %v2345_v37 = vadd.f32 %v2344_v54, %v2312_v27 }
 0x4ef   : > { %v5068_v20 = vsub.f32 %v4929_v49, %v2271_v22  ;;  %v5071_v44 = vsub.f32 %v4925_v3, %v2271_v22  ;;  %v2272_v8 = vmul.f32 0.005, %v2237_v59 }
 0x4f0   : > { %2346 = vadd.xlane.f32.xlu0 %v2345_v37 }
 0x4f1   : > { %v5074_v32 = vsub.f32 %v4937_v17, %v2272_v8  ;;  %v5077_v28 = vsub.f32 %v4932_v30, %v2272_v8  ;;  %v2314_v29 = vmul.f32 %v5068_v20, %v5068_v20  ;;  %v2315_v55 = vmul.f32 %v5071_v44, %v5071_v44 }
 0x4f3   : > { %v2348_v49 = vsel %vm560_vm0, %v2315_v55, 0.0  ;;  %v2316_v3 = vmul.f32 %v5074_v32, %v5074_v32  ;;  %v2317_v11 = vmul.f32 %v5077_v28, %v5077_v28 }
 0x4f4   : > { %v2241_v4 = vpop.xlane.xlu0 %2240  ;;  %v2349_v17 = vadd.f32 %v2348_v49, %v2314_v29 }
 0x4f5   : > { %v2273_v41 = vmul.f32 0.005, %v2241_v4  ;;  %v2352_v30 = vsel %vm560_vm0, %v2317_v11, 0.0 }
 0x4f6   : > { %v2245_v38 = vpop.xlane.xlu1 %2244  ;;  %2350 = vadd.xlane.f32.xlu1 %v2349_v17  ;;  %v2353_v21 = vadd.f32 %v2352_v30, %v2316_v3 }
 0x4f7   : > { %v5090_v7 = vsub.f32 %v4951_v42, %v2273_v41  ;;  %v5093_v18 = vsub.f32 %v4947_v33, %v2273_v41  ;;  %v2274_v14 = vmul.f32 0.005, %v2245_v38 }
 0x4f8   : > { %2354 = vadd.xlane.f32.xlu0 %v2353_v21 }
 0x4f9   : > { %v5096_v5 = vsub.f32 %v4959_v26, %v2274_v14  ;;  %v5099_v47 = vsub.f32 %v4954_v25, %v2274_v14  ;;  %v2318_v13 = vmul.f32 %v5090_v7, %v5090_v7  ;;  %v2319_v12 = vmul.f32 %v5093_v18, %v5093_v18 }
 0x4fb   : > { %v2356_v42 = vsel %vm560_vm0, %v2319_v12, 0.0  ;;  %v2320_v33 = vmul.f32 %v5096_v5, %v5096_v5  ;;  %v2321_v15 = vmul.f32 %v5099_v47, %v5099_v47 }
 0x4fc   : > { %v2249_v2 = vpop.xlane.xlu0 %2248  ;;  %v2357_v26 = vadd.f32 %v2356_v42, %v2318_v13 }
 0x4fd   : > { %v2275_v36 = vmul.f32 0.005, %v2249_v2  ;;  %v2360_v25 = vsel %vm560_vm0, %v2321_v15, 0.0 }
 0x4fe   : > { %v2253_v31 = vpop.xlane.xlu1 %2252  ;;  %2358 = vadd.xlane.f32.xlu1 %v2357_v26  ;;  %v2361_v19 = vadd.f32 %v2360_v25, %v2320_v33 }
 0x4ff   : > { %v5112_v0 = vsub.f32 %v4973_v61, %v2275_v36  ;;  %v5115_v45 = vsub.f32 %v4969_v9, %v2275_v36  ;;  %v2276_v58 = vmul.f32 0.005, %v2253_v31 }
 0x500   : > { %2362 = vadd.xlane.f32.xlu0 %v2361_v19 }
 0x501   : > { %v5118_v53 = vsub.f32 %v4981_v51, %v2276_v58  ;;  %v5121_v27 = vsub.f32 %v4976_v60, %v2276_v58  ;;  %v2322_v48 = vmul.f32 %v5112_v0, %v5112_v0  ;;  %v2323_v10 = vmul.f32 %v5115_v45, %v5115_v45 }
 0x503   : > { %v2364_v61 = vsel %vm560_vm0, %v2323_v10, 0.0  ;;  %v2324_v9 = vmul.f32 %v5118_v53, %v5118_v53  ;;  %v2325_v57 = vmul.f32 %v5121_v27, %v5121_v27 }
 0x504   : > { %v2257_v22 = vpop.xlane.xlu0 %2256  ;;  %v2365_v51 = vadd.f32 %v2364_v61, %v2322_v48  ;;  %v3232_v48 = vld [vmem:[%s5720_s5 + $0x2] ss:$8 sm:$0x3] }
 0x505   : > { %v2277_v54 = vmul.f32 0.005, %v2257_v22  ;;  %v2368_v60 = vsel %vm560_vm0, %v2325_v57, 0.0  ;;  %v3233_v57 = vld [vmem:[%s5720_s5 + $0x3] ss:$8 sm:$0x3]  ;;  %v5174_v22 = vrot.slane %v3232_v48, %v4421_v39 }
 0x506   : > { %v2261_v59 = vpop.xlane.xlu1 %2260  ;;  %2366 = vadd.xlane.f32.xlu1 %v2365_v51  ;;  %v2369_v37 = vadd.f32 %v2368_v60, %v2324_v9  ;;  %v5177_v51 = vrot.slane %v3232_v48, %v4424_v40 }
 0x507   : > { %v5134_v8 = vsub.f32 %v4995_v34, %v2277_v54  ;;  %v5137_v29 = vsub.f32 %v4991_v62, %v2277_v54  ;;  %v2278_v55 = vmul.f32 0.005, %v2261_v59 }
 0x508   : > { %2370 = vadd.xlane.f32.xlu0 %v2369_v37 }
 0x509   : > { %v5140_v49 = vsub.f32 %v5005_v52, %v2278_v55  ;;  %v5143_v3 = vsub.f32 %v4998_v63, %v2278_v55  ;;  %v2326_v11 = vmul.f32 %v5134_v8, %v5134_v8  ;;  %v2327_v4 = vmul.f32 %v5137_v29, %v5137_v29 }
 0x50a   : > { %v5182_v55 = vrot.slane %v3233_v57, %v4421_v39 }
 0x50b   : > { %v2372_v34 = vsel %vm560_vm0, %v2327_v4, 0.0  ;;  %v2328_v62 = vmul.f32 %v5140_v49, %v5140_v49  ;;  %v2329_v17 = vmul.f32 %v5143_v3, %v5143_v3 }
 0x50c   : > { %v2266_v41 = vpop.xlane.xlu0 %2265  ;;  %v2373_v52 = vadd.f32 %v2372_v34, %v2326_v11  ;;  %v5185_v11 = vrot.slane %v3233_v57, %v4424_v40 }
 0x50d   : > { %v2279_v30 = vmul.f32 0.005, %v2266_v41  ;;  %v2376_v63 = vsel %vm560_vm0, %v2329_v17, 0.0 }
 0x50e   : > { %2374 = vadd.xlane.f32.xlu1 %v2373_v52  ;;  %v2377_v38 = vadd.f32 %v2376_v63, %v2328_v62 }
 0x50f   : > { %v5156_v21 = vsub.f32 %v5014_v56, %v2279_v30  ;;  %v5159_v14 = vsub.f32 %v5017_v24, %v2279_v30 }
 0x510   : > { %2378 = vadd.xlane.f32.xlu0 %v2377_v38 }
 0x511   : > { %v2330_v13 = vmul.f32 %v5156_v21, %v5156_v21  ;;  %v2331_v12 = vmul.f32 %v5159_v14, %v5159_v14 }
 0x513   : > { %v2380_v42 = vsel %vm738_vm2, %v2330_v13, 0.0  ;;  %v2381_v33 = vsel %vm740_vm3, %v2331_v12, 0.0 }
 0x514   : > { %v2382_v15 = vadd.f32 %v2381_v33, %v2380_v42 }
 0x516   : > { %2383 = vadd.xlane.f32.xlu1 %v2382_v15 }
 0x573   : > { %v2335_v2 = vpop.xlane.xlu1 %2334 }
 0x574   : > { %v2385_v26 = vmul.f32 0.005, %v2335_v2 }
 0x575   : > { %v2339_v56 = vpop.xlane.xlu0 %2338 }
 0x576   : > { %v2398_v36 = vadd.f32 1e-05, %v2385_v26  ;;  %v2386_v25 = vmul.f32 0.005, %v2339_v56 }
 0x578   : > { %3778 = vrsqrt.f32 %v2398_v36  ;;  %v2399_v24 = vadd.f32 1e-05, %v2386_v25 }
 0x57a   : > { %3780 = vrsqrt.f32 %v2399_v24 }
 0x57b   : > { %v2343_v31 = vpop.xlane.xlu1 %2342 }
 0x57c   : > { %v2387_v19 = vmul.f32 0.005, %v2343_v31 }
 0x57d   : > { %v2347_v58 = vpop.xlane.xlu0 %2346 }
 0x57e   : > { %v2400_v10 = vadd.f32 1e-05, %v2387_v19  ;;  %v2388_v61 = vmul.f32 0.005, %v2347_v58 }
 0x580   : > { %3782 = vrsqrt.f32 %v2400_v10  ;;  %v2401_v9 = vadd.f32 1e-05, %v2388_v61 }
 0x582   : > { %v3779_v54 = vpop.eup %3778  ;;  %3784 = vrsqrt.f32 %v2401_v9 }
 0x583   : > { %v2351_v60 = vpop.xlane.xlu1 %2350  ;;  %v2424_v59 = vmul.f32 %v3779_v54, %v5024_v23  ;;  %v2425_v37 = vmul.f32 %v3779_v54, %v5027_v35 }
 0x584   : > { %v3781_v4 = vpop.eup %3780  ;;  %v2389_v34 = vmul.f32 0.005, %v2351_v60 }
 0x585   : > { %v2355_v62 = vpop.xlane.xlu0 %2354  ;;  %v2461_v17 = vmul.f32 %v5174_v22, %v2424_v59  ;;  %v2462_v41 = vmul.f32 %v5177_v51, %v2425_v37  ;;  %v2426_v52 = vmul.f32 %v3781_v4, %v5030_v16  ;;  %v2427_v30 = vmul.f32 %v3781_v4, %v5033_v43 }
 0x586   : > { %v2402_v23 = vadd.f32 1e-05, %v2389_v34  ;;  %v2390_v63 = vmul.f32 0.005, %v2355_v62 }
 0x587   : > { %v5192_v35 = vadd.f32 %v5182_v55, %v2461_v17  ;;  %v5195_v38 = vadd.f32 %v5185_v11, %v2462_v41  ;;  %v2463_v13 = vmul.f32 %v5174_v22, %v2426_v52  ;;  %v2464_v12 = vmul.f32 %v5177_v51, %v2427_v30 }
 0x588   : > { %3786 = vrsqrt.f32 %v2402_v23  ;;  %v2403_v42 = vadd.f32 1e-05, %v2390_v63 }
 0x589   : > { %v2528_v33 = vsel %vm560_vm0, %v5195_v38, 0.0  ;;  %v5202_v16 = vadd.f32 %v5182_v55, %v2463_v13  ;;  %v5205_v43 = vadd.f32 %v5185_v11, %v2464_v12 }
 0x58a   : > { %v3783_v15 = vpop.eup %3782  ;;  %3788 = vrsqrt.f32 %v2403_v42  ;;  %v2529_v2 = vadd.f32 %v2528_v33, %v5192_v35 }
 0x58b   : > { %v2359_v26 = vpop.xlane.xlu1 %2358  ;;  %v2532_v56 = vsel %vm560_vm0, %v5205_v43, 0.0  ;;  %v2428_v36 = vmul.f32 %v3783_v15, %v5046_v46  ;;  %v2429_v25 = vmul.f32 %v3783_v15, %v5049_v50 }
 0x58c   : > { %v3785_v24 = vpop.eup %3784  ;;  %v2391_v31 = vmul.f32 0.005, %v2359_v26  ;;  %2530 = vadd.xlane.f32.xlu0 %v2529_v2  ;;  %v2533_v19 = vadd.f32 %v2532_v56, %v5202_v16 }
 0x58d   : > { %v2363_v58 = vpop.xlane.xlu0 %2362  ;;  %v2465_v48 = vmul.f32 %v5174_v22, %v2428_v36  ;;  %v2466_v10 = vmul.f32 %v5177_v51, %v2429_v25  ;;  %v2430_v61 = vmul.f32 %v3785_v24, %v5052_v1  ;;  %v2431_v9 = vmul.f32 %v3785_v24, %v5055_v6 }
 0x58e   : > { %v2404_v57 = vadd.f32 1e-05, %v2391_v31  ;;  %v2392_v54 = vmul.f32 0.005, %v2363_v58  ;;  %2534 = vadd.xlane.f32.xlu1 %v2533_v19 }
 0x58f   : > { %v5218_v46 = vadd.f32 %v5182_v55, %v2465_v48  ;;  %v5221_v50 = vadd.f32 %v5185_v11, %v2466_v10  ;;  %v2467_v60 = vmul.f32 %v5174_v22, %v2430_v61  ;;  %v2468_v59 = vmul.f32 %v5177_v51, %v2431_v9 }
 0x590   : > { %3790 = vrsqrt.f32 %v2404_v57  ;;  %v2405_v37 = vadd.f32 1e-05, %v2392_v54 }
 0x591   : > { %v2536_v1 = vsel %vm560_vm0, %v5221_v50, 0.0  ;;  %v5228_v6 = vadd.f32 %v5182_v55, %v2467_v60  ;;  %v5231_v4 = vadd.f32 %v5185_v11, %v2468_v59 }
 0x592   : > { %v3787_v34 = vpop.eup %3786  ;;  %3792 = vrsqrt.f32 %v2405_v37  ;;  %v2537_v62 = vadd.f32 %v2536_v1, %v5218_v46 }
 0x593   : > { %v2367_v17 = vpop.xlane.xlu1 %2366  ;;  %v2540_v41 = vsel %vm560_vm0, %v5231_v4, 0.0  ;;  %v2432_v52 = vmul.f32 %v3787_v34, %v5068_v20  ;;  %v2433_v30 = vmul.f32 %v3787_v34, %v5071_v44 }
 0x594   : > { %v3789_v23 = vpop.eup %3788  ;;  %v2393_v63 = vmul.f32 0.005, %v2367_v17  ;;  %2538 = vadd.xlane.f32.xlu0 %v2537_v62  ;;  %v2541_v13 = vadd.f32 %v2540_v41, %v5228_v6 }
 0x595   : > { %v2371_v12 = vpop.xlane.xlu0 %2370  ;;  %v2469_v42 = vmul.f32 %v5174_v22, %v2432_v52  ;;  %v2470_v33 = vmul.f32 %v5177_v51, %v2433_v30  ;;  %v2434_v15 = vmul.f32 %v3789_v23, %v5074_v32  ;;  %v2435_v2 = vmul.f32 %v3789_v23, %v5077_v28 }
 0x596   : > { %v2406_v26 = vadd.f32 1e-05, %v2393_v63  ;;  %v2394_v56 = vmul.f32 0.005, %v2371_v12  ;;  %2542 = vadd.xlane.f32.xlu1 %v2541_v13 }
 0x597   : > { %v5244_v20 = vadd.f32 %v5182_v55, %v2469_v42  ;;  %v5247_v44 = vadd.f32 %v5185_v11, %v2470_v33  ;;  %v2471_v36 = vmul.f32 %v5174_v22, %v2434_v15  ;;  %v2472_v25 = vmul.f32 %v5177_v51, %v2435_v2 }
 0x598   : > { %3794 = vrsqrt.f32 %v2406_v26  ;;  %v2407_v24 = vadd.f32 1e-05, %v2394_v56 }
 0x599   : > { %v2544_v32 = vsel %vm560_vm0, %v5247_v44, 0.0  ;;  %v5254_v28 = vadd.f32 %v5182_v55, %v2471_v36  ;;  %v5257_v31 = vadd.f32 %v5185_v11, %v2472_v25 }
 0x59a   : > { %v3791_v19 = vpop.eup %3790  ;;  %3796 = vrsqrt.f32 %v2407_v24  ;;  %v2545_v58 = vadd.f32 %v2544_v32, %v5244_v20 }
 0x59b   : > { %v2375_v48 = vpop.xlane.xlu1 %2374  ;;  %v2548_v10 = vsel %vm560_vm0, %v5257_v31, 0.0  ;;  %v2436_v61 = vmul.f32 %v3791_v19, %v5090_v7  ;;  %v2437_v9 = vmul.f32 %v3791_v19, %v5093_v18 }
 0x59c   : > { %v3793_v57 = vpop.eup %3792  ;;  %v2395_v54 = vmul.f32 0.005, %v2375_v48  ;;  %2546 = vadd.xlane.f32.xlu0 %v2545_v58  ;;  %v2549_v60 = vadd.f32 %v2548_v10, %v5254_v28 }
 0x59d   : > { %v2379_v59 = vpop.xlane.xlu0 %2378  ;;  %v2473_v37 = vmul.f32 %v5174_v22, %v2436_v61  ;;  %v2474_v1 = vmul.f32 %v5177_v51, %v2437_v9  ;;  %v2438_v34 = vmul.f32 %v3793_v57, %v5096_v5  ;;  %v2439_v62 = vmul.f32 %v3793_v57, %v5099_v47 }
 0x59e   : > { %v2408_v17 = vadd.f32 1e-05, %v2395_v54  ;;  %v2396_v41 = vmul.f32 0.005, %v2379_v59  ;;  %2550 = vadd.xlane.f32.xlu1 %v2549_v60 }
 0x59f   : > { %v5270_v7 = vadd.f32 %v5182_v55, %v2473_v37  ;;  %v5273_v18 = vadd.f32 %v5185_v11, %v2474_v1  ;;  %v2475_v52 = vmul.f32 %v5174_v22, %v2438_v34  ;;  %v2476_v30 = vmul.f32 %v5177_v51, %v2439_v62 }
 0x5a0   : > { %3798 = vrsqrt.f32 %v2408_v17  ;;  %v2409_v23 = vadd.f32 1e-05, %v2396_v41 }
 0x5a1   : > { %v2552_v5 = vsel %vm560_vm0, %v5273_v18, 0.0  ;;  %v5280_v47 = vadd.f32 %v5182_v55, %v2475_v52  ;;  %v5283_v63 = vadd.f32 %v5185_v11, %v2476_v30 }
 0x5a2   : > { %v3795_v13 = vpop.eup %3794  ;;  %3800 = vrsqrt.f32 %v2409_v23  ;;  %v2553_v12 = vadd.f32 %v2552_v5, %v5270_v7 }
 0x5a3   : > { %v2384_v42 = vpop.xlane.xlu1 %2383  ;;  %v2556_v33 = vsel %vm560_vm0, %v5283_v63, 0.0  ;;  %v2440_v15 = vmul.f32 %v3795_v13, %v5112_v0  ;;  %v2441_v2 = vmul.f32 %v3795_v13, %v5115_v45 }
 0x5a4   : > { %v3797_v26 = vpop.eup %3796  ;;  %v2397_v56 = vmul.f32 0.005, %v2384_v42  ;;  %2554 = vadd.xlane.f32.xlu0 %v2553_v12  ;;  %v2557_v36 = vadd.f32 %v2556_v33, %v5280_v47 }
 0x5a5   : > { %v2477_v25 = vmul.f32 %v5174_v22, %v2440_v15  ;;  %v2478_v24 = vmul.f32 %v5177_v51, %v2441_v2  ;;  %v2442_v32 = vmul.f32 %v3797_v26, %v5118_v53  ;;  %v2443_v19 = vmul.f32 %v3797_v26, %v5121_v27 }
 0x5a6   : > { %v2410_v58 = vadd.f32 1e-05, %v2397_v56  ;;  %2558 = vadd.xlane.f32.xlu1 %v2557_v36 }
 0x5a7   : > { %v5296_v48 = vadd.f32 %v5182_v55, %v2477_v25  ;;  %v5299_v0 = vadd.f32 %v5185_v11, %v2478_v24  ;;  %v2479_v45 = vmul.f32 %v5174_v22, %v2442_v32  ;;  %v2480_v10 = vmul.f32 %v5177_v51, %v2443_v19  ;;  %v3722_v24 = vld [vmem:[%s5721_s6 + $0x24] ss:$8 sps:$4 sm:$0xff]   ;;  %v3720_v32 = vld [vmem:[%s5721_s6 + $0x20] ss:$8 sps:$4 sm:$0xff]   ;;  %v3725_v19 = vld [vmem:[%s5721_s6 + $0x34] ss:$8 sps:$4 sm:$0xff]  }
 0x5a8   : > { %3802 = vrsqrt.f32 %v2410_v58  ;;  %v3723_v58 = vld [vmem:[%s5721_s6 + $0x30] ss:$8 sps:$4 sm:$0xff]  }
 0x5a9   : > { %v2560_v61 = vsel %vm560_vm0, %v5299_v0, 0.0  ;;  %v5306_v53 = vadd.f32 %v5182_v55, %v2479_v45  ;;  %v5309_v27 = vadd.f32 %v5185_v11, %v2480_v10  ;;  %v3728_v45 = vld [vmem:[%s5721_s6 + $0x44] ss:$8 sps:$4 sm:$0xff]   ;;  %v3726_v10 = vld [vmem:[%s5721_s6 + $0x40] ss:$8 sps:$4 sm:$0xff]  }
 0x5aa   : > { %v3799_v9 = vpop.eup %3798  ;;  %v2561_v57 = vadd.f32 %v2560_v61, %v5296_v48  ;;  %v3731_v61 = vld [vmem:[%s5721_s6 + $0x54] ss:$8 sps:$4 sm:$0xff]  }
 0x5ab   : > { %v2564_v54 = vsel %vm560_vm0, %v5309_v27, 0.0  ;;  %v2444_v60 = vmul.f32 %v3799_v9, %v5134_v8  ;;  %v2445_v59 = vmul.f32 %v3799_v9, %v5137_v29  ;;  %v3729_v9 = vld [vmem:[%s5721_s6 + $0x50] ss:$8 sps:$4 sm:$0xff]  }
 0x5ac   : > { %v3801_v37 = vpop.eup %3800  ;;  %2562 = vadd.xlane.f32.xlu0 %v2561_v57  ;;  %v2565_v1 = vadd.f32 %v2564_v54, %v5306_v53  ;;  %v3734_v57 = vld [vmem:[%s5721_s6 + $0x64] ss:$8 sps:$4 sm:$0xff]   ;;  %v3732_v54 = vld [vmem:[%s5721_s6 + $0x60] ss:$8 sps:$4 sm:$0xff]  }
 0x5ad   : > { %v2481_v34 = vmul.f32 %v5174_v22, %v2444_v60  ;;  %v2482_v62 = vmul.f32 %v5177_v51, %v2445_v59  ;;  %v2446_v17 = vmul.f32 %v3801_v37, %v5140_v49  ;;  %v2447_v41 = vmul.f32 %v3801_v37, %v5143_v3 }
 0x5ae   : > { %2566 = vadd.xlane.f32.xlu1 %v2565_v1 }
 0x5af   : > { %v5322_v52 = vadd.f32 %v5182_v55, %v2481_v34  ;;  %v5325_v8 = vadd.f32 %v5185_v11, %v2482_v62  ;;  %v2483_v29 = vmul.f32 %v5174_v22, %v2446_v17  ;;  %v2484_v30 = vmul.f32 %v5177_v51, %v2447_v41 }
 0x5b1   : > { %v2568_v23 = vsel %vm560_vm0, %v5325_v8, 0.0  ;;  %v5332_v5 = vadd.f32 %v5182_v55, %v2483_v29  ;;  %v5335_v49 = vadd.f32 %v5185_v11, %v2484_v30 }
 0x5b2   : > { %v3803_v3 = vpop.eup %3802  ;;  %v2569_v13 = vadd.f32 %v2568_v23, %v5322_v52 }
 0x5b3   : > { %v2572_v12 = vsel %vm560_vm0, %v5335_v49, 0.0  ;;  %v2448_v42 = vmul.f32 %v3803_v3, %v5156_v21  ;;  %v2449_v33 = vmul.f32 %v3803_v3, %v5159_v14 }
 0x5b4   : > { %2570 = vadd.xlane.f32.xlu0 %v2569_v13  ;;  %v2573_v15 = vadd.f32 %v2572_v12, %v5332_v5 }
 0x5b5   : > { %v2485_v2 = vmul.f32 %v5174_v22, %v2448_v42  ;;  %v2486_v26 = vmul.f32 %v5177_v51, %v2449_v33  ;;  %v3714_v22 = vld [vmem:[%s5721_s6] ss:$8 sps:$4 sm:$0xff]   ;;  %v3716_v51 = vld [vmem:[%s5721_s6 + $0x4] ss:$8 sps:$4 sm:$0xff]  }
 0x5b6   : > { %2574 = vadd.xlane.f32.xlu1 %v2573_v15  ;;  %3029 = vmatprep.subr.bf16.mxu0 %v3716_v51 }
 0x5b7   : > { %v5346_v56 = vadd.f32 %v5182_v55, %v2485_v2  ;;  %v5349_v36 = vadd.f32 %v5185_v11, %v2486_v26  ;;  %v3719_v55 = vld [vmem:[%s5721_s6 + $0x14] ss:$8 sps:$4 sm:$0xff]   ;;  %3030 = vmatpush1.bf16.msra.mxu0 %v3714_v22  ;;  %v3717_v11 = vld [vmem:[%s5721_s6 + $0x10] ss:$8 sps:$4 sm:$0xff]  }
 0x5b8   : > { %3031 = vmatprep.subr.bf16.mxu0 %v3719_v55 }
 0x5b9   : > { %v2576_v25 = vsel %vm738_vm2, %v5346_v56, 0.0  ;;  %v2577_v21 = vsel %vm740_vm3, %v5349_v36, 0.0 }
 0x5ba   : > { %v2578_v14 = vadd.f32 %v2577_v21, %v2576_v25 }
 0x5bb   : > { %3032 = vmatpush1.bf16.msra.mxu0 %v3717_v11 }
 0x5bc   : > { %2579 = vadd.xlane.f32.xlu0 %v2578_v14  ;;  %3033 = vmatprep.subr.bf16.mxu0 %v3722_v24 }
 0x5bf   : > { %3034 = vmatpush1.bf16.msra.mxu0 %v3720_v32 }
 0x5c0   : > { %3035 = vmatprep.subr.bf16.mxu0 %v3725_v19 }
 0x5c3   : > { %3036 = vmatpush1.bf16.msra.mxu0 %v3723_v58 }
 0x5c4   : > { %3037 = vmatprep.subr.bf16.mxu0 %v3728_v45 }
 0x5c7   : > { %3038 = vmatpush1.bf16.msra.mxu0 %v3726_v10 }
 0x5c8   : > { %3039 = vmatprep.subr.bf16.mxu0 %v3731_v61 }
 0x5cb   : > { %3040 = vmatpush1.bf16.msra.mxu0 %v3729_v9 }
 0x5cc   : > { %3041 = vmatprep.subr.bf16.mxu0 %v3734_v57 }
 0x5cf   : > { %3042 = vmatpush1.bf16.msra.mxu0 %v3732_v54 }
 0x619   : > { %v2531_v60 = vpop.xlane.xlu0 %2530 }
 0x61a   : > { %v2581_v59 = vmul.f32 0.005, %v2531_v60 }
 0x61b   : > { %v2535_v37 = vpop.xlane.xlu1 %2534 }
 0x61c   : > { %v5398_v1 = vsub.f32 %v5192_v35, %v2581_v59  ;;  %v5401_v34 = vsub.f32 %v5195_v38, %v2581_v59  ;;  %v2582_v62 = vmul.f32 0.005, %v2535_v37  ;;  %v3737_v59 = vld [vmem:[%s5721_s6 + $0x74] ss:$8 sps:$4 sm:$0xff]  }
 0x61d   : > { %3043 = vmatprep.subr.bf16.mxu0 %v3737_v59 }
 0x61e   : > { %v5404_v17 = vsub.f32 %v5202_v16, %v2582_v62  ;;  %v5407_v41 = vsub.f32 %v5205_v43, %v2582_v62  ;;  %v2620_v29 = vmul.f32 %v5398_v1, %v5398_v1  ;;  %v2621_v30 = vmul.f32 %v5401_v34, %v5401_v34 }
 0x620   : > { %v2646_v23 = vsel %vm560_vm0, %v2621_v30, 0.0  ;;  %v2622_v35 = vmul.f32 %v5404_v17, %v5404_v17  ;;  %v2623_v38 = vmul.f32 %v5407_v41, %v5407_v41 }
 0x621   : > { %v2539_v3 = vpop.xlane.xlu0 %2538  ;;  %v2647_v16 = vadd.f32 %v2646_v23, %v2620_v29  ;;  %v3735_v29 = vld [vmem:[%s5721_s6 + $0x70] ss:$8 sps:$4 sm:$0xff]  }
 0x622   : > { %v2583_v13 = vmul.f32 0.005, %v2539_v3  ;;  %v2650_v43 = vsel %vm560_vm0, %v2623_v38, 0.0  ;;  %3044 = vmatpush1.bf16.msra.mxu0 %v3735_v29  ;;  %v2876_v29 = vld [vmem:[%s5721_s6 + $0xc0] sm:$0xff] }
 0x623   : > { %v2543_v12 = vpop.xlane.xlu1 %2542  ;;  %2648 = vadd.xlane.f32.xlu1 %v2647_v16  ;;  %v2651_v42 = vadd.f32 %v2650_v43, %v2622_v35 }
 0x624   : > { %v5420_v33 = vsub.f32 %v5218_v46, %v2583_v13  ;;  %v5423_v15 = vsub.f32 %v5221_v50, %v2583_v13  ;;  %v2584_v2 = vmul.f32 0.005, %v2543_v12  ;;  %v3738_v13 = vld [vmem:[%s5721_s6 + $0x80] ss:$8 sps:$4 sm:$0xff]  }
 0x625   : > { %2652 = vadd.xlane.f32.xlu0 %v2651_v42 }
 0x626   : > { %v5426_v26 = vsub.f32 %v5228_v6, %v2584_v2  ;;  %v5429_v25 = vsub.f32 %v5231_v4, %v2584_v2  ;;  %v2624_v21 = vmul.f32 %v5420_v33, %v5420_v33  ;;  %v2625_v14 = vmul.f32 %v5423_v15, %v5423_v15 }
 0x628   : > { %v2654_v46 = vsel %vm560_vm0, %v2625_v14, 0.0  ;;  %v2626_v50 = vmul.f32 %v5426_v26, %v5426_v26  ;;  %v2627_v22 = vmul.f32 %v5429_v25, %v5429_v25  ;;  %v3743_v14 = vld [vmem:[%s5721_s6 + $0x94] ss:$8 sps:$4 sm:$0xff]  }
 0x629   : > { %v2547_v51 = vpop.xlane.xlu0 %2546  ;;  %v2655_v6 = vadd.f32 %v2654_v46, %v2624_v21 }
 0x62a   : > { %v2585_v55 = vmul.f32 0.005, %v2547_v51  ;;  %v2658_v4 = vsel %vm560_vm0, %v2627_v22, 0.0  ;;  %v3741_v22 = vld [vmem:[%s5721_s6 + $0x90] ss:$8 sps:$4 sm:$0xff]  }
 0x62b   : > { %v2551_v11 = vpop.xlane.xlu1 %2550  ;;  %2656 = vadd.xlane.f32.xlu1 %v2655_v6  ;;  %v2659_v24 = vadd.f32 %v2658_v4, %v2626_v50 }
 0x62c   : > { %v5442_v32 = vsub.f32 %v5244_v20, %v2585_v55  ;;  %v5445_v19 = vsub.f32 %v5247_v44, %v2585_v55  ;;  %v2586_v58 = vmul.f32 0.005, %v2551_v11 }
 0x62d   : > { %2660 = vadd.xlane.f32.xlu0 %v2659_v24 }
 0x62e   : > { %v5448_v45 = vsub.f32 %v5254_v28, %v2586_v58  ;;  %v5451_v10 = vsub.f32 %v5257_v31, %v2586_v58  ;;  %v2628_v61 = vmul.f32 %v5442_v32, %v5442_v32  ;;  %v2629_v9 = vmul.f32 %v5445_v19, %v5445_v19  ;;  %v3744_v58 = vld [vmem:[%s5721_s6 + $0xa0] ss:$8 sps:$4 sm:$0xff]  }
 0x630   : > { %v2662_v20 = vsel %vm560_vm0, %v2629_v9, 0.0  ;;  %v2630_v44 = vmul.f32 %v5448_v45, %v5448_v45  ;;  %v2631_v57 = vmul.f32 %v5451_v10, %v5451_v10 }
 0x631   : > { %v2555_v54 = vpop.xlane.xlu0 %2554  ;;  %v2663_v28 = vadd.f32 %v2662_v20, %v2628_v61 }
 0x632   : > { %v2587_v60 = vmul.f32 0.005, %v2555_v54  ;;  %v2666_v31 = vsel %vm560_vm0, %v2631_v57, 0.0  ;;  %v3749_v54 = vld [vmem:[%s5721_s6 + $0xb4] ss:$8 sps:$4 sm:$0xff]  }
 0x633   : > { %v2559_v37 = vpop.xlane.xlu1 %2558  ;;  %2664 = vadd.xlane.f32.xlu1 %v2663_v28  ;;  %v2667_v62 = vadd.f32 %v2666_v31, %v2630_v44  ;;  %v3747_v31 = vld [vmem:[%s5721_s6 + $0xb0] ss:$8 sps:$4 sm:$0xff]  }
 0x634   : > { %v5470_v30 = vsub.f32 %v5270_v7, %v2587_v60  ;;  %v5473_v23 = vsub.f32 %v5273_v18, %v2587_v60  ;;  %v2588_v35 = vmul.f32 0.005, %v2559_v37  ;;  %v3740_v18 = vld [vmem:[%s5721_s6 + $0x84] ss:$8 sps:$4 sm:$0xff]  }
 0x635   : > { %2668 = vadd.xlane.f32.xlu0 %v2667_v62  ;;  %3045 = vmatprep.subr.bf16.mxu0 %v3740_v18  ;;  %v3435_v18 = vcombine.low %v2876_v29, %v2876_v29 }
 0x636   : > { %v5476_v38 = vsub.f32 %v5280_v47, %v2588_v35  ;;  %v5479_v3 = vsub.f32 %v5283_v63, %v2588_v35  ;;  %v2632_v16 = vmul.f32 %v5470_v30, %v5470_v30  ;;  %v2633_v7 = vmul.f32 %v5473_v23, %v5473_v23  ;;  %3046 = vmatpush1.bf16.msra.mxu0 %v3738_v13 }
 0x637   : > { %3047 = vmatprep.subr.bf16.mxu0 %v3743_v14 }
 0x638   : > { %v2670_v47 = vsel %vm560_vm0, %v2633_v7, 0.0  ;;  %v2634_v63 = vmul.f32 %v5476_v38, %v5476_v38  ;;  %v2635_v43 = vmul.f32 %v5479_v3, %v5479_v3  ;;  %v3436_v7 = vcombine.high %v2876_v29, %v2876_v29 }
 0x639   : > { %v2563_v12 = vpop.xlane.xlu0 %2562  ;;  %v2671_v42 = vadd.f32 %v2670_v47, %v2632_v16 }
 0x63a   : > { %v2589_v2 = vmul.f32 0.005, %v2563_v12  ;;  %v2674_v21 = vsel %vm560_vm0, %v2635_v43, 0.0  ;;  %3048 = vmatpush1.bf16.msra.mxu0 %v3741_v22 }
 0x63b   : > { %v2567_v46 = vpop.xlane.xlu1 %2566  ;;  %2672 = vadd.xlane.f32.xlu1 %v2671_v42  ;;  %v2675_v50 = vadd.f32 %v2674_v21, %v2634_v63 }
 0x63c   : > { %v5504_v51 = vsub.f32 %v5296_v48, %v2589_v2  ;;  %v5507_v6 = vsub.f32 %v5299_v0, %v2589_v2  ;;  %v2590_v55 = vmul.f32 0.005, %v2567_v46  ;;  %v3746_v0 = vld [vmem:[%s5721_s6 + $0xa4] ss:$8 sps:$4 sm:$0xff]  }
 0x63d   : > { %2676 = vadd.xlane.f32.xlu0 %v2675_v50  ;;  %3049 = vmatprep.subr.bf16.mxu0 %v3746_v0 }
 0x63e   : > { %v5510_v4 = vsub.f32 %v5306_v53, %v2590_v55  ;;  %v5513_v11 = vsub.f32 %v5309_v27, %v2590_v55  ;;  %v2636_v24 = vmul.f32 %v5504_v51, %v5504_v51  ;;  %v2637_v48 = vmul.f32 %v5507_v6, %v5507_v6  ;;  %3050 = vmatpush1.bf16.msra.mxu0 %v3744_v58 }
 0x63f   : > { %3051 = vmatprep.subr.bf16.mxu0 %v3749_v54 }
 0x640   : > { %v2678_v53 = vsel %vm560_vm0, %v2637_v48, 0.0  ;;  %v2638_v27 = vmul.f32 %v5510_v4, %v5510_v4  ;;  %v2639_v61 = vmul.f32 %v5513_v11, %v5513_v11 }
 0x641   : > { %v2571_v9 = vpop.xlane.xlu0 %2570  ;;  %v2679_v20 = vadd.f32 %v2678_v53, %v2636_v24 }
 0x642   : > { %v2591_v44 = vmul.f32 0.005, %v2571_v9  ;;  %v2682_v57 = vsel %vm560_vm0, %v2639_v61, 0.0  ;;  %3052 = vmatpush1.bf16.msra.mxu0 %v3747_v31  ;;  %v3409_v9 = vld [vmem:[%s5720_s5 + $0x6] ss:$8 sm:$0x3] }
 0x643   : > { %v2575_v28 = vpop.xlane.xlu1 %2574  ;;  %2680 = vadd.xlane.f32.xlu1 %v2679_v20  ;;  %v2683_v60 = vadd.f32 %v2682_v57, %v2638_v27  ;;  %3437 = vmatprep.subr.msk.bf16.mxu0 %vm582_vm1, %v3436_v7  ;;  %v5586_v31 = vrot.slane %v3409_v9, %v4424_v40 }
 0x644   : > { %v5538_v59 = vsub.f32 %v5322_v52, %v2591_v44  ;;  %v5541_v37 = vsub.f32 %v5325_v8, %v2591_v44  ;;  %v2592_v62 = vmul.f32 0.005, %v2575_v28  ;;  %v5580_v28 = vrot.slane %v3409_v9, %v4421_v39 }
 0x645   : > { %2684 = vadd.xlane.f32.xlu0 %v2683_v60  ;;  %v3410_v60 = vld [vmem:[%s5720_s5 + $0x7] ss:$8 sm:$0x3] }
 0x646   : > { %v5547_v35 = vsub.f32 %v5332_v5, %v2592_v62  ;;  %v5550_v16 = vsub.f32 %v5335_v49, %v2592_v62  ;;  %v2640_v52 = vmul.f32 %v5538_v59, %v5538_v59  ;;  %v2641_v8 = vmul.f32 %v5541_v37, %v5541_v37 }
 0x647   : > { %v3024_v49 = vsel %vm582_vm1, %v3435_v18, 0 }
 0x648   : > { %v2686_v13 = vsel %vm560_vm0, %v2641_v8, 0.0  ;;  %v2642_v47 = vmul.f32 %v5547_v35, %v5547_v35  ;;  %v2643_v5 = vmul.f32 %v5550_v16, %v5550_v16  ;;  %3054 = vmatpush1.bf16.msra.mxu0 %v3024_v49 }
 0x649   : > { %v2580_v63 = vpop.xlane.xlu0 %2579  ;;  %v2687_v43 = vadd.f32 %v2686_v13, %v2640_v52  ;;  %v5591_v13 = vrot.slane %v3410_v60, %v4421_v39 }
 0x64a   : > { %v2593_v12 = vmul.f32 0.005, %v2580_v63  ;;  %v2690_v42 = vsel %vm560_vm0, %v2643_v5, 0.0 }
 0x64b   : > { %2688 = vadd.xlane.f32.xlu1 %v2687_v43  ;;  %v2691_v2 = vadd.f32 %v2690_v42, %v2642_v47  ;;  %v5594_v47 = vrot.slane %v3410_v60, %v4424_v40 }
 0x64c   : > { %v5565_v21 = vsub.f32 %v5346_v56, %v2593_v12  ;;  %v5568_v14 = vsub.f32 %v5349_v36, %v2593_v12 }
 0x64d   : > { %2692 = vadd.xlane.f32.xlu0 %v2691_v2 }
 0x64e   : > { %v2644_v46 = vmul.f32 %v5565_v21, %v5565_v21  ;;  %v2645_v50 = vmul.f32 %v5568_v14, %v5568_v14 }
 0x650   : > { %v2694_v22 = vsel %vm738_vm2, %v2644_v46, 0.0  ;;  %v2695_v55 = vsel %vm740_vm3, %v2645_v50, 0.0 }
 0x651   : > { %v2696_v24 = vadd.f32 %v2695_v55, %v2694_v22 }
 0x653   : > { %2697 = vadd.xlane.f32.xlu1 %v2696_v24 }
 0x6b0   : > { %v2649_v48 = vpop.xlane.xlu1 %2648 }
 0x6b1   : > { %v2699_v0 = vmul.f32 0.005, %v2649_v48 }
 0x6b2   : > { %v2653_v56 = vpop.xlane.xlu0 %2652 }
 0x6b3   : > { %v2712_v58 = vadd.f32 1e-05, %v2699_v0  ;;  %v2700_v53 = vmul.f32 0.005, %v2653_v56 }
 0x6b5   : > { %3804 = vrsqrt.f32 %v2712_v58  ;;  %v2713_v36 = vadd.f32 1e-05, %v2700_v53 }
 0x6b7   : > { %3806 = vrsqrt.f32 %v2713_v36 }
 0x6b8   : > { %v2657_v27 = vpop.xlane.xlu1 %2656 }
 0x6b9   : > { %v2701_v61 = vmul.f32 0.005, %v2657_v27 }
 0x6ba   : > { %v2661_v20 = vpop.xlane.xlu0 %2660 }
 0x6bb   : > { %v2714_v44 = vadd.f32 1e-05, %v2701_v61  ;;  %v2702_v57 = vmul.f32 0.005, %v2661_v20 }
 0x6bd   : > { %3808 = vrsqrt.f32 %v2714_v44  ;;  %v2715_v54 = vadd.f32 1e-05, %v2702_v57 }
 0x6bf   : > { %v3805_v62 = vpop.eup %3804  ;;  %3810 = vrsqrt.f32 %v2715_v54 }
 0x6c0   : > { %v2738_v29 = vmul.f32 %v3805_v62, %v5398_v1  ;;  %v2739_v52 = vmul.f32 %v3805_v62, %v5401_v34  ;;  %v2665_v8 = vpop.xlane.xlu1 %2664 }
 0x6c1   : > { %v3807_v7 = vpop.eup %3806  ;;  %v2703_v18 = vmul.f32 0.005, %v2665_v8 }
 0x6c2   : > { %v2775_v5 = vmul.f32 %v5580_v28, %v2738_v29  ;;  %v2740_v63 = vmul.f32 %v3807_v7, %v5404_v17  ;;  %v2741_v43 = vmul.f32 %v3807_v7, %v5407_v41  ;;  %v2669_v49 = vpop.xlane.xlu0 %2668  ;;  %v2776_v1 = vmul.f32 %v5586_v31, %v2739_v52 }
 0x6c3   : > { %v2716_v12 = vadd.f32 1e-05, %v2703_v18  ;;  %v2704_v34 = vmul.f32 0.005, %v2669_v49 }
 0x6c4   : > { %v2777_v42 = vmul.f32 %v5580_v28, %v2740_v63  ;;  %v2778_v2 = vmul.f32 %v5586_v31, %v2741_v43  ;;  %v2813_v40 = vadd.f32 %v5594_v47, %v2776_v1  ;;  %v2812_v50 = vadd.f32 %v5591_v13, %v2775_v5 }
 0x6c5   : > { %3812 = vrsqrt.f32 %v2716_v12  ;;  %v2717_v39 = vadd.f32 1e-05, %v2704_v34 }
 0x6c6   : > { %v2815_v46 = vadd.f32 %v5594_v47, %v2778_v2  ;;  %v2814_v17 = vadd.f32 %v5591_v13, %v2777_v42 }
 0x6c7   : > { %v3809_v41 = vpop.eup %3808  ;;  %3814 = vrsqrt.f32 %v2717_v39 }
 0x6c8   : > { %v2743_v22 = vmul.f32 %v3809_v41, %v5423_v15  ;;  %v2673_v55 = vpop.xlane.xlu1 %2672  ;;  %v2839_v24 = vpack.c.bf16 %v2815_v46, %v2813_v40  ;;  %v2838_v48 = vpack.c.bf16 %v2814_v17, %v2812_v50  ;;  %v2742_v0 = vmul.f32 %v3809_v41, %v5420_v33 }
 0x6c9   : > { %v3811_v56 = vpop.eup %3810  ;;  %v2705_v58 = vmul.f32 0.005, %v2673_v55 }
 0x6ca   : > { %v2745_v53 = vmul.f32 %v3811_v56, %v5429_v25  ;;  %3438 = vmatprep.mubr.msk.bf16.mxu0 %vm560_vm0, %v2839_v24  ;;  %v2677_v36 = vpop.xlane.xlu0 %2676  ;;  %v2780_v27 = vmul.f32 %v5586_v31, %v2743_v22  ;;  %v2744_v61 = vmul.f32 %v3811_v56, %v5426_v26  ;;  %v2779_v9 = vmul.f32 %v5580_v28, %v2742_v0 }
 0x6cb   : > { %v2718_v20 = vadd.f32 1e-05, %v2705_v58  ;;  %v2706_v15 = vmul.f32 0.005, %v2677_v36  ;;  %3062 = vmatmul.mubr.bf16.vlgmr.msra.gmra.mrb[56].mxu0 %v2838_v48 }
 0x6cc   : > { %v2782_v44 = vmul.f32 %v5586_v31, %v2745_v53  ;;  %v2781_v33 = vmul.f32 %v5580_v28, %v2744_v61  ;;  %v2817_v25 = vadd.f32 %v5594_v47, %v2780_v27  ;;  %v2816_v60 = vadd.f32 %v5591_v13, %v2779_v9 }
 0x6cd   : > { %3816 = vrsqrt.f32 %v2718_v20  ;;  %v2719_v57 = vadd.f32 1e-05, %v2706_v15 }
 0x6ce   : > { %v2819_v54 = vadd.f32 %v5594_v47, %v2782_v44  ;;  %v2818_v62 = vadd.f32 %v5591_v13, %v2781_v33 }
 0x6cf   : > { %v3813_v26 = vpop.eup %3812  ;;  %3818 = vrsqrt.f32 %v2719_v57 }
 0x6d0   : > { %v2747_v29 = vmul.f32 %v3813_v26, %v5445_v19  ;;  %v2681_v52 = vpop.xlane.xlu1 %2680  ;;  %v2841_v8 = vpack.c.bf16 %v2819_v54, %v2817_v25  ;;  %v2840_v7 = vpack.c.bf16 %v2818_v62, %v2816_v60  ;;  %v2746_v18 = vmul.f32 %v3813_v26, %v5442_v32 }
 0x6d1   : > { %v3815_v5 = vpop.eup %3814  ;;  %v2707_v63 = vmul.f32 0.005, %v2681_v52 }
 0x6d2   : > { %v2749_v43 = vmul.f32 %v3815_v5, %v5451_v10  ;;  %3439 = vmatprep.mubr.msk.bf16.mxu0 %vm560_vm0, %v2841_v8  ;;  %v2685_v49 = vpop.xlane.xlu0 %2684  ;;  %v2784_v1 = vmul.f32 %v5586_v31, %v2747_v29  ;;  %v2748_v12 = vmul.f32 %v3815_v5, %v5448_v45  ;;  %v2783_v34 = vmul.f32 %v5580_v28, %v2746_v18 }
 0x6d3   : > { %v2720_v42 = vadd.f32 1e-05, %v2707_v63  ;;  %v2708_v19 = vmul.f32 0.005, %v2685_v49  ;;  %3072 = vmatmul.mubr.bf16.gmra.mrb[60].mxu0 %v2840_v7 }
 0x6d4   : > { %v2786_v2 = vmul.f32 %v5586_v31, %v2749_v43  ;;  %v2785_v32 = vmul.f32 %v5580_v28, %v2748_v12  ;;  %v2821_v10 = vadd.f32 %v5594_v47, %v2784_v1  ;;  %v2820_v46 = vadd.f32 %v5591_v13, %v2783_v34 }
 0x6d5   : > { %3820 = vrsqrt.f32 %v2720_v42  ;;  %v2721_v39 = vadd.f32 1e-05, %v2708_v19 }
 0x6d6   : > { %v2823_v40 = vadd.f32 %v5594_v47, %v2786_v2  ;;  %v2822_v50 = vadd.f32 %v5591_v13, %v2785_v32 }
 0x6d7   : > { %v3817_v45 = vpop.eup %3816  ;;  %3822 = vrsqrt.f32 %v2721_v39 }
 0x6d8   : > { %v2751_v17 = vmul.f32 %v3817_v45, %v5473_v23  ;;  %v2689_v41 = vpop.xlane.xlu1 %2688  ;;  %v2843_v22 = vpack.c.bf16 %v2823_v40, %v2821_v10  ;;  %v2842_v55 = vpack.c.bf16 %v2822_v50, %v2820_v46  ;;  %v2750_v24 = vmul.f32 %v3817_v45, %v5470_v30 }
 0x6d9   : > { %v3819_v48 = vpop.eup %3818  ;;  %v2709_v0 = vmul.f32 0.005, %v2689_v41 }
 0x6da   : > { %v2753_v56 = vmul.f32 %v3819_v48, %v5479_v3  ;;  %3440 = vmatprep.mubr.msk.bf16.mxu0 %vm560_vm0, %v2843_v22  ;;  %v2693_v58 = vpop.xlane.xlu0 %2692  ;;  %v2788_v53 = vmul.f32 %v5586_v31, %v2751_v17  ;;  %v2752_v36 = vmul.f32 %v3819_v48, %v5476_v38  ;;  %v2787_v27 = vmul.f32 %v5580_v28, %v2750_v24 }
 0x6db   : > { %v2722_v61 = vadd.f32 1e-05, %v2709_v0  ;;  %v2710_v23 = vmul.f32 0.005, %v2693_v58  ;;  %3082 = vmatmul.mubr.bf16.gmra.mrb[64].mxu0 %v2842_v55 }
 0x6dc   : > { %v2790_v9 = vmul.f32 %v5586_v31, %v2753_v56  ;;  %v2789_v30 = vmul.f32 %v5580_v28, %v2752_v36  ;;  %v2825_v3 = vadd.f32 %v5594_v47, %v2788_v53  ;;  %v2824_v44 = vadd.f32 %v5591_v13, %v2787_v27 }
 0x6dd   : > { %3824 = vrsqrt.f32 %v2722_v61  ;;  %v2723_v20 = vadd.f32 1e-05, %v2710_v23 }
 0x6de   : > { %v2827_v15 = vadd.f32 %v5594_v47, %v2790_v9  ;;  %v2826_v33 = vadd.f32 %v5591_v13, %v2789_v30 }
 0x6df   : > { %v3821_v38 = vpop.eup %3820  ;;  %3826 = vrsqrt.f32 %v2723_v20 }
 0x6e0   : > { %v2755_v57 = vmul.f32 %v3821_v38, %v5507_v6  ;;  %v2698_v25 = vpop.xlane.xlu1 %2697  ;;  %v2845_v54 = vpack.c.bf16 %v2827_v15, %v2825_v3  ;;  %v2844_v60 = vpack.c.bf16 %v2826_v33, %v2824_v44  ;;  %v2754_v62 = vmul.f32 %v3821_v38, %v5504_v51 }
 0x6e1   : > { %v3823_v26 = vpop.eup %3822  ;;  %v2711_v29 = vmul.f32 0.005, %v2698_v25 }
 0x6e2   : > { %v2757_v52 = vmul.f32 %v3823_v26, %v5513_v11  ;;  %3441 = vmatprep.mubr.msk.bf16.mxu0 %vm560_vm0, %v2845_v54  ;;  %v2792_v8 = vmul.f32 %v5586_v31, %v2755_v57  ;;  %v2756_v7 = vmul.f32 %v3823_v26, %v5510_v4  ;;  %v2791_v18 = vmul.f32 %v5580_v28, %v2754_v62 }
 0x6e3   : > { %v2724_v5 = vadd.f32 1e-05, %v2711_v29  ;;  %3092 = vmatmul.mubr.bf16.gmra.mrb[68].mxu0 %v2844_v60 }
 0x6e4   : > { %v2794_v6 = vmul.f32 %v5586_v31, %v2757_v52  ;;  %v2793_v63 = vmul.f32 %v5580_v28, %v2756_v7  ;;  %v2829_v51 = vadd.f32 %v5594_v47, %v2792_v8  ;;  %v2828_v11 = vadd.f32 %v5591_v13, %v2791_v18 }
 0x6e5   : > { %3828 = vrsqrt.f32 %v2724_v5 }
 0x6e6   : > { %v2831_v43 = vadd.f32 %v5594_v47, %v2794_v6  ;;  %v2830_v49 = vadd.f32 %v5591_v13, %v2793_v63 }
 0x6e7   : > { %v3825_v1 = vpop.eup %3824 }
 0x6e8   : > { %v2759_v4 = vmul.f32 %v3825_v1, %v5541_v37  ;;  %v2847_v12 = vpack.c.bf16 %v2831_v43, %v2829_v51  ;;  %v2846_v34 = vpack.c.bf16 %v2830_v49, %v2828_v11  ;;  %v2758_v42 = vmul.f32 %v3825_v1, %v5538_v59 }
 0x6e9   : > { %v3827_v19 = vpop.eup %3826 }
 0x6ea   : > { %v2761_v2 = vmul.f32 %v3827_v19, %v5550_v16  ;;  %3442 = vmatprep.mubr.msk.bf16.mxu0 %vm560_vm0, %v2847_v12  ;;  %v2796_v32 = vmul.f32 %v5586_v31, %v2759_v4  ;;  %v2760_v39 = vmul.f32 %v3827_v19, %v5547_v35  ;;  %v2795_v10 = vmul.f32 %v5580_v28, %v2758_v42 }
 0x6eb   : > { %3102 = vmatmul.mubr.bf16.gmra.mrb[72].mxu0 %v2846_v34 }
 0x6ec   : > { %v2798_v40 = vmul.f32 %v5586_v31, %v2761_v2  ;;  %v2797_v37 = vmul.f32 %v5580_v28, %v2760_v39  ;;  %v2833_v46 = vadd.f32 %v5594_v47, %v2796_v32  ;;  %v2832_v50 = vadd.f32 %v5591_v13, %v2795_v10 }
 0x6ee   : > { %v2835_v59 = vadd.f32 %v5594_v47, %v2798_v40  ;;  %v2834_v16 = vadd.f32 %v5591_v13, %v2797_v37 }
 0x6ef   : > { %v3829_v45 = vpop.eup %3828 }
 0x6f0   : > { %v2763_v17 = vmul.f32 %v3829_v45, %v5568_v14  ;;  %v2849_v35 = vpack.c.bf16 %v2835_v59, %v2833_v46  ;;  %v2848_v41 = vpack.c.bf16 %v2834_v16, %v2832_v50  ;;  %v2762_v22 = vmul.f32 %v3829_v45, %v5565_v21 }
 0x6f2   : > { %3443 = vmatprep.mubr.msk.bf16.mxu0 %vm560_vm0, %v2849_v35  ;;  %v2800_v55 = vmul.f32 %v5586_v31, %v2763_v17  ;;  %v2799_v24 = vmul.f32 %v5580_v28, %v2762_v22 }
 0x6f3   : > { %3112 = vmatmul.mubr.bf16.gmra.mrb[76].mxu0 %v2848_v41 }
 0x6f4   : > { %v2837_v48 = vadd.f32 %v5594_v47, %v2800_v55  ;;  %v2836_v0 = vadd.f32 %v5591_v13, %v2799_v24 }
 0x6f6   : > { %v2851_v56 = vpack.c.bf16 %v2837_v48, %v2837_v48  ;;  %v2850_v58 = vpack.c.bf16 %v2836_v0, %v2836_v0 }
 0x6f8   : > { %3444 = vmatprep.mubr.msk.bf16.mxu0 %vm560_vm0, %v2851_v56 }
 0x6fb   : > { %3122 = vmatmul.mubr.bf16.gmra.mrb[80].mxu0 %v2850_v58 }
 0x79e   : > { %v3063_v21 = vpop.f32.mrb[56].mxu0 }
 0x79f   : > { %3130 = vst [vmem:[%s5684_s30] sm:$0xff] %v3063_v21  ;;  %v3065_v14 = vpop.f32.mrb[57].mxu0 }
 0x7a0   : > { %3131 = vst [vmem:[%s5684_s30 + $0x8] sm:$0xff] %v3065_v14  ;;  %v3067_v28 = vpop.f32.mrb[58].mxu0 }
 0x7a1   : > { %3132 = vst [vmem:[%s5684_s30 + $0x10] sm:$0xff] %v3067_v28  ;;  %v3069_v31 = vpop.f32.mrb[59].mxu0 }
 0x7a2   : > { %3133 = vst [vmem:[%s5684_s30 + $0x18] sm:$0xff] %v3069_v31 }
 0x7a6   : > { %v3073_v13 = vpop.f32.mrb[60].mxu0 }
 0x7a7   : > { %3134 = vst [vmem:[%s5684_s30 + $0x20] sm:$0xff] %v3073_v13  ;;  %v3075_v47 = vpop.f32.mrb[61].mxu0 }
 0x7a8   : > { %3135 = vst [vmem:[%s5684_s30 + $0x28] sm:$0xff] %v3075_v47  ;;  %v3077_v53 = vpop.f32.mrb[62].mxu0 }
 0x7a9   : > { %3136 = vst [vmem:[%s5684_s30 + $0x30] sm:$0xff] %v3077_v53  ;;  %v3079_v36 = vpop.f32.mrb[63].mxu0 }
 0x7aa   : > { %3137 = vst [vmem:[%s5684_s30 + $0x38] sm:$0xff] %v3079_v36 }
 0x7ae   : > { %v3083_v27 = vpop.f32.mrb[64].mxu0 }
 0x7af   : > { %3138 = vst [vmem:[%s5684_s30 + $0x40] sm:$0xff] %v3083_v27  ;;  %v3085_v61 = vpop.f32.mrb[65].mxu0 }
 0x7b0   : > { %3139 = vst [vmem:[%s5684_s30 + $0x48] sm:$0xff] %v3085_v61  ;;  %v3087_v23 = vpop.f32.mrb[66].mxu0 }
 0x7b1   : > { %3140 = vst [vmem:[%s5684_s30 + $0x50] sm:$0xff] %v3087_v23  ;;  %v3089_v9 = vpop.f32.mrb[67].mxu0 }
 0x7b2   : > { %3141 = vst [vmem:[%s5684_s30 + $0x58] sm:$0xff] %v3089_v9 }
 0x7b6   : > { %v3093_v30 = vpop.f32.mrb[68].mxu0 }
 0x7b7   : > { %3142 = vst [vmem:[%s5684_s30 + $0x60] sm:$0xff] %v3093_v30  ;;  %v3095_v20 = vpop.f32.mrb[69].mxu0 }
 0x7b8   : > { %3143 = vst [vmem:[%s5684_s30 + $0x68] sm:$0xff] %v3095_v20  ;;  %v3097_v3 = vpop.f32.mrb[70].mxu0 }
 0x7b9   : > { %3144 = vst [vmem:[%s5684_s30 + $0x70] sm:$0xff] %v3097_v3  ;;  %v3099_v15 = vpop.f32.mrb[71].mxu0 }
 0x7ba   : > { %3145 = vst [vmem:[%s5684_s30 + $0x78] sm:$0xff] %v3099_v15 }
 0x7be   : > { %v3103_v44 = vpop.f32.mrb[72].mxu0 }
 0x7bf   : > { %3146 = vst [vmem:[%s5684_s30 + $0x80] sm:$0xff] %v3103_v44  ;;  %v3105_v33 = vpop.f32.mrb[73].mxu0 }
 0x7c0   : > { %3147 = vst [vmem:[%s5684_s30 + $0x88] sm:$0xff] %v3105_v33  ;;  %v3107_v38 = vpop.f32.mrb[74].mxu0 }
 0x7c1   : > { %3148 = vst [vmem:[%s5684_s30 + $0x90] sm:$0xff] %v3107_v38  ;;  %v3109_v57 = vpop.f32.mrb[75].mxu0 }
 0x7c2   : > { %3149 = vst [vmem:[%s5684_s30 + $0x98] sm:$0xff] %v3109_v57 }
 0x7c6   : > { %v3113_v25 = vpop.f32.mrb[76].mxu0 }
 0x7c7   : > { %3150 = vst [vmem:[%s5684_s30 + $0xa0] sm:$0xff] %v3113_v25  ;;  %v3115_v54 = vpop.f32.mrb[77].mxu0 }
 0x7c8   : > { %3151 = vst [vmem:[%s5684_s30 + $0xa8] sm:$0xff] %v3115_v54  ;;  %v3117_v60 = vpop.f32.mrb[78].mxu0 }
 0x7c9   : > { %3152 = vst [vmem:[%s5684_s30 + $0xb0] sm:$0xff] %v3117_v60  ;;  %v3119_v62 = vpop.f32.mrb[79].mxu0 }
 0x7ca   : > { %3153 = vst [vmem:[%s5684_s30 + $0xb8] sm:$0xff] %v3119_v62 }
 0x7ce   : > { %v3123_v26 = vpop.f32.mrb[80].mxu0 }
 0x7cf   : > { %3154 = vst [vmem:[%s5684_s30 + $0xc0] sm:$0x7] %v3123_v26  ;;  %v3125_v29 = vpop.f32.mrb[81].mxu0 }
 0x7d0   : > { %3155 = vst [vmem:[%s5684_s30 + $0xc8] sm:$0x7] %v3125_v29  ;;  %v3127_v52 = vpop.f32.mrb[82].mxu0 }
 0x7d1   : > { %v3128_v8 = vpop.f32.mrb[83].mxu0 }
 0x7d2 PF: > { %s17_s24 = sadd.s32 1, %s3836_s24  }
 0x7d3   : > { %p14_p4 = scmp.ge.s32.totalorder %s17_s24, 4  }
 0x7d5   :  { %16 = sbr.rel (!%p14_p4) target bundleno = 1 (0x1), region = 88 }

</bundles_post_ra>
